<compile_context>
chip_gen: v7x
topology: tpu7x:2x2x1
jax: 0.10.0
libtpu: 0.0.40
codegen_flags: <defaults>
</compile_context>

<pallas_src>
import functools

import jax
import jax.numpy as jnp
from jax import lax
from jax.experimental import pallas as pl
from jax.experimental.pallas import tpu as pltpu

C_REAL = 64                     # real stage-0 channel count (blocks_sizes[0])
C_PAD = 128                     # channels padded to a full 128-lane vreg row
ACT_DTYPE = jnp.bfloat16        # internal activation dtype
_VMEM_LIMIT = 32 * 1024 * 1024  # per-step working set is ~2 MiB; generous budget


# ------------------------------- helpers -----------------------------------

def _round_up(x, m):
    return (x + m - 1) // m * m


def _cdiv(a, b):
    return -(-a // b)


def _cparams(n_parallel_axes):
    return pltpu.CompilerParams(
        dimension_semantics=("parallel",) * n_parallel_axes,
        vmem_limit_bytes=_VMEM_LIMIT)


def _tile_m(m, max_tm=512):
    """M tile for the gate GEMM: big tiles, grid >= 2 when possible."""
    for t in (max_tm, 256, 128, 64, 32, 16, 8):
        if m >= 2 * t:
            return t, _round_up(m, t)
    t = max(_round_up(m, 8), 8)
    return t, t


def _plan_block_tiles(G, m_need):
    """Pick (TM, chunk, H1, H2) for the fused basic-block kernel.

    H1 = conv1-intermediate halo rows (>= 2G, multiple of chunk);
    H2 = activation-window halo rows (H1 + ~2G); both must fit inside one TM tile
    so the halo can be streamed as the next activation tile.
    """
    g2 = 2 * G
    fallback = None
    for tm in (512, 256, 128, 64, 32, 16, 8):
        for ch in (128, 64, 32, 16, 8):
            if ch > tm or tm % ch:
                continue
            h1 = _round_up(g2, ch)
            h2 = h1 + _round_up(g2, 8)
            if h2 <= tm:
                if fallback is None:
                    fallback = (tm, ch, h1, h2)
                if _cdiv(m_need, tm) >= 2:      # grid >= 2 (v7x 2-core sharding)
                    return tm, ch, h1, h2
                break
    if fallback is None:
        # TODO(synk): support very wide planes by splitting the W axis.
        raise ValueError("plane row width too large for the fused block tiles")
    return fallback


# ----------------------------- Pallas kernels -------------------------------

def _gemm_bn_kernel(x_ref, w_ref, scale_ref, bias_ref, o_ref, *, relu):
    # (TM, K)bf16 @ (K, 128)bf16 on the MXU, f32 accumulate; folded-BN affine
    # + optional ReLU fused; lane-dense 128-wide store.
    acc = jnp.dot(x_ref[...], w_ref[...], preferred_element_type=jnp.float32)
    y = acc * scale_ref[...] + bias_ref[...]
    if relu:
        y = jnp.maximum(y, 0.0)
    o_ref[...] = y.astype(o_ref.dtype)


def _maxpool_kernel(xe_ref, xo_ref, o_ref):
    # xe/xo: (1, Ho+1, 2, Wo+1, C) even/odd-column parity planes of the -inf
    # padded input with rows grouped in stride-2 pairs.  All 9 pooling taps are
    # plain shifted slices; no (9, M, C) tap stack ever exists in HBM.
    ho, wo = o_ref.shape[1], o_ref.shape[2]
    xe = xe_ref[0]
    xo = xo_ref[0]

    def row3(e_rows, o_rows):                       # 3-tap max along W
        m = jnp.maximum(e_rows[:, :wo, :], o_rows[:, :wo, :])
        return jnp.maximum(m, e_rows[:, 1:wo + 1, :])

    m = row3(xe[:ho, 0], xo[:ho, 0])                # input rows 2*oy
    m = jnp.maximum(m, row3(xe[:ho, 1], xo[:ho, 1]))          # rows 2*oy+1
    m = jnp.maximum(m, row3(xe[1:ho + 1, 0], xo[1:ho + 1, 0]))  # rows 2*oy+2
    o_ref[0] = m


def _interior_mask(first_row, n, m0, hp, wp):
    """(n,1) f32 0/1 mask: 1 iff plane row (first_row + i) is an interior row.

    Uses f32 floor-division (all values << 2^24, divisors small, so floors are
    exact) to avoid integer vector div/mod in the kernel.
    """
    rows = first_row + lax.broadcasted_iota(jnp.int32, (n, 1), 0)
    rf = rows.astype(jnp.float32)
    hw = float(hp * wp)
    img = jnp.floor(rf / hw)
    q = rf - img * hw                       # flat position within one image plane
    py = jnp.floor(q / float(wp))
    px = q - py * float(wp)
    ok = (rows >= 0) & (rows < m0)
    ok = ok & (py >= 1.0) & (py <= float(hp - 2))
    ok = ok & (px >= 1.0) & (px <= float(wp - 2))
    return ok.astype(jnp.float32)


def _basic_block_kernel(xa_ref, xb_ref, w1_ref, s1_ref, b1_ref,
                        w2_ref, s2_ref, b2_ref, o_ref, xwin, tbuf, *,
                        tm, ch, g, h1, h2, f_in, m0, hp, wp):
    """Fused ResNetBasicBlock over the guarded flattened plane.

    Input rows X[r] (front guard f_in); output rows Y[r] land with guard f_in-2G.
    conv1 intermediate (tm + h1 rows) lives only in VMEM scratch (tbuf); the
    identity residual comes for free out of the streamed activation window.
    """
    cp = o_ref.shape[-1]
    g2 = 2 * g
    offs = tuple(ky * wp + kx for ky in range(3) for kx in range(3))
    r0 = pl.program_id(0) * tm

    # Stitch this step's activation window (tm + h2 rows): own tile + next tile.
    xwin[pl.ds(0, tm), :] = xa_ref[...]
    xwin[pl.ds(tm, h2), :] = xb_ref[pl.ds(0, h2), :]

    # conv1 + BN1 + ReLU; non-interior rows are zeroed (== conv2's zero padding).
    for c in range(0, tm + h1, ch):
        acc = jnp.zeros((ch, cp), jnp.float32)
        for t, off in enumerate(offs):
            acc = acc + jnp.dot(xwin[pl.ds(c + off, ch), :], w1_ref[t],
                                preferred_element_type=jnp.float32)
        y = jnp.maximum(acc * s1_ref[...] + b1_ref[...], 0.0)
        y = y * _interior_mask(r0 + c + g - f_in, ch, m0, hp, wp)
        tbuf[pl.ds(c, ch), :] = y.astype(tbuf.dtype)

    # conv2 + BN2 + identity residual + ReLU; zero non-interior output rows.
    for c in range(0, tm, ch):
        acc = jnp.zeros((ch, cp), jnp.float32)
        for t, off in enumerate(offs):
            acc = acc + jnp.dot(tbuf[pl.ds(c + off, ch), :], w2_ref[t],
                                preferred_element_type=jnp.float32)
        res = xwin[pl.ds(c + g2, ch), :].astype(jnp.float32)
        y = jnp.maximum(acc * s2_ref[...] + b2_ref[...] + res, 0.0)
        y = y * _interior_mask(r0 + c + g2 - f_in, ch, m0, hp, wp)
        o_ref[pl.ds(c, ch), :] = y.astype(o_ref.dtype)


# ------------------------------- wrappers -----------------------------------

def gemm_bn(patches, w, scale, bias, relu=True):
    """patches:(M,K)bf16  w:(K,128)bf16  scale/bias:(1,128)f32 -> (M,128)bf16."""
    M, K = patches.shape
    Cp = w.shape[1]
    TM, Mp = _tile_m(M)
    if Mp != M:
        patches = jnp.pad(patches, ((0, Mp - M), (0, 0)))
    out = pl.pallas_call(
        functools.partial(_gemm_bn_kernel, relu=relu),
        out_shape=jax.ShapeDtypeStruct((Mp, Cp), ACT_DTYPE),
        grid=(Mp // TM,),
        in_specs=[
            pl.BlockSpec((TM, K), lambda i: (i, 0)),
            pl.BlockSpec((K, Cp), lambda i: (0, 0)),   # small constant operands;
            pl.BlockSpec((1, Cp), lambda i: (0, 0)),   # default double-buffering
            pl.BlockSpec((1, Cp), lambda i: (0, 0)),   # is harmless (<0.1 MiB)
        ],
        out_specs=pl.BlockSpec((TM, Cp), lambda i: (i, 0)),
        compiler_params=_cparams(1),
    )(patches, w, scale, bias)
    return out[:M]


def maxpool3x3_s2_p1(x):
    """3x3 / stride-2 / pad-1 max pool, computed in-kernel from parity planes."""
    N, H, W, C = x.shape
    Ho = (H - 1) // 2 + 1
    Wo = (W - 1) // 2 + 1
    Hp, Wp = 2 * (Ho + 1), 2 * (Wo + 1)
    xp = jnp.pad(x, ((0, 0), (1, Hp - 1 - H), (1, Wp - 1 - W), (0, 0)),
                 constant_values=-jnp.inf)   # PyTorch maxpool ignores padding
    # Even/odd column planes; stride-2 rows become a free contiguous reshape.
    xe = xp[:, :, 0::2, :].reshape(N, Ho + 1, 2, Wo + 1, C)
    xo = xp[:, :, 1::2, :].reshape(N, Ho + 1, 2, Wo + 1, C)
    # TODO(synk): block the grid over output-row groups as well for very large
    #             frames (per-image blocks are a few MiB at ResNet scale).
    return pl.pallas_call(
        _maxpool_kernel,
        out_shape=jax.ShapeDtypeStruct((N, Ho, Wo, C), x.dtype),
        grid=(N,),
        in_specs=[pl.BlockSpec((1, Ho + 1, 2, Wo + 1, C),
                               lambda n: (n, 0, 0, 0, 0)),
                  pl.BlockSpec((1, Ho + 1, 2, Wo + 1, C),
                               lambda n: (n, 0, 0, 0, 0))],
        out_specs=pl.BlockSpec((1, Ho, Wo, C), lambda n: (n, 0, 0, 0)),
        compiler_params=_cparams(1),
    )(xe, xo)


def basic_block(x_flat, bp, *, f_in, out_len, tm, ch, h1, h2, g, m0, hp, wp):
    """One fused ResNetBasicBlock over the guarded flattened plane."""
    l_in, cp = x_flat.shape
    assert out_len % tm == 0 and l_in >= out_len + tm, (l_in, out_len, tm)
    kernel = functools.partial(_basic_block_kernel, tm=tm, ch=ch, g=g, h1=h1,
                               h2=h2, f_in=f_in, m0=m0, hp=hp, wp=wp)
    return pl.pallas_call(
        kernel,
        out_shape=jax.ShapeDtypeStruct((out_len, cp), ACT_DTYPE),
        grid=(out_len // tm,),
        in_specs=[
            pl.BlockSpec((tm, cp), lambda i: (i, 0)),        # activation tile i
            pl.BlockSpec((tm, cp), lambda i: (i + 1, 0)),    # next tile (halo)
            pl.BlockSpec((9, cp, cp), lambda i: (0, 0, 0)),  # conv1 tap weights
            pl.BlockSpec((1, cp), lambda i: (0, 0)),
            pl.BlockSpec((1, cp), lambda i: (0, 0)),
            pl.BlockSpec((9, cp, cp), lambda i: (0, 0, 0)),  # conv2 tap weights
            pl.BlockSpec((1, cp), lambda i: (0, 0)),
            pl.BlockSpec((1, cp), lambda i: (0, 0)),
        ],
        out_specs=pl.BlockSpec((tm, cp), lambda i: (i, 0)),
        scratch_shapes=[pltpu.VMEM((tm + h2, cp), ACT_DTYPE),   # activation window
                        pltpu.VMEM((tm + h1, cp), ACT_DTYPE)],  # conv1 intermediate
        compiler_params=_cparams(1),
    )(x_flat, x_flat, bp["w1"], bp["scale1"], bp["bias1"],
      bp["w2"], bp["scale2"], bp["bias2"])


# --------------------------- weight preparation ------------------------------

def im2col(x, k, stride, pad, k_pad=None):
    """Conv patches in (ky,kx,cin) feature order; optional zero-pad of K."""
    N, H, W, C = x.shape
    Ho = (H + 2 * pad - k) // stride + 1
    Wo = (W + 2 * pad - k) // stride + 1
    xp = jnp.pad(x, ((0, 0), (pad, pad), (pad, pad), (0, 0)))
    cols = [xp[:, ky:ky + stride * Ho:stride, kx:kx + stride * Wo:stride, :]
            for ky in range(k) for kx in range(k)]
    patches = jnp.concatenate(cols, axis=-1).reshape(N * Ho * Wo, k * k * C)
    if k_pad is not None and k_pad > patches.shape[1]:
        patches = jnp.pad(patches, ((0, 0), (0, k_pad - patches.shape[1])))
    return patches, (N, Ho, Wo)


def fold_bn(gamma, beta, mean, var, eps=1e-5):
    scale = gamma / jnp.sqrt(var + eps)
    bias = beta - mean * scale
    return scale, bias


def _pad_vec(v, cpad):
    return jnp.pad(v, (0, cpad - v.shape[0])).reshape(1, cpad).astype(jnp.float32)


def prepare_params(params, cpad=C_PAD):
    """One-time prep: fold BN, reshape weights to tap/GEMM layouts, pad, bf16."""
    prep = {}
    w = params["gate_conv"]                             # (Cout, Cin, 7, 7)
    cout, cin, kh, kw = w.shape
    w2 = jnp.transpose(w, (2, 3, 1, 0)).reshape(kh * kw * cin, cout)
    kp = _round_up(kh * kw * cin, 8)                    # 147 -> 152 (not 256)
    w2 = jnp.pad(w2, ((0, kp - kh * kw * cin), (0, cpad - cout)))
    s, b = fold_bn(*params["gate_bn"])
    prep["gate"] = {"w": w2.astype(jnp.bfloat16),
                    "scale": _pad_vec(s, cpad), "bias": _pad_vec(b, cpad)}
    for blk in ("block1", "block2"):
        bp, d = params[blk], {}
        for j in ("1", "2"):
            w = bp["conv" + j]                          # (Cout, Cin, 3, 3)
            co, ci = w.shape[0], w.shape[1]
            wt = jnp.transpose(w, (2, 3, 1, 0)).reshape(9, ci, co)
            wt = jnp.pad(wt, ((0, 0), (0, cpad - ci), (0, cpad - co)))
            s, b = fold_bn(*bp["bn" + j])
            d["w" + j] = wt.astype(jnp.bfloat16)
            d["scale" + j] = _pad_vec(s, cpad)
            d["bias" + j] = _pad_vec(b, cpad)
        prep[blk] = d
    return prep


# ---------------------------- ResNet forward ---------------------------------

def resnet_stage0_forward(x_nchw, prep):
    x = jnp.transpose(x_nchw, (0, 2, 3, 1)).astype(ACT_DTYPE)   # NCHW -> NHWC bf16

    # gate: conv7x7 s2 p3 + BN + ReLU (im2col + fused GEMM, K padded to 152)
    g = prep["gate"]
    patches, (N, H1, W1) = im2col(x, k=7, stride=2, pad=3, k_pad=g["w"].shape[0])
    y = gemm_bn(patches, g["w"], g["scale"], g["bias"], relu=True)
    y = y.reshape(N, H1, W1, C_PAD)

    # gate: maxpool 3x3 s2 p1 (in-kernel shifted-slice max)
    y = maxpool3x3_s2_p1(y)

    # two fused ResNetBasicBlocks(64 -> 64) over the guarded flattened plane.
    N_, Hc, Wc, Cp = y.shape
    Hp, Wp = Hc + 2, Wc + 2
    G = Wp + 1
    M0 = N_ * Hp * Wp
    tm, ch, h1, h2 = _plan_block_tiles(G, M0)
    L2 = _round_up(M0, tm)          # block2 output length (front guard 0)
    L1 = L2 + tm                    # block1 output length (front guard 2G)
    L0 = L1 + tm                    # chain input length   (front guard 4G)
    f0 = 4 * G
    flat = jnp.pad(y, ((0, 0), (1, 1), (1, 1), (0, 0))).reshape(M0, Cp)
    xg = jnp.pad(flat, ((f0, L0 - f0 - M0), (0, 0)))
    geom = dict(tm=tm, ch=ch, h1=h1, h2=h2, g=G, m0=M0, hp=Hp, wp=Wp)
    y = basic_block(xg, prep["block1"], f_in=f0, out_len=L1, **geom)
    y = basic_block(y, prep["block2"], f_in=f0 - 2 * G, out_len=L2, **geom)

    out = y[:M0].reshape(N_, Hp, Wp, Cp)[:, 1:-1, 1:-1, :C_REAL]
    return jnp.transpose(out.astype(jnp.float32), (0, 3, 1, 2))   # NHWC -> NCHW


# ------------------------------ param init -----------------------------------

def make_params(key, cin=3, c=C_REAL):
    ks = iter(jax.random.split(key, 32))

    def conv(shape):  # PyTorch OIHW shape convention
        fan_in = shape[1] * shape[2] * shape[3]
        return jax.random.normal(next(ks), shape, jnp.float32) / jnp.sqrt(fan_in)

    def bn(ch):
        gamma = 1.0 + 0.1 * jax.random.normal(next(ks), (ch,), jnp.float32)
        beta = 0.1 * jax.random.normal(next(ks), (ch,), jnp.float32)
        mean = 0.1 * jax.random.normal(next(ks), (ch,), jnp.float32)
        var = jnp.abs(jax.random.normal(next(ks), (ch,), jnp.float32)) + 0.5
        return (gamma, beta, mean, var)

    params = {"gate_conv": conv((c, cin, 7, 7)), "gate_bn": bn(c)}
    for blk in ("block1", "block2"):
        params[blk] = {"conv1": conv((c, c, 3, 3)), "bn1": bn(c),
                       "conv2": conv((c, c, 3, 3)), "bn2": bn(c)}
    return params


# ------------------------- pure-JAX reference (eval BN) ----------------------

def reference_forward(x_nchw, params):
    def q(v):                                   # mirror the kernel's bf16 rounding
        return v.astype(jnp.bfloat16).astype(jnp.float32)

    def bnorm(y, stats):
        gamma, beta, mean, var = stats
        return (y - mean) / jnp.sqrt(var + 1e-5) * gamma + beta

    def conv(y, w, stride, pad):
        return lax.conv_general_dilated(
            y, jnp.transpose(q(w), (2, 3, 1, 0)), (stride, stride),
            [(pad, pad), (pad, pad)],
            dimension_numbers=("NHWC", "HWIO", "NHWC"))

    y = q(jnp.transpose(x_nchw, (0, 2, 3, 1)))
    y = q(jax.nn.relu(bnorm(conv(y, params["gate_conv"], 2, 3), params["gate_bn"])))
    y = lax.reduce_window(y, -jnp.inf, lax.max, (1, 3, 3, 1), (1, 2, 2, 1),
                          [(0, 0), (1, 1), (1, 1), (0, 0)])
    for blk in ("block1", "block2"):
        bp = params[blk]
        res = y
        t = q(jax.nn.relu(bnorm(conv(y, bp["conv1"], 1, 1), bp["bn1"])))
        y = q(jax.nn.relu(bnorm(conv(t, bp["conv2"], 1, 1), bp["bn2"]) + res))
    return jnp.transpose(y, (0, 3, 1, 2))


if __name__ == "__main__":
    root = jax.random.PRNGKey(0)
    pkey, xkey = jax.random.split(root)

    params = make_params(pkey, cin=3, c=C_REAL)
    prep = prepare_params(params)                       # hoisted, done once
    x = jax.random.normal(xkey, (2, 3, 16, 16), jnp.float32)  # NCHW like PyTorch

    out = jax.jit(resnet_stage0_forward)(x, prep)
    out = jax.block_until_ready(out)

    assert out.shape == (2, 64, 4, 4), out.shape
    assert bool(jnp.all(jnp.isfinite(out)))
    assert bool(jnp.all(out >= 0.0))                    # final ReLU

    ref = reference_forward(x, params)
    max_err = float(jnp.max(jnp.abs(out - ref)))
    mean_err = float(jnp.mean(jnp.abs(out - ref)))
    assert max_err < 0.3 and mean_err < 0.03, (max_err, mean_err)
    print("KERNEL_OK")
</pallas_src>

<mosaic_0001>
module attributes {stable_mosaic.version = 11 : i64} {
  func.func @_gemm_bn_kernel(%arg0: i32, %arg1: memref<64x152xbf16, #tpu.memory_space<vmem>>, %arg2: memref<152x128xbf16, #tpu.memory_space<vmem>>, %arg3: memref<1x128xf32, #tpu.memory_space<vmem>>, %arg4: memref<1x128xf32, #tpu.memory_space<vmem>>, %arg5: memref<64x128xbf16, #tpu.memory_space<vmem>>) attributes {dimension_semantics = [#tpu.dimension_semantics<parallel>], iteration_bounds = array<i64: 2>, scalar_prefetch = 0 : i64, scratch_operands = 0 : i64, tpu.core_type = #tpu.core_type<tc>, window_params = [{transform_indices = @transform_0, window_bounds = array<i64: 64, 152>}, {pipeline_mode = #tpu.pipeline_mode<synchronous>, transform_indices = @transform_1, window_bounds = array<i64: 152, 128>}, {pipeline_mode = #tpu.pipeline_mode<synchronous>, transform_indices = @transform_2, window_bounds = array<i64: 1, 128>}, {pipeline_mode = #tpu.pipeline_mode<synchronous>, transform_indices = @transform_3, window_bounds = array<i64: 1, 128>}, {transform_indices = @transform_4, window_bounds = array<i64: 64, 128>}]} {
    %c0 = arith.constant 0 : index
    %c0_0 = arith.constant 0 : index
    %0 = vector.load %arg1[%c0, %c0_0] : memref<64x152xbf16, #tpu.memory_space<vmem>>, vector<64x152xbf16>
    %c0_1 = arith.constant 0 : index
    %c0_2 = arith.constant 0 : index
    %1 = vector.load %arg2[%c0_1, %c0_2] : memref<152x128xbf16, #tpu.memory_space<vmem>>, vector<152x128xbf16>
    %cst = arith.constant dense<0.000000e+00> : vector<64x128xf32>
    %2 = tpu.matmul %0, %1, %cst {dimension_numbers = #tpu.dot_dimension_numbers<[1], [0], [0], [1], [0, 0, 1, 1], [], []>} : vector<64x152xbf16>, vector<152x128xbf16>, vector<64x128xf32> -> vector<64x128xf32>
    %c0_3 = arith.constant 0 : index
    %c0_4 = arith.constant 0 : index
    %3 = vector.load %arg3[%c0_3, %c0_4] : memref<1x128xf32, #tpu.memory_space<vmem>>, vector<1x128xf32>
    %4 = vector.broadcast %3 : vector<1x128xf32> to vector<64x128xf32>
    %5 = arith.mulf %2, %4 : vector<64x128xf32>
    %c0_5 = arith.constant 0 : index
    %c0_6 = arith.constant 0 : index
    %6 = vector.load %arg4[%c0_5, %c0_6] : memref<1x128xf32, #tpu.memory_space<vmem>>, vector<1x128xf32>
    %7 = vector.broadcast %6 : vector<1x128xf32> to vector<64x128xf32>
    %8 = arith.addf %5, %7 : vector<64x128xf32>
    %cst_7 = arith.constant 0.000000e+00 : f32
    %9 = vector.broadcast %cst_7 : f32 to vector<64x128xf32>
    %10 = arith.maximumf %8, %9 : vector<64x128xf32>
    %11 = arith.truncf %10 : vector<64x128xf32> to vector<64x128xbf16>
    %c0_8 = arith.constant 0 : index
    %c0_9 = arith.constant 0 : index
    %12 = vector.load %arg5[%c0_8, %c0_9] : memref<64x128xbf16, #tpu.memory_space<vmem>>, vector<64x128xbf16>
    tpu.vector_store %arg5[%c0_8, %c0_9], %11 {strides = array<i32>} : memref<64x128xbf16, #tpu.memory_space<vmem>>, vector<64x128xbf16>,
    return
  }
  func.func @transform_0(%arg0: i32) -> (i32, i32) {
    %c0_i32 = arith.constant 0 : i32
    %c0_i32_0 = arith.constant 0 : i32
    return %arg0, %c0_i32 : i32, i32
  }
  func.func @transform_1(%arg0: i32) -> (i32, i32) {
    %c0_i32 = arith.constant 0 : i32
    %c0_i32_0 = arith.constant 0 : i32
    %c0_i32_1 = arith.constant 0 : i32
    return %c0_i32, %c0_i32_0 : i32, i32
  }
  func.func @transform_2(%arg0: i32) -> (i32, i32) {
    %c0_i32 = arith.constant 0 : i32
    %c0_i32_0 = arith.constant 0 : i32
    %c0_i32_1 = arith.constant 0 : i32
    return %c0_i32, %c0_i32_0 : i32, i32
  }
  func.func @transform_3(%arg0: i32) -> (i32, i32) {
    %c0_i32 = arith.constant 0 : i32
    %c0_i32_0 = arith.constant 0 : i32
    %c0_i32_1 = arith.constant 0 : i32
    return %c0_i32, %c0_i32_0 : i32, i32
  }
  func.func @transform_4(%arg0: i32) -> (i32, i32) {
    %c0_i32 = arith.constant 0 : i32
    %c0_i32_0 = arith.constant 0 : i32
    return %arg0, %c0_i32 : i32, i32
  }
}

module attributes {stable_mosaic.version = 11 : i64} {
  func.func @_maxpool_kernel(%arg0: i32, %arg1: memref<1x5x2x5x128xbf16, #tpu.memory_space<vmem>>, %arg2: memref<1x5x2x5x128xbf16, #tpu.memory_space<vmem>>, %arg3: memref<1x4x4x128xbf16, #tpu.memory_space<vmem>>) attributes {dimension_semantics = [#tpu.dimension_semantics<parallel>], iteration_bounds = array<i64: 2>, scalar_prefetch = 0 : i64, scratch_operands = 0 : i64, tpu.core_type = #tpu.core_type<tc>, window_params = [{transform_indices = @transform_0, window_bounds = array<i64: 1, 5, 2, 5, 128>}, {transform_indices = @transform_1, window_bounds = array<i64: 1, 5, 2, 5, 128>}, {transform_indices = @transform_2, window_bounds = array<i64: 1, 4, 4, 128>}]} {
    %c0 = arith.constant 0 : index
    %c0_0 = arith.constant 0 : index
    %c0_1 = arith.constant 0 : index
    %c0_2 = arith.constant 0 : index
    %c0_3 = arith.constant 0 : index
    %0 = vector.load %arg1[%c0, %c0_0, %c0_1, %c0_2, %c0_3] : memref<1x5x2x5x128xbf16, #tpu.memory_space<vmem>>, vector<1x5x2x5x128xbf16>
    %1 = vector.shape_cast %0 : vector<1x5x2x5x128xbf16> to vector<5x2x5x128xbf16>
    %c0_4 = arith.constant 0 : index
    %c0_5 = arith.constant 0 : index
    %c0_6 = arith.constant 0 : index
    %c0_7 = arith.constant 0 : index
    %c0_8 = arith.constant 0 : index
    %2 = vector.load %arg2[%c0_4, %c0_5, %c0_6, %c0_7, %c0_8] : memref<1x5x2x5x128xbf16, #tpu.memory_space<vmem>>, vector<1x5x2x5x128xbf16>
    %3 = vector.shape_cast %2 : vector<1x5x2x5x128xbf16> to vector<5x2x5x128xbf16>
    %4 = vector.extract_strided_slice %1 {offsets = [0, 0, 0, 0], sizes = [4, 1, 5, 128], strides = [1, 1, 1, 1]} : vector<5x2x5x128xbf16> to vector<4x1x5x128xbf16>
    %5 = vector.shape_cast %4 : vector<4x1x5x128xbf16> to vector<4x5x128xbf16>
    %6 = vector.extract_strided_slice %3 {offsets = [0, 0, 0, 0], sizes = [4, 1, 5, 128], strides = [1, 1, 1, 1]} : vector<5x2x5x128xbf16> to vector<4x1x5x128xbf16>
    %7 = vector.shape_cast %6 : vector<4x1x5x128xbf16> to vector<4x5x128xbf16>
    %8 = vector.extract_strided_slice %5 {offsets = [0, 0, 0], sizes = [4, 4, 128], strides = [1, 1, 1]} : vector<4x5x128xbf16> to vector<4x4x128xbf16>
    %9 = vector.extract_strided_slice %7 {offsets = [0, 0, 0], sizes = [4, 4, 128], strides = [1, 1, 1]} : vector<4x5x128xbf16> to vector<4x4x128xbf16>
    %10 = arith.maximumf %8, %9 : vector<4x4x128xbf16>
    %11 = vector.extract_strided_slice %5 {offsets = [0, 1, 0], sizes = [4, 4, 128], strides = [1, 1, 1]} : vector<4x5x128xbf16> to vector<4x4x128xbf16>
    %12 = arith.maximumf %10, %11 : vector<4x4x128xbf16>
    %13 = vector.extract_strided_slice %1 {offsets = [0, 1, 0, 0], sizes = [4, 1, 5, 128], strides = [1, 1, 1, 1]} : vector<5x2x5x128xbf16> to vector<4x1x5x128xbf16>
    %14 = vector.shape_cast %13 : vector<4x1x5x128xbf16> to vector<4x5x128xbf16>
    %15 = vector.extract_strided_slice %3 {offsets = [0, 1, 0, 0], sizes = [4, 1, 5, 128], strides = [1, 1, 1, 1]} : vector<5x2x5x128xbf16> to vector<4x1x5x128xbf16>
    %16 = vector.shape_cast %15 : vector<4x1x5x128xbf16> to vector<4x5x128xbf16>
    %17 = vector.extract_strided_slice %14 {offsets = [0, 0, 0], sizes = [4, 4, 128], strides = [1, 1, 1]} : vector<4x5x128xbf16> to vector<4x4x128xbf16>
    %18 = vector.extract_strided_slice %16 {offsets = [0, 0, 0], sizes = [4, 4, 128], strides = [1, 1, 1]} : vector<4x5x128xbf16> to vector<4x4x128xbf16>
    %19 = arith.maximumf %17, %18 : vector<4x4x128xbf16>
    %20 = vector.extract_strided_slice %14 {offsets = [0, 1, 0], sizes = [4, 4, 128], strides = [1, 1, 1]} : vector<4x5x128xbf16> to vector<4x4x128xbf16>
    %21 = arith.maximumf %19, %20 : vector<4x4x128xbf16>
    %22 = arith.maximumf %12, %21 : vector<4x4x128xbf16>
    %23 = vector.extract_strided_slice %1 {offsets = [1, 0, 0, 0], sizes = [4, 1, 5, 128], strides = [1, 1, 1, 1]} : vector<5x2x5x128xbf16> to vector<4x1x5x128xbf16>
    %24 = vector.shape_cast %23 : vector<4x1x5x128xbf16> to vector<4x5x128xbf16>
    %25 = vector.extract_strided_slice %3 {offsets = [1, 0, 0, 0], sizes = [4, 1, 5, 128], strides = [1, 1, 1, 1]} : vector<5x2x5x128xbf16> to vector<4x1x5x128xbf16>
    %26 = vector.shape_cast %25 : vector<4x1x5x128xbf16> to vector<4x5x128xbf16>
    %27 = vector.extract_strided_slice %24 {offsets = [0, 0, 0], sizes = [4, 4, 128], strides = [1, 1, 1]} : vector<4x5x128xbf16> to vector<4x4x128xbf16>
    %28 = vector.extract_strided_slice %26 {offsets = [0, 0, 0], sizes = [4, 4, 128], strides = [1, 1, 1]} : vector<4x5x128xbf16> to vector<4x4x128xbf16>
    %29 = arith.maximumf %27, %28 : vector<4x4x128xbf16>
    %30 = vector.extract_strided_slice %24 {offsets = [0, 1, 0], sizes = [4, 4, 128], strides = [1, 1, 1]} : vector<4x5x128xbf16> to vector<4x4x128xbf16>
    %31 = arith.maximumf %29, %30 : vector<4x4x128xbf16>
    %32 = arith.maximumf %22, %31 : vector<4x4x128xbf16>
    %c0_9 = arith.constant 0 : index
    %c0_10 = arith.constant 0 : index
    %c0_11 = arith.constant 0 : index
    %c0_12 = arith.constant 0 : index
    %33 = vector.load %arg3[%c0_9, %c0_10, %c0_11, %c0_12] : memref<1x4x4x128xbf16, #tpu.memory_space<vmem>>, vector<1x4x4x128xbf16>
    %34 = vector.shape_cast %33 : vector<1x4x4x128xbf16> to vector<4x4x128xbf16>
    %35 = vector.shape_cast %32 : vector<4x4x128xbf16> to vector<1x4x4x128xbf16>
    tpu.vector_store %arg3[%c0_9, %c0_10, %c0_11, %c0_12], %35 {strides = array<i32>} : memref<1x4x4x128xbf16, #tpu.memory_space<vmem>>, vector<1x4x4x128xbf16>,
    return
  }
  func.func @transform_0(%arg0: i32) -> (i32, i32, i32, i32, i32) {
    %c0_i32 = arith.constant 0 : i32
    %c0_i32_0 = arith.constant 0 : i32
    %c0_i32_1 = arith.constant 0 : i32
    %c0_i32_2 = arith.constant 0 : i32
    %c0_i32_3 = arith.constant 0 : i32
    return %arg0, %c0_i32, %c0_i32_0, %c0_i32_1, %c0_i32_2 : i32, i32, i32, i32, i32
  }
  func.func @transform_1(%arg0: i32) -> (i32, i32, i32, i32, i32) {
    %c0_i32 = arith.constant 0 : i32
    %c0_i32_0 = arith.constant 0 : i32
    %c0_i32_1 = arith.constant 0 : i32
    %c0_i32_2 = arith.constant 0 : i32
    %c0_i32_3 = arith.constant 0 : i32
    return %arg0, %c0_i32, %c0_i32_0, %c0_i32_1, %c0_i32_2 : i32, i32, i32, i32, i32
  }
  func.func @transform_2(%arg0: i32) -> (i32, i32, i32, i32) {
    %c0_i32 = arith.constant 0 : i32
    %c0_i32_0 = arith.constant 0 : i32
    %c0_i32_1 = arith.constant 0 : i32
    %c0_i32_2 = arith.constant 0 : i32
    return %arg0, %c0_i32, %c0_i32_0, %c0_i32_1 : i32, i32, i32, i32
  }
}

module attributes {stable_mosaic.version = 11 : i64} {
  func.func @_basic_block_kernel(%arg0: i32, %arg1: memref<64x128xbf16, #tpu.memory_space<vmem>>, %arg2: memref<64x128xbf16, #tpu.memory_space<vmem>>, %arg3: memref<9x128x128xbf16, #tpu.memory_space<vmem>>, %arg4: memref<1x128xf32, #tpu.memory_space<vmem>>, %arg5: memref<1x128xf32, #tpu.memory_space<vmem>>, %arg6: memref<9x128x128xbf16, #tpu.memory_space<vmem>>, %arg7: memref<1x128xf32, #tpu.memory_space<vmem>>, %arg8: memref<1x128xf32, #tpu.memory_space<vmem>>, %arg9: memref<64x128xbf16, #tpu.memory_space<vmem>>, %arg10: memref<112x128xbf16, #tpu.memory_space<vmem>>, %arg11: memref<96x128xbf16, #tpu.memory_space<vmem>>) attributes {dimension_semantics = [#tpu.dimension_semantics<parallel>], iteration_bounds = array<i64: 3>, scalar_prefetch = 0 : i64, scratch_operands = 2 : i64, tpu.core_type = #tpu.core_type<tc>, window_params = [{transform_indices = @transform_0, window_bounds = array<i64: 64, 128>}, {transform_indices = @transform_1, window_bounds = array<i64: 64, 128>}, {pipeline_mode = #tpu.pipeline_mode<synchronous>, transform_indices = @transform_2, window_bounds = array<i64: 9, 128, 128>}, {pipeline_mode = #tpu.pipeline_mode<synchronous>, transform_indices = @transform_3, window_bounds = array<i64: 1, 128>}, {pipeline_mode = #tpu.pipeline_mode<synchronous>, transform_indices = @transform_4, window_bounds = array<i64: 1, 128>}, {pipeline_mode = #tpu.pipeline_mode<synchronous>, transform_indices = @transform_5, window_bounds = array<i64: 9, 128, 128>}, {pipeline_mode = #tpu.pipeline_mode<synchronous>, transform_indices = @transform_6, window_bounds = array<i64: 1, 128>}, {pipeline_mode = #tpu.pipeline_mode<synchronous>, transform_indices = @transform_7, window_bounds = array<i64: 1, 128>}, {transform_indices = @transform_8, window_bounds = array<i64: 64, 128>}]} {
    %c64_i32 = arith.constant 64 : i32
    %0 = arith.muli %arg0, %c64_i32 : i32
    %c0 = arith.constant 0 : index
    %c0_0 = arith.constant 0 : index
    %1 = vector.load %arg1[%c0, %c0_0] : memref<64x128xbf16, #tpu.memory_space<vmem>>, vector<64x128xbf16>
    %c0_1 = arith.constant 0 : index
    %c0_2 = arith.constant 0 : index
    %2 = vector.load %arg10[%c0_1, %c0_2] : memref<112x128xbf16, #tpu.memory_space<vmem>>, vector<64x128xbf16>
    tpu.vector_store %arg10[%c0_1, %c0_2], %1 {strides = array<i32>} : memref<112x128xbf16, #tpu.memory_space<vmem>>, vector<64x128xbf16>,
    %c0_3 = arith.constant 0 : index
    %c0_4 = arith.constant 0 : index
    %3 = vector.load %arg2[%c0_3, %c0_4] : memref<64x128xbf16, #tpu.memory_space<vmem>>, vector<48x128xbf16>
    %c64 = arith.constant 64 : index
    %c0_5 = arith.constant 0 : index
    %4 = vector.load %arg10[%c64, %c0_5] : memref<112x128xbf16, #tpu.memory_space<vmem>>, vector<48x128xbf16>
    tpu.vector_store %arg10[%c64, %c0_5], %3 {strides = array<i32>} : memref<112x128xbf16, #tpu.memory_space<vmem>>, vector<48x128xbf16>,
    %cst = arith.constant 0.000000e+00 : f32
    %5 = vector.broadcast %cst : f32 to vector<32x128xf32>
    %c0_6 = arith.constant 0 : index
    %c0_7 = arith.constant 0 : index
    %6 = vector.load %arg10[%c0_6, %c0_7] : memref<112x128xbf16, #tpu.memory_space<vmem>>, vector<32x128xbf16>
    %c0_8 = arith.constant 0 : index
    %c0_9 = arith.constant 0 : index
    %c0_10 = arith.constant 0 : index
    %7 = vector.load %arg3[%c0_8, %c0_9, %c0_10] : memref<9x128x128xbf16, #tpu.memory_space<vmem>>, vector<1x128x128xbf16>
    %8 = vector.shape_cast %7 : vector<1x128x128xbf16> to vector<128x128xbf16>
    %cst_11 = arith.constant dense<0.000000e+00> : vector<32x128xf32>
    %9 = tpu.matmul %6, %8, %cst_11 {dimension_numbers = #tpu.dot_dimension_numbers<[1], [0], [0], [1], [0, 0, 1, 1], [], []>} : vector<32x128xbf16>, vector<128x128xbf16>, vector<32x128xf32> -> vector<32x128xf32>
    %10 = arith.addf %5, %9 : vector<32x128xf32>
    %c1 = arith.constant 1 : index
    %c0_12 = arith.constant 0 : index
    %11 = vector.load %arg10[%c1, %c0_12] : memref<112x128xbf16, #tpu.memory_space<vmem>>, vector<32x128xbf16>
    %c1_13 = arith.constant 1 : index
    %c0_14 = arith.constant 0 : index
    %c0_15 = arith.constant 0 : index
    %12 = vector.load %arg3[%c1_13, %c0_14, %c0_15] : memref<9x128x128xbf16, #tpu.memory_space<vmem>>, vector<1x128x128xbf16>
    %13 = vector.shape_cast %12 : vector<1x128x128xbf16> to vector<128x128xbf16>
    %cst_16 = arith.constant dense<0.000000e+00> : vector<32x128xf32>
    %14 = tpu.matmul %11, %13, %cst_16 {dimension_numbers = #tpu.dot_dimension_numbers<[1], [0], [0], [1], [0, 0, 1, 1], [], []>} : vector<32x128xbf16>, vector<128x128xbf16>, vector<32x128xf32> -> vector<32x128xf32>
    %15 = arith.addf %10, %14 : vector<32x128xf32>
    %c2 = arith.constant 2 : index
    %c0_17 = arith.constant 0 : index
    %16 = vector.load %arg10[%c2, %c0_17] : memref<112x128xbf16, #tpu.memory_space<vmem>>, vector<32x128xbf16>
    %c2_18 = arith.constant 2 : index
    %c0_19 = arith.constant 0 : index
    %c0_20 = arith.constant 0 : index
    %17 = vector.load %arg3[%c2_18, %c0_19, %c0_20] : memref<9x128x128xbf16, #tpu.memory_space<vmem>>, vector<1x128x128xbf16>
    %18 = vector.shape_cast %17 : vector<1x128x128xbf16> to vector<128x128xbf16>
    %cst_21 = arith.constant dense<0.000000e+00> : vector<32x128xf32>
    %19 = tpu.matmul %16, %18, %cst_21 {dimension_numbers = #tpu.dot_dimension_numbers<[1], [0], [0], [1], [0, 0, 1, 1], [], []>} : vector<32x128xbf16>, vector<128x128xbf16>, vector<32x128xf32> -> vector<32x128xf32>
    %20 = arith.addf %15, %19 : vector<32x128xf32>
    %c6 = arith.constant 6 : index
    %c0_22 = arith.constant 0 : index
    %21 = vector.load %arg10[%c6, %c0_22] : memref<112x128xbf16, #tpu.memory_space<vmem>>, vector<32x128xbf16>
    %c3 = arith.constant 3 : index
    %c0_23 = arith.constant 0 : index
    %c0_24 = arith.constant 0 : index
    %22 = vector.load %arg3[%c3, %c0_23, %c0_24] : memref<9x128x128xbf16, #tpu.memory_space<vmem>>, vector<1x128x128xbf16>
    %23 = vector.shape_cast %22 : vector<1x128x128xbf16> to vector<128x128xbf16>
    %cst_25 = arith.constant dense<0.000000e+00> : vector<32x128xf32>
    %24 = tpu.matmul %21, %23, %cst_25 {dimension_numbers = #tpu.dot_dimension_numbers<[1], [0], [0], [1], [0, 0, 1, 1], [], []>} : vector<32x128xbf16>, vector<128x128xbf16>, vector<32x128xf32> -> vector<32x128xf32>
    %25 = arith.addf %20, %24 : vector<32x128xf32>
    %c7 = arith.constant 7 : index
    %c0_26 = arith.constant 0 : index
    %26 = vector.load %arg10[%c7, %c0_26] : memref<112x128xbf16, #tpu.memory_space<vmem>>, vector<32x128xbf16>
    %c4 = arith.constant 4 : index
    %c0_27 = arith.constant 0 : index
    %c0_28 = arith.constant 0 : index
    %27 = vector.load %arg3[%c4, %c0_27, %c0_28] : memref<9x128x128xbf16, #tpu.memory_space<vmem>>, vector<1x128x128xbf16>
    %28 = vector.shape_cast %27 : vector<1x128x128xbf16> to vector<128x128xbf16>
    %cst_29 = arith.constant dense<0.000000e+00> : vector<32x128xf32>
    %29 = tpu.matmul %26, %28, %cst_29 {dimension_numbers = #tpu.dot_dimension_numbers<[1], [0], [0], [1], [0, 0, 1, 1], [], []>} : vector<32x128xbf16>, vector<128x128xbf16>, vector<32x128xf32> -> vector<32x128xf32>
    %30 = arith.addf %25, %29 : vector<32x128xf32>
    %c8 = arith.constant 8 : index
    %c0_30 = arith.constant 0 : index
    %31 = vector.load %arg10[%c8, %c0_30] : memref<112x128xbf16, #tpu.memory_space<vmem>>, vector<32x128xbf16>
    %c5 = arith.constant 5 : index
    %c0_31 = arith.constant 0 : index
    %c0_32 = arith.constant 0 : index
    %32 = vector.load %arg3[%c5, %c0_31, %c0_32] : memref<9x128x128xbf16, #tpu.memory_space<vmem>>, vector<1x128x128xbf16>
    %33 = vector.shape_cast %32 : vector<1x128x128xbf16> to vector<128x128xbf16>
    %cst_33 = arith.constant dense<0.000000e+00> : vector<32x128xf32>
    %34 = tpu.matmul %31, %33, %cst_33 {dimension_numbers = #tpu.dot_dimension_numbers<[1], [0], [0], [1], [0, 0, 1, 1], [], []>} : vector<32x128xbf16>, vector<128x128xbf16>, vector<32x128xf32> -> vector<32x128xf32>
    %35 = arith.addf %30, %34 : vector<32x128xf32>
    %c12 = arith.constant 12 : index
    %c0_34 = arith.constant 0 : index
    %36 = vector.load %arg10[%c12, %c0_34] : memref<112x128xbf16, #tpu.memory_space<vmem>>, vector<32x128xbf16>
    %c6_35 = arith.constant 6 : index
    %c0_36 = arith.constant 0 : index
    %c0_37 = arith.constant 0 : index
    %37 = vector.load %arg3[%c6_35, %c0_36, %c0_37] : memref<9x128x128xbf16, #tpu.memory_space<vmem>>, vector<1x128x128xbf16>
    %38 = vector.shape_cast %37 : vector<1x128x128xbf16> to vector<128x128xbf16>
    %cst_38 = arith.constant dense<0.000000e+00> : vector<32x128xf32>
    %39 = tpu.matmul %36, %38, %cst_38 {dimension_numbers = #tpu.dot_dimension_numbers<[1], [0], [0], [1], [0, 0, 1, 1], [], []>} : vector<32x128xbf16>, vector<128x128xbf16>, vector<32x128xf32> -> vector<32x128xf32>
    %40 = arith.addf %35, %39 : vector<32x128xf32>
    %c13 = arith.constant 13 : index
    %c0_39 = arith.constant 0 : index
    %41 = vector.load %arg10[%c13, %c0_39] : memref<112x128xbf16, #tpu.memory_space<vmem>>, vector<32x128xbf16>
    %c7_40 = arith.constant 7 : index
    %c0_41 = arith.constant 0 : index
    %c0_42 = arith.constant 0 : index
    %42 = vector.load %arg3[%c7_40, %c0_41, %c0_42] : memref<9x128x128xbf16, #tpu.memory_space<vmem>>, vector<1x128x128xbf16>
    %43 = vector.shape_cast %42 : vector<1x128x128xbf16> to vector<128x128xbf16>
    %cst_43 = arith.constant dense<0.000000e+00> : vector<32x128xf32>
    %44 = tpu.matmul %41, %43, %cst_43 {dimension_numbers = #tpu.dot_dimension_numbers<[1], [0], [0], [1], [0, 0, 1, 1], [], []>} : vector<32x128xbf16>, vector<128x128xbf16>, vector<32x128xf32> -> vector<32x128xf32>
    %45 = arith.addf %40, %44 : vector<32x128xf32>
    %c14 = arith.constant 14 : index
    %c0_44 = arith.constant 0 : index
    %46 = vector.load %arg10[%c14, %c0_44] : memref<112x128xbf16, #tpu.memory_space<vmem>>, vector<32x128xbf16>
    %c8_45 = arith.constant 8 : index
    %c0_46 = arith.constant 0 : index
    %c0_47 = arith.constant 0 : index
    %47 = vector.load %arg3[%c8_45, %c0_46, %c0_47] : memref<9x128x128xbf16, #tpu.memory_space<vmem>>, vector<1x128x128xbf16>
    %48 = vector.shape_cast %47 : vector<1x128x128xbf16> to vector<128x128xbf16>
    %cst_48 = arith.constant dense<0.000000e+00> : vector<32x128xf32>
    %49 = tpu.matmul %46, %48, %cst_48 {dimension_numbers = #tpu.dot_dimension_numbers<[1], [0], [0], [1], [0, 0, 1, 1], [], []>} : vector<32x128xbf16>, vector<128x128xbf16>, vector<32x128xf32> -> vector<32x128xf32>
    %50 = arith.addf %45, %49 : vector<32x128xf32>
    %c0_49 = arith.constant 0 : index
    %c0_50 = arith.constant 0 : index
    %51 = vector.load %arg4[%c0_49, %c0_50] : memref<1x128xf32, #tpu.memory_space<vmem>>, vector<1x128xf32>
    %52 = vector.broadcast %51 : vector<1x128xf32> to vector<32x128xf32>
    %53 = arith.mulf %50, %52 : vector<32x128xf32>
    %c0_51 = arith.constant 0 : index
    %c0_52 = arith.constant 0 : index
    %54 = vector.load %arg5[%c0_51, %c0_52] : memref<1x128xf32, #tpu.memory_space<vmem>>, vector<1x128xf32>
    %55 = vector.broadcast %54 : vector<1x128xf32> to vector<32x128xf32>
    %56 = arith.addf %53, %55 : vector<32x128xf32>
    %cst_53 = arith.constant 0.000000e+00 : f32
    %57 = vector.broadcast %cst_53 : f32 to vector<32x128xf32>
    %58 = arith.maximumf %56, %57 : vector<32x128xf32>
    %c0_i32 = arith.constant 0 : i32
    %59 = arith.addi %0, %c0_i32 : i32
    %c7_i32 = arith.constant 7 : i32
    %60 = arith.addi %59, %c7_i32 : i32
    %c28_i32 = arith.constant 28 : i32
    %61 = arith.subi %60, %c28_i32 : i32
    %62 = tpu.iota {dimensions = array<i32: 0>} : vector<32x1xi32>
    %63 = vector.broadcast %61 : i32 to vector<32x1xi32>
    %64 = arith.addi %63, %62 : vector<32x1xi32>
    %65 = arith.sitofp %64 : vector<32x1xi32> to vector<32x1xf32>
    %cst_54 = arith.constant 3.600000e+01 : f32
    %66 = vector.broadcast %cst_54 : f32 to vector<32x1xf32>
    %67 = arith.divf %65, %66 : vector<32x1xf32>
    %68 = math.floor %67 : vector<32x1xf32>
    %cst_55 = arith.constant 3.600000e+01 : f32
    %69 = vector.broadcast %cst_55 : f32 to vector<32x1xf32>
    %70 = arith.mulf %68, %69 : vector<32x1xf32>
    %71 = arith.subf %65, %70 : vector<32x1xf32>
    %cst_56 = arith.constant 6.000000e+00 : f32
    %72 = vector.broadcast %cst_56 : f32 to vector<32x1xf32>
    %73 = arith.divf %71, %72 : vector<32x1xf32>
    %74 = math.floor %73 : vector<32x1xf32>
    %cst_57 = arith.constant 6.000000e+00 : f32
    %75 = vector.broadcast %cst_57 : f32 to vector<32x1xf32>
    %76 = arith.mulf %74, %75 : vector<32x1xf32>
    %77 = arith.subf %71, %76 : vector<32x1xf32>
    %c0_i32_58 = arith.constant 0 : i32
    %78 = vector.broadcast %c0_i32_58 : i32 to vector<32x1xi32>
    %79 = arith.cmpi sge, %64, %78 : vector<32x1xi32>
    %c72_i32 = arith.constant 72 : i32
    %80 = vector.broadcast %c72_i32 : i32 to vector<32x1xi32>
    %81 = arith.cmpi slt, %64, %80 : vector<32x1xi32>
    %82 = arith.andi %79, %81 : vector<32x1xi1>
    %cst_59 = arith.constant 1.000000e+00 : f32
    %83 = vector.broadcast %cst_59 : f32 to vector<32x1xf32>
    %84 = arith.cmpf oge, %74, %83 : vector<32x1xf32>
    %85 = arith.andi %82, %84 : vector<32x1xi1>
    %cst_60 = arith.constant 4.000000e+00 : f32
    %86 = vector.broadcast %cst_60 : f32 to vector<32x1xf32>
    %87 = arith.cmpf ole, %74, %86 : vector<32x1xf32>
    %88 = arith.andi %85, %87 : vector<32x1xi1>
    %cst_61 = arith.constant 1.000000e+00 : f32
    %89 = vector.broadcast %cst_61 : f32 to vector<32x1xf32>
    %90 = arith.cmpf oge, %77, %89 : vector<32x1xf32>
    %91 = arith.andi %88, %90 : vector<32x1xi1>
    %cst_62 = arith.constant 4.000000e+00 : f32
    %92 = vector.broadcast %cst_62 : f32 to vector<32x1xf32>
    %93 = arith.cmpf ole, %77, %92 : vector<32x1xf32>
    %94 = arith.andi %91, %93 : vector<32x1xi1>
    %95 = arith.extui %94 : vector<32x1xi1> to vector<32x1xi32>
    %96 = arith.sitofp %95 : vector<32x1xi32> to vector<32x1xf32>
    %97 = vector.broadcast %96 : vector<32x1xf32> to vector<32x128xf32>
    %98 = arith.mulf %58, %97 : vector<32x128xf32>
    %99 = arith.truncf %98 : vector<32x128xf32> to vector<32x128xbf16>
    %c0_63 = arith.constant 0 : index
    %c0_64 = arith.constant 0 : index
    %100 = vector.load %arg11[%c0_63, %c0_64] : memref<96x128xbf16, #tpu.memory_space<vmem>>, vector<32x128xbf16>
    tpu.vector_store %arg11[%c0_63, %c0_64], %99 {strides = array<i32>} : memref<96x128xbf16, #tpu.memory_space<vmem>>, vector<32x128xbf16>,
    %cst_65 = arith.constant 0.000000e+00 : f32
    %101 = vector.broadcast %cst_65 : f32 to vector<32x128xf32>
    %c32 = arith.constant 32 : index
    %c0_66 = arith.constant 0 : index
    %102 = vector.load %arg10[%c32, %c0_66] : memref<112x128xbf16, #tpu.memory_space<vmem>>, vector<32x128xbf16>
    %c0_67 = arith.constant 0 : index
    %c0_68 = arith.constant 0 : index
    %c0_69 = arith.constant 0 : index
    %103 = vector.load %arg3[%c0_67, %c0_68, %c0_69] : memref<9x128x128xbf16, #tpu.memory_space<vmem>>, vector<1x128x128xbf16>
    %104 = vector.shape_cast %103 : vector<1x128x128xbf16> to vector<128x128xbf16>
    %cst_70 = arith.constant dense<0.000000e+00> : vector<32x128xf32>
    %105 = tpu.matmul %102, %104, %cst_70 {dimension_numbers = #tpu.dot_dimension_numbers<[1], [0], [0], [1], [0, 0, 1, 1], [], []>} : vector<32x128xbf16>, vector<128x128xbf16>, vector<32x128xf32> -> vector<32x128xf32>
    %106 = arith.addf %101, %105 : vector<32x128xf32>
    %c33 = arith.constant 33 : index
    %c0_71 = arith.constant 0 : index
    %107 = vector.load %arg10[%c33, %c0_71] : memref<112x128xbf16, #tpu.memory_space<vmem>>, vector<32x128xbf16>
    %c1_72 = arith.constant 1 : index
    %c0_73 = arith.constant 0 : index
    %c0_74 = arith.constant 0 : index
    %108 = vector.load %arg3[%c1_72, %c0_73, %c0_74] : memref<9x128x128xbf16, #tpu.memory_space<vmem>>, vector<1x128x128xbf16>
    %109 = vector.shape_cast %108 : vector<1x128x128xbf16> to vector<128x128xbf16>
    %cst_75 = arith.constant dense<0.000000e+00> : vector<32x128xf32>
    %110 = tpu.matmul %107, %109, %cst_75 {dimension_numbers = #tpu.dot_dimension_numbers<[1], [0], [0], [1], [0, 0, 1, 1], [], []>} : vector<32x128xbf16>, vector<128x128xbf16>, vector<32x128xf32> -> vector<32x128xf32>
    %111 = arith.addf %106, %110 : vector<32x128xf32>
    %c34 = arith.constant 34 : index
    %c0_76 = arith.constant 0 : index
    %112 = vector.load %arg10[%c34, %c0_76] : memref<112x128xbf16, #tpu.memory_space<vmem>>, vector<32x128xbf16>
    %c2_77 = arith.constant 2 : index
    %c0_78 = arith.constant 0 : index
    %c0_79 = arith.constant 0 : index
    %113 = vector.load %arg3[%c2_77, %c0_78, %c0_79] : memref<9x128x128xbf16, #tpu.memory_space<vmem>>, vector<1x128x128xbf16>
    %114 = vector.shape_cast %113 : vector<1x128x128xbf16> to vector<128x128xbf16>
    %cst_80 = arith.constant dense<0.000000e+00> : vector<32x128xf32>
    %115 = tpu.matmul %112, %114, %cst_80 {dimension_numbers = #tpu.dot_dimension_numbers<[1], [0], [0], [1], [0, 0, 1, 1], [], []>} : vector<32x128xbf16>, vector<128x128xbf16>, vector<32x128xf32> -> vector<32x128xf32>
    %116 = arith.addf %111, %115 : vector<32x128xf32>
    %c38 = arith.constant 38 : index
    %c0_81 = arith.constant 0 : index
    %117 = vector.load %arg10[%c38, %c0_81] : memref<112x128xbf16, #tpu.memory_space<vmem>>, vector<32x128xbf16>
    %c3_82 = arith.constant 3 : index
    %c0_83 = arith.constant 0 : index
    %c0_84 = arith.constant 0 : index
    %118 = vector.load %arg3[%c3_82, %c0_83, %c0_84] : memref<9x128x128xbf16, #tpu.memory_space<vmem>>, vector<1x128x128xbf16>
    %119 = vector.shape_cast %118 : vector<1x128x128xbf16> to vector<128x128xbf16>
    %cst_85 = arith.constant dense<0.000000e+00> : vector<32x128xf32>
    %120 = tpu.matmul %117, %119, %cst_85 {dimension_numbers = #tpu.dot_dimension_numbers<[1], [0], [0], [1], [0, 0, 1, 1], [], []>} : vector<32x128xbf16>, vector<128x128xbf16>, vector<32x128xf32> -> vector<32x128xf32>
    %121 = arith.addf %116, %120 : vector<32x128xf32>
    %c39 = arith.constant 39 : index
    %c0_86 = arith.constant 0 : index
    %122 = vector.load %arg10[%c39, %c0_86] : memref<112x128xbf16, #tpu.memory_space<vmem>>, vector<32x128xbf16>
    %c4_87 = arith.constant 4 : index
    %c0_88 = arith.constant 0 : index
    %c0_89 = arith.constant 0 : index
    %123 = vector.load %arg3[%c4_87, %c0_88, %c0_89] : memref<9x128x128xbf16, #tpu.memory_space<vmem>>, vector<1x128x128xbf16>
    %124 = vector.shape_cast %123 : vector<1x128x128xbf16> to vector<128x128xbf16>
    %cst_90 = arith.constant dense<0.000000e+00> : vector<32x128xf32>
    %125 = tpu.matmul %122, %124, %cst_90 {dimension_numbers = #tpu.dot_dimension_numbers<[1], [0], [0], [1], [0, 0, 1, 1], [], []>} : vector<32x128xbf16>, vector<128x128xbf16>, vector<32x128xf32> -> vector<32x128xf32>
    %126 = arith.addf %121, %125 : vector<32x128xf32>
    %c40 = arith.constant 40 : index
    %c0_91 = arith.constant 0 : index
    %127 = vector.load %arg10[%c40, %c0_91] : memref<112x128xbf16, #tpu.memory_space<vmem>>, vector<32x128xbf16>
    %c5_92 = arith.constant 5 : index
    %c0_93 = arith.constant 0 : index
    %c0_94 = arith.constant 0 : index
    %128 = vector.load %arg3[%c5_92, %c0_93, %c0_94] : memref<9x128x128xbf16, #tpu.memory_space<vmem>>, vector<1x128x128xbf16>
    %129 = vector.shape_cast %128 : vector<1x128x128xbf16> to vector<128x128xbf16>
    %cst_95 = arith.constant dense<0.000000e+00> : vector<32x128xf32>
    %130 = tpu.matmul %127, %129, %cst_95 {dimension_numbers = #tpu.dot_dimension_numbers<[1], [0], [0], [1], [0, 0, 1, 1], [], []>} : vector<32x128xbf16>, vector<128x128xbf16>, vector<32x128xf32> -> vector<32x128xf32>
    %131 = arith.addf %126, %130 : vector<32x128xf32>
    %c44 = arith.constant 44 : index
    %c0_96 = arith.constant 0 : index
    %132 = vector.load %arg10[%c44, %c0_96] : memref<112x128xbf16, #tpu.memory_space<vmem>>, vector<32x128xbf16>
    %c6_97 = arith.constant 6 : index
    %c0_98 = arith.constant 0 : index
    %c0_99 = arith.constant 0 : index
    %133 = vector.load %arg3[%c6_97, %c0_98, %c0_99] : memref<9x128x128xbf16, #tpu.memory_space<vmem>>, vector<1x128x128xbf16>
    %134 = vector.shape_cast %133 : vector<1x128x128xbf16> to vector<128x128xbf16>
    %cst_100 = arith.constant dense<0.000000e+00> : vector<32x128xf32>
    %135 = tpu.matmul %132, %134, %cst_100 {dimension_numbers = #tpu.dot_dimension_numbers<[1], [0], [0], [1], [0, 0, 1, 1], [], []>} : vector<32x128xbf16>, vector<128x128xbf16>, vector<32x128xf32> -> vector<32x128xf32>
    %136 = arith.addf %131, %135 : vector<32x128xf32>
    %c45 = arith.constant 45 : index
    %c0_101 = arith.constant 0 : index
    %137 = vector.load %arg10[%c45, %c0_101] : memref<112x128xbf16, #tpu.memory_space<vmem>>, vector<32x128xbf16>
    %c7_102 = arith.constant 7 : index
    %c0_103 = arith.constant 0 : index
    %c0_104 = arith.constant 0 : index
    %138 = vector.load %arg3[%c7_102, %c0_103, %c0_104] : memref<9x128x128xbf16, #tpu.memory_space<vmem>>, vector<1x128x128xbf16>
    %139 = vector.shape_cast %138 : vector<1x128x128xbf16> to vector<128x128xbf16>
    %cst_105 = arith.constant dense<0.000000e+00> : vector<32x128xf32>
    %140 = tpu.matmul %137, %139, %cst_105 {dimension_numbers = #tpu.dot_dimension_numbers<[1], [0], [0], [1], [0, 0, 1, 1], [], []>} : vector<32x128xbf16>, vector<128x128xbf16>, vector<32x128xf32> -> vector<32x128xf32>
    %141 = arith.addf %136, %140 : vector<32x128xf32>
    %c46 = arith.constant 46 : index
    %c0_106 = arith.constant 0 : index
    %142 = vector.load %arg10[%c46, %c0_106] : memref<112x128xbf16, #tpu.memory_space<vmem>>, vector<32x128xbf16>
    %c8_107 = arith.constant 8 : index
    %c0_108 = arith.constant 0 : index
    %c0_109 = arith.constant 0 : index
    %143 = vector.load %arg3[%c8_107, %c0_108, %c0_109] : memref<9x128x128xbf16, #tpu.memory_space<vmem>>, vector<1x128x128xbf16>
    %144 = vector.shape_cast %143 : vector<1x128x128xbf16> to vector<128x128xbf16>
    %cst_110 = arith.constant dense<0.000000e+00> : vector<32x128xf32>
    %145 = tpu.matmul %142, %144, %cst_110 {dimension_numbers = #tpu.dot_dimension_numbers<[1], [0], [0], [1], [0, 0, 1, 1], [], []>} : vector<32x128xbf16>, vector<128x128xbf16>, vector<32x128xf32> -> vector<32x128xf32>
    %146 = arith.addf %141, %145 : vector<32x128xf32>
    %c0_111 = arith.constant 0 : index
    %c0_112 = arith.constant 0 : index
    %147 = vector.load %arg4[%c0_111, %c0_112] : memref<1x128xf32, #tpu.memory_space<vmem>>, vector<1x128xf32>
    %148 = vector.broadcast %147 : vector<1x128xf32> to vector<32x128xf32>
    %149 = arith.mulf %146, %148 : vector<32x128xf32>
    %c0_113 = arith.constant 0 : index
    %c0_114 = arith.constant 0 : index
    %150 = vector.load %arg5[%c0_113, %c0_114] : memref<1x128xf32, #tpu.memory_space<vmem>>, vector<1x128xf32>
    %151 = vector.broadcast %150 : vector<1x128xf32> to vector<32x128xf32>
    %152 = arith.addf %149, %151 : vector<32x128xf32>
    %cst_115 = arith.constant 0.000000e+00 : f32
    %153 = vector.broadcast %cst_115 : f32 to vector<32x128xf32>
    %154 = arith.maximumf %152, %153 : vector<32x128xf32>
    %c32_i32 = arith.constant 32 : i32
    %155 = arith.addi %0, %c32_i32 : i32
    %c7_i32_116 = arith.constant 7 : i32
    %156 = arith.addi %155, %c7_i32_116 : i32
    %c28_i32_117 = arith.constant 28 : i32
    %157 = arith.subi %156, %c28_i32_117 : i32
    %158 = tpu.iota {dimensions = array<i32: 0>} : vector<32x1xi32>
    %159 = vector.broadcast %157 : i32 to vector<32x1xi32>
    %160 = arith.addi %159, %158 : vector<32x1xi32>
    %161 = arith.sitofp %160 : vector<32x1xi32> to vector<32x1xf32>
    %cst_118 = arith.constant 3.600000e+01 : f32
    %162 = vector.broadcast %cst_118 : f32 to vector<32x1xf32>
    %163 = arith.divf %161, %162 : vector<32x1xf32>
    %164 = math.floor %163 : vector<32x1xf32>
    %cst_119 = arith.constant 3.600000e+01 : f32
    %165 = vector.broadcast %cst_119 : f32 to vector<32x1xf32>
    %166 = arith.mulf %164, %165 : vector<32x1xf32>
    %167 = arith.subf %161, %166 : vector<32x1xf32>
    %cst_120 = arith.constant 6.000000e+00 : f32
    %168 = vector.broadcast %cst_120 : f32 to vector<32x1xf32>
    %169 = arith.divf %167, %168 : vector<32x1xf32>
    %170 = math.floor %169 : vector<32x1xf32>
    %cst_121 = arith.constant 6.000000e+00 : f32
    %171 = vector.broadcast %cst_121 : f32 to vector<32x1xf32>
    %172 = arith.mulf %170, %171 : vector<32x1xf32>
    %173 = arith.subf %167, %172 : vector<32x1xf32>
    %c0_i32_122 = arith.constant 0 : i32
    %174 = vector.broadcast %c0_i32_122 : i32 to vector<32x1xi32>
    %175 = arith.cmpi sge, %160, %174 : vector<32x1xi32>
    %c72_i32_123 = arith.constant 72 : i32
    %176 = vector.broadcast %c72_i32_123 : i32 to vector<32x1xi32>
    %177 = arith.cmpi slt, %160, %176 : vector<32x1xi32>
    %178 = arith.andi %175, %177 : vector<32x1xi1>
    %cst_124 = arith.constant 1.000000e+00 : f32
    %179 = vector.broadcast %cst_124 : f32 to vector<32x1xf32>
    %180 = arith.cmpf oge, %170, %179 : vector<32x1xf32>
    %181 = arith.andi %178, %180 : vector<32x1xi1>
    %cst_125 = arith.constant 4.000000e+00 : f32
    %182 = vector.broadcast %cst_125 : f32 to vector<32x1xf32>
    %183 = arith.cmpf ole, %170, %182 : vector<32x1xf32>
    %184 = arith.andi %181, %183 : vector<32x1xi1>
    %cst_126 = arith.constant 1.000000e+00 : f32
    %185 = vector.broadcast %cst_126 : f32 to vector<32x1xf32>
    %186 = arith.cmpf oge, %173, %185 : vector<32x1xf32>
    %187 = arith.andi %184, %186 : vector<32x1xi1>
    %cst_127 = arith.constant 4.000000e+00 : f32
    %188 = vector.broadcast %cst_127 : f32 to vector<32x1xf32>
    %189 = arith.cmpf ole, %173, %188 : vector<32x1xf32>
    %190 = arith.andi %187, %189 : vector<32x1xi1>
    %191 = arith.extui %190 : vector<32x1xi1> to vector<32x1xi32>
    %192 = arith.sitofp %191 : vector<32x1xi32> to vector<32x1xf32>
    %193 = vector.broadcast %192 : vector<32x1xf32> to vector<32x128xf32>
    %194 = arith.mulf %154, %193 : vector<32x128xf32>
    %195 = arith.truncf %194 : vector<32x128xf32> to vector<32x128xbf16>
    %c32_128 = arith.constant 32 : index
    %c0_129 = arith.constant 0 : index
    %196 = vector.load %arg11[%c32_128, %c0_129] : memref<96x128xbf16, #tpu.memory_space<vmem>>, vector<32x128xbf16>
    tpu.vector_store %arg11[%c32_128, %c0_129], %195 {strides = array<i32>} : memref<96x128xbf16, #tpu.memory_space<vmem>>, vector<32x128xbf16>,
    %cst_130 = arith.constant 0.000000e+00 : f32
    %197 = vector.broadcast %cst_130 : f32 to vector<32x128xf32>
    %c64_131 = arith.constant 64 : index
    %c0_132 = arith.constant 0 : index
    %198 = vector.load %arg10[%c64_131, %c0_132] : memref<112x128xbf16, #tpu.memory_space<vmem>>, vector<32x128xbf16>
    %c0_133 = arith.constant 0 : index
    %c0_134 = arith.constant 0 : index
    %c0_135 = arith.constant 0 : index
    %199 = vector.load %arg3[%c0_133, %c0_134, %c0_135] : memref<9x128x128xbf16, #tpu.memory_space<vmem>>, vector<1x128x128xbf16>
    %200 = vector.shape_cast %199 : vector<1x128x128xbf16> to vector<128x128xbf16>
    %cst_136 = arith.constant dense<0.000000e+00> : vector<32x128xf32>
    %201 = tpu.matmul %198, %200, %cst_136 {dimension_numbers = #tpu.dot_dimension_numbers<[1], [0], [0], [1], [0, 0, 1, 1], [], []>} : vector<32x128xbf16>, vector<128x128xbf16>, vector<32x128xf32> -> vector<32x128xf32>
    %202 = arith.addf %197, %201 : vector<32x128xf32>
    %c65 = arith.constant 65 : index
    %c0_137 = arith.constant 0 : index
    %203 = vector.load %arg10[%c65, %c0_137] : memref<112x128xbf16, #tpu.memory_space<vmem>>, vector<32x128xbf16>
    %c1_138 = arith.constant 1 : index
    %c0_139 = arith.constant 0 : index
    %c0_140 = arith.constant 0 : index
    %204 = vector.load %arg3[%c1_138, %c0_139, %c0_140] : memref<9x128x128xbf16, #tpu.memory_space<vmem>>, vector<1x128x128xbf16>
    %205 = vector.shape_cast %204 : vector<1x128x128xbf16> to vector<128x128xbf16>
    %cst_141 = arith.constant dense<0.000000e+00> : vector<32x128xf32>
    %206 = tpu.matmul %203, %205, %cst_141 {dimension_numbers = #tpu.dot_dimension_numbers<[1], [0], [0], [1], [0, 0, 1, 1], [], []>} : vector<32x128xbf16>, vector<128x128xbf16>, vector<32x128xf32> -> vector<32x128xf32>
    %207 = arith.addf %202, %206 : vector<32x128xf32>
    %c66 = arith.constant 66 : index
    %c0_142 = arith.constant 0 : index
    %208 = vector.load %arg10[%c66, %c0_142] : memref<112x128xbf16, #tpu.memory_space<vmem>>, vector<32x128xbf16>
    %c2_143 = arith.constant 2 : index
    %c0_144 = arith.constant 0 : index
    %c0_145 = arith.constant 0 : index
    %209 = vector.load %arg3[%c2_143, %c0_144, %c0_145] : memref<9x128x128xbf16, #tpu.memory_space<vmem>>, vector<1x128x128xbf16>
    %210 = vector.shape_cast %209 : vector<1x128x128xbf16> to vector<128x128xbf16>
    %cst_146 = arith.constant dense<0.000000e+00> : vector<32x128xf32>
    %211 = tpu.matmul %208, %210, %cst_146 {dimension_numbers = #tpu.dot_dimension_numbers<[1], [0], [0], [1], [0, 0, 1, 1], [], []>} : vector<32x128xbf16>, vector<128x128xbf16>, vector<32x128xf32> -> vector<32x128xf32>
    %212 = arith.addf %207, %211 : vector<32x128xf32>
    %c70 = arith.constant 70 : index
    %c0_147 = arith.constant 0 : index
    %213 = vector.load %arg10[%c70, %c0_147] : memref<112x128xbf16, #tpu.memory_space<vmem>>, vector<32x128xbf16>
    %c3_148 = arith.constant 3 : index
    %c0_149 = arith.constant 0 : index
    %c0_150 = arith.constant 0 : index
    %214 = vector.load %arg3[%c3_148, %c0_149, %c0_150] : memref<9x128x128xbf16, #tpu.memory_space<vmem>>, vector<1x128x128xbf16>
    %215 = vector.shape_cast %214 : vector<1x128x128xbf16> to vector<128x128xbf16>
    %cst_151 = arith.constant dense<0.000000e+00> : vector<32x128xf32>
    %216 = tpu.matmul %213, %215, %cst_151 {dimension_numbers = #tpu.dot_dimension_numbers<[1], [0], [0], [1], [0, 0, 1, 1], [], []>} : vector<32x128xbf16>, vector<128x128xbf16>, vector<32x128xf32> -> vector<32x128xf32>
    %217 = arith.addf %212, %216 : vector<32x128xf32>
    %c71 = arith.constant 71 : index
    %c0_152 = arith.constant 0 : index
    %218 = vector.load %arg10[%c71, %c0_152] : memref<112x128xbf16, #tpu.memory_space<vmem>>, vector<32x128xbf16>
    %c4_153 = arith.constant 4 : index
    %c0_154 = arith.constant 0 : index
    %c0_155 = arith.constant 0 : index
    %219 = vector.load %arg3[%c4_153, %c0_154, %c0_155] : memref<9x128x128xbf16, #tpu.memory_space<vmem>>, vector<1x128x128xbf16>
    %220 = vector.shape_cast %219 : vector<1x128x128xbf16> to vector<128x128xbf16>
    %cst_156 = arith.constant dense<0.000000e+00> : vector<32x128xf32>
    %221 = tpu.matmul %218, %220, %cst_156 {dimension_numbers = #tpu.dot_dimension_numbers<[1], [0], [0], [1], [0, 0, 1, 1], [], []>} : vector<32x128xbf16>, vector<128x128xbf16>, vector<32x128xf32> -> vector<32x128xf32>
    %222 = arith.addf %217, %221 : vector<32x128xf32>
    %c72 = arith.constant 72 : index
    %c0_157 = arith.constant 0 : index
    %223 = vector.load %arg10[%c72, %c0_157] : memref<112x128xbf16, #tpu.memory_space<vmem>>, vector<32x128xbf16>
    %c5_158 = arith.constant 5 : index
    %c0_159 = arith.constant 0 : index
    %c0_160 = arith.constant 0 : index
    %224 = vector.load %arg3[%c5_158, %c0_159, %c0_160] : memref<9x128x128xbf16, #tpu.memory_space<vmem>>, vector<1x128x128xbf16>
    %225 = vector.shape_cast %224 : vector<1x128x128xbf16> to vector<128x128xbf16>
    %cst_161 = arith.constant dense<0.000000e+00> : vector<32x128xf32>
    %226 = tpu.matmul %223, %225, %cst_161 {dimension_numbers = #tpu.dot_dimension_numbers<[1], [0], [0], [1], [0, 0, 1, 1], [], []>} : vector<32x128xbf16>, vector<128x128xbf16>, vector<32x128xf32> -> vector<32x128xf32>
    %227 = arith.addf %222, %226 : vector<32x128xf32>
    %c76 = arith.constant 76 : index
    %c0_162 = arith.constant 0 : index
    %228 = vector.load %arg10[%c76, %c0_162] : memref<112x128xbf16, #tpu.memory_space<vmem>>, vector<32x128xbf16>
    %c6_163 = arith.constant 6 : index
    %c0_164 = arith.constant 0 : index
    %c0_165 = arith.constant 0 : index
    %229 = vector.load %arg3[%c6_163, %c0_164, %c0_165] : memref<9x128x128xbf16, #tpu.memory_space<vmem>>, vector<1x128x128xbf16>
    %230 = vector.shape_cast %229 : vector<1x128x128xbf16> to vector<128x128xbf16>
    %cst_166 = arith.constant dense<0.000000e+00> : vector<32x128xf32>
    %231 = tpu.matmul %228, %230, %cst_166 {dimension_numbers = #tpu.dot_dimension_numbers<[1], [0], [0], [1], [0, 0, 1, 1], [], []>} : vector<32x128xbf16>, vector<128x128xbf16>, vector<32x128xf32> -> vector<32x128xf32>
    %232 = arith.addf %227, %231 : vector<32x128xf32>
    %c77 = arith.constant 77 : index
    %c0_167 = arith.constant 0 : index
    %233 = vector.load %arg10[%c77, %c0_167] : memref<112x128xbf16, #tpu.memory_space<vmem>>, vector<32x128xbf16>
    %c7_168 = arith.constant 7 : index
    %c0_169 = arith.constant 0 : index
    %c0_170 = arith.constant 0 : index
    %234 = vector.load %arg3[%c7_168, %c0_169, %c0_170] : memref<9x128x128xbf16, #tpu.memory_space<vmem>>, vector<1x128x128xbf16>
    %235 = vector.shape_cast %234 : vector<1x128x128xbf16> to vector<128x128xbf16>
    %cst_171 = arith.constant dense<0.000000e+00> : vector<32x128xf32>
    %236 = tpu.matmul %233, %235, %cst_171 {dimension_numbers = #tpu.dot_dimension_numbers<[1], [0], [0], [1], [0, 0, 1, 1], [], []>} : vector<32x128xbf16>, vector<128x128xbf16>, vector<32x128xf32> -> vector<32x128xf32>
    %237 = arith.addf %232, %236 : vector<32x128xf32>
    %c78 = arith.constant 78 : index
    %c0_172 = arith.constant 0 : index
    %238 = vector.load %arg10[%c78, %c0_172] : memref<112x128xbf16, #tpu.memory_space<vmem>>, vector<32x128xbf16>
    %c8_173 = arith.constant 8 : index
    %c0_174 = arith.constant 0 : index
    %c0_175 = arith.constant 0 : index
    %239 = vector.load %arg3[%c8_173, %c0_174, %c0_175] : memref<9x128x128xbf16, #tpu.memory_space<vmem>>, vector<1x128x128xbf16>
    %240 = vector.shape_cast %239 : vector<1x128x128xbf16> to vector<128x128xbf16>
    %cst_176 = arith.constant dense<0.000000e+00> : vector<32x128xf32>
    %241 = tpu.matmul %238, %240, %cst_176 {dimension_numbers = #tpu.dot_dimension_numbers<[1], [0], [0], [1], [0, 0, 1, 1], [], []>} : vector<32x128xbf16>, vector<128x128xbf16>, vector<32x128xf32> -> vector<32x128xf32>
    %242 = arith.addf %237, %241 : vector<32x128xf32>
    %c0_177 = arith.constant 0 : index
    %c0_178 = arith.constant 0 : index
    %243 = vector.load %arg4[%c0_177, %c0_178] : memref<1x128xf32, #tpu.memory_space<vmem>>, vector<1x128xf32>
    %244 = vector.broadcast %243 : vector<1x128xf32> to vector<32x128xf32>
    %245 = arith.mulf %242, %244 : vector<32x128xf32>
    %c0_179 = arith.constant 0 : index
    %c0_180 = arith.constant 0 : index
    %246 = vector.load %arg5[%c0_179, %c0_180] : memref<1x128xf32, #tpu.memory_space<vmem>>, vector<1x128xf32>
    %247 = vector.broadcast %246 : vector<1x128xf32> to vector<32x128xf32>
    %248 = arith.addf %245, %247 : vector<32x128xf32>
    %cst_181 = arith.constant 0.000000e+00 : f32
    %249 = vector.broadcast %cst_181 : f32 to vector<32x128xf32>
    %250 = arith.maximumf %248, %249 : vector<32x128xf32>
    %c64_i32_182 = arith.constant 64 : i32
    %251 = arith.addi %0, %c64_i32_182 : i32
    %c7_i32_183 = arith.constant 7 : i32
    %252 = arith.addi %251, %c7_i32_183 : i32
    %c28_i32_184 = arith.constant 28 : i32
    %253 = arith.subi %252, %c28_i32_184 : i32
    %254 = tpu.iota {dimensions = array<i32: 0>} : vector<32x1xi32>
    %255 = vector.broadcast %253 : i32 to vector<32x1xi32>
    %256 = arith.addi %255, %254 : vector<32x1xi32>
    %257 = arith.sitofp %256 : vector<32x1xi32> to vector<32x1xf32>
    %cst_185 = arith.constant 3.600000e+01 : f32
    %258 = vector.broadcast %cst_185 : f32 to vector<32x1xf32>
    %259 = arith.divf %257, %258 : vector<32x1xf32>
    %260 = math.floor %259 : vector<32x1xf32>
    %cst_186 = arith.constant 3.600000e+01 : f32
    %261 = vector.broadcast %cst_186 : f32 to vector<32x1xf32>
    %262 = arith.mulf %260, %261 : vector<32x1xf32>
    %263 = arith.subf %257, %262 : vector<32x1xf32>
    %cst_187 = arith.constant 6.000000e+00 : f32
    %264 = vector.broadcast %cst_187 : f32 to vector<32x1xf32>
    %265 = arith.divf %263, %264 : vector<32x1xf32>
    %266 = math.floor %265 : vector<32x1xf32>
    %cst_188 = arith.constant 6.000000e+00 : f32
    %267 = vector.broadcast %cst_188 : f32 to vector<32x1xf32>
    %268 = arith.mulf %266, %267 : vector<32x1xf32>
    %269 = arith.subf %263, %268 : vector<32x1xf32>
    %c0_i32_189 = arith.constant 0 : i32
    %270 = vector.broadcast %c0_i32_189 : i32 to vector<32x1xi32>
    %271 = arith.cmpi sge, %256, %270 : vector<32x1xi32>
    %c72_i32_190 = arith.constant 72 : i32
    %272 = vector.broadcast %c72_i32_190 : i32 to vector<32x1xi32>
    %273 = arith.cmpi slt, %256, %272 : vector<32x1xi32>
    %274 = arith.andi %271, %273 : vector<32x1xi1>
    %cst_191 = arith.constant 1.000000e+00 : f32
    %275 = vector.broadcast %cst_191 : f32 to vector<32x1xf32>
    %276 = arith.cmpf oge, %266, %275 : vector<32x1xf32>
    %277 = arith.andi %274, %276 : vector<32x1xi1>
    %cst_192 = arith.constant 4.000000e+00 : f32
    %278 = vector.broadcast %cst_192 : f32 to vector<32x1xf32>
    %279 = arith.cmpf ole, %266, %278 : vector<32x1xf32>
    %280 = arith.andi %277, %279 : vector<32x1xi1>
    %cst_193 = arith.constant 1.000000e+00 : f32
    %281 = vector.broadcast %cst_193 : f32 to vector<32x1xf32>
    %282 = arith.cmpf oge, %269, %281 : vector<32x1xf32>
    %283 = arith.andi %280, %282 : vector<32x1xi1>
    %cst_194 = arith.constant 4.000000e+00 : f32
    %284 = vector.broadcast %cst_194 : f32 to vector<32x1xf32>
    %285 = arith.cmpf ole, %269, %284 : vector<32x1xf32>
    %286 = arith.andi %283, %285 : vector<32x1xi1>
    %287 = arith.extui %286 : vector<32x1xi1> to vector<32x1xi32>
    %288 = arith.sitofp %287 : vector<32x1xi32> to vector<32x1xf32>
    %289 = vector.broadcast %288 : vector<32x1xf32> to vector<32x128xf32>
    %290 = arith.mulf %250, %289 : vector<32x128xf32>
    %291 = arith.truncf %290 : vector<32x128xf32> to vector<32x128xbf16>
    %c64_195 = arith.constant 64 : index
    %c0_196 = arith.constant 0 : index
    %292 = vector.load %arg11[%c64_195, %c0_196] : memref<96x128xbf16, #tpu.memory_space<vmem>>, vector<32x128xbf16>
    tpu.vector_store %arg11[%c64_195, %c0_196], %291 {strides = array<i32>} : memref<96x128xbf16, #tpu.memory_space<vmem>>, vector<32x128xbf16>,
    %cst_197 = arith.constant 0.000000e+00 : f32
    %293 = vector.broadcast %cst_197 : f32 to vector<32x128xf32>
    %c0_198 = arith.constant 0 : index
    %c0_199 = arith.constant 0 : index
    %294 = vector.load %arg11[%c0_198, %c0_199] : memref<96x128xbf16, #tpu.memory_space<vmem>>, vector<32x128xbf16>
    %c0_200 = arith.constant 0 : index
    %c0_201 = arith.constant 0 : index
    %c0_202 = arith.constant 0 : index
    %295 = vector.load %arg6[%c0_200, %c0_201, %c0_202] : memref<9x128x128xbf16, #tpu.memory_space<vmem>>, vector<1x128x128xbf16>
    %296 = vector.shape_cast %295 : vector<1x128x128xbf16> to vector<128x128xbf16>
    %cst_203 = arith.constant dense<0.000000e+00> : vector<32x128xf32>
    %297 = tpu.matmul %294, %296, %cst_203 {dimension_numbers = #tpu.dot_dimension_numbers<[1], [0], [0], [1], [0, 0, 1, 1], [], []>} : vector<32x128xbf16>, vector<128x128xbf16>, vector<32x128xf32> -> vector<32x128xf32>
    %298 = arith.addf %293, %297 : vector<32x128xf32>
    %c1_204 = arith.constant 1 : index
    %c0_205 = arith.constant 0 : index
    %299 = vector.load %arg11[%c1_204, %c0_205] : memref<96x128xbf16, #tpu.memory_space<vmem>>, vector<32x128xbf16>
    %c1_206 = arith.constant 1 : index
    %c0_207 = arith.constant 0 : index
    %c0_208 = arith.constant 0 : index
    %300 = vector.load %arg6[%c1_206, %c0_207, %c0_208] : memref<9x128x128xbf16, #tpu.memory_space<vmem>>, vector<1x128x128xbf16>
    %301 = vector.shape_cast %300 : vector<1x128x128xbf16> to vector<128x128xbf16>
    %cst_209 = arith.constant dense<0.000000e+00> : vector<32x128xf32>
    %302 = tpu.matmul %299, %301, %cst_209 {dimension_numbers = #tpu.dot_dimension_numbers<[1], [0], [0], [1], [0, 0, 1, 1], [], []>} : vector<32x128xbf16>, vector<128x128xbf16>, vector<32x128xf32> -> vector<32x128xf32>
    %303 = arith.addf %298, %302 : vector<32x128xf32>
    %c2_210 = arith.constant 2 : index
    %c0_211 = arith.constant 0 : index
    %304 = vector.load %arg11[%c2_210, %c0_211] : memref<96x128xbf16, #tpu.memory_space<vmem>>, vector<32x128xbf16>
    %c2_212 = arith.constant 2 : index
    %c0_213 = arith.constant 0 : index
    %c0_214 = arith.constant 0 : index
    %305 = vector.load %arg6[%c2_212, %c0_213, %c0_214] : memref<9x128x128xbf16, #tpu.memory_space<vmem>>, vector<1x128x128xbf16>
    %306 = vector.shape_cast %305 : vector<1x128x128xbf16> to vector<128x128xbf16>
    %cst_215 = arith.constant dense<0.000000e+00> : vector<32x128xf32>
    %307 = tpu.matmul %304, %306, %cst_215 {dimension_numbers = #tpu.dot_dimension_numbers<[1], [0], [0], [1], [0, 0, 1, 1], [], []>} : vector<32x128xbf16>, vector<128x128xbf16>, vector<32x128xf32> -> vector<32x128xf32>
    %308 = arith.addf %303, %307 : vector<32x128xf32>
    %c6_216 = arith.constant 6 : index
    %c0_217 = arith.constant 0 : index
    %309 = vector.load %arg11[%c6_216, %c0_217] : memref<96x128xbf16, #tpu.memory_space<vmem>>, vector<32x128xbf16>
    %c3_218 = arith.constant 3 : index
    %c0_219 = arith.constant 0 : index
    %c0_220 = arith.constant 0 : index
    %310 = vector.load %arg6[%c3_218, %c0_219, %c0_220] : memref<9x128x128xbf16, #tpu.memory_space<vmem>>, vector<1x128x128xbf16>
    %311 = vector.shape_cast %310 : vector<1x128x128xbf16> to vector<128x128xbf16>
    %cst_221 = arith.constant dense<0.000000e+00> : vector<32x128xf32>
    %312 = tpu.matmul %309, %311, %cst_221 {dimension_numbers = #tpu.dot_dimension_numbers<[1], [0], [0], [1], [0, 0, 1, 1], [], []>} : vector<32x128xbf16>, vector<128x128xbf16>, vector<32x128xf32> -> vector<32x128xf32>
    %313 = arith.addf %308, %312 : vector<32x128xf32>
    %c7_222 = arith.constant 7 : index
    %c0_223 = arith.constant 0 : index
    %314 = vector.load %arg11[%c7_222, %c0_223] : memref<96x128xbf16, #tpu.memory_space<vmem>>, vector<32x128xbf16>
    %c4_224 = arith.constant 4 : index
    %c0_225 = arith.constant 0 : index
    %c0_226 = arith.constant 0 : index
    %315 = vector.load %arg6[%c4_224, %c0_225, %c0_226] : memref<9x128x128xbf16, #tpu.memory_space<vmem>>, vector<1x128x128xbf16>
    %316 = vector.shape_cast %315 : vector<1x128x128xbf16> to vector<128x128xbf16>
    %cst_227 = arith.constant dense<0.000000e+00> : vector<32x128xf32>
    %317 = tpu.matmul %314, %316, %cst_227 {dimension_numbers = #tpu.dot_dimension_numbers<[1], [0], [0], [1], [0, 0, 1, 1], [], []>} : vector<32x128xbf16>, vector<128x128xbf16>, vector<32x128xf32> -> vector<32x128xf32>
    %318 = arith.addf %313, %317 : vector<32x128xf32>
    %c8_228 = arith.constant 8 : index
    %c0_229 = arith.constant 0 : index
    %319 = vector.load %arg11[%c8_228, %c0_229] : memref<96x128xbf16, #tpu.memory_space<vmem>>, vector<32x128xbf16>
    %c5_230 = arith.constant 5 : index
    %c0_231 = arith.constant 0 : index
    %c0_232 = arith.constant 0 : index
    %320 = vector.load %arg6[%c5_230, %c0_231, %c0_232] : memref<9x128x128xbf16, #tpu.memory_space<vmem>>, vector<1x128x128xbf16>
    %321 = vector.shape_cast %320 : vector<1x128x128xbf16> to vector<128x128xbf16>
    %cst_233 = arith.constant dense<0.000000e+00> : vector<32x128xf32>
    %322 = tpu.matmul %319, %321, %cst_233 {dimension_numbers = #tpu.dot_dimension_numbers<[1], [0], [0], [1], [0, 0, 1, 1], [], []>} : vector<32x128xbf16>, vector<128x128xbf16>, vector<32x128xf32> -> vector<32x128xf32>
    %323 = arith.addf %318, %322 : vector<32x128xf32>
    %c12_234 = arith.constant 12 : index
    %c0_235 = arith.constant 0 : index
    %324 = vector.load %arg11[%c12_234, %c0_235] : memref<96x128xbf16, #tpu.memory_space<vmem>>, vector<32x128xbf16>
    %c6_236 = arith.constant 6 : index
    %c0_237 = arith.constant 0 : index
    %c0_238 = arith.constant 0 : index
    %325 = vector.load %arg6[%c6_236, %c0_237, %c0_238] : memref<9x128x128xbf16, #tpu.memory_space<vmem>>, vector<1x128x128xbf16>
    %326 = vector.shape_cast %325 : vector<1x128x128xbf16> to vector<128x128xbf16>
    %cst_239 = arith.constant dense<0.000000e+00> : vector<32x128xf32>
    %327 = tpu.matmul %324, %326, %cst_239 {dimension_numbers = #tpu.dot_dimension_numbers<[1], [0], [0], [1], [0, 0, 1, 1], [], []>} : vector<32x128xbf16>, vector<128x128xbf16>, vector<32x128xf32> -> vector<32x128xf32>
    %328 = arith.addf %323, %327 : vector<32x128xf32>
    %c13_240 = arith.constant 13 : index
    %c0_241 = arith.constant 0 : index
    %329 = vector.load %arg11[%c13_240, %c0_241] : memref<96x128xbf16, #tpu.memory_space<vmem>>, vector<32x128xbf16>
    %c7_242 = arith.constant 7 : index
    %c0_243 = arith.constant 0 : index
    %c0_244 = arith.constant 0 : index
    %330 = vector.load %arg6[%c7_242, %c0_243, %c0_244] : memref<9x128x128xbf16, #tpu.memory_space<vmem>>, vector<1x128x128xbf16>
    %331 = vector.shape_cast %330 : vector<1x128x128xbf16> to vector<128x128xbf16>
    %cst_245 = arith.constant dense<0.000000e+00> : vector<32x128xf32>
    %332 = tpu.matmul %329, %331, %cst_245 {dimension_numbers = #tpu.dot_dimension_numbers<[1], [0], [0], [1], [0, 0, 1, 1], [], []>} : vector<32x128xbf16>, vector<128x128xbf16>, vector<32x128xf32> -> vector<32x128xf32>
    %333 = arith.addf %328, %332 : vector<32x128xf32>
    %c14_246 = arith.constant 14 : index
    %c0_247 = arith.constant 0 : index
    %334 = vector.load %arg11[%c14_246, %c0_247] : memref<96x128xbf16, #tpu.memory_space<vmem>>, vector<32x128xbf16>
    %c8_248 = arith.constant 8 : index
    %c0_249 = arith.constant 0 : index
    %c0_250 = arith.constant 0 : index
    %335 = vector.load %arg6[%c8_248, %c0_249, %c0_250] : memref<9x128x128xbf16, #tpu.memory_space<vmem>>, vector<1x128x128xbf16>
    %336 = vector.shape_cast %335 : vector<1x128x128xbf16> to vector<128x128xbf16>
    %cst_251 = arith.constant dense<0.000000e+00> : vector<32x128xf32>
    %337 = tpu.matmul %334, %336, %cst_251 {dimension_numbers = #tpu.dot_dimension_numbers<[1], [0], [0], [1], [0, 0, 1, 1], [], []>} : vector<32x128xbf16>, vector<128x128xbf16>, vector<32x128xf32> -> vector<32x128xf32>
    %338 = arith.addf %333, %337 : vector<32x128xf32>
    %c14_252 = arith.constant 14 : index
    %c0_253 = arith.constant 0 : index
    %339 = vector.load %arg10[%c14_252, %c0_253] : memref<112x128xbf16, #tpu.memory_space<vmem>>, vector<32x128xbf16>
    %340 = arith.extf %339 : vector<32x128xbf16> to vector<32x128xf32>
    %c0_254 = arith.constant 0 : index
    %c0_255 = arith.constant 0 : index
    %341 = vector.load %arg7[%c0_254, %c0_255] : memref<1x128xf32, #tpu.memory_space<vmem>>, vector<1x128xf32>
    %342 = vector.broadcast %341 : vector<1x128xf32> to vector<32x128xf32>
    %343 = arith.mulf %338, %342 : vector<32x128xf32>
    %c0_256 = arith.constant 0 : index
    %c0_257 = arith.constant 0 : index
    %344 = vector.load %arg8[%c0_256, %c0_257] : memref<1x128xf32, #tpu.memory_space<vmem>>, vector<1x128xf32>
    %345 = vector.broadcast %344 : vector<1x128xf32> to vector<32x128xf32>
    %346 = arith.addf %343, %345 : vector<32x128xf32>
    %347 = arith.addf %346, %340 : vector<32x128xf32>
    %cst_258 = arith.constant 0.000000e+00 : f32
    %348 = vector.broadcast %cst_258 : f32 to vector<32x128xf32>
    %349 = arith.maximumf %347, %348 : vector<32x128xf32>
    %c0_i32_259 = arith.constant 0 : i32
    %350 = arith.addi %0, %c0_i32_259 : i32
    %c14_i32 = arith.constant 14 : i32
    %351 = arith.addi %350, %c14_i32 : i32
    %c28_i32_260 = arith.constant 28 : i32
    %352 = arith.subi %351, %c28_i32_260 : i32
    %353 = tpu.iota {dimensions = array<i32: 0>} : vector<32x1xi32>
    %354 = vector.broadcast %352 : i32 to vector<32x1xi32>
    %355 = arith.addi %354, %353 : vector<32x1xi32>
    %356 = arith.sitofp %355 : vector<32x1xi32> to vector<32x1xf32>
    %cst_261 = arith.constant 3.600000e+01 : f32
    %357 = vector.broadcast %cst_261 : f32 to vector<32x1xf32>
    %358 = arith.divf %356, %357 : vector<32x1xf32>
    %359 = math.floor %358 : vector<32x1xf32>
    %cst_262 = arith.constant 3.600000e+01 : f32
    %360 = vector.broadcast %cst_262 : f32 to vector<32x1xf32>
    %361 = arith.mulf %359, %360 : vector<32x1xf32>
    %362 = arith.subf %356, %361 : vector<32x1xf32>
    %cst_263 = arith.constant 6.000000e+00 : f32
    %363 = vector.broadcast %cst_263 : f32 to vector<32x1xf32>
    %364 = arith.divf %362, %363 : vector<32x1xf32>
    %365 = math.floor %364 : vector<32x1xf32>
    %cst_264 = arith.constant 6.000000e+00 : f32
    %366 = vector.broadcast %cst_264 : f32 to vector<32x1xf32>
    %367 = arith.mulf %365, %366 : vector<32x1xf32>
    %368 = arith.subf %362, %367 : vector<32x1xf32>
    %c0_i32_265 = arith.constant 0 : i32
    %369 = vector.broadcast %c0_i32_265 : i32 to vector<32x1xi32>
    %370 = arith.cmpi sge, %355, %369 : vector<32x1xi32>
    %c72_i32_266 = arith.constant 72 : i32
    %371 = vector.broadcast %c72_i32_266 : i32 to vector<32x1xi32>
    %372 = arith.cmpi slt, %355, %371 : vector<32x1xi32>
    %373 = arith.andi %370, %372 : vector<32x1xi1>
    %cst_267 = arith.constant 1.000000e+00 : f32
    %374 = vector.broadcast %cst_267 : f32 to vector<32x1xf32>
    %375 = arith.cmpf oge, %365, %374 : vector<32x1xf32>
    %376 = arith.andi %373, %375 : vector<32x1xi1>
    %cst_268 = arith.constant 4.000000e+00 : f32
    %377 = vector.broadcast %cst_268 : f32 to vector<32x1xf32>
    %378 = arith.cmpf ole, %365, %377 : vector<32x1xf32>
    %379 = arith.andi %376, %378 : vector<32x1xi1>
    %cst_269 = arith.constant 1.000000e+00 : f32
    %380 = vector.broadcast %cst_269 : f32 to vector<32x1xf32>
    %381 = arith.cmpf oge, %368, %380 : vector<32x1xf32>
    %382 = arith.andi %379, %381 : vector<32x1xi1>
    %cst_270 = arith.constant 4.000000e+00 : f32
    %383 = vector.broadcast %cst_270 : f32 to vector<32x1xf32>
    %384 = arith.cmpf ole, %368, %383 : vector<32x1xf32>
    %385 = arith.andi %382, %384 : vector<32x1xi1>
    %386 = arith.extui %385 : vector<32x1xi1> to vector<32x1xi32>
    %387 = arith.sitofp %386 : vector<32x1xi32> to vector<32x1xf32>
    %388 = vector.broadcast %387 : vector<32x1xf32> to vector<32x128xf32>
    %389 = arith.mulf %349, %388 : vector<32x128xf32>
    %390 = arith.truncf %389 : vector<32x128xf32> to vector<32x128xbf16>
    %c0_271 = arith.constant 0 : index
    %c0_272 = arith.constant 0 : index
    %391 = vector.load %arg9[%c0_271, %c0_272] : memref<64x128xbf16, #tpu.memory_space<vmem>>, vector<32x128xbf16>
    tpu.vector_store %arg9[%c0_271, %c0_272], %390 {strides = array<i32>} : memref<64x128xbf16, #tpu.memory_space<vmem>>, vector<32x128xbf16>,
    %cst_273 = arith.constant 0.000000e+00 : f32
    %392 = vector.broadcast %cst_273 : f32 to vector<32x128xf32>
    %c32_274 = arith.constant 32 : index
    %c0_275 = arith.constant 0 : index
    %393 = vector.load %arg11[%c32_274, %c0_275] : memref<96x128xbf16, #tpu.memory_space<vmem>>, vector<32x128xbf16>
    %c0_276 = arith.constant 0 : index
    %c0_277 = arith.constant 0 : index
    %c0_278 = arith.constant 0 : index
    %394 = vector.load %arg6[%c0_276, %c0_277, %c0_278] : memref<9x128x128xbf16, #tpu.memory_space<vmem>>, vector<1x128x128xbf16>
    %395 = vector.shape_cast %394 : vector<1x128x128xbf16> to vector<128x128xbf16>
    %cst_279 = arith.constant dense<0.000000e+00> : vector<32x128xf32>
    %396 = tpu.matmul %393, %395, %cst_279 {dimension_numbers = #tpu.dot_dimension_numbers<[1], [0], [0], [1], [0, 0, 1, 1], [], []>} : vector<32x128xbf16>, vector<128x128xbf16>, vector<32x128xf32> -> vector<32x128xf32>
    %397 = arith.addf %392, %396 : vector<32x128xf32>
    %c33_280 = arith.constant 33 : index
    %c0_281 = arith.constant 0 : index
    %398 = vector.load %arg11[%c33_280, %c0_281] : memref<96x128xbf16, #tpu.memory_space<vmem>>, vector<32x128xbf16>
    %c1_282 = arith.constant 1 : index
    %c0_283 = arith.constant 0 : index
    %c0_284 = arith.constant 0 : index
    %399 = vector.load %arg6[%c1_282, %c0_283, %c0_284] : memref<9x128x128xbf16, #tpu.memory_space<vmem>>, vector<1x128x128xbf16>
    %400 = vector.shape_cast %399 : vector<1x128x128xbf16> to vector<128x128xbf16>
    %cst_285 = arith.constant dense<0.000000e+00> : vector<32x128xf32>
    %401 = tpu.matmul %398, %400, %cst_285 {dimension_numbers = #tpu.dot_dimension_numbers<[1], [0], [0], [1], [0, 0, 1, 1], [], []>} : vector<32x128xbf16>, vector<128x128xbf16>, vector<32x128xf32> -> vector<32x128xf32>
    %402 = arith.addf %397, %401 : vector<32x128xf32>
    %c34_286 = arith.constant 34 : index
    %c0_287 = arith.constant 0 : index
    %403 = vector.load %arg11[%c34_286, %c0_287] : memref<96x128xbf16, #tpu.memory_space<vmem>>, vector<32x128xbf16>
    %c2_288 = arith.constant 2 : index
    %c0_289 = arith.constant 0 : index
    %c0_290 = arith.constant 0 : index
    %404 = vector.load %arg6[%c2_288, %c0_289, %c0_290] : memref<9x128x128xbf16, #tpu.memory_space<vmem>>, vector<1x128x128xbf16>
    %405 = vector.shape_cast %404 : vector<1x128x128xbf16> to vector<128x128xbf16>
    %cst_291 = arith.constant dense<0.000000e+00> : vector<32x128xf32>
    %406 = tpu.matmul %403, %405, %cst_291 {dimension_numbers = #tpu.dot_dimension_numbers<[1], [0], [0], [1], [0, 0, 1, 1], [], []>} : vector<32x128xbf16>, vector<128x128xbf16>, vector<32x128xf32> -> vector<32x128xf32>
    %407 = arith.addf %402, %406 : vector<32x128xf32>
    %c38_292 = arith.constant 38 : index
    %c0_293 = arith.constant 0 : index
    %408 = vector.load %arg11[%c38_292, %c0_293] : memref<96x128xbf16, #tpu.memory_space<vmem>>, vector<32x128xbf16>
    %c3_294 = arith.constant 3 : index
    %c0_295 = arith.constant 0 : index
    %c0_296 = arith.constant 0 : index
    %409 = vector.load %arg6[%c3_294, %c0_295, %c0_296] : memref<9x128x128xbf16, #tpu.memory_space<vmem>>, vector<1x128x128xbf16>
    %410 = vector.shape_cast %409 : vector<1x128x128xbf16> to vector<128x128xbf16>
    %cst_297 = arith.constant dense<0.000000e+00> : vector<32x128xf32>
    %411 = tpu.matmul %408, %410, %cst_297 {dimension_numbers = #tpu.dot_dimension_numbers<[1], [0], [0], [1], [0, 0, 1, 1], [], []>} : vector<32x128xbf16>, vector<128x128xbf16>, vector<32x128xf32> -> vector<32x128xf32>
    %412 = arith.addf %407, %411 : vector<32x128xf32>
    %c39_298 = arith.constant 39 : index
    %c0_299 = arith.constant 0 : index
    %413 = vector.load %arg11[%c39_298, %c0_299] : memref<96x128xbf16, #tpu.memory_space<vmem>>, vector<32x128xbf16>
    %c4_300 = arith.constant 4 : index
    %c0_301 = arith.constant 0 : index
    %c0_302 = arith.constant 0 : index
    %414 = vector.load %arg6[%c4_300, %c0_301, %c0_302] : memref<9x128x128xbf16, #tpu.memory_space<vmem>>, vector<1x128x128xbf16>
    %415 = vector.shape_cast %414 : vector<1x128x128xbf16> to vector<128x128xbf16>
    %cst_303 = arith.constant dense<0.000000e+00> : vector<32x128xf32>
    %416 = tpu.matmul %413, %415, %cst_303 {dimension_numbers = #tpu.dot_dimension_numbers<[1], [0], [0], [1], [0, 0, 1, 1], [], []>} : vector<32x128xbf16>, vector<128x128xbf16>, vector<32x128xf32> -> vector<32x128xf32>
    %417 = arith.addf %412, %416 : vector<32x128xf32>
    %c40_304 = arith.constant 40 : index
    %c0_305 = arith.constant 0 : index
    %418 = vector.load %arg11[%c40_304, %c0_305] : memref<96x128xbf16, #tpu.memory_space<vmem>>, vector<32x128xbf16>
    %c5_306 = arith.constant 5 : index
    %c0_307 = arith.constant 0 : index
    %c0_308 = arith.constant 0 : index
    %419 = vector.load %arg6[%c5_306, %c0_307, %c0_308] : memref<9x128x128xbf16, #tpu.memory_space<vmem>>, vector<1x128x128xbf16>
    %420 = vector.shape_cast %419 : vector<1x128x128xbf16> to vector<128x128xbf16>
    %cst_309 = arith.constant dense<0.000000e+00> : vector<32x128xf32>
    %421 = tpu.matmul %418, %420, %cst_309 {dimension_numbers = #tpu.dot_dimension_numbers<[1], [0], [0], [1], [0, 0, 1, 1], [], []>} : vector<32x128xbf16>, vector<128x128xbf16>, vector<32x128xf32> -> vector<32x128xf32>
    %422 = arith.addf %417, %421 : vector<32x128xf32>
    %c44_310 = arith.constant 44 : index
    %c0_311 = arith.constant 0 : index
    %423 = vector.load %arg11[%c44_310, %c0_311] : memref<96x128xbf16, #tpu.memory_space<vmem>>, vector<32x128xbf16>
    %c6_312 = arith.constant 6 : index
    %c0_313 = arith.constant 0 : index
    %c0_314 = arith.constant 0 : index
    %424 = vector.load %arg6[%c6_312, %c0_313, %c0_314] : memref<9x128x128xbf16, #tpu.memory_space<vmem>>, vector<1x128x128xbf16>
    %425 = vector.shape_cast %424 : vector<1x128x128xbf16> to vector<128x128xbf16>
    %cst_315 = arith.constant dense<0.000000e+00> : vector<32x128xf32>
    %426 = tpu.matmul %423, %425, %cst_315 {dimension_numbers = #tpu.dot_dimension_numbers<[1], [0], [0], [1], [0, 0, 1, 1], [], []>} : vector<32x128xbf16>, vector<128x128xbf16>, vector<32x128xf32> -> vector<32x128xf32>
    %427 = arith.addf %422, %426 : vector<32x128xf32>
    %c45_316 = arith.constant 45 : index
    %c0_317 = arith.constant 0 : index
    %428 = vector.load %arg11[%c45_316, %c0_317] : memref<96x128xbf16, #tpu.memory_space<vmem>>, vector<32x128xbf16>
    %c7_318 = arith.constant 7 : index
    %c0_319 = arith.constant 0 : index
    %c0_320 = arith.constant 0 : index
    %429 = vector.load %arg6[%c7_318, %c0_319, %c0_320] : memref<9x128x128xbf16, #tpu.memory_space<vmem>>, vector<1x128x128xbf16>
    %430 = vector.shape_cast %429 : vector<1x128x128xbf16> to vector<128x128xbf16>
    %cst_321 = arith.constant dense<0.000000e+00> : vector<32x128xf32>
    %431 = tpu.matmul %428, %430, %cst_321 {dimension_numbers = #tpu.dot_dimension_numbers<[1], [0], [0], [1], [0, 0, 1, 1], [], []>} : vector<32x128xbf16>, vector<128x128xbf16>, vector<32x128xf32> -> vector<32x128xf32>
    %432 = arith.addf %427, %431 : vector<32x128xf32>
    %c46_322 = arith.constant 46 : index
    %c0_323 = arith.constant 0 : index
    %433 = vector.load %arg11[%c46_322, %c0_323] : memref<96x128xbf16, #tpu.memory_space<vmem>>, vector<32x128xbf16>
    %c8_324 = arith.constant 8 : index
    %c0_325 = arith.constant 0 : index
    %c0_326 = arith.constant 0 : index
    %434 = vector.load %arg6[%c8_324, %c0_325, %c0_326] : memref<9x128x128xbf16, #tpu.memory_space<vmem>>, vector<1x128x128xbf16>
    %435 = vector.shape_cast %434 : vector<1x128x128xbf16> to vector<128x128xbf16>
    %cst_327 = arith.constant dense<0.000000e+00> : vector<32x128xf32>
    %436 = tpu.matmul %433, %435, %cst_327 {dimension_numbers = #tpu.dot_dimension_numbers<[1], [0], [0], [1], [0, 0, 1, 1], [], []>} : vector<32x128xbf16>, vector<128x128xbf16>, vector<32x128xf32> -> vector<32x128xf32>
    %437 = arith.addf %432, %436 : vector<32x128xf32>
    %c46_328 = arith.constant 46 : index
    %c0_329 = arith.constant 0 : index
    %438 = vector.load %arg10[%c46_328, %c0_329] : memref<112x128xbf16, #tpu.memory_space<vmem>>, vector<32x128xbf16>
    %439 = arith.extf %438 : vector<32x128xbf16> to vector<32x128xf32>
    %c0_330 = arith.constant 0 : index
    %c0_331 = arith.constant 0 : index
    %440 = vector.load %arg7[%c0_330, %c0_331] : memref<1x128xf32, #tpu.memory_space<vmem>>, vector<1x128xf32>
    %441 = vector.broadcast %440 : vector<1x128xf32> to vector<32x128xf32>
    %442 = arith.mulf %437, %441 : vector<32x128xf32>
    %c0_332 = arith.constant 0 : index
    %c0_333 = arith.constant 0 : index
    %443 = vector.load %arg8[%c0_332, %c0_333] : memref<1x128xf32, #tpu.memory_space<vmem>>, vector<1x128xf32>
    %444 = vector.broadcast %443 : vector<1x128xf32> to vector<32x128xf32>
    %445 = arith.addf %442, %444 : vector<32x128xf32>
    %446 = arith.addf %445, %439 : vector<32x128xf32>
    %cst_334 = arith.constant 0.000000e+00 : f32
    %447 = vector.broadcast %cst_334 : f32 to vector<32x128xf32>
    %448 = arith.maximumf %446, %447 : vector<32x128xf32>
    %c32_i32_335 = arith.constant 32 : i32
    %449 = arith.addi %0, %c32_i32_335 : i32
    %c14_i32_336 = arith.constant 14 : i32
    %450 = arith.addi %449, %c14_i32_336 : i32
    %c28_i32_337 = arith.constant 28 : i32
    %451 = arith.subi %450, %c28_i32_337 : i32
    %452 = tpu.iota {dimensions = array<i32: 0>} : vector<32x1xi32>
    %453 = vector.broadcast %451 : i32 to vector<32x1xi32>
    %454 = arith.addi %453, %452 : vector<32x1xi32>
    %455 = arith.sitofp %454 : vector<32x1xi32> to vector<32x1xf32>
    %cst_338 = arith.constant 3.600000e+01 : f32
    %456 = vector.broadcast %cst_338 : f32 to vector<32x1xf32>
    %457 = arith.divf %455, %456 : vector<32x1xf32>
    %458 = math.floor %457 : vector<32x1xf32>
    %cst_339 = arith.constant 3.600000e+01 : f32
    %459 = vector.broadcast %cst_339 : f32 to vector<32x1xf32>
    %460 = arith.mulf %458, %459 : vector<32x1xf32>
    %461 = arith.subf %455, %460 : vector<32x1xf32>
    %cst_340 = arith.constant 6.000000e+00 : f32
    %462 = vector.broadcast %cst_340 : f32 to vector<32x1xf32>
    %463 = arith.divf %461, %462 : vector<32x1xf32>
    %464 = math.floor %463 : vector<32x1xf32>
    %cst_341 = arith.constant 6.000000e+00 : f32
    %465 = vector.broadcast %cst_341 : f32 to vector<32x1xf32>
    %466 = arith.mulf %464, %465 : vector<32x1xf32>
    %467 = arith.subf %461, %466 : vector<32x1xf32>
    %c0_i32_342 = arith.constant 0 : i32
    %468 = vector.broadcast %c0_i32_342 : i32 to vector<32x1xi32>
    %469 = arith.cmpi sge, %454, %468 : vector<32x1xi32>
    %c72_i32_343 = arith.constant 72 : i32
    %470 = vector.broadcast %c72_i32_343 : i32 to vector<32x1xi32>
    %471 = arith.cmpi slt, %454, %470 : vector<32x1xi32>
    %472 = arith.andi %469, %471 : vector<32x1xi1>
    %cst_344 = arith.constant 1.000000e+00 : f32
    %473 = vector.broadcast %cst_344 : f32 to vector<32x1xf32>
    %474 = arith.cmpf oge, %464, %473 : vector<32x1xf32>
    %475 = arith.andi %472, %474 : vector<32x1xi1>
    %cst_345 = arith.constant 4.000000e+00 : f32
    %476 = vector.broadcast %cst_345 : f32 to vector<32x1xf32>
    %477 = arith.cmpf ole, %464, %476 : vector<32x1xf32>
    %478 = arith.andi %475, %477 : vector<32x1xi1>
    %cst_346 = arith.constant 1.000000e+00 : f32
    %479 = vector.broadcast %cst_346 : f32 to vector<32x1xf32>
    %480 = arith.cmpf oge, %467, %479 : vector<32x1xf32>
    %481 = arith.andi %478, %480 : vector<32x1xi1>
    %cst_347 = arith.constant 4.000000e+00 : f32
    %482 = vector.broadcast %cst_347 : f32 to vector<32x1xf32>
    %483 = arith.cmpf ole, %467, %482 : vector<32x1xf32>
    %484 = arith.andi %481, %483 : vector<32x1xi1>
    %485 = arith.extui %484 : vector<32x1xi1> to vector<32x1xi32>
    %486 = arith.sitofp %485 : vector<32x1xi32> to vector<32x1xf32>
    %487 = vector.broadcast %486 : vector<32x1xf32> to vector<32x128xf32>
    %488 = arith.mulf %448, %487 : vector<32x128xf32>
    %489 = arith.truncf %488 : vector<32x128xf32> to vector<32x128xbf16>
    %c32_348 = arith.constant 32 : index
    %c0_349 = arith.constant 0 : index
    %490 = vector.load %arg9[%c32_348, %c0_349] : memref<64x128xbf16, #tpu.memory_space<vmem>>, vector<32x128xbf16>
    tpu.vector_store %arg9[%c32_348, %c0_349], %489 {strides = array<i32>} : memref<64x128xbf16, #tpu.memory_space<vmem>>, vector<32x128xbf16>,
    return
  }
  func.func @transform_0(%arg0: i32) -> (i32, i32) {
    %c0_i32 = arith.constant 0 : i32
    %c0_i32_0 = arith.constant 0 : i32
    return %arg0, %c0_i32 : i32, i32
  }
  func.func @transform_1(%arg0: i32) -> (i32, i32) {
    %c1_i32 = arith.constant 1 : i32
    %0 = arith.addi %arg0, %c1_i32 : i32
    %c0_i32 = arith.constant 0 : i32
    %c0_i32_0 = arith.constant 0 : i32
    return %0, %c0_i32 : i32, i32
  }
  func.func @transform_2(%arg0: i32) -> (i32, i32, i32) {
    %c0_i32 = arith.constant 0 : i32
    %c0_i32_0 = arith.constant 0 : i32
    %c0_i32_1 = arith.constant 0 : i32
    %c0_i32_2 = arith.constant 0 : i32
    return %c0_i32, %c0_i32_0, %c0_i32_1 : i32, i32, i32
  }
  func.func @transform_3(%arg0: i32) -> (i32, i32) {
    %c0_i32 = arith.constant 0 : i32
    %c0_i32_0 = arith.constant 0 : i32
    %c0_i32_1 = arith.constant 0 : i32
    return %c0_i32, %c0_i32_0 : i32, i32
  }
  func.func @transform_4(%arg0: i32) -> (i32, i32) {
    %c0_i32 = arith.constant 0 : i32
    %c0_i32_0 = arith.constant 0 : i32
    %c0_i32_1 = arith.constant 0 : i32
    return %c0_i32, %c0_i32_0 : i32, i32
  }
  func.func @transform_5(%arg0: i32) -> (i32, i32, i32) {
    %c0_i32 = arith.constant 0 : i32
    %c0_i32_0 = arith.constant 0 : i32
    %c0_i32_1 = arith.constant 0 : i32
    %c0_i32_2 = arith.constant 0 : i32
    return %c0_i32, %c0_i32_0, %c0_i32_1 : i32, i32, i32
  }
  func.func @transform_6(%arg0: i32) -> (i32, i32) {
    %c0_i32 = arith.constant 0 : i32
    %c0_i32_0 = arith.constant 0 : i32
    %c0_i32_1 = arith.constant 0 : i32
    return %c0_i32, %c0_i32_0 : i32, i32
  }
  func.func @transform_7(%arg0: i32) -> (i32, i32) {
    %c0_i32 = arith.constant 0 : i32
    %c0_i32_0 = arith.constant 0 : i32
    %c0_i32_1 = arith.constant 0 : i32
    return %c0_i32, %c0_i32_0 : i32, i32
  }
  func.func @transform_8(%arg0: i32) -> (i32, i32) {
    %c0_i32 = arith.constant 0 : i32
    %c0_i32_0 = arith.constant 0 : i32
    return %arg0, %c0_i32 : i32, i32
  }
}

module attributes {stable_mosaic.version = 11 : i64} {
  func.func @_basic_block_kernel(%arg0: i32, %arg1: memref<64x128xbf16, #tpu.memory_space<vmem>>, %arg2: memref<64x128xbf16, #tpu.memory_space<vmem>>, %arg3: memref<9x128x128xbf16, #tpu.memory_space<vmem>>, %arg4: memref<1x128xf32, #tpu.memory_space<vmem>>, %arg5: memref<1x128xf32, #tpu.memory_space<vmem>>, %arg6: memref<9x128x128xbf16, #tpu.memory_space<vmem>>, %arg7: memref<1x128xf32, #tpu.memory_space<vmem>>, %arg8: memref<1x128xf32, #tpu.memory_space<vmem>>, %arg9: memref<64x128xbf16, #tpu.memory_space<vmem>>, %arg10: memref<112x128xbf16, #tpu.memory_space<vmem>>, %arg11: memref<96x128xbf16, #tpu.memory_space<vmem>>) attributes {dimension_semantics = [#tpu.dimension_semantics<parallel>], iteration_bounds = array<i64: 2>, scalar_prefetch = 0 : i64, scratch_operands = 2 : i64, tpu.core_type = #tpu.core_type<tc>, window_params = [{transform_indices = @transform_0, window_bounds = array<i64: 64, 128>}, {transform_indices = @transform_1, window_bounds = array<i64: 64, 128>}, {pipeline_mode = #tpu.pipeline_mode<synchronous>, transform_indices = @transform_2, window_bounds = array<i64: 9, 128, 128>}, {pipeline_mode = #tpu.pipeline_mode<synchronous>, transform_indices = @transform_3, window_bounds = array<i64: 1, 128>}, {pipeline_mode = #tpu.pipeline_mode<synchronous>, transform_indices = @transform_4, window_bounds = array<i64: 1, 128>}, {pipeline_mode = #tpu.pipeline_mode<synchronous>, transform_indices = @transform_5, window_bounds = array<i64: 9, 128, 128>}, {pipeline_mode = #tpu.pipeline_mode<synchronous>, transform_indices = @transform_6, window_bounds = array<i64: 1, 128>}, {pipeline_mode = #tpu.pipeline_mode<synchronous>, transform_indices = @transform_7, window_bounds = array<i64: 1, 128>}, {transform_indices = @transform_8, window_bounds = array<i64: 64, 128>}]} {
    %c64_i32 = arith.constant 64 : i32
    %0 = arith.muli %arg0, %c64_i32 : i32
    %c0 = arith.constant 0 : index
    %c0_0 = arith.constant 0 : index
    %1 = vector.load %arg1[%c0, %c0_0] : memref<64x128xbf16, #tpu.memory_space<vmem>>, vector<64x128xbf16>
    %c0_1 = arith.constant 0 : index
    %c0_2 = arith.constant 0 : index
    %2 = vector.load %arg10[%c0_1, %c0_2] : memref<112x128xbf16, #tpu.memory_space<vmem>>, vector<64x128xbf16>
    tpu.vector_store %arg10[%c0_1, %c0_2], %1 {strides = array<i32>} : memref<112x128xbf16, #tpu.memory_space<vmem>>, vector<64x128xbf16>,
    %c0_3 = arith.constant 0 : index
    %c0_4 = arith.constant 0 : index
    %3 = vector.load %arg2[%c0_3, %c0_4] : memref<64x128xbf16, #tpu.memory_space<vmem>>, vector<48x128xbf16>
    %c64 = arith.constant 64 : index
    %c0_5 = arith.constant 0 : index
    %4 = vector.load %arg10[%c64, %c0_5] : memref<112x128xbf16, #tpu.memory_space<vmem>>, vector<48x128xbf16>
    tpu.vector_store %arg10[%c64, %c0_5], %3 {strides = array<i32>} : memref<112x128xbf16, #tpu.memory_space<vmem>>, vector<48x128xbf16>,
    %cst = arith.constant 0.000000e+00 : f32
    %5 = vector.broadcast %cst : f32 to vector<32x128xf32>
    %c0_6 = arith.constant 0 : index
    %c0_7 = arith.constant 0 : index
    %6 = vector.load %arg10[%c0_6, %c0_7] : memref<112x128xbf16, #tpu.memory_space<vmem>>, vector<32x128xbf16>
    %c0_8 = arith.constant 0 : index
    %c0_9 = arith.constant 0 : index
    %c0_10 = arith.constant 0 : index
    %7 = vector.load %arg3[%c0_8, %c0_9, %c0_10] : memref<9x128x128xbf16, #tpu.memory_space<vmem>>, vector<1x128x128xbf16>
    %8 = vector.shape_cast %7 : vector<1x128x128xbf16> to vector<128x128xbf16>
    %cst_11 = arith.constant dense<0.000000e+00> : vector<32x128xf32>
    %9 = tpu.matmul %6, %8, %cst_11 {dimension_numbers = #tpu.dot_dimension_numbers<[1], [0], [0], [1], [0, 0, 1, 1], [], []>} : vector<32x128xbf16>, vector<128x128xbf16>, vector<32x128xf32> -> vector<32x128xf32>
    %10 = arith.addf %5, %9 : vector<32x128xf32>
    %c1 = arith.constant 1 : index
    %c0_12 = arith.constant 0 : index
    %11 = vector.load %arg10[%c1, %c0_12] : memref<112x128xbf16, #tpu.memory_space<vmem>>, vector<32x128xbf16>
    %c1_13 = arith.constant 1 : index
    %c0_14 = arith.constant 0 : index
    %c0_15 = arith.constant 0 : index
    %12 = vector.load %arg3[%c1_13, %c0_14, %c0_15] : memref<9x128x128xbf16, #tpu.memory_space<vmem>>, vector<1x128x128xbf16>
    %13 = vector.shape_cast %12 : vector<1x128x128xbf16> to vector<128x128xbf16>
    %cst_16 = arith.constant dense<0.000000e+00> : vector<32x128xf32>
    %14 = tpu.matmul %11, %13, %cst_16 {dimension_numbers = #tpu.dot_dimension_numbers<[1], [0], [0], [1], [0, 0, 1, 1], [], []>} : vector<32x128xbf16>, vector<128x128xbf16>, vector<32x128xf32> -> vector<32x128xf32>
    %15 = arith.addf %10, %14 : vector<32x128xf32>
    %c2 = arith.constant 2 : index
    %c0_17 = arith.constant 0 : index
    %16 = vector.load %arg10[%c2, %c0_17] : memref<112x128xbf16, #tpu.memory_space<vmem>>, vector<32x128xbf16>
    %c2_18 = arith.constant 2 : index
    %c0_19 = arith.constant 0 : index
    %c0_20 = arith.constant 0 : index
    %17 = vector.load %arg3[%c2_18, %c0_19, %c0_20] : memref<9x128x128xbf16, #tpu.memory_space<vmem>>, vector<1x128x128xbf16>
    %18 = vector.shape_cast %17 : vector<1x128x128xbf16> to vector<128x128xbf16>
    %cst_21 = arith.constant dense<0.000000e+00> : vector<32x128xf32>
    %19 = tpu.matmul %16, %18, %cst_21 {dimension_numbers = #tpu.dot_dimension_numbers<[1], [0], [0], [1], [0, 0, 1, 1], [], []>} : vector<32x128xbf16>, vector<128x128xbf16>, vector<32x128xf32> -> vector<32x128xf32>
    %20 = arith.addf %15, %19 : vector<32x128xf32>
    %c6 = arith.constant 6 : index
    %c0_22 = arith.constant 0 : index
    %21 = vector.load %arg10[%c6, %c0_22] : memref<112x128xbf16, #tpu.memory_space<vmem>>, vector<32x128xbf16>
    %c3 = arith.constant 3 : index
    %c0_23 = arith.constant 0 : index
    %c0_24 = arith.constant 0 : index
    %22 = vector.load %arg3[%c3, %c0_23, %c0_24] : memref<9x128x128xbf16, #tpu.memory_space<vmem>>, vector<1x128x128xbf16>
    %23 = vector.shape_cast %22 : vector<1x128x128xbf16> to vector<128x128xbf16>
    %cst_25 = arith.constant dense<0.000000e+00> : vector<32x128xf32>
    %24 = tpu.matmul %21, %23, %cst_25 {dimension_numbers = #tpu.dot_dimension_numbers<[1], [0], [0], [1], [0, 0, 1, 1], [], []>} : vector<32x128xbf16>, vector<128x128xbf16>, vector<32x128xf32> -> vector<32x128xf32>
    %25 = arith.addf %20, %24 : vector<32x128xf32>
    %c7 = arith.constant 7 : index
    %c0_26 = arith.constant 0 : index
    %26 = vector.load %arg10[%c7, %c0_26] : memref<112x128xbf16, #tpu.memory_space<vmem>>, vector<32x128xbf16>
    %c4 = arith.constant 4 : index
    %c0_27 = arith.constant 0 : index
    %c0_28 = arith.constant 0 : index
    %27 = vector.load %arg3[%c4, %c0_27, %c0_28] : memref<9x128x128xbf16, #tpu.memory_space<vmem>>, vector<1x128x128xbf16>
    %28 = vector.shape_cast %27 : vector<1x128x128xbf16> to vector<128x128xbf16>
    %cst_29 = arith.constant dense<0.000000e+00> : vector<32x128xf32>
    %29 = tpu.matmul %26, %28, %cst_29 {dimension_numbers = #tpu.dot_dimension_numbers<[1], [0], [0], [1], [0, 0, 1, 1], [], []>} : vector<32x128xbf16>, vector<128x128xbf16>, vector<32x128xf32> -> vector<32x128xf32>
    %30 = arith.addf %25, %29 : vector<32x128xf32>
    %c8 = arith.constant 8 : index
    %c0_30 = arith.constant 0 : index
    %31 = vector.load %arg10[%c8, %c0_30] : memref<112x128xbf16, #tpu.memory_space<vmem>>, vector<32x128xbf16>
    %c5 = arith.constant 5 : index
    %c0_31 = arith.constant 0 : index
    %c0_32 = arith.constant 0 : index
    %32 = vector.load %arg3[%c5, %c0_31, %c0_32] : memref<9x128x128xbf16, #tpu.memory_space<vmem>>, vector<1x128x128xbf16>
    %33 = vector.shape_cast %32 : vector<1x128x128xbf16> to vector<128x128xbf16>
    %cst_33 = arith.constant dense<0.000000e+00> : vector<32x128xf32>
    %34 = tpu.matmul %31, %33, %cst_33 {dimension_numbers = #tpu.dot_dimension_numbers<[1], [0], [0], [1], [0, 0, 1, 1], [], []>} : vector<32x128xbf16>, vector<128x128xbf16>, vector<32x128xf32> -> vector<32x128xf32>
    %35 = arith.addf %30, %34 : vector<32x128xf32>
    %c12 = arith.constant 12 : index
    %c0_34 = arith.constant 0 : index
    %36 = vector.load %arg10[%c12, %c0_34] : memref<112x128xbf16, #tpu.memory_space<vmem>>, vector<32x128xbf16>
    %c6_35 = arith.constant 6 : index
    %c0_36 = arith.constant 0 : index
    %c0_37 = arith.constant 0 : index
    %37 = vector.load %arg3[%c6_35, %c0_36, %c0_37] : memref<9x128x128xbf16, #tpu.memory_space<vmem>>, vector<1x128x128xbf16>
    %38 = vector.shape_cast %37 : vector<1x128x128xbf16> to vector<128x128xbf16>
    %cst_38 = arith.constant dense<0.000000e+00> : vector<32x128xf32>
    %39 = tpu.matmul %36, %38, %cst_38 {dimension_numbers = #tpu.dot_dimension_numbers<[1], [0], [0], [1], [0, 0, 1, 1], [], []>} : vector<32x128xbf16>, vector<128x128xbf16>, vector<32x128xf32> -> vector<32x128xf32>
    %40 = arith.addf %35, %39 : vector<32x128xf32>
    %c13 = arith.constant 13 : index
    %c0_39 = arith.constant 0 : index
    %41 = vector.load %arg10[%c13, %c0_39] : memref<112x128xbf16, #tpu.memory_space<vmem>>, vector<32x128xbf16>
    %c7_40 = arith.constant 7 : index
    %c0_41 = arith.constant 0 : index
    %c0_42 = arith.constant 0 : index
    %42 = vector.load %arg3[%c7_40, %c0_41, %c0_42] : memref<9x128x128xbf16, #tpu.memory_space<vmem>>, vector<1x128x128xbf16>
    %43 = vector.shape_cast %42 : vector<1x128x128xbf16> to vector<128x128xbf16>
    %cst_43 = arith.constant dense<0.000000e+00> : vector<32x128xf32>
    %44 = tpu.matmul %41, %43, %cst_43 {dimension_numbers = #tpu.dot_dimension_numbers<[1], [0], [0], [1], [0, 0, 1, 1], [], []>} : vector<32x128xbf16>, vector<128x128xbf16>, vector<32x128xf32> -> vector<32x128xf32>
    %45 = arith.addf %40, %44 : vector<32x128xf32>
    %c14 = arith.constant 14 : index
    %c0_44 = arith.constant 0 : index
    %46 = vector.load %arg10[%c14, %c0_44] : memref<112x128xbf16, #tpu.memory_space<vmem>>, vector<32x128xbf16>
    %c8_45 = arith.constant 8 : index
    %c0_46 = arith.constant 0 : index
    %c0_47 = arith.constant 0 : index
    %47 = vector.load %arg3[%c8_45, %c0_46, %c0_47] : memref<9x128x128xbf16, #tpu.memory_space<vmem>>, vector<1x128x128xbf16>
    %48 = vector.shape_cast %47 : vector<1x128x128xbf16> to vector<128x128xbf16>
    %cst_48 = arith.constant dense<0.000000e+00> : vector<32x128xf32>
    %49 = tpu.matmul %46, %48, %cst_48 {dimension_numbers = #tpu.dot_dimension_numbers<[1], [0], [0], [1], [0, 0, 1, 1], [], []>} : vector<32x128xbf16>, vector<128x128xbf16>, vector<32x128xf32> -> vector<32x128xf32>
    %50 = arith.addf %45, %49 : vector<32x128xf32>
    %c0_49 = arith.constant 0 : index
    %c0_50 = arith.constant 0 : index
    %51 = vector.load %arg4[%c0_49, %c0_50] : memref<1x128xf32, #tpu.memory_space<vmem>>, vector<1x128xf32>
    %52 = vector.broadcast %51 : vector<1x128xf32> to vector<32x128xf32>
    %53 = arith.mulf %50, %52 : vector<32x128xf32>
    %c0_51 = arith.constant 0 : index
    %c0_52 = arith.constant 0 : index
    %54 = vector.load %arg5[%c0_51, %c0_52] : memref<1x128xf32, #tpu.memory_space<vmem>>, vector<1x128xf32>
    %55 = vector.broadcast %54 : vector<1x128xf32> to vector<32x128xf32>
    %56 = arith.addf %53, %55 : vector<32x128xf32>
    %cst_53 = arith.constant 0.000000e+00 : f32
    %57 = vector.broadcast %cst_53 : f32 to vector<32x128xf32>
    %58 = arith.maximumf %56, %57 : vector<32x128xf32>
    %c0_i32 = arith.constant 0 : i32
    %59 = arith.addi %0, %c0_i32 : i32
    %c7_i32 = arith.constant 7 : i32
    %60 = arith.addi %59, %c7_i32 : i32
    %c14_i32 = arith.constant 14 : i32
    %61 = arith.subi %60, %c14_i32 : i32
    %62 = tpu.iota {dimensions = array<i32: 0>} : vector<32x1xi32>
    %63 = vector.broadcast %61 : i32 to vector<32x1xi32>
    %64 = arith.addi %63, %62 : vector<32x1xi32>
    %65 = arith.sitofp %64 : vector<32x1xi32> to vector<32x1xf32>
    %cst_54 = arith.constant 3.600000e+01 : f32
    %66 = vector.broadcast %cst_54 : f32 to vector<32x1xf32>
    %67 = arith.divf %65, %66 : vector<32x1xf32>
    %68 = math.floor %67 : vector<32x1xf32>
    %cst_55 = arith.constant 3.600000e+01 : f32
    %69 = vector.broadcast %cst_55 : f32 to vector<32x1xf32>
    %70 = arith.mulf %68, %69 : vector<32x1xf32>
    %71 = arith.subf %65, %70 : vector<32x1xf32>
    %cst_56 = arith.constant 6.000000e+00 : f32
    %72 = vector.broadcast %cst_56 : f32 to vector<32x1xf32>
    %73 = arith.divf %71, %72 : vector<32x1xf32>
    %74 = math.floor %73 : vector<32x1xf32>
    %cst_57 = arith.constant 6.000000e+00 : f32
    %75 = vector.broadcast %cst_57 : f32 to vector<32x1xf32>
    %76 = arith.mulf %74, %75 : vector<32x1xf32>
    %77 = arith.subf %71, %76 : vector<32x1xf32>
    %c0_i32_58 = arith.constant 0 : i32
    %78 = vector.broadcast %c0_i32_58 : i32 to vector<32x1xi32>
    %79 = arith.cmpi sge, %64, %78 : vector<32x1xi32>
    %c72_i32 = arith.constant 72 : i32
    %80 = vector.broadcast %c72_i32 : i32 to vector<32x1xi32>
    %81 = arith.cmpi slt, %64, %80 : vector<32x1xi32>
    %82 = arith.andi %79, %81 : vector<32x1xi1>
    %cst_59 = arith.constant 1.000000e+00 : f32
    %83 = vector.broadcast %cst_59 : f32 to vector<32x1xf32>
    %84 = arith.cmpf oge, %74, %83 : vector<32x1xf32>
    %85 = arith.andi %82, %84 : vector<32x1xi1>
    %cst_60 = arith.constant 4.000000e+00 : f32
    %86 = vector.broadcast %cst_60 : f32 to vector<32x1xf32>
    %87 = arith.cmpf ole, %74, %86 : vector<32x1xf32>
    %88 = arith.andi %85, %87 : vector<32x1xi1>
    %cst_61 = arith.constant 1.000000e+00 : f32
    %89 = vector.broadcast %cst_61 : f32 to vector<32x1xf32>
    %90 = arith.cmpf oge, %77, %89 : vector<32x1xf32>
    %91 = arith.andi %88, %90 : vector<32x1xi1>
    %cst_62 = arith.constant 4.000000e+00 : f32
    %92 = vector.broadcast %cst_62 : f32 to vector<32x1xf32>
    %93 = arith.cmpf ole, %77, %92 : vector<32x1xf32>
    %94 = arith.andi %91, %93 : vector<32x1xi1>
    %95 = arith.extui %94 : vector<32x1xi1> to vector<32x1xi32>
    %96 = arith.sitofp %95 : vector<32x1xi32> to vector<32x1xf32>
    %97 = vector.broadcast %96 : vector<32x1xf32> to vector<32x128xf32>
    %98 = arith.mulf %58, %97 : vector<32x128xf32>
    %99 = arith.truncf %98 : vector<32x128xf32> to vector<32x128xbf16>
    %c0_63 = arith.constant 0 : index
    %c0_64 = arith.constant 0 : index
    %100 = vector.load %arg11[%c0_63, %c0_64] : memref<96x128xbf16, #tpu.memory_space<vmem>>, vector<32x128xbf16>
    tpu.vector_store %arg11[%c0_63, %c0_64], %99 {strides = array<i32>} : memref<96x128xbf16, #tpu.memory_space<vmem>>, vector<32x128xbf16>,
    %cst_65 = arith.constant 0.000000e+00 : f32
    %101 = vector.broadcast %cst_65 : f32 to vector<32x128xf32>
    %c32 = arith.constant 32 : index
    %c0_66 = arith.constant 0 : index
    %102 = vector.load %arg10[%c32, %c0_66] : memref<112x128xbf16, #tpu.memory_space<vmem>>, vector<32x128xbf16>
    %c0_67 = arith.constant 0 : index
    %c0_68 = arith.constant 0 : index
    %c0_69 = arith.constant 0 : index
    %103 = vector.load %arg3[%c0_67, %c0_68, %c0_69] : memref<9x128x128xbf16, #tpu.memory_space<vmem>>, vector<1x128x128xbf16>
    %104 = vector.shape_cast %103 : vector<1x128x128xbf16> to vector<128x128xbf16>
    %cst_70 = arith.constant dense<0.000000e+00> : vector<32x128xf32>
    %105 = tpu.matmul %102, %104, %cst_70 {dimension_numbers = #tpu.dot_dimension_numbers<[1], [0], [0], [1], [0, 0, 1, 1], [], []>} : vector<32x128xbf16>, vector<128x128xbf16>, vector<32x128xf32> -> vector<32x128xf32>
    %106 = arith.addf %101, %105 : vector<32x128xf32>
    %c33 = arith.constant 33 : index
    %c0_71 = arith.constant 0 : index
    %107 = vector.load %arg10[%c33, %c0_71] : memref<112x128xbf16, #tpu.memory_space<vmem>>, vector<32x128xbf16>
    %c1_72 = arith.constant 1 : index
    %c0_73 = arith.constant 0 : index
    %c0_74 = arith.constant 0 : index
    %108 = vector.load %arg3[%c1_72, %c0_73, %c0_74] : memref<9x128x128xbf16, #tpu.memory_space<vmem>>, vector<1x128x128xbf16>
    %109 = vector.shape_cast %108 : vector<1x128x128xbf16> to vector<128x128xbf16>
    %cst_75 = arith.constant dense<0.000000e+00> : vector<32x128xf32>
    %110 = tpu.matmul %107, %109, %cst_75 {dimension_numbers = #tpu.dot_dimension_numbers<[1], [0], [0], [1], [0, 0, 1, 1], [], []>} : vector<32x128xbf16>, vector<128x128xbf16>, vector<32x128xf32> -> vector<32x128xf32>
    %111 = arith.addf %106, %110 : vector<32x128xf32>
    %c34 = arith.constant 34 : index
    %c0_76 = arith.constant 0 : index
    %112 = vector.load %arg10[%c34, %c0_76] : memref<112x128xbf16, #tpu.memory_space<vmem>>, vector<32x128xbf16>
    %c2_77 = arith.constant 2 : index
    %c0_78 = arith.constant 0 : index
    %c0_79 = arith.constant 0 : index
    %113 = vector.load %arg3[%c2_77, %c0_78, %c0_79] : memref<9x128x128xbf16, #tpu.memory_space<vmem>>, vector<1x128x128xbf16>
    %114 = vector.shape_cast %113 : vector<1x128x128xbf16> to vector<128x128xbf16>
    %cst_80 = arith.constant dense<0.000000e+00> : vector<32x128xf32>
    %115 = tpu.matmul %112, %114, %cst_80 {dimension_numbers = #tpu.dot_dimension_numbers<[1], [0], [0], [1], [0, 0, 1, 1], [], []>} : vector<32x128xbf16>, vector<128x128xbf16>, vector<32x128xf32> -> vector<32x128xf32>
    %116 = arith.addf %111, %115 : vector<32x128xf32>
    %c38 = arith.constant 38 : index
    %c0_81 = arith.constant 0 : index
    %117 = vector.load %arg10[%c38, %c0_81] : memref<112x128xbf16, #tpu.memory_space<vmem>>, vector<32x128xbf16>
    %c3_82 = arith.constant 3 : index
    %c0_83 = arith.constant 0 : index
    %c0_84 = arith.constant 0 : index
    %118 = vector.load %arg3[%c3_82, %c0_83, %c0_84] : memref<9x128x128xbf16, #tpu.memory_space<vmem>>, vector<1x128x128xbf16>
    %119 = vector.shape_cast %118 : vector<1x128x128xbf16> to vector<128x128xbf16>
    %cst_85 = arith.constant dense<0.000000e+00> : vector<32x128xf32>
    %120 = tpu.matmul %117, %119, %cst_85 {dimension_numbers = #tpu.dot_dimension_numbers<[1], [0], [0], [1], [0, 0, 1, 1], [], []>} : vector<32x128xbf16>, vector<128x128xbf16>, vector<32x128xf32> -> vector<32x128xf32>
    %121 = arith.addf %116, %120 : vector<32x128xf32>
    %c39 = arith.constant 39 : index
    %c0_86 = arith.constant 0 : index
    %122 = vector.load %arg10[%c39, %c0_86] : memref<112x128xbf16, #tpu.memory_space<vmem>>, vector<32x128xbf16>
    %c4_87 = arith.constant 4 : index
    %c0_88 = arith.constant 0 : index
    %c0_89 = arith.constant 0 : index
    %123 = vector.load %arg3[%c4_87, %c0_88, %c0_89] : memref<9x128x128xbf16, #tpu.memory_space<vmem>>, vector<1x128x128xbf16>
    %124 = vector.shape_cast %123 : vector<1x128x128xbf16> to vector<128x128xbf16>
    %cst_90 = arith.constant dense<0.000000e+00> : vector<32x128xf32>
    %125 = tpu.matmul %122, %124, %cst_90 {dimension_numbers = #tpu.dot_dimension_numbers<[1], [0], [0], [1], [0, 0, 1, 1], [], []>} : vector<32x128xbf16>, vector<128x128xbf16>, vector<32x128xf32> -> vector<32x128xf32>
    %126 = arith.addf %121, %125 : vector<32x128xf32>
    %c40 = arith.constant 40 : index
    %c0_91 = arith.constant 0 : index
    %127 = vector.load %arg10[%c40, %c0_91] : memref<112x128xbf16, #tpu.memory_space<vmem>>, vector<32x128xbf16>
    %c5_92 = arith.constant 5 : index
    %c0_93 = arith.constant 0 : index
    %c0_94 = arith.constant 0 : index
    %128 = vector.load %arg3[%c5_92, %c0_93, %c0_94] : memref<9x128x128xbf16, #tpu.memory_space<vmem>>, vector<1x128x128xbf16>
    %129 = vector.shape_cast %128 : vector<1x128x128xbf16> to vector<128x128xbf16>
    %cst_95 = arith.constant dense<0.000000e+00> : vector<32x128xf32>
    %130 = tpu.matmul %127, %129, %cst_95 {dimension_numbers = #tpu.dot_dimension_numbers<[1], [0], [0], [1], [0, 0, 1, 1], [], []>} : vector<32x128xbf16>, vector<128x128xbf16>, vector<32x128xf32> -> vector<32x128xf32>
    %131 = arith.addf %126, %130 : vector<32x128xf32>
    %c44 = arith.constant 44 : index
    %c0_96 = arith.constant 0 : index
    %132 = vector.load %arg10[%c44, %c0_96] : memref<112x128xbf16, #tpu.memory_space<vmem>>, vector<32x128xbf16>
    %c6_97 = arith.constant 6 : index
    %c0_98 = arith.constant 0 : index
    %c0_99 = arith.constant 0 : index
    %133 = vector.load %arg3[%c6_97, %c0_98, %c0_99] : memref<9x128x128xbf16, #tpu.memory_space<vmem>>, vector<1x128x128xbf16>
    %134 = vector.shape_cast %133 : vector<1x128x128xbf16> to vector<128x128xbf16>
    %cst_100 = arith.constant dense<0.000000e+00> : vector<32x128xf32>
    %135 = tpu.matmul %132, %134, %cst_100 {dimension_numbers = #tpu.dot_dimension_numbers<[1], [0], [0], [1], [0, 0, 1, 1], [], []>} : vector<32x128xbf16>, vector<128x128xbf16>, vector<32x128xf32> -> vector<32x128xf32>
    %136 = arith.addf %131, %135 : vector<32x128xf32>
    %c45 = arith.constant 45 : index
    %c0_101 = arith.constant 0 : index
    %137 = vector.load %arg10[%c45, %c0_101] : memref<112x128xbf16, #tpu.memory_space<vmem>>, vector<32x128xbf16>
    %c7_102 = arith.constant 7 : index
    %c0_103 = arith.constant 0 : index
    %c0_104 = arith.constant 0 : index
    %138 = vector.load %arg3[%c7_102, %c0_103, %c0_104] : memref<9x128x128xbf16, #tpu.memory_space<vmem>>, vector<1x128x128xbf16>
    %139 = vector.shape_cast %138 : vector<1x128x128xbf16> to vector<128x128xbf16>
    %cst_105 = arith.constant dense<0.000000e+00> : vector<32x128xf32>
    %140 = tpu.matmul %137, %139, %cst_105 {dimension_numbers = #tpu.dot_dimension_numbers<[1], [0], [0], [1], [0, 0, 1, 1], [], []>} : vector<32x128xbf16>, vector<128x128xbf16>, vector<32x128xf32> -> vector<32x128xf32>
    %141 = arith.addf %136, %140 : vector<32x128xf32>
    %c46 = arith.constant 46 : index
    %c0_106 = arith.constant 0 : index
    %142 = vector.load %arg10[%c46, %c0_106] : memref<112x128xbf16, #tpu.memory_space<vmem>>, vector<32x128xbf16>
    %c8_107 = arith.constant 8 : index
    %c0_108 = arith.constant 0 : index
    %c0_109 = arith.constant 0 : index
    %143 = vector.load %arg3[%c8_107, %c0_108, %c0_109] : memref<9x128x128xbf16, #tpu.memory_space<vmem>>, vector<1x128x128xbf16>
    %144 = vector.shape_cast %143 : vector<1x128x128xbf16> to vector<128x128xbf16>
    %cst_110 = arith.constant dense<0.000000e+00> : vector<32x128xf32>
    %145 = tpu.matmul %142, %144, %cst_110 {dimension_numbers = #tpu.dot_dimension_numbers<[1], [0], [0], [1], [0, 0, 1, 1], [], []>} : vector<32x128xbf16>, vector<128x128xbf16>, vector<32x128xf32> -> vector<32x128xf32>
    %146 = arith.addf %141, %145 : vector<32x128xf32>
    %c0_111 = arith.constant 0 : index
    %c0_112 = arith.constant 0 : index
    %147 = vector.load %arg4[%c0_111, %c0_112] : memref<1x128xf32, #tpu.memory_space<vmem>>, vector<1x128xf32>
    %148 = vector.broadcast %147 : vector<1x128xf32> to vector<32x128xf32>
    %149 = arith.mulf %146, %148 : vector<32x128xf32>
    %c0_113 = arith.constant 0 : index
    %c0_114 = arith.constant 0 : index
    %150 = vector.load %arg5[%c0_113, %c0_114] : memref<1x128xf32, #tpu.memory_space<vmem>>, vector<1x128xf32>
    %151 = vector.broadcast %150 : vector<1x128xf32> to vector<32x128xf32>
    %152 = arith.addf %149, %151 : vector<32x128xf32>
    %cst_115 = arith.constant 0.000000e+00 : f32
    %153 = vector.broadcast %cst_115 : f32 to vector<32x128xf32>
    %154 = arith.maximumf %152, %153 : vector<32x128xf32>
    %c32_i32 = arith.constant 32 : i32
    %155 = arith.addi %0, %c32_i32 : i32
    %c7_i32_116 = arith.constant 7 : i32
    %156 = arith.addi %155, %c7_i32_116 : i32
    %c14_i32_117 = arith.constant 14 : i32
    %157 = arith.subi %156, %c14_i32_117 : i32
    %158 = tpu.iota {dimensions = array<i32: 0>} : vector<32x1xi32>
    %159 = vector.broadcast %157 : i32 to vector<32x1xi32>
    %160 = arith.addi %159, %158 : vector<32x1xi32>
    %161 = arith.sitofp %160 : vector<32x1xi32> to vector<32x1xf32>
    %cst_118 = arith.constant 3.600000e+01 : f32
    %162 = vector.broadcast %cst_118 : f32 to vector<32x1xf32>
    %163 = arith.divf %161, %162 : vector<32x1xf32>
    %164 = math.floor %163 : vector<32x1xf32>
    %cst_119 = arith.constant 3.600000e+01 : f32
    %165 = vector.broadcast %cst_119 : f32 to vector<32x1xf32>
    %166 = arith.mulf %164, %165 : vector<32x1xf32>
    %167 = arith.subf %161, %166 : vector<32x1xf32>
    %cst_120 = arith.constant 6.000000e+00 : f32
    %168 = vector.broadcast %cst_120 : f32 to vector<32x1xf32>
    %169 = arith.divf %167, %168 : vector<32x1xf32>
    %170 = math.floor %169 : vector<32x1xf32>
    %cst_121 = arith.constant 6.000000e+00 : f32
    %171 = vector.broadcast %cst_121 : f32 to vector<32x1xf32>
    %172 = arith.mulf %170, %171 : vector<32x1xf32>
    %173 = arith.subf %167, %172 : vector<32x1xf32>
    %c0_i32_122 = arith.constant 0 : i32
    %174 = vector.broadcast %c0_i32_122 : i32 to vector<32x1xi32>
    %175 = arith.cmpi sge, %160, %174 : vector<32x1xi32>
    %c72_i32_123 = arith.constant 72 : i32
    %176 = vector.broadcast %c72_i32_123 : i32 to vector<32x1xi32>
    %177 = arith.cmpi slt, %160, %176 : vector<32x1xi32>
    %178 = arith.andi %175, %177 : vector<32x1xi1>
    %cst_124 = arith.constant 1.000000e+00 : f32
    %179 = vector.broadcast %cst_124 : f32 to vector<32x1xf32>
    %180 = arith.cmpf oge, %170, %179 : vector<32x1xf32>
    %181 = arith.andi %178, %180 : vector<32x1xi1>
    %cst_125 = arith.constant 4.000000e+00 : f32
    %182 = vector.broadcast %cst_125 : f32 to vector<32x1xf32>
    %183 = arith.cmpf ole, %170, %182 : vector<32x1xf32>
    %184 = arith.andi %181, %183 : vector<32x1xi1>
    %cst_126 = arith.constant 1.000000e+00 : f32
    %185 = vector.broadcast %cst_126 : f32 to vector<32x1xf32>
    %186 = arith.cmpf oge, %173, %185 : vector<32x1xf32>
    %187 = arith.andi %184, %186 : vector<32x1xi1>
    %cst_127 = arith.constant 4.000000e+00 : f32
    %188 = vector.broadcast %cst_127 : f32 to vector<32x1xf32>
    %189 = arith.cmpf ole, %173, %188 : vector<32x1xf32>
    %190 = arith.andi %187, %189 : vector<32x1xi1>
    %191 = arith.extui %190 : vector<32x1xi1> to vector<32x1xi32>
    %192 = arith.sitofp %191 : vector<32x1xi32> to vector<32x1xf32>
    %193 = vector.broadcast %192 : vector<32x1xf32> to vector<32x128xf32>
    %194 = arith.mulf %154, %193 : vector<32x128xf32>
    %195 = arith.truncf %194 : vector<32x128xf32> to vector<32x128xbf16>
    %c32_128 = arith.constant 32 : index
    %c0_129 = arith.constant 0 : index
    %196 = vector.load %arg11[%c32_128, %c0_129] : memref<96x128xbf16, #tpu.memory_space<vmem>>, vector<32x128xbf16>
    tpu.vector_store %arg11[%c32_128, %c0_129], %195 {strides = array<i32>} : memref<96x128xbf16, #tpu.memory_space<vmem>>, vector<32x128xbf16>,
    %cst_130 = arith.constant 0.000000e+00 : f32
    %197 = vector.broadcast %cst_130 : f32 to vector<32x128xf32>
    %c64_131 = arith.constant 64 : index
    %c0_132 = arith.constant 0 : index
    %198 = vector.load %arg10[%c64_131, %c0_132] : memref<112x128xbf16, #tpu.memory_space<vmem>>, vector<32x128xbf16>
    %c0_133 = arith.constant 0 : index
    %c0_134 = arith.constant 0 : index
    %c0_135 = arith.constant 0 : index
    %199 = vector.load %arg3[%c0_133, %c0_134, %c0_135] : memref<9x128x128xbf16, #tpu.memory_space<vmem>>, vector<1x128x128xbf16>
    %200 = vector.shape_cast %199 : vector<1x128x128xbf16> to vector<128x128xbf16>
    %cst_136 = arith.constant dense<0.000000e+00> : vector<32x128xf32>
    %201 = tpu.matmul %198, %200, %cst_136 {dimension_numbers = #tpu.dot_dimension_numbers<[1], [0], [0], [1], [0, 0, 1, 1], [], []>} : vector<32x128xbf16>, vector<128x128xbf16>, vector<32x128xf32> -> vector<32x128xf32>
    %202 = arith.addf %197, %201 : vector<32x128xf32>
    %c65 = arith.constant 65 : index
    %c0_137 = arith.constant 0 : index
    %203 = vector.load %arg10[%c65, %c0_137] : memref<112x128xbf16, #tpu.memory_space<vmem>>, vector<32x128xbf16>
    %c1_138 = arith.constant 1 : index
    %c0_139 = arith.constant 0 : index
    %c0_140 = arith.constant 0 : index
    %204 = vector.load %arg3[%c1_138, %c0_139, %c0_140] : memref<9x128x128xbf16, #tpu.memory_space<vmem>>, vector<1x128x128xbf16>
    %205 = vector.shape_cast %204 : vector<1x128x128xbf16> to vector<128x128xbf16>
    %cst_141 = arith.constant dense<0.000000e+00> : vector<32x128xf32>
    %206 = tpu.matmul %203, %205, %cst_141 {dimension_numbers = #tpu.dot_dimension_numbers<[1], [0], [0], [1], [0, 0, 1, 1], [], []>} : vector<32x128xbf16>, vector<128x128xbf16>, vector<32x128xf32> -> vector<32x128xf32>
    %207 = arith.addf %202, %206 : vector<32x128xf32>
    %c66 = arith.constant 66 : index
    %c0_142 = arith.constant 0 : index
    %208 = vector.load %arg10[%c66, %c0_142] : memref<112x128xbf16, #tpu.memory_space<vmem>>, vector<32x128xbf16>
    %c2_143 = arith.constant 2 : index
    %c0_144 = arith.constant 0 : index
    %c0_145 = arith.constant 0 : index
    %209 = vector.load %arg3[%c2_143, %c0_144, %c0_145] : memref<9x128x128xbf16, #tpu.memory_space<vmem>>, vector<1x128x128xbf16>
    %210 = vector.shape_cast %209 : vector<1x128x128xbf16> to vector<128x128xbf16>
    %cst_146 = arith.constant dense<0.000000e+00> : vector<32x128xf32>
    %211 = tpu.matmul %208, %210, %cst_146 {dimension_numbers = #tpu.dot_dimension_numbers<[1], [0], [0], [1], [0, 0, 1, 1], [], []>} : vector<32x128xbf16>, vector<128x128xbf16>, vector<32x128xf32> -> vector<32x128xf32>
    %212 = arith.addf %207, %211 : vector<32x128xf32>
    %c70 = arith.constant 70 : index
    %c0_147 = arith.constant 0 : index
    %213 = vector.load %arg10[%c70, %c0_147] : memref<112x128xbf16, #tpu.memory_space<vmem>>, vector<32x128xbf16>
    %c3_148 = arith.constant 3 : index
    %c0_149 = arith.constant 0 : index
    %c0_150 = arith.constant 0 : index
    %214 = vector.load %arg3[%c3_148, %c0_149, %c0_150] : memref<9x128x128xbf16, #tpu.memory_space<vmem>>, vector<1x128x128xbf16>
    %215 = vector.shape_cast %214 : vector<1x128x128xbf16> to vector<128x128xbf16>
    %cst_151 = arith.constant dense<0.000000e+00> : vector<32x128xf32>
    %216 = tpu.matmul %213, %215, %cst_151 {dimension_numbers = #tpu.dot_dimension_numbers<[1], [0], [0], [1], [0, 0, 1, 1], [], []>} : vector<32x128xbf16>, vector<128x128xbf16>, vector<32x128xf32> -> vector<32x128xf32>
    %217 = arith.addf %212, %216 : vector<32x128xf32>
    %c71 = arith.constant 71 : index
    %c0_152 = arith.constant 0 : index
    %218 = vector.load %arg10[%c71, %c0_152] : memref<112x128xbf16, #tpu.memory_space<vmem>>, vector<32x128xbf16>
    %c4_153 = arith.constant 4 : index
    %c0_154 = arith.constant 0 : index
    %c0_155 = arith.constant 0 : index
    %219 = vector.load %arg3[%c4_153, %c0_154, %c0_155] : memref<9x128x128xbf16, #tpu.memory_space<vmem>>, vector<1x128x128xbf16>
    %220 = vector.shape_cast %219 : vector<1x128x128xbf16> to vector<128x128xbf16>
    %cst_156 = arith.constant dense<0.000000e+00> : vector<32x128xf32>
    %221 = tpu.matmul %218, %220, %cst_156 {dimension_numbers = #tpu.dot_dimension_numbers<[1], [0], [0], [1], [0, 0, 1, 1], [], []>} : vector<32x128xbf16>, vector<128x128xbf16>, vector<32x128xf32> -> vector<32x128xf32>
    %222 = arith.addf %217, %221 : vector<32x128xf32>
    %c72 = arith.constant 72 : index
    %c0_157 = arith.constant 0 : index
    %223 = vector.load %arg10[%c72, %c0_157] : memref<112x128xbf16, #tpu.memory_space<vmem>>, vector<32x128xbf16>
    %c5_158 = arith.constant 5 : index
    %c0_159 = arith.constant 0 : index
    %c0_160 = arith.constant 0 : index
    %224 = vector.load %arg3[%c5_158, %c0_159, %c0_160] : memref<9x128x128xbf16, #tpu.memory_space<vmem>>, vector<1x128x128xbf16>
    %225 = vector.shape_cast %224 : vector<1x128x128xbf16> to vector<128x128xbf16>
    %cst_161 = arith.constant dense<0.000000e+00> : vector<32x128xf32>
    %226 = tpu.matmul %223, %225, %cst_161 {dimension_numbers = #tpu.dot_dimension_numbers<[1], [0], [0], [1], [0, 0, 1, 1], [], []>} : vector<32x128xbf16>, vector<128x128xbf16>, vector<32x128xf32> -> vector<32x128xf32>
    %227 = arith.addf %222, %226 : vector<32x128xf32>
    %c76 = arith.constant 76 : index
    %c0_162 = arith.constant 0 : index
    %228 = vector.load %arg10[%c76, %c0_162] : memref<112x128xbf16, #tpu.memory_space<vmem>>, vector<32x128xbf16>
    %c6_163 = arith.constant 6 : index
    %c0_164 = arith.constant 0 : index
    %c0_165 = arith.constant 0 : index
    %229 = vector.load %arg3[%c6_163, %c0_164, %c0_165] : memref<9x128x128xbf16, #tpu.memory_space<vmem>>, vector<1x128x128xbf16>
    %230 = vector.shape_cast %229 : vector<1x128x128xbf16> to vector<128x128xbf16>
    %cst_166 = arith.constant dense<0.000000e+00> : vector<32x128xf32>
    %231 = tpu.matmul %228, %230, %cst_166 {dimension_numbers = #tpu.dot_dimension_numbers<[1], [0], [0], [1], [0, 0, 1, 1], [], []>} : vector<32x128xbf16>, vector<128x128xbf16>, vector<32x128xf32> -> vector<32x128xf32>
    %232 = arith.addf %227, %231 : vector<32x128xf32>
    %c77 = arith.constant 77 : index
    %c0_167 = arith.constant 0 : index
    %233 = vector.load %arg10[%c77, %c0_167] : memref<112x128xbf16, #tpu.memory_space<vmem>>, vector<32x128xbf16>
    %c7_168 = arith.constant 7 : index
    %c0_169 = arith.constant 0 : index
    %c0_170 = arith.constant 0 : index
    %234 = vector.load %arg3[%c7_168, %c0_169, %c0_170] : memref<9x128x128xbf16, #tpu.memory_space<vmem>>, vector<1x128x128xbf16>
    %235 = vector.shape_cast %234 : vector<1x128x128xbf16> to vector<128x128xbf16>
    %cst_171 = arith.constant dense<0.000000e+00> : vector<32x128xf32>
    %236 = tpu.matmul %233, %235, %cst_171 {dimension_numbers = #tpu.dot_dimension_numbers<[1], [0], [0], [1], [0, 0, 1, 1], [], []>} : vector<32x128xbf16>, vector<128x128xbf16>, vector<32x128xf32> -> vector<32x128xf32>
    %237 = arith.addf %232, %236 : vector<32x128xf32>
    %c78 = arith.constant 78 : index
    %c0_172 = arith.constant 0 : index
    %238 = vector.load %arg10[%c78, %c0_172] : memref<112x128xbf16, #tpu.memory_space<vmem>>, vector<32x128xbf16>
    %c8_173 = arith.constant 8 : index
    %c0_174 = arith.constant 0 : index
    %c0_175 = arith.constant 0 : index
    %239 = vector.load %arg3[%c8_173, %c0_174, %c0_175] : memref<9x128x128xbf16, #tpu.memory_space<vmem>>, vector<1x128x128xbf16>
    %240 = vector.shape_cast %239 : vector<1x128x128xbf16> to vector<128x128xbf16>
    %cst_176 = arith.constant dense<0.000000e+00> : vector<32x128xf32>
    %241 = tpu.matmul %238, %240, %cst_176 {dimension_numbers = #tpu.dot_dimension_numbers<[1], [0], [0], [1], [0, 0, 1, 1], [], []>} : vector<32x128xbf16>, vector<128x128xbf16>, vector<32x128xf32> -> vector<32x128xf32>
    %242 = arith.addf %237, %241 : vector<32x128xf32>
    %c0_177 = arith.constant 0 : index
    %c0_178 = arith.constant 0 : index
    %243 = vector.load %arg4[%c0_177, %c0_178] : memref<1x128xf32, #tpu.memory_space<vmem>>, vector<1x128xf32>
    %244 = vector.broadcast %243 : vector<1x128xf32> to vector<32x128xf32>
    %245 = arith.mulf %242, %244 : vector<32x128xf32>
    %c0_179 = arith.constant 0 : index
    %c0_180 = arith.constant 0 : index
    %246 = vector.load %arg5[%c0_179, %c0_180] : memref<1x128xf32, #tpu.memory_space<vmem>>, vector<1x128xf32>
    %247 = vector.broadcast %246 : vector<1x128xf32> to vector<32x128xf32>
    %248 = arith.addf %245, %247 : vector<32x128xf32>
    %cst_181 = arith.constant 0.000000e+00 : f32
    %249 = vector.broadcast %cst_181 : f32 to vector<32x128xf32>
    %250 = arith.maximumf %248, %249 : vector<32x128xf32>
    %c64_i32_182 = arith.constant 64 : i32
    %251 = arith.addi %0, %c64_i32_182 : i32
    %c7_i32_183 = arith.constant 7 : i32
    %252 = arith.addi %251, %c7_i32_183 : i32
    %c14_i32_184 = arith.constant 14 : i32
    %253 = arith.subi %252, %c14_i32_184 : i32
    %254 = tpu.iota {dimensions = array<i32: 0>} : vector<32x1xi32>
    %255 = vector.broadcast %253 : i32 to vector<32x1xi32>
    %256 = arith.addi %255, %254 : vector<32x1xi32>
    %257 = arith.sitofp %256 : vector<32x1xi32> to vector<32x1xf32>
    %cst_185 = arith.constant 3.600000e+01 : f32
    %258 = vector.broadcast %cst_185 : f32 to vector<32x1xf32>
    %259 = arith.divf %257, %258 : vector<32x1xf32>
    %260 = math.floor %259 : vector<32x1xf32>
    %cst_186 = arith.constant 3.600000e+01 : f32
    %261 = vector.broadcast %cst_186 : f32 to vector<32x1xf32>
    %262 = arith.mulf %260, %261 : vector<32x1xf32>
    %263 = arith.subf %257, %262 : vector<32x1xf32>
    %cst_187 = arith.constant 6.000000e+00 : f32
    %264 = vector.broadcast %cst_187 : f32 to vector<32x1xf32>
    %265 = arith.divf %263, %264 : vector<32x1xf32>
    %266 = math.floor %265 : vector<32x1xf32>
    %cst_188 = arith.constant 6.000000e+00 : f32
    %267 = vector.broadcast %cst_188 : f32 to vector<32x1xf32>
    %268 = arith.mulf %266, %267 : vector<32x1xf32>
    %269 = arith.subf %263, %268 : vector<32x1xf32>
    %c0_i32_189 = arith.constant 0 : i32
    %270 = vector.broadcast %c0_i32_189 : i32 to vector<32x1xi32>
    %271 = arith.cmpi sge, %256, %270 : vector<32x1xi32>
    %c72_i32_190 = arith.constant 72 : i32
    %272 = vector.broadcast %c72_i32_190 : i32 to vector<32x1xi32>
    %273 = arith.cmpi slt, %256, %272 : vector<32x1xi32>
    %274 = arith.andi %271, %273 : vector<32x1xi1>
    %cst_191 = arith.constant 1.000000e+00 : f32
    %275 = vector.broadcast %cst_191 : f32 to vector<32x1xf32>
    %276 = arith.cmpf oge, %266, %275 : vector<32x1xf32>
    %277 = arith.andi %274, %276 : vector<32x1xi1>
    %cst_192 = arith.constant 4.000000e+00 : f32
    %278 = vector.broadcast %cst_192 : f32 to vector<32x1xf32>
    %279 = arith.cmpf ole, %266, %278 : vector<32x1xf32>
    %280 = arith.andi %277, %279 : vector<32x1xi1>
    %cst_193 = arith.constant 1.000000e+00 : f32
    %281 = vector.broadcast %cst_193 : f32 to vector<32x1xf32>
    %282 = arith.cmpf oge, %269, %281 : vector<32x1xf32>
    %283 = arith.andi %280, %282 : vector<32x1xi1>
    %cst_194 = arith.constant 4.000000e+00 : f32
    %284 = vector.broadcast %cst_194 : f32 to vector<32x1xf32>
    %285 = arith.cmpf ole, %269, %284 : vector<32x1xf32>
    %286 = arith.andi %283, %285 : vector<32x1xi1>
    %287 = arith.extui %286 : vector<32x1xi1> to vector<32x1xi32>
    %288 = arith.sitofp %287 : vector<32x1xi32> to vector<32x1xf32>
    %289 = vector.broadcast %288 : vector<32x1xf32> to vector<32x128xf32>
    %290 = arith.mulf %250, %289 : vector<32x128xf32>
    %291 = arith.truncf %290 : vector<32x128xf32> to vector<32x128xbf16>
    %c64_195 = arith.constant 64 : index
    %c0_196 = arith.constant 0 : index
    %292 = vector.load %arg11[%c64_195, %c0_196] : memref<96x128xbf16, #tpu.memory_space<vmem>>, vector<32x128xbf16>
    tpu.vector_store %arg11[%c64_195, %c0_196], %291 {strides = array<i32>} : memref<96x128xbf16, #tpu.memory_space<vmem>>, vector<32x128xbf16>,
    %cst_197 = arith.constant 0.000000e+00 : f32
    %293 = vector.broadcast %cst_197 : f32 to vector<32x128xf32>
    %c0_198 = arith.constant 0 : index
    %c0_199 = arith.constant 0 : index
    %294 = vector.load %arg11[%c0_198, %c0_199] : memref<96x128xbf16, #tpu.memory_space<vmem>>, vector<32x128xbf16>
    %c0_200 = arith.constant 0 : index
    %c0_201 = arith.constant 0 : index
    %c0_202 = arith.constant 0 : index
    %295 = vector.load %arg6[%c0_200, %c0_201, %c0_202] : memref<9x128x128xbf16, #tpu.memory_space<vmem>>, vector<1x128x128xbf16>
    %296 = vector.shape_cast %295 : vector<1x128x128xbf16> to vector<128x128xbf16>
    %cst_203 = arith.constant dense<0.000000e+00> : vector<32x128xf32>
    %297 = tpu.matmul %294, %296, %cst_203 {dimension_numbers = #tpu.dot_dimension_numbers<[1], [0], [0], [1], [0, 0, 1, 1], [], []>} : vector<32x128xbf16>, vector<128x128xbf16>, vector<32x128xf32> -> vector<32x128xf32>
    %298 = arith.addf %293, %297 : vector<32x128xf32>
    %c1_204 = arith.constant 1 : index
    %c0_205 = arith.constant 0 : index
    %299 = vector.load %arg11[%c1_204, %c0_205] : memref<96x128xbf16, #tpu.memory_space<vmem>>, vector<32x128xbf16>
    %c1_206 = arith.constant 1 : index
    %c0_207 = arith.constant 0 : index
    %c0_208 = arith.constant 0 : index
    %300 = vector.load %arg6[%c1_206, %c0_207, %c0_208] : memref<9x128x128xbf16, #tpu.memory_space<vmem>>, vector<1x128x128xbf16>
    %301 = vector.shape_cast %300 : vector<1x128x128xbf16> to vector<128x128xbf16>
    %cst_209 = arith.constant dense<0.000000e+00> : vector<32x128xf32>
    %302 = tpu.matmul %299, %301, %cst_209 {dimension_numbers = #tpu.dot_dimension_numbers<[1], [0], [0], [1], [0, 0, 1, 1], [], []>} : vector<32x128xbf16>, vector<128x128xbf16>, vector<32x128xf32> -> vector<32x128xf32>
    %303 = arith.addf %298, %302 : vector<32x128xf32>
    %c2_210 = arith.constant 2 : index
    %c0_211 = arith.constant 0 : index
    %304 = vector.load %arg11[%c2_210, %c0_211] : memref<96x128xbf16, #tpu.memory_space<vmem>>, vector<32x128xbf16>
    %c2_212 = arith.constant 2 : index
    %c0_213 = arith.constant 0 : index
    %c0_214 = arith.constant 0 : index
    %305 = vector.load %arg6[%c2_212, %c0_213, %c0_214] : memref<9x128x128xbf16, #tpu.memory_space<vmem>>, vector<1x128x128xbf16>
    %306 = vector.shape_cast %305 : vector<1x128x128xbf16> to vector<128x128xbf16>
    %cst_215 = arith.constant dense<0.000000e+00> : vector<32x128xf32>
    %307 = tpu.matmul %304, %306, %cst_215 {dimension_numbers = #tpu.dot_dimension_numbers<[1], [0], [0], [1], [0, 0, 1, 1], [], []>} : vector<32x128xbf16>, vector<128x128xbf16>, vector<32x128xf32> -> vector<32x128xf32>
    %308 = arith.addf %303, %307 : vector<32x128xf32>
    %c6_216 = arith.constant 6 : index
    %c0_217 = arith.constant 0 : index
    %309 = vector.load %arg11[%c6_216, %c0_217] : memref<96x128xbf16, #tpu.memory_space<vmem>>, vector<32x128xbf16>
    %c3_218 = arith.constant 3 : index
    %c0_219 = arith.constant 0 : index
    %c0_220 = arith.constant 0 : index
    %310 = vector.load %arg6[%c3_218, %c0_219, %c0_220] : memref<9x128x128xbf16, #tpu.memory_space<vmem>>, vector<1x128x128xbf16>
    %311 = vector.shape_cast %310 : vector<1x128x128xbf16> to vector<128x128xbf16>
    %cst_221 = arith.constant dense<0.000000e+00> : vector<32x128xf32>
    %312 = tpu.matmul %309, %311, %cst_221 {dimension_numbers = #tpu.dot_dimension_numbers<[1], [0], [0], [1], [0, 0, 1, 1], [], []>} : vector<32x128xbf16>, vector<128x128xbf16>, vector<32x128xf32> -> vector<32x128xf32>
    %313 = arith.addf %308, %312 : vector<32x128xf32>
    %c7_222 = arith.constant 7 : index
    %c0_223 = arith.constant 0 : index
    %314 = vector.load %arg11[%c7_222, %c0_223] : memref<96x128xbf16, #tpu.memory_space<vmem>>, vector<32x128xbf16>
    %c4_224 = arith.constant 4 : index
    %c0_225 = arith.constant 0 : index
    %c0_226 = arith.constant 0 : index
    %315 = vector.load %arg6[%c4_224, %c0_225, %c0_226] : memref<9x128x128xbf16, #tpu.memory_space<vmem>>, vector<1x128x128xbf16>
    %316 = vector.shape_cast %315 : vector<1x128x128xbf16> to vector<128x128xbf16>
    %cst_227 = arith.constant dense<0.000000e+00> : vector<32x128xf32>
    %317 = tpu.matmul %314, %316, %cst_227 {dimension_numbers = #tpu.dot_dimension_numbers<[1], [0], [0], [1], [0, 0, 1, 1], [], []>} : vector<32x128xbf16>, vector<128x128xbf16>, vector<32x128xf32> -> vector<32x128xf32>
    %318 = arith.addf %313, %317 : vector<32x128xf32>
    %c8_228 = arith.constant 8 : index
    %c0_229 = arith.constant 0 : index
    %319 = vector.load %arg11[%c8_228, %c0_229] : memref<96x128xbf16, #tpu.memory_space<vmem>>, vector<32x128xbf16>
    %c5_230 = arith.constant 5 : index
    %c0_231 = arith.constant 0 : index
    %c0_232 = arith.constant 0 : index
    %320 = vector.load %arg6[%c5_230, %c0_231, %c0_232] : memref<9x128x128xbf16, #tpu.memory_space<vmem>>, vector<1x128x128xbf16>
    %321 = vector.shape_cast %320 : vector<1x128x128xbf16> to vector<128x128xbf16>
    %cst_233 = arith.constant dense<0.000000e+00> : vector<32x128xf32>
    %322 = tpu.matmul %319, %321, %cst_233 {dimension_numbers = #tpu.dot_dimension_numbers<[1], [0], [0], [1], [0, 0, 1, 1], [], []>} : vector<32x128xbf16>, vector<128x128xbf16>, vector<32x128xf32> -> vector<32x128xf32>
    %323 = arith.addf %318, %322 : vector<32x128xf32>
    %c12_234 = arith.constant 12 : index
    %c0_235 = arith.constant 0 : index
    %324 = vector.load %arg11[%c12_234, %c0_235] : memref<96x128xbf16, #tpu.memory_space<vmem>>, vector<32x128xbf16>
    %c6_236 = arith.constant 6 : index
    %c0_237 = arith.constant 0 : index
    %c0_238 = arith.constant 0 : index
    %325 = vector.load %arg6[%c6_236, %c0_237, %c0_238] : memref<9x128x128xbf16, #tpu.memory_space<vmem>>, vector<1x128x128xbf16>
    %326 = vector.shape_cast %325 : vector<1x128x128xbf16> to vector<128x128xbf16>
    %cst_239 = arith.constant dense<0.000000e+00> : vector<32x128xf32>
    %327 = tpu.matmul %324, %326, %cst_239 {dimension_numbers = #tpu.dot_dimension_numbers<[1], [0], [0], [1], [0, 0, 1, 1], [], []>} : vector<32x128xbf16>, vector<128x128xbf16>, vector<32x128xf32> -> vector<32x128xf32>
    %328 = arith.addf %323, %327 : vector<32x128xf32>
    %c13_240 = arith.constant 13 : index
    %c0_241 = arith.constant 0 : index
    %329 = vector.load %arg11[%c13_240, %c0_241] : memref<96x128xbf16, #tpu.memory_space<vmem>>, vector<32x128xbf16>
    %c7_242 = arith.constant 7 : index
    %c0_243 = arith.constant 0 : index
    %c0_244 = arith.constant 0 : index
    %330 = vector.load %arg6[%c7_242, %c0_243, %c0_244] : memref<9x128x128xbf16, #tpu.memory_space<vmem>>, vector<1x128x128xbf16>
    %331 = vector.shape_cast %330 : vector<1x128x128xbf16> to vector<128x128xbf16>
    %cst_245 = arith.constant dense<0.000000e+00> : vector<32x128xf32>
    %332 = tpu.matmul %329, %331, %cst_245 {dimension_numbers = #tpu.dot_dimension_numbers<[1], [0], [0], [1], [0, 0, 1, 1], [], []>} : vector<32x128xbf16>, vector<128x128xbf16>, vector<32x128xf32> -> vector<32x128xf32>
    %333 = arith.addf %328, %332 : vector<32x128xf32>
    %c14_246 = arith.constant 14 : index
    %c0_247 = arith.constant 0 : index
    %334 = vector.load %arg11[%c14_246, %c0_247] : memref<96x128xbf16, #tpu.memory_space<vmem>>, vector<32x128xbf16>
    %c8_248 = arith.constant 8 : index
    %c0_249 = arith.constant 0 : index
    %c0_250 = arith.constant 0 : index
    %335 = vector.load %arg6[%c8_248, %c0_249, %c0_250] : memref<9x128x128xbf16, #tpu.memory_space<vmem>>, vector<1x128x128xbf16>
    %336 = vector.shape_cast %335 : vector<1x128x128xbf16> to vector<128x128xbf16>
    %cst_251 = arith.constant dense<0.000000e+00> : vector<32x128xf32>
    %337 = tpu.matmul %334, %336, %cst_251 {dimension_numbers = #tpu.dot_dimension_numbers<[1], [0], [0], [1], [0, 0, 1, 1], [], []>} : vector<32x128xbf16>, vector<128x128xbf16>, vector<32x128xf32> -> vector<32x128xf32>
    %338 = arith.addf %333, %337 : vector<32x128xf32>
    %c14_252 = arith.constant 14 : index
    %c0_253 = arith.constant 0 : index
    %339 = vector.load %arg10[%c14_252, %c0_253] : memref<112x128xbf16, #tpu.memory_space<vmem>>, vector<32x128xbf16>
    %340 = arith.extf %339 : vector<32x128xbf16> to vector<32x128xf32>
    %c0_254 = arith.constant 0 : index
    %c0_255 = arith.constant 0 : index
    %341 = vector.load %arg7[%c0_254, %c0_255] : memref<1x128xf32, #tpu.memory_space<vmem>>, vector<1x128xf32>
    %342 = vector.broadcast %341 : vector<1x128xf32> to vector<32x128xf32>
    %343 = arith.mulf %338, %342 : vector<32x128xf32>
    %c0_256 = arith.constant 0 : index
    %c0_257 = arith.constant 0 : index
    %344 = vector.load %arg8[%c0_256, %c0_257] : memref<1x128xf32, #tpu.memory_space<vmem>>, vector<1x128xf32>
    %345 = vector.broadcast %344 : vector<1x128xf32> to vector<32x128xf32>
    %346 = arith.addf %343, %345 : vector<32x128xf32>
    %347 = arith.addf %346, %340 : vector<32x128xf32>
    %cst_258 = arith.constant 0.000000e+00 : f32
    %348 = vector.broadcast %cst_258 : f32 to vector<32x128xf32>
    %349 = arith.maximumf %347, %348 : vector<32x128xf32>
    %c0_i32_259 = arith.constant 0 : i32
    %350 = arith.addi %0, %c0_i32_259 : i32
    %c14_i32_260 = arith.constant 14 : i32
    %351 = arith.addi %350, %c14_i32_260 : i32
    %c14_i32_261 = arith.constant 14 : i32
    %352 = arith.subi %351, %c14_i32_261 : i32
    %353 = tpu.iota {dimensions = array<i32: 0>} : vector<32x1xi32>
    %354 = vector.broadcast %352 : i32 to vector<32x1xi32>
    %355 = arith.addi %354, %353 : vector<32x1xi32>
    %356 = arith.sitofp %355 : vector<32x1xi32> to vector<32x1xf32>
    %cst_262 = arith.constant 3.600000e+01 : f32
    %357 = vector.broadcast %cst_262 : f32 to vector<32x1xf32>
    %358 = arith.divf %356, %357 : vector<32x1xf32>
    %359 = math.floor %358 : vector<32x1xf32>
    %cst_263 = arith.constant 3.600000e+01 : f32
    %360 = vector.broadcast %cst_263 : f32 to vector<32x1xf32>
    %361 = arith.mulf %359, %360 : vector<32x1xf32>
    %362 = arith.subf %356, %361 : vector<32x1xf32>
    %cst_264 = arith.constant 6.000000e+00 : f32
    %363 = vector.broadcast %cst_264 : f32 to vector<32x1xf32>
    %364 = arith.divf %362, %363 : vector<32x1xf32>
    %365 = math.floor %364 : vector<32x1xf32>
    %cst_265 = arith.constant 6.000000e+00 : f32
    %366 = vector.broadcast %cst_265 : f32 to vector<32x1xf32>
    %367 = arith.mulf %365, %366 : vector<32x1xf32>
    %368 = arith.subf %362, %367 : vector<32x1xf32>
    %c0_i32_266 = arith.constant 0 : i32
    %369 = vector.broadcast %c0_i32_266 : i32 to vector<32x1xi32>
    %370 = arith.cmpi sge, %355, %369 : vector<32x1xi32>
    %c72_i32_267 = arith.constant 72 : i32
    %371 = vector.broadcast %c72_i32_267 : i32 to vector<32x1xi32>
    %372 = arith.cmpi slt, %355, %371 : vector<32x1xi32>
    %373 = arith.andi %370, %372 : vector<32x1xi1>
    %cst_268 = arith.constant 1.000000e+00 : f32
    %374 = vector.broadcast %cst_268 : f32 to vector<32x1xf32>
    %375 = arith.cmpf oge, %365, %374 : vector<32x1xf32>
    %376 = arith.andi %373, %375 : vector<32x1xi1>
    %cst_269 = arith.constant 4.000000e+00 : f32
    %377 = vector.broadcast %cst_269 : f32 to vector<32x1xf32>
    %378 = arith.cmpf ole, %365, %377 : vector<32x1xf32>
    %379 = arith.andi %376, %378 : vector<32x1xi1>
    %cst_270 = arith.constant 1.000000e+00 : f32
    %380 = vector.broadcast %cst_270 : f32 to vector<32x1xf32>
    %381 = arith.cmpf oge, %368, %380 : vector<32x1xf32>
    %382 = arith.andi %379, %381 : vector<32x1xi1>
    %cst_271 = arith.constant 4.000000e+00 : f32
    %383 = vector.broadcast %cst_271 : f32 to vector<32x1xf32>
    %384 = arith.cmpf ole, %368, %383 : vector<32x1xf32>
    %385 = arith.andi %382, %384 : vector<32x1xi1>
    %386 = arith.extui %385 : vector<32x1xi1> to vector<32x1xi32>
    %387 = arith.sitofp %386 : vector<32x1xi32> to vector<32x1xf32>
    %388 = vector.broadcast %387 : vector<32x1xf32> to vector<32x128xf32>
    %389 = arith.mulf %349, %388 : vector<32x128xf32>
    %390 = arith.truncf %389 : vector<32x128xf32> to vector<32x128xbf16>
    %c0_272 = arith.constant 0 : index
    %c0_273 = arith.constant 0 : index
    %391 = vector.load %arg9[%c0_272, %c0_273] : memref<64x128xbf16, #tpu.memory_space<vmem>>, vector<32x128xbf16>
    tpu.vector_store %arg9[%c0_272, %c0_273], %390 {strides = array<i32>} : memref<64x128xbf16, #tpu.memory_space<vmem>>, vector<32x128xbf16>,
    %cst_274 = arith.constant 0.000000e+00 : f32
    %392 = vector.broadcast %cst_274 : f32 to vector<32x128xf32>
    %c32_275 = arith.constant 32 : index
    %c0_276 = arith.constant 0 : index
    %393 = vector.load %arg11[%c32_275, %c0_276] : memref<96x128xbf16, #tpu.memory_space<vmem>>, vector<32x128xbf16>
    %c0_277 = arith.constant 0 : index
    %c0_278 = arith.constant 0 : index
    %c0_279 = arith.constant 0 : index
    %394 = vector.load %arg6[%c0_277, %c0_278, %c0_279] : memref<9x128x128xbf16, #tpu.memory_space<vmem>>, vector<1x128x128xbf16>
    %395 = vector.shape_cast %394 : vector<1x128x128xbf16> to vector<128x128xbf16>
    %cst_280 = arith.constant dense<0.000000e+00> : vector<32x128xf32>
    %396 = tpu.matmul %393, %395, %cst_280 {dimension_numbers = #tpu.dot_dimension_numbers<[1], [0], [0], [1], [0, 0, 1, 1], [], []>} : vector<32x128xbf16>, vector<128x128xbf16>, vector<32x128xf32> -> vector<32x128xf32>
    %397 = arith.addf %392, %396 : vector<32x128xf32>
    %c33_281 = arith.constant 33 : index
    %c0_282 = arith.constant 0 : index
    %398 = vector.load %arg11[%c33_281, %c0_282] : memref<96x128xbf16, #tpu.memory_space<vmem>>, vector<32x128xbf16>
    %c1_283 = arith.constant 1 : index
    %c0_284 = arith.constant 0 : index
    %c0_285 = arith.constant 0 : index
    %399 = vector.load %arg6[%c1_283, %c0_284, %c0_285] : memref<9x128x128xbf16, #tpu.memory_space<vmem>>, vector<1x128x128xbf16>
    %400 = vector.shape_cast %399 : vector<1x128x128xbf16> to vector<128x128xbf16>
    %cst_286 = arith.constant dense<0.000000e+00> : vector<32x128xf32>
    %401 = tpu.matmul %398, %400, %cst_286 {dimension_numbers = #tpu.dot_dimension_numbers<[1], [0], [0], [1], [0, 0, 1, 1], [], []>} : vector<32x128xbf16>, vector<128x128xbf16>, vector<32x128xf32> -> vector<32x128xf32>
    %402 = arith.addf %397, %401 : vector<32x128xf32>
    %c34_287 = arith.constant 34 : index
    %c0_288 = arith.constant 0 : index
    %403 = vector.load %arg11[%c34_287, %c0_288] : memref<96x128xbf16, #tpu.memory_space<vmem>>, vector<32x128xbf16>
    %c2_289 = arith.constant 2 : index
    %c0_290 = arith.constant 0 : index
    %c0_291 = arith.constant 0 : index
    %404 = vector.load %arg6[%c2_289, %c0_290, %c0_291] : memref<9x128x128xbf16, #tpu.memory_space<vmem>>, vector<1x128x128xbf16>
    %405 = vector.shape_cast %404 : vector<1x128x128xbf16> to vector<128x128xbf16>
    %cst_292 = arith.constant dense<0.000000e+00> : vector<32x128xf32>
    %406 = tpu.matmul %403, %405, %cst_292 {dimension_numbers = #tpu.dot_dimension_numbers<[1], [0], [0], [1], [0, 0, 1, 1], [], []>} : vector<32x128xbf16>, vector<128x128xbf16>, vector<32x128xf32> -> vector<32x128xf32>
    %407 = arith.addf %402, %406 : vector<32x128xf32>
    %c38_293 = arith.constant 38 : index
    %c0_294 = arith.constant 0 : index
    %408 = vector.load %arg11[%c38_293, %c0_294] : memref<96x128xbf16, #tpu.memory_space<vmem>>, vector<32x128xbf16>
    %c3_295 = arith.constant 3 : index
    %c0_296 = arith.constant 0 : index
    %c0_297 = arith.constant 0 : index
    %409 = vector.load %arg6[%c3_295, %c0_296, %c0_297] : memref<9x128x128xbf16, #tpu.memory_space<vmem>>, vector<1x128x128xbf16>
    %410 = vector.shape_cast %409 : vector<1x128x128xbf16> to vector<128x128xbf16>
    %cst_298 = arith.constant dense<0.000000e+00> : vector<32x128xf32>
    %411 = tpu.matmul %408, %410, %cst_298 {dimension_numbers = #tpu.dot_dimension_numbers<[1], [0], [0], [1], [0, 0, 1, 1], [], []>} : vector<32x128xbf16>, vector<128x128xbf16>, vector<32x128xf32> -> vector<32x128xf32>
    %412 = arith.addf %407, %411 : vector<32x128xf32>
    %c39_299 = arith.constant 39 : index
    %c0_300 = arith.constant 0 : index
    %413 = vector.load %arg11[%c39_299, %c0_300] : memref<96x128xbf16, #tpu.memory_space<vmem>>, vector<32x128xbf16>
    %c4_301 = arith.constant 4 : index
    %c0_302 = arith.constant 0 : index
    %c0_303 = arith.constant 0 : index
    %414 = vector.load %arg6[%c4_301, %c0_302, %c0_303] : memref<9x128x128xbf16, #tpu.memory_space<vmem>>, vector<1x128x128xbf16>
    %415 = vector.shape_cast %414 : vector<1x128x128xbf16> to vector<128x128xbf16>
    %cst_304 = arith.constant dense<0.000000e+00> : vector<32x128xf32>
    %416 = tpu.matmul %413, %415, %cst_304 {dimension_numbers = #tpu.dot_dimension_numbers<[1], [0], [0], [1], [0, 0, 1, 1], [], []>} : vector<32x128xbf16>, vector<128x128xbf16>, vector<32x128xf32> -> vector<32x128xf32>
    %417 = arith.addf %412, %416 : vector<32x128xf32>
    %c40_305 = arith.constant 40 : index
    %c0_306 = arith.constant 0 : index
    %418 = vector.load %arg11[%c40_305, %c0_306] : memref<96x128xbf16, #tpu.memory_space<vmem>>, vector<32x128xbf16>
    %c5_307 = arith.constant 5 : index
    %c0_308 = arith.constant 0 : index
    %c0_309 = arith.constant 0 : index
    %419 = vector.load %arg6[%c5_307, %c0_308, %c0_309] : memref<9x128x128xbf16, #tpu.memory_space<vmem>>, vector<1x128x128xbf16>
    %420 = vector.shape_cast %419 : vector<1x128x128xbf16> to vector<128x128xbf16>
    %cst_310 = arith.constant dense<0.000000e+00> : vector<32x128xf32>
    %421 = tpu.matmul %418, %420, %cst_310 {dimension_numbers = #tpu.dot_dimension_numbers<[1], [0], [0], [1], [0, 0, 1, 1], [], []>} : vector<32x128xbf16>, vector<128x128xbf16>, vector<32x128xf32> -> vector<32x128xf32>
    %422 = arith.addf %417, %421 : vector<32x128xf32>
    %c44_311 = arith.constant 44 : index
    %c0_312 = arith.constant 0 : index
    %423 = vector.load %arg11[%c44_311, %c0_312] : memref<96x128xbf16, #tpu.memory_space<vmem>>, vector<32x128xbf16>
    %c6_313 = arith.constant 6 : index
    %c0_314 = arith.constant 0 : index
    %c0_315 = arith.constant 0 : index
    %424 = vector.load %arg6[%c6_313, %c0_314, %c0_315] : memref<9x128x128xbf16, #tpu.memory_space<vmem>>, vector<1x128x128xbf16>
    %425 = vector.shape_cast %424 : vector<1x128x128xbf16> to vector<128x128xbf16>
    %cst_316 = arith.constant dense<0.000000e+00> : vector<32x128xf32>
    %426 = tpu.matmul %423, %425, %cst_316 {dimension_numbers = #tpu.dot_dimension_numbers<[1], [0], [0], [1], [0, 0, 1, 1], [], []>} : vector<32x128xbf16>, vector<128x128xbf16>, vector<32x128xf32> -> vector<32x128xf32>
    %427 = arith.addf %422, %426 : vector<32x128xf32>
    %c45_317 = arith.constant 45 : index
    %c0_318 = arith.constant 0 : index
    %428 = vector.load %arg11[%c45_317, %c0_318] : memref<96x128xbf16, #tpu.memory_space<vmem>>, vector<32x128xbf16>
    %c7_319 = arith.constant 7 : index
    %c0_320 = arith.constant 0 : index
    %c0_321 = arith.constant 0 : index
    %429 = vector.load %arg6[%c7_319, %c0_320, %c0_321] : memref<9x128x128xbf16, #tpu.memory_space<vmem>>, vector<1x128x128xbf16>
    %430 = vector.shape_cast %429 : vector<1x128x128xbf16> to vector<128x128xbf16>
    %cst_322 = arith.constant dense<0.000000e+00> : vector<32x128xf32>
    %431 = tpu.matmul %428, %430, %cst_322 {dimension_numbers = #tpu.dot_dimension_numbers<[1], [0], [0], [1], [0, 0, 1, 1], [], []>} : vector<32x128xbf16>, vector<128x128xbf16>, vector<32x128xf32> -> vector<32x128xf32>
    %432 = arith.addf %427, %431 : vector<32x128xf32>
    %c46_323 = arith.constant 46 : index
    %c0_324 = arith.constant 0 : index
    %433 = vector.load %arg11[%c46_323, %c0_324] : memref<96x128xbf16, #tpu.memory_space<vmem>>, vector<32x128xbf16>
    %c8_325 = arith.constant 8 : index
    %c0_326 = arith.constant 0 : index
    %c0_327 = arith.constant 0 : index
    %434 = vector.load %arg6[%c8_325, %c0_326, %c0_327] : memref<9x128x128xbf16, #tpu.memory_space<vmem>>, vector<1x128x128xbf16>
    %435 = vector.shape_cast %434 : vector<1x128x128xbf16> to vector<128x128xbf16>
    %cst_328 = arith.constant dense<0.000000e+00> : vector<32x128xf32>
    %436 = tpu.matmul %433, %435, %cst_328 {dimension_numbers = #tpu.dot_dimension_numbers<[1], [0], [0], [1], [0, 0, 1, 1], [], []>} : vector<32x128xbf16>, vector<128x128xbf16>, vector<32x128xf32> -> vector<32x128xf32>
    %437 = arith.addf %432, %436 : vector<32x128xf32>
    %c46_329 = arith.constant 46 : index
    %c0_330 = arith.constant 0 : index
    %438 = vector.load %arg10[%c46_329, %c0_330] : memref<112x128xbf16, #tpu.memory_space<vmem>>, vector<32x128xbf16>
    %439 = arith.extf %438 : vector<32x128xbf16> to vector<32x128xf32>
    %c0_331 = arith.constant 0 : index
    %c0_332 = arith.constant 0 : index
    %440 = vector.load %arg7[%c0_331, %c0_332] : memref<1x128xf32, #tpu.memory_space<vmem>>, vector<1x128xf32>
    %441 = vector.broadcast %440 : vector<1x128xf32> to vector<32x128xf32>
    %442 = arith.mulf %437, %441 : vector<32x128xf32>
    %c0_333 = arith.constant 0 : index
    %c0_334 = arith.constant 0 : index
    %443 = vector.load %arg8[%c0_333, %c0_334] : memref<1x128xf32, #tpu.memory_space<vmem>>, vector<1x128xf32>
    %444 = vector.broadcast %443 : vector<1x128xf32> to vector<32x128xf32>
    %445 = arith.addf %442, %444 : vector<32x128xf32>
    %446 = arith.addf %445, %439 : vector<32x128xf32>
    %cst_335 = arith.constant 0.000000e+00 : f32
    %447 = vector.broadcast %cst_335 : f32 to vector<32x128xf32>
    %448 = arith.maximumf %446, %447 : vector<32x128xf32>
    %c32_i32_336 = arith.constant 32 : i32
    %449 = arith.addi %0, %c32_i32_336 : i32
    %c14_i32_337 = arith.constant 14 : i32
    %450 = arith.addi %449, %c14_i32_337 : i32
    %c14_i32_338 = arith.constant 14 : i32
    %451 = arith.subi %450, %c14_i32_338 : i32
    %452 = tpu.iota {dimensions = array<i32: 0>} : vector<32x1xi32>
    %453 = vector.broadcast %451 : i32 to vector<32x1xi32>
    %454 = arith.addi %453, %452 : vector<32x1xi32>
    %455 = arith.sitofp %454 : vector<32x1xi32> to vector<32x1xf32>
    %cst_339 = arith.constant 3.600000e+01 : f32
    %456 = vector.broadcast %cst_339 : f32 to vector<32x1xf32>
    %457 = arith.divf %455, %456 : vector<32x1xf32>
    %458 = math.floor %457 : vector<32x1xf32>
    %cst_340 = arith.constant 3.600000e+01 : f32
    %459 = vector.broadcast %cst_340 : f32 to vector<32x1xf32>
    %460 = arith.mulf %458, %459 : vector<32x1xf32>
    %461 = arith.subf %455, %460 : vector<32x1xf32>
    %cst_341 = arith.constant 6.000000e+00 : f32
    %462 = vector.broadcast %cst_341 : f32 to vector<32x1xf32>
    %463 = arith.divf %461, %462 : vector<32x1xf32>
    %464 = math.floor %463 : vector<32x1xf32>
    %cst_342 = arith.constant 6.000000e+00 : f32
    %465 = vector.broadcast %cst_342 : f32 to vector<32x1xf32>
    %466 = arith.mulf %464, %465 : vector<32x1xf32>
    %467 = arith.subf %461, %466 : vector<32x1xf32>
    %c0_i32_343 = arith.constant 0 : i32
    %468 = vector.broadcast %c0_i32_343 : i32 to vector<32x1xi32>
    %469 = arith.cmpi sge, %454, %468 : vector<32x1xi32>
    %c72_i32_344 = arith.constant 72 : i32
    %470 = vector.broadcast %c72_i32_344 : i32 to vector<32x1xi32>
    %471 = arith.cmpi slt, %454, %470 : vector<32x1xi32>
    %472 = arith.andi %469, %471 : vector<32x1xi1>
    %cst_345 = arith.constant 1.000000e+00 : f32
    %473 = vector.broadcast %cst_345 : f32 to vector<32x1xf32>
    %474 = arith.cmpf oge, %464, %473 : vector<32x1xf32>
    %475 = arith.andi %472, %474 : vector<32x1xi1>
    %cst_346 = arith.constant 4.000000e+00 : f32
    %476 = vector.broadcast %cst_346 : f32 to vector<32x1xf32>
    %477 = arith.cmpf ole, %464, %476 : vector<32x1xf32>
    %478 = arith.andi %475, %477 : vector<32x1xi1>
    %cst_347 = arith.constant 1.000000e+00 : f32
    %479 = vector.broadcast %cst_347 : f32 to vector<32x1xf32>
    %480 = arith.cmpf oge, %467, %479 : vector<32x1xf32>
    %481 = arith.andi %478, %480 : vector<32x1xi1>
    %cst_348 = arith.constant 4.000000e+00 : f32
    %482 = vector.broadcast %cst_348 : f32 to vector<32x1xf32>
    %483 = arith.cmpf ole, %467, %482 : vector<32x1xf32>
    %484 = arith.andi %481, %483 : vector<32x1xi1>
    %485 = arith.extui %484 : vector<32x1xi1> to vector<32x1xi32>
    %486 = arith.sitofp %485 : vector<32x1xi32> to vector<32x1xf32>
    %487 = vector.broadcast %486 : vector<32x1xf32> to vector<32x128xf32>
    %488 = arith.mulf %448, %487 : vector<32x128xf32>
    %489 = arith.truncf %488 : vector<32x128xf32> to vector<32x128xbf16>
    %c32_349 = arith.constant 32 : index
    %c0_350 = arith.constant 0 : index
    %490 = vector.load %arg9[%c32_349, %c0_350] : memref<64x128xbf16, #tpu.memory_space<vmem>>, vector<32x128xbf16>
    tpu.vector_store %arg9[%c32_349, %c0_350], %489 {strides = array<i32>} : memref<64x128xbf16, #tpu.memory_space<vmem>>, vector<32x128xbf16>,
    return
  }
  func.func @transform_0(%arg0: i32) -> (i32, i32) {
    %c0_i32 = arith.constant 0 : i32
    %c0_i32_0 = arith.constant 0 : i32
    return %arg0, %c0_i32 : i32, i32
  }
  func.func @transform_1(%arg0: i32) -> (i32, i32) {
    %c1_i32 = arith.constant 1 : i32
    %0 = arith.addi %arg0, %c1_i32 : i32
    %c0_i32 = arith.constant 0 : i32
    %c0_i32_0 = arith.constant 0 : i32
    return %0, %c0_i32 : i32, i32
  }
  func.func @transform_2(%arg0: i32) -> (i32, i32, i32) {
    %c0_i32 = arith.constant 0 : i32
    %c0_i32_0 = arith.constant 0 : i32
    %c0_i32_1 = arith.constant 0 : i32
    %c0_i32_2 = arith.constant 0 : i32
    return %c0_i32, %c0_i32_0, %c0_i32_1 : i32, i32, i32
  }
  func.func @transform_3(%arg0: i32) -> (i32, i32) {
    %c0_i32 = arith.constant 0 : i32
    %c0_i32_0 = arith.constant 0 : i32
    %c0_i32_1 = arith.constant 0 : i32
    return %c0_i32, %c0_i32_0 : i32, i32
  }
  func.func @transform_4(%arg0: i32) -> (i32, i32) {
    %c0_i32 = arith.constant 0 : i32
    %c0_i32_0 = arith.constant 0 : i32
    %c0_i32_1 = arith.constant 0 : i32
    return %c0_i32, %c0_i32_0 : i32, i32
  }
  func.func @transform_5(%arg0: i32) -> (i32, i32, i32) {
    %c0_i32 = arith.constant 0 : i32
    %c0_i32_0 = arith.constant 0 : i32
    %c0_i32_1 = arith.constant 0 : i32
    %c0_i32_2 = arith.constant 0 : i32
    return %c0_i32, %c0_i32_0, %c0_i32_1 : i32, i32, i32
  }
  func.func @transform_6(%arg0: i32) -> (i32, i32) {
    %c0_i32 = arith.constant 0 : i32
    %c0_i32_0 = arith.constant 0 : i32
    %c0_i32_1 = arith.constant 0 : i32
    return %c0_i32, %c0_i32_0 : i32, i32
  }
  func.func @transform_7(%arg0: i32) -> (i32, i32) {
    %c0_i32 = arith.constant 0 : i32
    %c0_i32_0 = arith.constant 0 : i32
    %c0_i32_1 = arith.constant 0 : i32
    return %c0_i32, %c0_i32_0 : i32, i32
  }
  func.func @transform_8(%arg0: i32) -> (i32, i32) {
    %c0_i32 = arith.constant 0 : i32
    %c0_i32_0 = arith.constant 0 : i32
    return %arg0, %c0_i32 : i32, i32
  }
}

</mosaic_0001>

<bundles_post_ra>
// kernel: resnet_stage0_forward.5
= control target key start
LH: loop header
LB: loop body
LE: loop exit
PB: predicated region body
PF: predicated region fallthrough
CT: control target
= control target key end

     0   :  { %s413_s9 = smov 0   ;;  %s475_s0 = inlined_call_operand.vmem [shape: bf16[2,5,2,5,128], index: 0, kind: input, shape index: {}]   ;;  %s476_s1 = inlined_call_operand.vmem [shape: bf16[2,5,2,5,128], index: 1, kind: input, shape index: {}]   ;;  %s477_s2 = inlined_call_operand.vmem [shape: bf16[2,4,4,128], index: 2, kind: output, shape index: {}]  }
   0x1 LB: > { %s369_s10 = sadd.s32 4294967295, %s396_s9   ;;  %p373_p0 = scmp.ge.s32.totalorder %s396_s9, 1  ;;  %s396_s9 = sphi %s413_s9, %s12_s9  }
   0x2   : > { %p122_p1 = scmp.lt.s32.totalorder %s396_s9, 3 }
   0x4   : > { %p123_p2 = pnand %p373_p0, %p122_p1 }
   0x5   : > { %p149_p3 = scmp.lt.s32.totalorder (!%p123_p2), %s369_s10, 1 }
   0x6   : > { %126 = sbr.rel (%p123_p2) target bundleno = 46 (0x2e), region = 28 }
   0xd   : > { %s479_s10 = smov (!%p149_p3, %s369_s10), 1 }
   0xe   : > { %s381_s11 = smul.u32 40, %s479_s10  ;;  %s380_s18 = sshll.u32 %s479_s10, 3 }
   0xf   : > { %s464_s21 = scalar_lea.vmem %s477_s2, %s380_s18 }
  0x10   : > { %s427_s14 = scalar_lea.vmem %s475_s0, %s381_s11  ;;  %s432_s17 = scalar_lea.vmem %s476_s1, %s381_s11 }
  0x11   : > { %v164_v0 = vld [vmem:[%s427_s14] sm:$0x7]  ;;  %v165_v1 = vld [vmem:[%s427_s14 + $0x4] sm:$0x7]  ;;  %v166_v2 = vld [vmem:[%s427_s14 + $0x8] sm:$0x7] }
  0x12   : > { %v173_v3 = vld [vmem:[%s432_s17] sm:$0x7]  ;;  %v175_v4 = vld [vmem:[%s432_s17 + $0x8] sm:$0x7]  ;;  %v187_v5 = vshrl.u32 %v164_v0, 16  ;;  %v190_v6 = vshll.u32 %v164_v0, 16 }
  0x13   : > { %v440_v7 = vld [vmem:[%s427_s14 + $0x10] sm:$0x7]  ;;  %v174_v8 = vld [vmem:[%s432_s17 + $0x4] sm:$0x7]  ;;  %v182_v9 = vmax.bf16 %v173_v3, %v164_v0  ;;  %v196_v10 = vshrl.u32 %v166_v2, 16  ;;  %v199_v11 = vshll.u32 %v166_v2, 16  ;;  %v183_v18 = vmax.bf16 %v175_v4, %v166_v2 }
  0x14   : > { %v235_v12 = vshrl.u32 %v165_v1, 16  ;;  %v189_v13 = vrot.slane %v187_v5, 4  ;;  %v192_v14 = vrot.slane %v190_v6, 5  ;;  %v238_v15 = vshll.u32 %v165_v1, 16  ;;  %v167_v16 = vld [vmem:[%s427_s14 + $0xc] sm:$0x7] }
  0x15   : > { %v205_v17 = vshrl.u32 %v440_v7, 16  ;;  %v198_v19 = vrot.slane %v196_v10, 4  ;;  %v201_v20 = vrot.slane %v199_v11, 5  ;;  %v177_v22 = vld [vmem:[%s432_s17 + $0x10] sm:$0x7]  ;;  %v208_v26 = vshll.u32 %v440_v7, 16 }
  0x16   : > { %v237_v21 = vrot.slane %v235_v12, 4  ;;  %v193_v23 = vor.u32 %v192_v14, %v189_v13  ;;  %v240_v24 = vrot.slane %v238_v15, 5  ;;  %v448_v27 = vld [vmem:[%s427_s14 + $0x18] sm:$0x7]  ;;  %v230_v29 = vmax.bf16 %v174_v8, %v165_v1  ;;  %v176_v34 = vld [vmem:[%s432_s17 + $0xc] sm:$0x7] }
  0x17   : > { %v207_v25 = vrot.slane %v205_v17, 4  ;;  %v202_v28 = vor.u32 %v201_v20, %v198_v19  ;;  %v244_v30 = vshrl.u32 %v167_v16, 16  ;;  %v247_v31 = vshll.u32 %v167_v16, 16  ;;  %v179_v37 = vld [vmem:[%s432_s17 + $0x18] sm:$0x7] }
  0x18   : > { %v194_v32 = vrot.slane %v193_v23, 4  ;;  %v241_v33 = vor.u32 %v240_v24, %v237_v21  ;;  %v184_v35 = vmax.bf16 %v177_v22, %v440_v7  ;;  %v210_v36 = vrot.slane %v208_v26, 5  ;;  %v169_v41 = vld [vmem:[%s427_s14 + $0x14] sm:$0x7]  ;;  %v171_v47 = vld [vmem:[%s427_s14 + $0x1c] sm:$0x7] }
  0x19   : > { %v203_v38 = vrot.slane %v202_v28, 4  ;;  %v246_v39 = vrot.slane %v244_v30, 4  ;;  %v249_v40 = vrot.slane %v247_v31, 5  ;;  %v214_v42 = vshrl.u32 %v448_v27, 16  ;;  %v178_v50 = vld [vmem:[%s432_s17 + $0x14] sm:$0x7] }
  0x1a   : > { %v226_v43 = vmax.bf16 %v194_v32, %v182_v9  ;;  %v242_v44 = vrot.slane %v241_v33, 4  ;;  %v211_v45 = vor.u32 %v210_v36, %v207_v25  ;;  %v217_v46 = vshll.u32 %v448_v27, 16  ;;  %v172_v60 = vld [vmem:[%s427_s14 + $0x20] sm:$0x7]  ;;  %v180_v4 = vld [vmem:[%s432_s17 + $0x1c] sm:$0x7] }
  0x1b   : > { %v231_v48 = vmax.bf16 %v176_v34, %v167_v16  ;;  %v250_v49 = vor.u32 %v249_v40, %v246_v39  ;;  %v185_v51 = vmax.bf16 %v179_v37, %v448_v27  ;;  %v216_v52 = vrot.slane %v214_v42, 4  ;;  %v181_v13 = vld [vmem:[%s432_s17 + $0x20] sm:$0x7] }
  0x1c   : > { %v274_v53 = vmax.bf16 %v242_v44, %v230_v29  ;;  %v212_v54 = vrot.slane %v211_v45, 4  ;;  %v219_v55 = vrot.slane %v217_v46, 5  ;;  %v253_v56 = vshrl.u32 %v169_v41, 16 }
  0x1d   : > { %v227_v57 = vmax.bf16 %v203_v38, %v183_v18  ;;  %v251_v58 = vrot.slane %v250_v49, 4  ;;  %v256_v59 = vshll.u32 %v169_v41, 16  ;;  %v262_v61 = vshrl.u32 %v171_v47, 16 }
  0x1e   : > { %v278_v62 = vmax.bf16 %v274_v53, %v226_v43  ;;  %v220_v63 = vor.u32 %v219_v55, %v216_v52  ;;  %v232_v0 = vmax.bf16 %v178_v50, %v169_v41  ;;  %v255_v1 = vrot.slane %v253_v56, 4 }
  0x1f   : > { %v275_v2 = vmax.bf16 %v251_v58, %v231_v48  ;;  %v258_v3 = vrot.slane %v256_v59, 5  ;;  %v264_v5 = vrot.slane %v262_v61, 4  ;;  %v265_v6 = vshll.u32 %v171_v47, 16 }
  0x20   : > { %v294_v7 = vmax.bf16 %v278_v62, %v227_v57  ;;  %v228_v8 = vmax.bf16 %v212_v54, %v184_v35  ;;  %v221_v9 = vrot.slane %v220_v63, 4  ;;  %v284_v10 = vshrl.u32 %v172_v60, 16 }
  0x21   : > { %v279_v11 = vmax.bf16 %v275_v2, %v227_v57  ;;  %v259_v12 = vor.u32 %v258_v3, %v255_v1  ;;  %v267_v14 = vrot.slane %v265_v6, 5  ;;  %v287_v15 = vshll.u32 %v172_v60, 16 }
  0x22   : > { %298 = vst [vmem:[%s464_s21] sm:$0x3] %v294_v7  ;;  %v233_v16 = vmax.bf16 %v180_v4, %v171_v47  ;;  %v286_v17 = vrot.slane %v284_v10, 4  ;;  %v282_v22 = vmax.bf16 %v181_v13, %v172_v60  ;;  %v229_v23 = vmax.bf16 %v221_v9, %v185_v51 }
  0x23   : > { %v295_v18 = vmax.bf16 %v279_v11, %v228_v8  ;;  %v260_v19 = vrot.slane %v259_v12, 4  ;;  %v268_v20 = vor.u32 %v267_v14, %v264_v5  ;;  %v289_v21 = vrot.slane %v287_v15, 5 }
  0x25   : > { %299 = vst [vmem:[%s464_s21 + $0x2] sm:$0x3] %v295_v18  ;;  %v276_v24 = vmax.bf16 %v260_v19, %v232_v0  ;;  %v269_v25 = vrot.slane %v268_v20, 4  ;;  %v290_v26 = vor.u32 %v289_v21, %v286_v17 }
  0x27   : > { %v280_v27 = vmax.bf16 %v276_v24, %v228_v8  ;;  %v277_v28 = vmax.bf16 %v269_v25, %v233_v16  ;;  %v291_v29 = vrot.slane %v290_v26, 4 }
  0x29   : > { %v296_v30 = vmax.bf16 %v280_v27, %v229_v23  ;;  %v281_v31 = vmax.bf16 %v277_v28, %v229_v23  ;;  %v293_v32 = vmax.bf16 %v291_v29, %v282_v22 }
  0x2b   : > { %300 = vst [vmem:[%s464_s21 + $0x4] sm:$0x3] %v296_v30  ;;  %v297_v33 = vmax.bf16 %v293_v32, %v281_v31 }
  0x2d   : > { %301 = vst [vmem:[%s464_s21 + $0x6] sm:$0x3] %v297_v33 }
  0x2e PF: > { %s12_s9 = sadd.s32 1, %s396_s9  }
  0x2f   : > { %p9_p4 = scmp.ge.s32.totalorder %s12_s9, 4  }
  0x31   :  { %11 = sbr.rel (!%p9_p4) target bundleno = 1 (0x1), region = 61 }

// kernel: resnet_stage0_forward.4
= control target key start
LH: loop header
LB: loop body
LE: loop exit
PB: predicated region body
PF: predicated region fallthrough
CT: control target
= control target key end

     0   :  { %s702_s15 = smov 0   ;;  %s773_s0 = inlined_call_operand.vmem [shape: bf16[128,152], index: 0, kind: input, shape index: {}]   ;;  %s774_s1 = inlined_call_operand.vmem [shape: bf16[152,128], index: 1, kind: input, shape index: {}]   ;;  %s775_s2 = inlined_call_operand.vmem [shape: f32[1,128], index: 2, kind: input, shape index: {}]   ;;  %s776_s3 = inlined_call_operand.vmem [shape: f32[1,128], index: 3, kind: input, shape index: {}]   ;;  %s777_s4 = inlined_call_operand.vmem [shape: bf16[128,128], index: 4, kind: output, shape index: {}]  }
   0x1 LB: > { %s541_s16 = sadd.s32 4294967295, %s674_s15   ;;  %p545_p0 = scmp.ge.s32.totalorder %s674_s15, 1  ;;  %s674_s15 = sphi %s702_s15, %s14_s15  }
   0x2   : > { %p164_p1 = scmp.lt.s32.totalorder %s674_s15, 3 }
   0x4   : > { %p165_p2 = pnand %p545_p0, %p164_p1 }
   0x5   : > { %v646_v0 = vld [vmem:[%s774_s1] sm:$0xff] (!%p165_p2)   ;;  %v676_v1 = vmov (!%p165_p2), 0   ;;  %v647_v2 = vld [vmem:[%s774_s1 + $0x8] sm:$0xff] (!%p165_p2)   ;;  %s546_s21 = sshll.u32 (!%p165_p2), %s541_s16, 3  ;;  %v648_v3 = vld [vmem:[%s774_s1 + $0x10] sm:$0xff] (!%p165_p2)   ;;  %vm325_vm0 = vcmask (!%p165_p2), 195584  }
   0x6   : > { %168 = sbr.rel (%p165_p2) target bundleno = 278 (0x116), region = 36  ;;  %342 = vmatprep.subr.bf16.mxu0 (!%p165_p2), %v676_v1  ;;  %617 = vmatprep.subr.bf16.mxu1 (!%p165_p2), %v676_v1  ;;  %p192_p3 = scmp.lt.s32.totalorder (!%p165_p2), %s546_s21, 15  ;;  %v649_v4 = vld [vmem:[%s774_s1 + $0x18] sm:$0xff] (!%p165_p2)   ;;  %v650_v7 = vld [vmem:[%s774_s1 + $0x20] sm:$0xff] (!%p165_p2)   ;;  %v651_v8 = vld [vmem:[%s774_s1 + $0x28] sm:$0xff] (!%p165_p2)   ;;  %vm338_vm1 = vcmask (!%p165_p2), 1043456  }
   0x7   : > { %343 = vmatpush1.bf16.msra.mxu0 (!%p165_p2), %v646_v0  ;;  %627 = vmatpush1.bf16.msra.mxu1 (!%p165_p2), %v646_v0  ;;  %v652_v9 = vld [vmem:[%s774_s1 + $0x30] sm:$0xff] (!%p165_p2)   ;;  %v653_v10 = vld [vmem:[%s774_s1 + $0x38] sm:$0xff] (!%p165_p2)   ;;  %v654_v11 = vld [vmem:[%s774_s1 + $0x40] sm:$0xff] (!%p165_p2)  }
   0x8   : > { %344 = vmatprep.subr.bf16.mxu0 (!%p165_p2), %v676_v1  ;;  %618 = vmatprep.subr.bf16.mxu1 (!%p165_p2), %v676_v1  ;;  %v655_v12 = vld [vmem:[%s774_s1 + $0x48] ss:$0 sps:$4 sm:$0xff] (!%p165_p2)   ;;  %v573_v20 = vld [vmem:[%s775_s2] ss:$0 sm:$0xff] (!%p165_p2) }
   0x9   : > { %v340_v13 = vsel (!%p165_p2), %vm338_vm1, %v655_v12, 0  ;;  %v574_v22 = vld [vmem:[%s776_s3] ss:$0 sm:$0xff] (!%p165_p2) }
   0xb   : > { %345 = vmatpush1.bf16.msra.mxu0 (!%p165_p2), %v647_v2  ;;  %628 = vmatpush1.bf16.msra.mxu1 (!%p165_p2), %v647_v2 }
   0xc   : > { %346 = vmatprep.subr.bf16.mxu0 (!%p165_p2), %v676_v1  ;;  %619 = vmatprep.subr.bf16.mxu1 (!%p165_p2), %v676_v1 }
   0xd   : > { %s779_s21 = smov (!%p192_p3, %s546_s21), 15 }
   0xe   : > { %s585_s24 = sshll.u32 %s779_s21, 3  ;;  %s550_s22 = sshll.u32 %s779_s21, 2 }
   0xf   : > { %s725_s27 = scalar_lea.vmem %s773_s0, %s585_s24  ;;  %347 = vmatpush1.bf16.msra.mxu0 %v648_v3  ;;  %629 = vmatpush1.bf16.msra.mxu1 %v648_v3  ;;  %s202_s25 = scalar_lea.vmem %s777_s4, %s550_s22 }
  0x10   : > { %v658_v5 = vld [vmem:[%s725_s27 + $0x4] ss:$8 sps:$4 sm:$0xff]   ;;  %348 = vmatprep.subr.bf16.mxu0 %v676_v1  ;;  %620 = vmatprep.subr.bf16.mxu1 %v676_v1  ;;  %v656_v14 = vld [vmem:[%s725_s27] ss:$8 sps:$4 sm:$0xff]   ;;  %v662_v16 = vld [vmem:[%s725_s27 + $0x14] ss:$8 sps:$4 sm:$0xff]  }
  0x11   : > { %569 = vmatprep.mubr.msk.bf16.mxu0 %vm325_vm0, %v658_v5  ;;  %v661_v6 = vld [vmem:[%s725_s27 + $0x24] ss:$8 sps:$4 sm:$0xff]   ;;  %v659_v15 = vld [vmem:[%s725_s27 + $0x20] ss:$8 sps:$4 sm:$0xff]   ;;  %v664_v17 = vld [vmem:[%s725_s27 + $0x34] ss:$8 sps:$4 sm:$0xff]  }
  0x12   : > { %571 = vmatprep.mubr.msk.bf16.mxu1 %vm325_vm0, %v661_v6  ;;  %v666_v18 = vld [vmem:[%s725_s27 + $0x10] ss:$8 sps:$4 sm:$0xff]  }
  0x13   : > { %349 = vmatpush1.bf16.msra.mxu0 %v649_v4  ;;  %630 = vmatpush1.bf16.msra.mxu1 %v649_v4  ;;  %v667_v19 = vld [vmem:[%s725_s27 + $0x30] ss:$8 sps:$4 sm:$0xff]  }
  0x14   : > { %350 = vmatprep.subr.bf16.mxu0 %v676_v1  ;;  %621 = vmatprep.subr.bf16.mxu1 %v676_v1 }
  0x17   : > { %351 = vmatpush1.bf16.msra.mxu0 %v650_v7  ;;  %631 = vmatpush1.bf16.msra.mxu1 %v650_v7 }
  0x18   : > { %352 = vmatprep.subr.bf16.mxu0 %v676_v1  ;;  %622 = vmatprep.subr.bf16.mxu1 %v676_v1 }
  0x1b   : > { %353 = vmatpush1.bf16.msra.mxu0 %v651_v8  ;;  %632 = vmatpush1.bf16.msra.mxu1 %v651_v8 }
  0x1c   : > { %354 = vmatprep.subr.bf16.mxu0 %v676_v1  ;;  %623 = vmatprep.subr.bf16.mxu1 %v676_v1 }
  0x1f   : > { %355 = vmatpush1.bf16.msra.mxu0 %v652_v9  ;;  %633 = vmatpush1.bf16.msra.mxu1 %v652_v9 }
  0x20   : > { %356 = vmatprep.subr.bf16.mxu0 %v676_v1  ;;  %624 = vmatprep.subr.bf16.mxu1 %v676_v1 }
  0x23   : > { %357 = vmatpush1.bf16.msra.mxu0 %v653_v10  ;;  %634 = vmatpush1.bf16.msra.mxu1 %v653_v10 }
  0x24   : > { %358 = vmatprep.subr.bf16.mxu0 %v676_v1  ;;  %625 = vmatprep.subr.bf16.mxu1 %v676_v1 }
  0x27   : > { %359 = vmatpush1.bf16.msra.mxu0 %v654_v11  ;;  %635 = vmatpush1.bf16.msra.mxu1 %v654_v11 }
  0x28   : > { %360 = vmatprep.subr.bf16.mxu0 %v676_v1  ;;  %626 = vmatprep.subr.bf16.mxu1 %v676_v1 }
  0x2b   : > { %361 = vmatpush1.bf16.msra.mxu0 %v340_v13  ;;  %636 = vmatpush1.bf16.msra.mxu1 %v340_v13 }
  0x2e   : > { %375 = vmatmul.mubr.bf16.vlgmr.msra.gmra.mrb[0].mxu0 %v656_v14  ;;  %391 = vmatmul.mubr.bf16.vlgmr.msra.gmra.mrb[0].mxu1 %v659_v15 }
  0x2f   : > { %570 = vmatprep.mubr.msk.bf16.mxu0 %vm325_vm0, %v662_v16  ;;  %572 = vmatprep.mubr.msk.bf16.mxu1 %vm325_vm0, %v664_v17 }
  0x36   : > { %383 = vmatmul.mubr.bf16.gmra.mrb[4].mxu0 %v666_v18  ;;  %399 = vmatmul.mubr.bf16.gmra.mrb[4].mxu1 %v667_v19 }
 0x101   : > { %v376_v21 = vpop.f32.mrb[0].mxu0  ;;  %v392_v23 = vpop.f32.mrb[0].mxu1 }
 0x102   : > { %v414_v24 = vmul.f32 %v573_v20, %v376_v21  ;;  %v418_v25 = vmul.f32 %v573_v20, %v392_v23  ;;  %v378_v26 = vpop.f32.mrb[1].mxu0  ;;  %v394_v27 = vpop.f32.mrb[1].mxu1 }
 0x103   : > { %v379_v28 = vpop.f32.mrb[2].mxu0  ;;  %v395_v29 = vpop.f32.mrb[2].mxu1 }
 0x104   : > { %v429_v30 = vadd.f32 %v574_v22, %v414_v24  ;;  %v433_v31 = vadd.f32 %v574_v22, %v418_v25  ;;  %v415_v32 = vmul.f32 %v573_v20, %v379_v28  ;;  %v419_v33 = vmul.f32 %v573_v20, %v395_v29  ;;  %v381_v34 = vpop.f32.mrb[3].mxu0  ;;  %v397_v35 = vpop.f32.mrb[3].mxu1 }
 0x106   : > { %v430_v36 = vadd.f32 %v574_v22, %v415_v32  ;;  %v434_v37 = vadd.f32 %v574_v22, %v419_v33  ;;  %v437_v38 = vmax.f32 %v429_v30, 0.0  ;;  %v441_v39 = vmax.f32 %v433_v31, 0.0 }
 0x108   : > { %v438_v40 = vmax.f32 %v430_v36, 0.0  ;;  %v442_v41 = vmax.f32 %v434_v37, 0.0 }
 0x109   : > { %v384_v42 = vpop.f32.mrb[4].mxu0  ;;  %v400_v43 = vpop.f32.mrb[4].mxu1 }
 0x10a   : > { %v597_v44 = vpack.c.bf16 %v438_v40, %v437_v38  ;;  %v607_v45 = vpack.c.bf16 %v442_v41, %v441_v39  ;;  %v416_v46 = vmul.f32 %v573_v20, %v384_v42  ;;  %v420_v47 = vmul.f32 %v573_v20, %v400_v43  ;;  %v386_v48 = vpop.f32.mrb[5].mxu0  ;;  %v402_v49 = vpop.f32.mrb[5].mxu1 }
 0x10b   : > { %v387_v50 = vpop.f32.mrb[6].mxu0  ;;  %v403_v51 = vpop.f32.mrb[6].mxu1 }
 0x10c   : > { %598 = vst [vmem:[%s202_s25] sm:$0xff] %v597_v44   ;;  %615 = vst [vmem:[%s202_s25 + $0x10] sm:$0xff] %v607_v45   ;;  %v431_v52 = vadd.f32 %v574_v22, %v416_v46  ;;  %v435_v53 = vadd.f32 %v574_v22, %v420_v47  ;;  %v417_v54 = vmul.f32 %v573_v20, %v387_v50  ;;  %v389_v56 = vpop.f32.mrb[7].mxu0  ;;  %v405_v57 = vpop.f32.mrb[7].mxu1 }
 0x10d   : > { %v421_v55 = vmul.f32 %v573_v20, %v403_v51 }
 0x10e   : > { %v432_v58 = vadd.f32 %v574_v22, %v417_v54  ;;  %v439_v60 = vmax.f32 %v431_v52, 0.0  ;;  %v443_v61 = vmax.f32 %v435_v53, 0.0 }
 0x10f   : > { %v436_v59 = vadd.f32 %v574_v22, %v421_v55 }
 0x110   : > { %v440_v62 = vmax.f32 %v432_v58, 0.0 }
 0x111   : > { %v444_v63 = vmax.f32 %v436_v59, 0.0 }
 0x112   : > { %v602_v0 = vpack.c.bf16 %v440_v62, %v439_v60 }
 0x113   : > { %v612_v1 = vpack.c.bf16 %v444_v63, %v443_v61 }
 0x114   : > { %614 = vst [vmem:[%s202_s25 + $0x8] sm:$0xff] %v602_v0  }
 0x115   : > { %616 = vst [vmem:[%s202_s25 + $0x18] sm:$0xff] %v612_v1  }
 0x116 PF: > { %s14_s15 = sadd.s32 1, %s674_s15  }
 0x117   : > { %p11_p4 = scmp.ge.s32.totalorder %s14_s15, 4  }
 0x119   :  { %13 = sbr.rel (!%p11_p4) target bundleno = 1 (0x1), region = 66 }

// kernel: resnet_stage0_forward.6
= control target key start
LH: loop header
LB: loop body
LE: loop exit
PB: predicated region body
PF: predicated region fallthrough
CT: control target
= control target key end

     0   :  { %s10153_s27 = smov 0   ;;  %s12272_s0 = inlined_call_operand.vmem [shape: bf16[256,128], index: 0, kind: input, shape index: {}, may-alias: {0,1}]   ;;  %s12273_s1 = inlined_call_operand.vmem [shape: bf16[256,128], index: 1, kind: input, shape index: {}, may-alias: {0,1}]   ;;  %s12274_s2 = inlined_call_operand.vmem [shape: bf16[9,128,128], index: 2, kind: input, shape index: {}]   ;;  %s12275_s3 = inlined_call_operand.vmem [shape: f32[1,128], index: 3, kind: input, shape index: {}]   ;;  %s12276_s4 = inlined_call_operand.vmem [shape: f32[1,128], index: 4, kind: input, shape index: {}]   ;;  %s12277_s5 = inlined_call_operand.vmem [shape: bf16[9,128,128], index: 5, kind: input, shape index: {}]   ;;  %s12278_s6 = inlined_call_operand.vmem [shape: f32[1,128], index: 6, kind: input, shape index: {}]   ;;  %s12279_s7 = inlined_call_operand.vmem [shape: f32[1,128], index: 7, kind: input, shape index: {}]   ;;  %s12280_s8 = inlined_call_operand.vmem [shape: bf16[192,128], index: 8, kind: output, shape index: {}]  }
   0x1 LB: > { %s7114_s28 = sadd.s32 4294967295, %s10105_s27   ;;  %p7118_p0 = scmp.ge.s32.totalorder %s10105_s27, 1  ;;  %s10105_s27 = sphi %s10153_s27, %s18_s27  }
   0x2   : > { %p278_p1 = scmp.lt.s32.totalorder %s10105_s27, 4 }
   0x4   : > { %p279_p2 = pnand %p7118_p0, %p278_p1 }
   0x5   : > { %v9725_v0 = vld [vmem:[%s12274_s2 + $0x40] sm:$0xff] (!%p279_p2)   ;;  %s10166_s9 = sshll.u32 (!%p279_p2), %s7114_s28, 3  ;;  %v9727_v2 = vld [vmem:[%s12274_s2 + $0x48] sm:$0xff] (!%p279_p2)   ;;  %v9729_v4 = vld [vmem:[%s12274_s2 + $0x50] sm:$0xff] (!%p279_p2)   ;;  %vm12285_vm0 = vsmask.f32 (!%p279_p2), 7424 }
   0x6   : > { %282 = sbr.rel (%p279_p2) target bundleno = 1178 (0x49a), region = 52  ;;  %v9726_v1 = vld [vmem:[%s12274_s2 + $0x100] sm:$0xff] (!%p279_p2)   ;;  %8656 = vmatprep.subr.bf16.mxu1 (!%p279_p2), %v9725_v0  ;;  %v9728_v3 = vld [vmem:[%s12274_s2 + $0x108] sm:$0xff] (!%p279_p2)   ;;  %p319_p3 = scmp.lt.s32.totalorder (!%p279_p2), %s10166_s9, 31  ;;  %v9730_v5 = vld [vmem:[%s12274_s2 + $0x110] sm:$0xff] (!%p279_p2)   ;;  %vm12283_vm2 = vcmask (!%p279_p2), 1044480  }
   0x7   : > { %8736 = vmatprep.subr.bf16.mxu0 (!%p279_p2), %v9726_v1  ;;  %8657 = vmatpush3.bf16.msra.mxu1 (!%p279_p2), %v9725_v0  ;;  %v9731_v6 = vld [vmem:[%s12274_s2 + $0x58] sm:$0xff] (!%p279_p2)   ;;  %v9733_v8 = vld [vmem:[%s12274_s2 + $0x60] sm:$0xff] (!%p279_p2)   ;;  %v9735_v10 = vld [vmem:[%s12274_s2 + $0x68] sm:$0xff] (!%p279_p2)   ;;  %vm12282_vm1 = vsmask.f32 (!%p279_p2), 4352  ;;  %vm12281_vm3 = vcmask (!%p279_p2), 1043456  }
   0x8   : > { %8737 = vmatpush3.bf16.msra.mxu0 (!%p279_p2), %v9726_v1  ;;  %8658 = vmatprep.subr.bf16.mxu1 (!%p279_p2), %v9727_v2  ;;  %v9732_v7 = vld [vmem:[%s12274_s2 + $0x118] sm:$0xff] (!%p279_p2)   ;;  %v9734_v9 = vld [vmem:[%s12274_s2 + $0x120] sm:$0xff] (!%p279_p2)   ;;  %v9736_v11 = vld [vmem:[%s12274_s2 + $0x128] sm:$0xff] (!%p279_p2)   ;;  %vm12284_vm4 = vcmask (!%p279_p2), 1046528   ;;  %vm12286_vm5 = vcmask (!%p279_p2), 1041408   ;;  %s8174_s18 = sadd.s32 (!%p279_p2), 8, %s10166_s9 }
   0x9   : > { %8738 = vmatprep.subr.bf16.mxu0 (!%p279_p2), %v9728_v3  ;;  %v9737_v17 = vld [vmem:[%s12274_s2 + $0x70] sm:$0xff] (!%p279_p2)   ;;  %v9739_v23 = vld [vmem:[%s12274_s2 + $0x78] sm:$0xff] (!%p279_p2)   ;;  %v9743_v30 = vld [vmem:[%s12274_s2] sm:$0xff] (!%p279_p2)   ;;  %p326_p4 = scmp.lt.s32.totalorder (!%p279_p2), %s8174_s18, 31  ;;  %vm12288_vm6 = vsmask.f32 (!%p279_p2), 1280 }
   0xa   : > { %v9738_v19 = vld [vmem:[%s12274_s2 + $0x130] sm:$0xff] (!%p279_p2)   ;;  %v9740_v25 = vld [vmem:[%s12274_s2 + $0x138] sm:$0xff] (!%p279_p2)   ;;  %v9744_v33 = vld [vmem:[%s12274_s2 + $0x140] sm:$0xff] (!%p279_p2)   ;;  %vm12287_vm7 = vcmask (!%p279_p2), 1040384   ;;  %s10802_s22 = sshll.u32 (!%p279_p2), %s7114_s28, 6  ;;  %p333_p5 = scmp.lt.s32.totalorder (!%p279_p2), %s10166_s9, 23 }
   0xb   : > { %8659 = vmatpush3.bf16.msra.mxu1 (!%p279_p2), %v9727_v2  ;;  %v9746_v44 = vld [vmem:[%s12274_s2 + $0x8] sm:$0xff] (!%p279_p2)   ;;  %v9748_v56 = vld [vmem:[%s12274_s2 + $0x10] sm:$0xff] (!%p279_p2)   ;;  %v9750_v0 = vld [vmem:[%s12274_s2 + $0x18] sm:$0xff] (!%p279_p2)   ;;  %s1616_s28 = sadd.s32 (!%p279_p2), 4294967275, %s10802_s22  ;;  %s2922_s21 = sadd.s32 (!%p279_p2), 11, %s10802_s22 }
   0xc   : > { %8739 = vmatpush3.bf16.msra.mxu0 (!%p279_p2), %v9728_v3  ;;  %8660 = vmatprep.subr.bf16.mxu1 (!%p279_p2), %v9729_v4  ;;  %v9747_v52 = vld [vmem:[%s12274_s2 + $0x148] sm:$0xff] (!%p279_p2)   ;;  %v9749_v60 = vld [vmem:[%s12274_s2 + $0x150] sm:$0xff] (!%p279_p2)   ;;  %v9751_v2 = vld [vmem:[%s12274_s2 + $0x158] sm:$0xff] (!%p279_p2)   ;;  %s5572_s11 = sadd.s32 (!%p279_p2), 4294967282, %s10802_s22  ;;  %s6928_s12 = sadd.s32 (!%p279_p2), 18, %s10802_s22 }
   0xd   : > { %s320_s20 = scalar_select %p319_p3, %s10166_s9, 31  ;;  %8740 = vmatprep.subr.bf16.mxu0 %v9730_v5  ;;  %v9752_v3 = vld [vmem:[%s12274_s2 + $0x20] sm:$0xff]  }
   0xe   : > { %s12408_s18 = smov (!%p326_p4, %s8174_s18), 31  ;;  %s12410_s9 = smov (!%p333_p5, %s10166_s9), 23 }
   0xf   : > { %8661 = vmatpush3.bf16.msra.mxu1 %v9729_v4  ;;  %s7120_s25 = sshll.u32 %s320_s20, 2  ;;  %v9753_v4 = vld [vmem:[%s12274_s2 + $0x160] sm:$0xff]   ;;  %s7122_s14 = sshll.u32 %s12408_s18, 2 }
  0x10   : > { %8741 = vmatpush3.bf16.msra.mxu0 %v9730_v5  ;;  %8662 = vmatprep.subr.bf16.mxu1 %v9731_v6  ;;  %s10203_s15 = scalar_lea.vmem %s12272_s0, %s7120_s25  ;;  %v9754_v5 = vld [vmem:[%s12274_s2 + $0x28] sm:$0xff]   ;;  %s10387_s18 = scalar_lea.vmem %s12273_s1, %s7122_s14 }
  0x11   : > { %8742 = vmatprep.subr.bf16.mxu0 %v9732_v7  ;;  %v10209_v12 = vld [vmem:[%s10203_s15] sm:$0xff]   ;;  %v10212_v13 = vld [vmem:[%s10203_s15 + $0x8] sm:$0xff]   ;;  %v10225_v18 = vld [vmem:[%s10203_s15 + $0x10] sm:$0xff]   ;;  %s7124_s17 = sshll.u32 %s12410_s9, 2 }
  0x12   : > { %372 = vst [vmem:[#allocation2] sm:$0xff] %v10209_v12  ;;  %373 = vst [vmem:[#allocation2 + $0x8] sm:$0xff] %v10212_v13  ;;  %v441_v14 = vshrl.u32 %v10209_v12, 16  ;;  %v443_v15 = vshll.u32 %v10209_v12, 16  ;;  %v10219_v16 = vshll.u32 %v10212_v13, 16  ;;  %v10232_v22 = vshrl.u32 %v10212_v13, 16 }
  0x13   : > { %8663 = vmatpush3.bf16.msra.mxu1 %v9731_v6  ;;  %374 = vst [vmem:[#allocation2 + $0x10] sm:$0xff] %v10225_v18  ;;  %v809_v48 = vrot.slane %v10212_v13, 3  ;;  %v1081_v59 = vrot.slane %v10212_v13, 4  ;;  %v9755_v6 = vld [vmem:[%s12274_s2 + $0x168] sm:$0xff]  }
  0x14   : > { %8743 = vmatpush3.bf16.msra.mxu0 %v9732_v7  ;;  %8664 = vmatprep.subr.bf16.mxu1 %v9733_v8  ;;  %v445_v20 = vrot.slane %v443_v15, 1  ;;  %v450_v21 = vrot.slane %v10219_v16, 1  ;;  %v943_v27 = vrot.slane %v10232_v22, 3  ;;  %v944_v28 = vrot.slane %v10219_v16, 4  ;;  %v9756_v7 = vld [vmem:[%s12274_s2 + $0x30] sm:$0xff]   ;;  %v9760_v15 = vld [vmem:[%s12274_s2 + $0x80] sm:$0xff]  }
  0x15   : > { %8744 = vmatprep.subr.bf16.mxu0 %v9734_v9  ;;  %v1345_v55 = vrot.slane %v10232_v22, 6  ;;  %v1346_v58 = vrot.slane %v10219_v16, 7 }
  0x16   : > { %v446_v24 = vor.u32 %v445_v20, %v441_v14  ;;  %v945_v36 = vor.u32 %v944_v28, %v943_v27  ;;  %v454_v39 = vor.u32 %v10232_v22, %v450_v21  ;;  %v9761_v20 = vld [vmem:[%s12274_s2 + $0x180] sm:$0xff]   ;;  %v9762_v22 = vld [vmem:[%s12274_s2 + $0x88] sm:$0xff]   ;;  %v9764_v27 = vld [vmem:[%s12274_s2 + $0x90] sm:$0xff]  }
  0x17   : > { %8665 = vmatpush3.bf16.msra.mxu1 %v9733_v8  ;;  %v10283_v62 = vor.u32 %v1346_v58, %v1345_v55  ;;  %v9757_v8 = vld [vmem:[%s12274_s2 + $0x170] sm:$0xff]   ;;  %v9779_v55 = vld [vmem:[%s12274_s2 + $0x1c8] sm:$0xff]  }
  0x18   : > { %8745 = vmatpush3.bf16.msra.mxu0 %v9734_v9  ;;  %8666 = vmatprep.subr.bf16.mxu1 %v9735_v10  ;;  %v451_v26 = vsel %vm12285_vm0, %v446_v24, %v450_v21  ;;  %v9758_v9 = vld [vmem:[%s12274_s2 + $0x38] sm:$0xff]   ;;  %v9765_v28 = vld [vmem:[%s12274_s2 + $0x190] sm:$0xff]  }
  0x19   : > { %8746 = vmatprep.subr.bf16.mxu0 %v9736_v11  ;;  %8672 = vmatprep.mubr.bf16.mxu1 %v451_v26  ;;  %v786_v29 = vld [vmem:[#allocation2] sm:$0xf8]  ;;  %v9780_v58 = vld [vmem:[%s12274_s2 + $0xd0] sm:$0xff]  }
  0x1a   : > { %v936_v31 = vshrl.u32 %v786_v29, 16  ;;  %v939_v32 = vshll.u32 %v786_v29, 16  ;;  %v10250_v37 = vld [vmem:[#allocation2 + $0x10] sm:$0x1]  ;;  %v808_v53 = vrot.slane %v786_v29, 3  ;;  %v9766_v29 = vld [vmem:[%s12274_s2 + $0x98] sm:$0xff]  }
  0x1b   : > { %8667 = vmatpush3.bf16.msra.mxu1 %v9735_v10  ;;  %v10252_v38 = vld [vmem:[#allocation2 + $0x10] sm:$0xf]  ;;  %v456_v40 = vshll.u32 %v10250_v37, 16  ;;  %v1059_v61 = vld [vmem:[#allocation2] sm:$0xf0] }
  0x1c   : > { %8747 = vmatpush3.bf16.msra.mxu0 %v9736_v11  ;;  %8668 = vmatprep.subr.bf16.mxu1 %v9737_v17  ;;  %v938_v34 = vrot.slane %v936_v31, 3  ;;  %v941_v35 = vrot.slane %v939_v32, 4  ;;  %v948_v41 = vshrl.u32 %v10252_v38, 16  ;;  %v951_v42 = vshll.u32 %v10252_v38, 16  ;;  %v656_v10 = vld [vmem:[#allocation2] sm:$0xfe] }
  0x1d   : > { %8748 = vmatprep.subr.bf16.mxu0 %v9738_v19  ;;  %v458_v45 = vrot.slane %v456_v40, 1  ;;  %v10276_v57 = vsel %vm12283_vm2, %v808_v53, %v809_v48  ;;  %v1080_v63 = vrot.slane %v1059_v61, 4  ;;  %v9759_v11 = vld [vmem:[%s12274_s2 + $0x178] sm:$0xff]   ;;  %v10317_v14 = vld [vmem:[#allocation2] sm:$0xc0]  ;;  %v678_v16 = vrot.slane %v656_v10, 1 }
  0x1e   : > { %v942_v43 = vor.u32 %v941_v35, %v938_v34  ;;  %v950_v46 = vrot.slane %v948_v41, 3  ;;  %v953_v47 = vrot.slane %v951_v42, 4  ;;  %v1210_v21 = vrot.slane %v10317_v14, 6  ;;  %v9768_v31 = vld [vmem:[%s12274_s2 + $0xa0] sm:$0xff]   ;;  %v9771_v34 = vld [vmem:[%s12274_s2 + $0x1a8] sm:$0xff]   ;;  %v9772_v35 = vld [vmem:[%s12274_s2 + $0xb0] sm:$0xff]  }
  0x1f   : > { %8669 = vmatpush3.bf16.msra.mxu1 %v9737_v17  ;;  %v459_v50 = vsel %vm12285_vm0, %v454_v39, %v458_v45  ;;  %v1082_v1 = vsel %vm12281_vm3, %v1080_v63, %v1081_v59  ;;  %v1083_v17 = vrot.slane %v10252_v38, 4  ;;  %v9769_v32 = vld [vmem:[%s12274_s2 + $0x1a0] sm:$0xff]   ;;  %v1338_v38 = vshrl.u32 %v10317_v14, 16  ;;  %v9774_v40 = vld [vmem:[%s12274_s2 + $0xb8] sm:$0xff]   ;;  %v9778_v53 = vld [vmem:[%s12274_s2 + $0xc8] sm:$0xff]  }
  0x20   : > { %8749 = vmatpush3.bf16.msra.mxu0 %v9738_v19  ;;  %8670 = vmatprep.subr.bf16.mxu1 %v9739_v23  ;;  %v946_v49 = vsel %vm12282_vm1, %v942_v43, %v945_v36  ;;  %v954_v51 = vor.u32 %v953_v47, %v950_v46  ;;  %v1211_v19 = vrot.slane %v10212_v13, 6  ;;  %v1341_v39 = vshll.u32 %v10317_v14, 16  ;;  %v9775_v41 = vld [vmem:[%s12274_s2 + $0x1b8] sm:$0xff]   ;;  %v1189_v43 = vld [vmem:[#allocation2 + $0x10] sm:$0x3f]  ;;  %v10392_v47 = vld [vmem:[%s10387_s18] sm:$0xff]  }
  0x21   : > { %8750 = vmatprep.subr.bf16.mxu0 %v9740_v25  ;;  %8752 = vmatprep.mubr.bf16.mxu0 %v946_v49  ;;  %v1084_v24 = vsel %vm12281_vm3, %v1081_v59, %v1083_v17  ;;  %v10382_v42 = vld [vmem:[%s10203_s15 + $0x18] sm:$0xff]   ;;  %v681_v46 = vrot.slane %v10250_v37, 1  ;;  %v9776_v49 = vld [vmem:[%s12274_s2 + $0xc0] sm:$0xff]   ;;  %400 = vst [vmem:[#allocation2 + $0x20] sm:$0xff] %v10392_v47  ;;  %v9781_v59 = vld [vmem:[%s12274_s2 + $0x1d0] sm:$0xff]   ;;  %s4223_s15 = sadd.s32 43, %s10802_s22 }
  0x22   : > { %v955_v54 = vsel %vm12282_vm1, %v945_v36, %v954_v51  ;;  %v1212_v26 = vsel %vm12286_vm5, %v1210_v21, %v1211_v19  ;;  %v9773_v36 = vld [vmem:[%s12274_s2 + $0x1b0] sm:$0xff]   ;;  %v1343_v45 = vrot.slane %v1341_v39, 7  ;;  %375 = vst [vmem:[#allocation2 + $0x18] sm:$0xff] %v10382_v42  ;;  %v9777_v51 = vld [vmem:[%s12274_s2 + $0x1c0] sm:$0xff]   ;;  %v10432_v63 = vld [vmem:[%s10387_s18 + $0x8] sm:$0xff]  }
  0x23   : > { %8671 = vmatpush3.bf16.msra.mxu1 %v9739_v23  ;;  %v9784_v61 = vld [vmem:[%s12274_s2 + $0xe0] sm:$0xff]   ;;  %401 = vst [vmem:[#allocation2 + $0x28] sm:$0xff] %v10432_v63  ;;  %v787_v10 = vld [vmem:[#allocation2 + $0x10] sm:$0x7]  ;;  %v9790_v14 = vld [vmem:[%s12274_s2 + $0xf8] sm:$0xff]  }
  0x24   : > { %8751 = vmatpush3.bf16.msra.mxu0 %v9740_v25  ;;  %8676 = vmatprep.subr.bf16.mxu1 %v9743_v30  ;;  %v9763_v25 = vld [vmem:[%s12274_s2 + $0x188] sm:$0xff]   ;;  %v9793_v21 = vld [vmem:[%s12274_s2 + $0x40] sm:$0xff]  }
  0x25   : > { %8756 = vmatprep.subr.bf16.mxu0 %v9744_v33  ;;  %v9803_v39 = vld [vmem:[%s12274_s2 + $0x68] sm:$0xff]  }
  0x26   : > { %8673 = vmatmul.mubr.bf16.vlgmr.msra.gmra.mrb[0].mxu1 %v459_v50  ;;  %v1213_v50 = vrot.slane %v1189_v43, 6 }
  0x27   : > { %8677 = vmatpush3.bf16.msra.mxu1 %v9743_v30  ;;  %8692 = vmatprep.mubr.bf16.mxu1 %v10209_v12  ;;  %v679_v12 = vrot.slane %v10212_v13, 1  ;;  %v9767_v30 = vld [vmem:[%s12274_s2 + $0x198] sm:$0xff]  }
  0x28   : > { %8753 = vmatmul.mubr.bf16.vlgmr.msra.gmra.mrb[0].mxu0 %v955_v54  ;;  %8678 = vmatprep.subr.bf16.mxu1 %v9746_v44  ;;  %v1214_v54 = vsel %vm12286_vm5, %v1211_v19, %v1213_v50  ;;  %v9791_v19 = vld [vmem:[%s12274_s2 + $0x1f8] sm:$0xff]   ;;  %v10518_v43 = vld [vmem:[#allocation2 + $0x20] sm:$0x1] }
  0x29   : > { %8757 = vmatpush3.bf16.msra.mxu0 %v9744_v33  ;;  %8772 = vmatprep.mubr.bf16.mxu0 %v1082_v1  ;;  %v680_v23 = vsel %vm12284_vm4, %v678_v16, %v679_v12  ;;  %v9770_v33 = vld [vmem:[%s12274_s2 + $0xa8] sm:$0xff]   ;;  %v682_v37 = vsel %vm12284_vm4, %v679_v12, %v681_v46  ;;  %v9829_v1 = vld [vmem:[%s10387_s18 + $0x10] sm:$0xff]   ;;  %v10525_v46 = vshrl.u32 %v10382_v42, 16  ;;  %v9807_v50 = vld [vmem:[%s12274_s2 + $0x78] sm:$0xff]  }
  0x2a   : > { %8758 = vmatprep.subr.bf16.mxu0 %v9747_v52  ;;  %402 = vst [vmem:[#allocation2 + $0x30] sm:$0xff] %v9829_v1 }
  0x2b   : > { %8679 = vmatpush3.bf16.msra.mxu1 %v9746_v44  ;;  %v1340_v44 = vrot.slane %v1338_v38, 6  ;;  %v9800_v38 = vld [vmem:[%s12274_s2 + $0x220] sm:$0xff]  }
  0x2c   : > { %8680 = vmatprep.subr.bf16.mxu1 %v9748_v56 }
  0x2d   : > { %8759 = vmatpush3.bf16.msra.mxu0 %v9747_v52  ;;  %v1344_v52 = vor.u32 %v1343_v45, %v1340_v44  ;;  %v9804_v44 = vld [vmem:[%s12274_s2 + $0x230] sm:$0xff]   ;;  %v3064_v45 = vshll.u32 %v10392_v47, 16 }
  0x2e   : > { %8760 = vmatprep.subr.bf16.mxu0 %v9749_v60 }
  0x2f   : > { %8681 = vmatpush3.bf16.msra.mxu1 %v9748_v56  ;;  %v1348_v56 = vsel %vm12288_vm6, %v1344_v52, %v10283_v62  ;;  %v10535_v52 = vshll.u32 %v10432_v63, 16 }
  0x30   : > { %8682 = vmatprep.subr.bf16.mxu1 %v9750_v0 }
  0x31   : > { %8761 = vmatpush3.bf16.msra.mxu0 %v9749_v60  ;;  %v9783_v60 = vld [vmem:[%s12274_s2 + $0x1d8] sm:$0xff]  }
  0x32   : > { %8762 = vmatprep.subr.bf16.mxu0 %v9751_v2 }
  0x33   : > { %8683 = vmatpush3.bf16.msra.mxu1 %v9750_v0  ;;  %v9785_v0 = vld [vmem:[%s12274_s2 + $0x1e0] sm:$0xff]  }
  0x34   : > { %8684 = vmatprep.subr.bf16.mxu1 %v9752_v3 }
  0x35   : > { %8763 = vmatpush3.bf16.msra.mxu0 %v9751_v2  ;;  %v9786_v2 = vld [vmem:[%s12274_s2 + $0xe8] sm:$0xff]  }
  0x36   : > { %8764 = vmatprep.subr.bf16.mxu0 %v9753_v4 }
  0x37   : > { %8685 = vmatpush3.bf16.msra.mxu1 %v9752_v3  ;;  %v9787_v3 = vld [vmem:[%s12274_s2 + $0x1e8] sm:$0xff]  }
  0x38   : > { %8686 = vmatprep.subr.bf16.mxu1 %v9754_v5 }
  0x39   : > { %8765 = vmatpush3.bf16.msra.mxu0 %v9753_v4  ;;  %v10445_v4 = vld [vmem:[#allocation2 + $0x10] sm:$0x7f] }
  0x3a   : > { %8766 = vmatprep.subr.bf16.mxu0 %v9755_v6 }
  0x3b   : > { %8687 = vmatpush3.bf16.msra.mxu1 %v9754_v5  ;;  %v1763_v5 = vshll.u32 %v10225_v18, 16 }
  0x3c   : > { %8688 = vmatprep.subr.bf16.mxu1 %v9756_v7 }
  0x3d   : > { %8767 = vmatpush3.bf16.msra.mxu0 %v9755_v6  ;;  %v9788_v6 = vld [vmem:[%s12274_s2 + $0xf0] sm:$0xff]   ;;  %v1765_v12 = vrot.slane %v1763_v5, 1 }
  0x3e   : > { %8768 = vmatprep.subr.bf16.mxu0 %v9757_v8  ;;  %v9815_v5 = vld [vmem:[%s12274_s2 + $0x50] sm:$0xff]  }
  0x3f   : > { %8689 = vmatpush3.bf16.msra.mxu1 %v9756_v7  ;;  %v1350_v7 = vshrl.u32 %v10445_v4, 16 }
  0x40   : > { %8690 = vmatprep.subr.bf16.mxu1 %v9758_v9 }
  0x41   : > { %8769 = vmatpush3.bf16.msra.mxu0 %v9757_v8  ;;  %v1353_v8 = vshll.u32 %v10445_v4, 16  ;;  %v1352_v16 = vrot.slane %v1350_v7, 6  ;;  %v9817_v7 = vld [vmem:[%s12274_s2 + $0x58] sm:$0xff]  }
  0x42   : > { %8770 = vmatprep.subr.bf16.mxu0 %v9759_v11 }
  0x43   : > { %8691 = vmatpush3.bf16.msra.mxu1 %v9758_v9  ;;  %v9789_v9 = vld [vmem:[%s12274_s2 + $0x1f0] sm:$0xff]   ;;  %v1355_v17 = vrot.slane %v1353_v8, 7  ;;  %v9818_v8 = vld [vmem:[%s12274_s2 + $0x20] sm:$0xff]  }
  0x44   : > { %8696 = vmatprep.subr.bf16.mxu1 %v9760_v15 }
  0x45   : > { %8771 = vmatpush3.bf16.msra.mxu0 %v9759_v11  ;;  %v1761_v11 = vshrl.u32 %v10225_v18, 16  ;;  %v1461_v18 = vld [vmem:[#allocation2] sm:$0x80] }
  0x46   : > { %8776 = vmatprep.subr.bf16.mxu0 %v9761_v20  ;;  %8693 = vmatmul.mubr.bf16.vlgmr.msra.gmra.mrb[0].mxu1 %v10212_v13 }
  0x47   : > { %8697 = vmatpush3.bf16.msra.mxu1 %v9760_v15  ;;  %8712 = vmatprep.mubr.bf16.mxu1 %v680_v23  ;;  %v10461_v15 = vshll.u32 %v10382_v42, 16 }
  0x48   : > { %8773 = vmatmul.mubr.bf16.vlgmr.msra.gmra.mrb[0].mxu0 %v1084_v24  ;;  %8698 = vmatprep.subr.bf16.mxu1 %v9762_v22  ;;  %v1356_v24 = vor.u32 %v1355_v17, %v1352_v16  ;;  %v9823_v16 = vld [vmem:[%s12274_s2 + $0x70] sm:$0xff]  }
  0x49   : > { %8777 = vmatpush3.bf16.msra.mxu0 %v9761_v20  ;;  %8792 = vmatprep.mubr.bf16.mxu0 %v1212_v26  ;;  %v811_v20 = vrot.slane %v787_v10, 3  ;;  %v1770_v23 = vrot.slane %v10461_v15, 1  ;;  %v9792_v26 = vld [vmem:[%s12274_s2 + $0x200] sm:$0xff]   ;;  %v9820_v10 = vld [vmem:[%s12274_s2 + $0x28] sm:$0xff]   ;;  %v10593_v17 = vld [vmem:[#allocation2 + $0x30] sm:$0x1] }
  0x4a   : > { %8778 = vmatprep.subr.bf16.mxu0 %v9763_v25 }
  0x4b   : > { %8699 = vmatpush3.bf16.msra.mxu1 %v9762_v22  ;;  %v1766_v22 = vor.u32 %v1765_v12, %v1761_v11  ;;  %v9821_v11 = vld [vmem:[%s12274_s2 + $0x68] sm:$0xff]   ;;  %v1997_v12 = vrot.slane %v10382_v42, 1 }
  0x4c   : > { %8700 = vmatprep.subr.bf16.mxu1 %v9764_v27 }
  0x4d   : > { %8779 = vmatpush3.bf16.msra.mxu0 %v9763_v25  ;;  %v1483_v25 = vrot.slane %v10212_v13, 7  ;;  %v9814_v13 = vld [vmem:[%s12274_s2 + $0x10] sm:$0xff]  }
  0x4e   : > { %8780 = vmatprep.subr.bf16.mxu0 %v9765_v28 }
  0x4f   : > { %8701 = vmatpush3.bf16.msra.mxu1 %v9764_v27  ;;  %v1482_v27 = vrot.slane %v1461_v18, 7  ;;  %v9825_v18 = vld [vmem:[%s12274_s2 + $0x78] sm:$0xff]  }
  0x50   : > { %8702 = vmatprep.subr.bf16.mxu1 %v9766_v29 }
  0x51   : > { %8781 = vmatpush3.bf16.msra.mxu0 %v9765_v28  ;;  %v812_v28 = vsel %vm12283_vm2, %v809_v48, %v811_v20  ;;  %v9794_v48 = vld [vmem:[%s12274_s2 + $0x208] sm:$0xff]   ;;  %v9824_v20 = vld [vmem:[%s12274_s2 + $0x38] sm:$0xff]  }
  0x52   : > { %8782 = vmatprep.subr.bf16.mxu0 %v9767_v30 }
  0x53   : > { %8703 = vmatpush3.bf16.msra.mxu1 %v9766_v29  ;;  %v9795_v29 = vld [vmem:[%s12274_s2 + $0x48] sm:$0xff]  }
  0x54   : > { %8704 = vmatprep.subr.bf16.mxu1 %v9768_v31 }
  0x55   : > { %8783 = vmatpush3.bf16.msra.mxu0 %v9767_v30  ;;  %v1771_v30 = vsel %vm12285_vm0, %v1766_v22, %v1770_v23  ;;  %v3077_v22 = vshll.u32 %v10593_v17, 16 }
  0x56   : > { %8784 = vmatprep.subr.bf16.mxu0 %v9769_v32 }
  0x57   : > { %8705 = vmatpush3.bf16.msra.mxu1 %v9768_v31  ;;  %v1357_v31 = vsel %vm12288_vm6, %v10283_v62, %v1356_v24  ;;  %v9796_v62 = vld [vmem:[%s12274_s2 + $0x210] sm:$0xff]   ;;  %v9826_v24 = vld [vmem:[%s12274_s2 + $0x80] sm:$0xff]  }
  0x58   : > { %8706 = vmatprep.subr.bf16.mxu1 %v9770_v33 }
  0x59   : > { %8785 = vmatpush3.bf16.msra.mxu0 %v9769_v32  ;;  %v1484_v32 = vsel %vm12287_vm7, %v1482_v27, %v1483_v25  ;;  %v9828_v27 = vld [vmem:[%s12274_s2] sm:$0xff]  }
  0x5a   : > { %8786 = vmatprep.subr.bf16.mxu0 %v9771_v34 }
  0x5b   : > { %8707 = vmatpush3.bf16.msra.mxu1 %v9770_v33  ;;  %v9797_v33 = vld [vmem:[%s12274_s2 + $0x50] sm:$0xff]  }
  0x5c   : > { %8708 = vmatprep.subr.bf16.mxu1 %v9772_v35 }
  0x5d   : > { %8787 = vmatpush3.bf16.msra.mxu0 %v9771_v34  ;;  %v9799_v34 = vld [vmem:[%s12274_s2 + $0x58] sm:$0xff]  }
  0x5e   : > { %8788 = vmatprep.subr.bf16.mxu0 %v9773_v36 }
  0x5f   : > { %8709 = vmatpush3.bf16.msra.mxu1 %v9772_v35  ;;  %v9798_v35 = vld [vmem:[%s12274_s2 + $0x218] sm:$0xff]  }
  0x60   : > { %8710 = vmatprep.subr.bf16.mxu1 %v9774_v40 }
  0x61   : > { %8789 = vmatpush3.bf16.msra.mxu0 %v9773_v36  ;;  %v9801_v36 = vld [vmem:[%s12274_s2 + $0x60] sm:$0xff]  }
  0x62   : > { %8790 = vmatprep.subr.bf16.mxu0 %v9775_v41 }
  0x63   : > { %8711 = vmatpush3.bf16.msra.mxu1 %v9774_v40  ;;  %v9802_v40 = vld [vmem:[%s12274_s2 + $0x228] sm:$0xff]  }
  0x64   : > { %8716 = vmatprep.subr.bf16.mxu1 %v9776_v49 }
  0x65   : > { %8791 = vmatpush3.bf16.msra.mxu0 %v9775_v41  ;;  %v9805_v41 = vld [vmem:[%s12274_s2 + $0x70] sm:$0xff]  }
  0x66   : > { %8796 = vmatprep.subr.bf16.mxu0 %v9777_v51  ;;  %8713 = vmatmul.mubr.bf16.vlgmr.msra.gmra.mrb[0].mxu1 %v682_v37  ;;  %v3062_v37 = vshrl.u32 %v10392_v47, 16 }
  0x67   : > { %8717 = vmatpush3.bf16.msra.mxu1 %v9776_v49  ;;  %8732 = vmatprep.mubr.bf16.mxu1 %v10276_v57  ;;  %v9782_v57 = vld [vmem:[%s12274_s2 + $0xd8] sm:$0xff]   ;;  %v1776_v49 = vshll.u32 %v10518_v43, 16 }
  0x68   : > { %8793 = vmatmul.mubr.bf16.vlgmr.msra.gmra.mrb[0].mxu0 %v1214_v54  ;;  %8718 = vmatprep.subr.bf16.mxu1 %v9778_v53  ;;  %v9809_v54 = vld [vmem:[%s12274_s2] sm:$0xff]  }
  0x69   : > { %8797 = vmatpush3.bf16.msra.mxu0 %v9777_v51  ;;  %8812 = vmatprep.mubr.bf16.mxu0 %v1348_v56  ;;  %v9806_v51 = vld [vmem:[%s12274_s2 + $0x238] sm:$0xff]   ;;  %v1778_v56 = vrot.slane %v1776_v49, 1 }
  0x6a   : > { %8798 = vmatprep.subr.bf16.mxu0 %v9779_v55 }
  0x6b   : > { %8719 = vmatpush3.bf16.msra.mxu1 %v9778_v53  ;;  %v3066_v53 = vrot.slane %v3064_v45, 1  ;;  %v9843_v45 = vld [vmem:[%s12274_s2 + $0x38] sm:$0xff]  }
  0x6c   : > { %8720 = vmatprep.subr.bf16.mxu1 %v9780_v58 }
  0x6d   : > { %8799 = vmatpush3.bf16.msra.mxu0 %v9779_v55  ;;  %v1774_v55 = vor.u32 %v10525_v46, %v1770_v23 }
  0x6e   : > { %8800 = vmatprep.subr.bf16.mxu0 %v9781_v59 }
  0x6f   : > { %8721 = vmatpush3.bf16.msra.mxu1 %v9780_v58  ;;  %v1485_v58 = vrot.slane %v10445_v4, 7  ;;  %v10092_v4 = vld [vmem:[#allocation2 + $0x10] sm:$0xff] }
  0x70   : > { %8722 = vmatprep.subr.bf16.mxu1 %v9782_v57 }
  0x71   : > { %8801 = vmatpush3.bf16.msra.mxu0 %v9781_v59  ;;  %v9810_v59 = vld [vmem:[%s12274_s2 + $0x40] sm:$0xff]   ;;  %v1486_v1 = vsel %vm12287_vm7, %v1483_v25, %v1485_v58  ;;  %v9846_v58 = vld [vmem:[%s12274_s2 + $0xc8] sm:$0xff]  }
  0x72   : > { %8802 = vmatprep.subr.bf16.mxu0 %v9783_v60 }
  0x73   : > { %8723 = vmatpush3.bf16.msra.mxu1 %v9782_v57  ;;  %v3071_v57 = vrot.slane %v10535_v52, 1 }
  0x74   : > { %8724 = vmatprep.subr.bf16.mxu1 %v9784_v61 }
  0x75   : > { %8803 = vmatpush3.bf16.msra.mxu0 %v9783_v60  ;;  %v3067_v60 = vor.u32 %v3066_v53, %v3062_v37  ;;  %v3277_v37 = vld [vmem:[#allocation2 + $0x20] sm:$0xfe] }
  0x76   : > { %8804 = vmatprep.subr.bf16.mxu0 %v9785_v0  ;;  %v9845_v53 = vld [vmem:[%s12274_s2 + $0x80] sm:$0xff]  }
  0x77   : > { %8725 = vmatpush3.bf16.msra.mxu1 %v9784_v61  ;;  %v1779_v61 = vsel %vm12285_vm0, %v1774_v55, %v1778_v56  ;;  %v3298_v55 = vrot.slane %v10432_v63, 1 }
  0x78   : > { %8726 = vmatprep.subr.bf16.mxu1 %v9786_v2 }
  0x79   : > { %8805 = vmatpush3.bf16.msra.mxu0 %v9785_v0  ;;  %v9812_v0 = vld [vmem:[%s12274_s2 + $0x8] sm:$0xff]  }
  0x7a   : > { %8806 = vmatprep.subr.bf16.mxu0 %v9787_v3 }
  0x7b   : > { %8727 = vmatpush3.bf16.msra.mxu1 %v9786_v2  ;;  %v9813_v2 = vld [vmem:[%s12274_s2 + $0x48] sm:$0xff]  }
  0x7c   : > { %8728 = vmatprep.subr.bf16.mxu1 %v9788_v6 }
  0x7d   : > { %8807 = vmatpush3.bf16.msra.mxu0 %v9787_v3  ;;  %v3072_v3 = vsel %vm12285_vm0, %v3067_v60, %v3071_v57  ;;  %v9848_v60 = vld [vmem:[%s12274_s2 + $0xd0] sm:$0xff]  }
  0x7e   : > { %8808 = vmatprep.subr.bf16.mxu0 %v9789_v9 }
  0x7f   : > { %8729 = vmatpush3.bf16.msra.mxu1 %v9788_v6  ;;  %v9816_v6 = vld [vmem:[%s12274_s2 + $0x18] sm:$0xff]  }
  0x80   : > { %8730 = vmatprep.subr.bf16.mxu1 %v9790_v14 }
  0x81   : > { %8809 = vmatpush3.bf16.msra.mxu0 %v9789_v9  ;;  %v9819_v9 = vld [vmem:[%s12274_s2 + $0x60] sm:$0xff]  }
  0x82   : > { %8810 = vmatprep.subr.bf16.mxu0 %v9791_v19 }
  0x83   : > { %8731 = vmatpush3.bf16.msra.mxu1 %v9790_v14  ;;  %v9822_v14 = vld [vmem:[%s12274_s2 + $0x30] sm:$0xff]  }
  0x84   : > { %8836 = vmatprep.subr.bf16.mxu1 %v9793_v21 }
  0x85   : > { %8811 = vmatpush3.bf16.msra.mxu0 %v9791_v19  ;;  %v1976_v19 = vld [vmem:[#allocation2 + $0x10] sm:$0xfe] }
  0x86   : > { %8733 = vmatmul.mubr.bf16.vlgmr.msra.gmra.mrb[0].mxu1 %v812_v28  ;;  %8816 = vmatprep.subr.bf16.mxu0 %v9792_v26  ;;  %v1996_v23 = vrot.slane %v1976_v19, 1  ;;  %v9830_v28 = vld [vmem:[%s12274_s2 + $0x88] sm:$0xff]   ;;  %v9859_v19 = vld [vmem:[%s12274_s2 + $0xb8] sm:$0xff]  }
  0x87   : > { %8837 = vmatpush3.bf16.msra.mxu1 %v9793_v21  ;;  %8852 = vmatprep.mubr.bf16.mxu1 %v1771_v30  ;;  %v10602_v21 = vshrl.u32 %v10432_v63, 16 }
  0x88   : > { %8813 = vmatmul.mubr.bf16.vlgmr.msra.gmra.mrb[0].mxu0 %v1357_v31  ;;  %8838 = vmatprep.subr.bf16.mxu1 %v9795_v29  ;;  %v9831_v31 = vld [vmem:[%s12274_s2 + $0x8] sm:$0xff]  }
  0x89   : > { %8817 = vmatpush3.bf16.msra.mxu0 %v9792_v26  ;;  %8832 = vmatprep.mubr.bf16.mxu0 %v1484_v32  ;;  %v3075_v25 = vor.u32 %v10602_v21, %v3071_v57  ;;  %v3079_v26 = vrot.slane %v3077_v22, 1  ;;  %v9833_v32 = vld [vmem:[%s12274_s2 + $0x10] sm:$0xff]   ;;  %v9847_v57 = vld [vmem:[%s12274_s2 + $0x88] sm:$0xff]   ;;  %v9860_v22 = vld [vmem:[%s12274_s2 + $0x100] sm:$0xff]  }
  0x8a   : > { %8818 = vmatprep.subr.bf16.mxu0 %v9794_v48 }
  0x8b   : > { %8839 = vmatpush3.bf16.msra.mxu1 %v9795_v29  ;;  %v1998_v29 = vsel %vm12284_vm4, %v1996_v23, %v1997_v12  ;;  %v3080_v30 = vsel %vm12285_vm0, %v3075_v25, %v3079_v26  ;;  %v3300_v25 = vrot.slane %v10593_v17, 1  ;;  %v9861_v26 = vld [vmem:[%s12274_s2 + $0xc0] sm:$0xff]   ;;  %v9862_v17 = vld [vmem:[%s12274_s2 + $0x108] sm:$0xff]  }
  0x8c   : > { %8840 = vmatprep.subr.bf16.mxu1 %v9797_v33 }
  0x8d   : > { %8819 = vmatpush3.bf16.msra.mxu0 %v9794_v48  ;;  %v9832_v48 = vld [vmem:[%s12274_s2 + $0x90] sm:$0xff]  }
  0x8e   : > { %8820 = vmatprep.subr.bf16.mxu0 %v9796_v62 }
  0x8f   : > { %8841 = vmatpush3.bf16.msra.mxu1 %v9797_v33  ;;  %v9834_v33 = vld [vmem:[%s12274_s2 + $0x98] sm:$0xff]  }
  0x90   : > { %8842 = vmatprep.subr.bf16.mxu1 %v9799_v34 }
  0x91   : > { %8821 = vmatpush3.bf16.msra.mxu0 %v9796_v62  ;;  %v9835_v62 = vld [vmem:[%s12274_s2 + $0x18] sm:$0xff]  }
  0x92   : > { %8822 = vmatprep.subr.bf16.mxu0 %v9798_v35 }
  0x93   : > { %8843 = vmatpush3.bf16.msra.mxu1 %v9799_v34  ;;  %v9836_v34 = vld [vmem:[%s12274_s2 + $0xa0] sm:$0xff]  }
  0x94   : > { %8844 = vmatprep.subr.bf16.mxu1 %v9801_v36 }
  0x95   : > { %8823 = vmatpush3.bf16.msra.mxu0 %v9798_v35  ;;  %v9838_v35 = vld [vmem:[%s12274_s2 + $0xa8] sm:$0xff]  }
  0x96   : > { %8824 = vmatprep.subr.bf16.mxu0 %v9800_v38 }
  0x97   : > { %8845 = vmatpush3.bf16.msra.mxu1 %v9801_v36  ;;  %v9839_v36 = vld [vmem:[%s12274_s2 + $0x28] sm:$0xff]  }
  0x98   : > { %8846 = vmatprep.subr.bf16.mxu1 %v9803_v39 }
  0x99   : > { %8825 = vmatpush3.bf16.msra.mxu0 %v9800_v38  ;;  %v9840_v38 = vld [vmem:[%s12274_s2 + $0xb0] sm:$0xff]  }
  0x9a   : > { %8826 = vmatprep.subr.bf16.mxu0 %v9802_v40 }
  0x9b   : > { %8847 = vmatpush3.bf16.msra.mxu1 %v9803_v39  ;;  %v9841_v39 = vld [vmem:[%s12274_s2 + $0x30] sm:$0xff]  }
  0x9c   : > { %8848 = vmatprep.subr.bf16.mxu1 %v9805_v41 }
  0x9d   : > { %8827 = vmatpush3.bf16.msra.mxu0 %v9802_v40  ;;  %v9842_v40 = vld [vmem:[%s12274_s2 + $0xb8] sm:$0xff]  }
  0x9e   : > { %8828 = vmatprep.subr.bf16.mxu0 %v9804_v44 }
  0x9f   : > { %8849 = vmatpush3.bf16.msra.mxu1 %v9805_v41  ;;  %v1999_v41 = vrot.slane %v10518_v43, 1  ;;  %v9844_v43 = vld [vmem:[%s12274_s2 + $0xc0] sm:$0xff]  }
  0xa0   : > { %8850 = vmatprep.subr.bf16.mxu1 %v9807_v50 }
  0xa1   : > { %8829 = vmatpush3.bf16.msra.mxu0 %v9804_v44  ;;  %v10660_v44 = vld [vmem:[#allocation2 + $0x10] sm:$0xf8]  ;;  %v2000_v56 = vsel %vm12284_vm4, %v1997_v12, %v1999_v41 }
  0xa2   : > { %8830 = vmatprep.subr.bf16.mxu0 %v9806_v51  ;;  %v2124_v49 = vrot.slane %v10660_v44, 3 }
  0xa3   : > { %8851 = vmatpush3.bf16.msra.mxu1 %v9807_v50  ;;  %v10666_v50 = vld [vmem:[#allocation2 + $0x18] sm:$0xff] }
  0xa4   : > { %8856 = vmatprep.subr.bf16.mxu1 %v9809_v54 }
  0xa5   : > { %8831 = vmatpush3.bf16.msra.mxu0 %v9806_v51  ;;  %v2125_v51 = vrot.slane %v10666_v50, 3 }
  0xa6   : > { %9016 = vmatprep.subr.bf16.mxu0 %v9810_v59  ;;  %8853 = vmatmul.mubr.bf16.vlgmr.msra.gmra.mrb[4].mxu1 %v1779_v61  ;;  %v9849_v61 = vld [vmem:[%s12274_s2 + $0x90] sm:$0xff]  }
  0xa7   : > { %8857 = vmatpush3.bf16.msra.mxu1 %v9809_v54  ;;  %8872 = vmatprep.mubr.bf16.mxu1 %v10092_v4  ;;  %v3297_v54 = vrot.slane %v3277_v37, 1  ;;  %v9854_v4 = vld [vmem:[%s12274_s2 + $0xe8] sm:$0xff]   ;;  %v10786_v37 = vld [vmem:[#allocation2 + $0x30] sm:$0xf] }
  0xa8   : > { %8833 = vmatmul.mubr.bf16.vlgmr.msra.gmra.mrb[0].mxu0 %v1486_v1  ;;  %8858 = vmatprep.subr.bf16.mxu1 %v9812_v0  ;;  %v9851_v1 = vld [vmem:[%s12274_s2 + $0x98] sm:$0xff]  }
  0xa9   : > { %9017 = vmatpush3.bf16.msra.mxu0 %v9810_v59  ;;  %9032 = vmatprep.mubr.bf16.mxu0 %v3072_v3  ;;  %v2126_v59 = vsel %vm12283_vm2, %v2124_v49, %v2125_v51  ;;  %v9853_v3 = vld [vmem:[%s12274_s2 + $0xa0] sm:$0xff]  }
  0xaa   : > { %9018 = vmatprep.subr.bf16.mxu0 %v9813_v2 }
  0xab   : > { %8859 = vmatpush3.bf16.msra.mxu1 %v9812_v0  ;;  %v9850_v0 = vld [vmem:[%s12274_s2 + $0xd8] sm:$0xff]  }
  0xac   : > { %8860 = vmatprep.subr.bf16.mxu1 %v9814_v13 }
  0xad   : > { %9019 = vmatpush3.bf16.msra.mxu0 %v9813_v2  ;;  %v9852_v2 = vld [vmem:[%s12274_s2 + $0xe0] sm:$0xff]  }
  0xae   : > { %9020 = vmatprep.subr.bf16.mxu0 %v9815_v5 }
  0xaf   : > { %8861 = vmatpush3.bf16.msra.mxu1 %v9814_v13  ;;  %v9855_v13 = vld [vmem:[%s12274_s2 + $0xa8] sm:$0xff]  }
  0xb0   : > { %8862 = vmatprep.subr.bf16.mxu1 %v9816_v6 }
  0xb1   : > { %9021 = vmatpush3.bf16.msra.mxu0 %v9815_v5  ;;  %v9856_v5 = vld [vmem:[%s12274_s2 + $0xf0] sm:$0xff]  }
  0xb2   : > { %9022 = vmatprep.subr.bf16.mxu0 %v9817_v7 }
  0xb3   : > { %8863 = vmatpush3.bf16.msra.mxu1 %v9816_v6  ;;  %v2250_v6 = vshrl.u32 %v10660_v44, 16 }
  0xb4   : > { %8864 = vmatprep.subr.bf16.mxu1 %v9818_v8 }
  0xb5   : > { %9023 = vmatpush3.bf16.msra.mxu0 %v9817_v7  ;;  %v2253_v7 = vshll.u32 %v10660_v44, 16 }
  0xb6   : > { %9024 = vmatprep.subr.bf16.mxu0 %v9819_v9 }
  0xb7   : > { %8865 = vmatpush3.bf16.msra.mxu1 %v9818_v8  ;;  %v9857_v8 = vld [vmem:[%s12274_s2 + $0xb0] sm:$0xff]   ;;  %v2255_v12 = vrot.slane %v2253_v7, 4  ;;  %v3566_v7 = vshll.u32 %v10786_v37, 16 }
  0xb8   : > { %8866 = vmatprep.subr.bf16.mxu1 %v9820_v10 }
  0xb9   : > { %9025 = vmatpush3.bf16.msra.mxu0 %v9819_v9  ;;  %v9858_v9 = vld [vmem:[%s12274_s2 + $0xf8] sm:$0xff]  }
  0xba   : > { %9026 = vmatprep.subr.bf16.mxu0 %v9821_v11 }
  0xbb   : > { %8867 = vmatpush3.bf16.msra.mxu1 %v9820_v10  ;;  %v2105_v10 = vld [vmem:[#allocation2 + $0x20] sm:$0x7] }
  0xbc   : > { %8868 = vmatprep.subr.bf16.mxu1 %v9822_v14 }
  0xbd   : > { %9027 = vmatpush3.bf16.msra.mxu0 %v9821_v11  ;;  %v2252_v11 = vrot.slane %v2250_v6, 3 }
  0xbe   : > { %9028 = vmatprep.subr.bf16.mxu0 %v9823_v16 }
  0xbf   : > { %8869 = vmatpush3.bf16.msra.mxu1 %v9822_v14  ;;  %v2257_v14 = vrot.slane %v10525_v46, 3  ;;  %v2256_v23 = vor.u32 %v2255_v12, %v2252_v11  ;;  %v1622_v12 = vstv %s1616_s28 }
  0xc0   : > { %8870 = vmatprep.subr.bf16.mxu1 %v9824_v20 }
  0xc1   : > { %9029 = vmatpush3.bf16.msra.mxu0 %v9823_v16  ;;  %v2258_v16 = vrot.slane %v10461_v15, 4 }
  0xc2   : > { %9030 = vmatprep.subr.bf16.mxu0 %v9825_v18 }
  0xc3   : > { %8871 = vmatpush3.bf16.msra.mxu1 %v9824_v20  ;;  %v2127_v20 = vrot.slane %v2105_v10, 3 }
  0xc4   : > { %8876 = vmatprep.subr.bf16.mxu1 %v9826_v24 }
  0xc5   : > { %9031 = vmatpush3.bf16.msra.mxu0 %v9825_v18  ;;  %v3405_v18 = vld [vmem:[#allocation2 + $0x20] sm:$0xf8] }
  0xc6   : > { %9036 = vmatprep.subr.bf16.mxu0 %v9828_v27  ;;  %8873 = vmatmul.mubr.bf16.vlgmr.msra.gmra.mrb[4].mxu1 %v10382_v42  ;;  %v3299_v42 = vsel %vm12284_vm4, %v3297_v54, %v3298_v55  ;;  %v3554_v49 = vshll.u32 %v3405_v18, 16 }
  0xc7   : > { %8877 = vmatpush3.bf16.msra.mxu1 %v9826_v24  ;;  %8892 = vmatprep.mubr.bf16.mxu1 %v1998_v29  ;;  %v10735_v24 = vor.u32 %v2258_v16, %v2257_v14  ;;  %v10828_v16 = vld [vmem:[#allocation2 + $0x10] sm:$0xc0] }
  0xc8   : > { %9033 = vmatmul.mubr.bf16.vlgmr.msra.gmra.mrb[4].mxu0 %v3080_v30  ;;  %8878 = vmatprep.subr.bf16.mxu1 %v9830_v28  ;;  %v2128_v30 = vsel %vm12283_vm2, %v2125_v51, %v2127_v20  ;;  %v9870_v51 = vld [vmem:[%s12274_s2 + $0x128] sm:$0xff]   ;;  %v3556_v54 = vrot.slane %v3554_v49, 4 }
  0xc9   : > { %9037 = vmatpush3.bf16.msra.mxu0 %v9828_v27  ;;  %9052 = vmatprep.mubr.bf16.mxu0 %v10392_v47  ;;  %v9837_v47 = vld [vmem:[%s12274_s2 + $0x20] sm:$0xff]   ;;  %v3425_v27 = vrot.slane %v3405_v18, 3  ;;  %v9879_v20 = vld [vmem:[%s12274_s2 + $0x108] sm:$0xff]  }
  0xca   : > { %9038 = vmatprep.subr.bf16.mxu0 %v9831_v31  ;;  %v9886_v49 = vld [vmem:[%s12274_s2 + $0x168] sm:$0xff]  }
  0xcb   : > { %8879 = vmatpush3.bf16.msra.mxu1 %v9830_v28  ;;  %v10741_v28 = vld [vmem:[#allocation2 + $0x28] sm:$0xff] }
  0xcc   : > { %8880 = vmatprep.subr.bf16.mxu1 %v9832_v48  ;;  %v3426_v29 = vrot.slane %v10741_v28, 3 }
  0xcd   : > { %9039 = vmatpush3.bf16.msra.mxu0 %v9831_v31  ;;  %v2260_v31 = vsel %vm12282_vm1, %v2256_v23, %v10735_v24 }
  0xce   : > { %9040 = vmatprep.subr.bf16.mxu0 %v9833_v32 }
  0xcf   : > { %8881 = vmatpush3.bf16.msra.mxu1 %v9832_v48  ;;  %v3301_v48 = vsel %vm12284_vm4, %v3298_v55, %v3300_v25  ;;  %v3558_v55 = vrot.slane %v10602_v21, 3  ;;  %v10845_v25 = vrot.slane %v3566_v7, 4 }
  0xd0   : > { %8882 = vmatprep.subr.bf16.mxu1 %v9834_v33 }
  0xd1   : > { %9041 = vmatpush3.bf16.msra.mxu0 %v9833_v32  ;;  %v9863_v32 = vld [vmem:[%s12274_s2 + $0xc8] sm:$0xff]  }
  0xd2   : > { %9042 = vmatprep.subr.bf16.mxu0 %v9835_v62 }
  0xd3   : > { %8883 = vmatpush3.bf16.msra.mxu1 %v9834_v33  ;;  %v3427_v33 = vsel %vm12283_vm2, %v3425_v27, %v3426_v29  ;;  %v9880_v27 = vld [vmem:[%s12274_s2 + $0x150] sm:$0xff]  }
  0xd4   : > { %8884 = vmatprep.subr.bf16.mxu1 %v9836_v34 }
  0xd5   : > { %9043 = vmatpush3.bf16.msra.mxu0 %v9835_v62  ;;  %v9865_v62 = vld [vmem:[%s12274_s2 + $0xd0] sm:$0xff]  }
  0xd6   : > { %9044 = vmatprep.subr.bf16.mxu0 %v9837_v47 }
  0xd7   : > { %8885 = vmatpush3.bf16.msra.mxu1 %v9836_v34  ;;  %v10767_v34 = vld [vmem:[#allocation2 + $0x20] sm:$0xf] }
  0xd8   : > { %8886 = vmatprep.subr.bf16.mxu1 %v9838_v35 }
  0xd9   : > { %9045 = vmatpush3.bf16.msra.mxu0 %v9837_v47  ;;  %v9866_v47 = vld [vmem:[%s12274_s2 + $0x118] sm:$0xff]  }
  0xda   : > { %9046 = vmatprep.subr.bf16.mxu0 %v9839_v36 }
  0xdb   : > { %8887 = vmatpush3.bf16.msra.mxu1 %v9838_v35  ;;  %v2262_v35 = vshrl.u32 %v10767_v34, 16 }
  0xdc   : > { %8888 = vmatprep.subr.bf16.mxu1 %v9840_v38 }
  0xdd   : > { %9047 = vmatpush3.bf16.msra.mxu0 %v9839_v36  ;;  %v2265_v36 = vshll.u32 %v10767_v34, 16  ;;  %v2264_v41 = vrot.slane %v2262_v35, 3 }
  0xde   : > { %9048 = vmatprep.subr.bf16.mxu0 %v9841_v39 }
  0xdf   : > { %8889 = vmatpush3.bf16.msra.mxu1 %v9840_v38  ;;  %v9867_v38 = vld [vmem:[%s12274_s2 + $0xd8] sm:$0xff]   ;;  %v2267_v44 = vrot.slane %v2265_v36, 4 }
  0xe0   : > { %8890 = vmatprep.subr.bf16.mxu1 %v9842_v40 }
  0xe1   : > { %9049 = vmatpush3.bf16.msra.mxu0 %v9841_v39  ;;  %v9868_v39 = vld [vmem:[%s12274_s2 + $0x120] sm:$0xff]  }
  0xe2   : > { %9050 = vmatprep.subr.bf16.mxu0 %v9843_v45 }
  0xe3   : > { %8891 = vmatpush3.bf16.msra.mxu1 %v9842_v40  ;;  %v9869_v40 = vld [vmem:[%s12274_s2 + $0xe0] sm:$0xff]  }
  0xe4   : > { %8896 = vmatprep.subr.bf16.mxu1 %v9844_v43 }
  0xe5   : > { %9051 = vmatpush3.bf16.msra.mxu0 %v9843_v45  ;;  %v3551_v45 = vshrl.u32 %v3405_v18, 16 }
  0xe6   : > { %9056 = vmatprep.subr.bf16.mxu0 %v9845_v53  ;;  %8893 = vmatmul.mubr.bf16.vlgmr.msra.gmra.mrb[4].mxu1 %v2000_v56  ;;  %v3563_v56 = vshrl.u32 %v10786_v37, 16 }
  0xe7   : > { %8897 = vmatpush3.bf16.msra.mxu1 %v9844_v43  ;;  %8912 = vmatprep.mubr.bf16.mxu1 %v2126_v59  ;;  %v9871_v43 = vld [vmem:[%s12274_s2 + $0xe8] sm:$0xff]   ;;  %v9873_v59 = vld [vmem:[%s12274_s2 + $0xf0] sm:$0xff]  }
  0xe8   : > { %9053 = vmatmul.mubr.bf16.vlgmr.msra.gmra.mrb[4].mxu0 %v10432_v63  ;;  %8898 = vmatprep.subr.bf16.mxu1 %v9846_v58  ;;  %v9864_v63 = vld [vmem:[%s12274_s2 + $0x110] sm:$0xff]  }
  0xe9   : > { %9057 = vmatpush3.bf16.msra.mxu0 %v9845_v53  ;;  %9072 = vmatprep.mubr.bf16.mxu0 %v3299_v42  ;;  %v3553_v53 = vrot.slane %v3551_v45, 3  ;;  %v3559_v42 = vrot.slane %v10535_v52, 4 }
  0xea   : > { %9058 = vmatprep.subr.bf16.mxu0 %v9847_v57 }
  0xeb   : > { %8899 = vmatpush3.bf16.msra.mxu1 %v9846_v58  ;;  %v9872_v58 = vld [vmem:[%s12274_s2 + $0x130] sm:$0xff]   ;;  %v3557_v10 = vor.u32 %v3556_v54, %v3553_v53  ;;  %v10824_v11 = vor.u32 %v3559_v42, %v3558_v55  ;;  %v9891_v42 = vld [vmem:[%s12274_s2 + $0x138] sm:$0xff]  }
  0xec   : > { %8900 = vmatprep.subr.bf16.mxu1 %v9848_v60  ;;  %v9888_v54 = vld [vmem:[%s12274_s2 + $0x170] sm:$0xff]  }
  0xed   : > { %9059 = vmatpush3.bf16.msra.mxu0 %v9847_v57  ;;  %v2373_v57 = vld [vmem:[#allocation2 + $0x10] sm:$0xf0] }
  0xee   : > { %9060 = vmatprep.subr.bf16.mxu0 %v9849_v61  ;;  %v9889_v55 = vld [vmem:[%s12274_s2 + $0x130] sm:$0xff]  }
  0xef   : > { %8901 = vmatpush3.bf16.msra.mxu1 %v9848_v60  ;;  %v1617_v60 = vlaneseq }
  0xf0   : > { %8902 = vmatprep.subr.bf16.mxu1 %v9850_v0 }
  0xf1   : > { %9061 = vmatpush3.bf16.msra.mxu0 %v9849_v61  ;;  %v9874_v61 = vld [vmem:[%s12274_s2 + $0x138] sm:$0xff]  }
  0xf2   : > { %9062 = vmatprep.subr.bf16.mxu0 %v9851_v1 }
  0xf3   : > { %8903 = vmatpush3.bf16.msra.mxu1 %v9850_v0  ;;  %v9875_v0 = vld [vmem:[%s12274_s2 + $0xf8] sm:$0xff]  }
  0xf4   : > { %8904 = vmatprep.subr.bf16.mxu1 %v9852_v2 }
  0xf5   : > { %9063 = vmatpush3.bf16.msra.mxu0 %v9851_v1  ;;  %v3406_v1 = vld [vmem:[#allocation2 + $0x30] sm:$0x7] }
  0xf6   : > { %9064 = vmatprep.subr.bf16.mxu0 %v9853_v3  ;;  %v3428_v6 = vrot.slane %v3406_v1, 3  ;;  %v10918_v1 = vld [vmem:[#allocation2 + $0x20] sm:$0x3f] }
  0xf7   : > { %8905 = vmatpush3.bf16.msra.mxu1 %v9852_v2  ;;  %v2392_v2 = vrot.slane %v2373_v57, 4  ;;  %v9890_v57 = vld [vmem:[%s12274_s2 + $0x178] sm:$0xff]  }
  0xf8   : > { %8906 = vmatprep.subr.bf16.mxu1 %v9854_v4  ;;  %v3429_v23 = vsel %vm12283_vm2, %v3426_v29, %v3428_v6  ;;  %v2521_v29 = vrot.slane %v10666_v50, 6 }
  0xf9   : > { %9065 = vmatpush3.bf16.msra.mxu0 %v9853_v3  ;;  %v2393_v3 = vrot.slane %v10666_v50, 4 }
  0xfa   : > { %9066 = vmatprep.subr.bf16.mxu0 %v9855_v13 }
  0xfb   : > { %8907 = vmatpush3.bf16.msra.mxu1 %v9854_v4  ;;  %v10812_v4 = vshrl.u32 %v1617_v60, 7  ;;  %v2394_v18 = vsel %vm12281_vm3, %v2392_v2, %v2393_v3 }
  0xfc   : > { %8908 = vmatprep.subr.bf16.mxu1 %v9856_v5 }
  0xfd   : > { %9067 = vmatpush3.bf16.msra.mxu0 %v9855_v13  ;;  %v9876_v13 = vld [vmem:[%s12274_s2 + $0x140] sm:$0xff]  }
  0xfe   : > { %9068 = vmatprep.subr.bf16.mxu0 %v9857_v8 }
  0xff   : > { %8909 = vmatpush3.bf16.msra.mxu1 %v9856_v5  ;;  %v2268_v5 = vor.u32 %v2267_v44, %v2264_v41 }
 0x100   : > { %8910 = vmatprep.subr.bf16.mxu1 %v9858_v9 }
 0x101   : > { %9069 = vmatpush3.bf16.msra.mxu0 %v9857_v8  ;;  %v10819_v8 = vadd.s32 16, %v10812_v4  ;;  %v2269_v14 = vsel %vm12282_vm1, %v10735_v24, %v2268_v5  ;;  %v2395_v24 = vrot.slane %v10767_v34, 4 }
 0x102   : > { %9070 = vmatprep.subr.bf16.mxu0 %v9859_v19 }
 0x103   : > { %8911 = vmatpush3.bf16.msra.mxu1 %v9858_v9  ;;  %v9877_v9 = vld [vmem:[%s12274_s2 + $0x100] sm:$0xff]  }
 0x104   : > { %8916 = vmatprep.subr.bf16.mxu1 %v9860_v22 }
 0x105   : > { %9071 = vmatpush3.bf16.msra.mxu0 %v9859_v19  ;;  %v9878_v19 = vld [vmem:[%s12274_s2 + $0x148] sm:$0xff]  }
 0x106   : > { %9076 = vmatprep.subr.bf16.mxu0 %v9861_v26  ;;  %8913 = vmatmul.mubr.bf16.vlgmr.msra.gmra.mrb[4].mxu1 %v2128_v30  ;;  %v3561_v30 = vsel %vm12282_vm1, %v3557_v10, %v10824_v11  ;;  %v3696_v10 = vrot.slane %v10786_v37, 4 }
 0x107   : > { %8917 = vmatpush3.bf16.msra.mxu1 %v9860_v22  ;;  %8932 = vmatprep.mubr.bf16.mxu1 %v2260_v31  ;;  %v10839_v22 = vrot.slane %v3563_v56, 3  ;;  %v9881_v31 = vld [vmem:[%s12274_s2 + $0x110] sm:$0xff]   ;;  %v3674_v56 = vld [vmem:[#allocation2 + $0x20] sm:$0xf0] }
 0x108   : > { %9073 = vmatmul.mubr.bf16.vlgmr.msra.gmra.mrb[4].mxu0 %v3301_v48  ;;  %8918 = vmatprep.subr.bf16.mxu1 %v9862_v17  ;;  %v3693_v60 = vrot.slane %v3674_v56, 4  ;;  %v3822_v56 = vrot.slane %v10741_v28, 6 }
 0x109   : > { %9077 = vmatpush3.bf16.msra.mxu0 %v9861_v26  ;;  %9092 = vmatprep.mubr.bf16.mxu0 %v3427_v33  ;;  %v10848_v26 = vadd.s32 %v1622_v12, %v10819_v8  ;;  %v10865_v33 = vadd.s32 24, %v10812_v4  ;;  %v3569_v7 = vor.u32 %v10845_v25, %v10839_v22  ;;  %v9895_v22 = vld [vmem:[%s12274_s2 + $0x148] sm:$0xff]  }
 0x10a   : > { %9078 = vmatprep.subr.bf16.mxu0 %v9863_v32 }
 0x10b   : > { %8919 = vmatpush3.bf16.msra.mxu1 %v9862_v17  ;;  %v2520_v17 = vrot.slane %v10828_v16, 6  ;;  %v1629_v48 = vcvt.s32.f32 %v10848_v26  ;;  %vm1667_vm8 = vcmp.ge.s32.totalorder %v10848_v26, 0  ;;  %vm1671_vm9 = vcmp.lt.s32.totalorder %v10848_v26, 72  ;;  %v9912_v26 = vld [vmem:[%s12274_s2 + $0x1d0] sm:$0xff]  }
 0x10c   : > { %8920 = vmatprep.subr.bf16.mxu1 %v9864_v63  ;;  %vm1675_vm10 = vmand %vm1667_vm8, %vm1671_vm9 }
 0x10d   : > { %9079 = vmatpush3.bf16.msra.mxu0 %v9863_v32  ;;  %v10862_v32 = vadd.s32 %v1622_v12, %v10812_v4  ;;  %v1634_v35 = vmul.f32 0.027777778, %v1629_v48 }
 0x10e   : > { %9080 = vmatprep.subr.bf16.mxu0 %v9865_v62 }
 0x10f   : > { %8921 = vmatpush3.bf16.msra.mxu1 %v9864_v63  ;;  %v10868_v63 = vadd.s32 8, %v10812_v4  ;;  %v1627_v36 = vcvt.s32.f32 %v10862_v32  ;;  %vm1665_vm8 = vcmp.ge.s32.totalorder %v10862_v32, 0  ;;  %vm1669_vm9 = vcmp.lt.s32.totalorder %v10862_v32, 72 }
 0x110   : > { %8922 = vmatprep.subr.bf16.mxu1 %v9866_v47  ;;  %vm1673_vm2 = vmand %vm1665_vm8, %vm1669_vm9 }
 0x111   : > { %9081 = vmatpush3.bf16.msra.mxu0 %v9865_v62  ;;  %v9882_v62 = vld [vmem:[%s12274_s2 + $0x158] sm:$0xff]   ;;  %v1632_v41 = vmul.f32 0.027777778, %v1627_v36  ;;  %v10890_v45 = vadd.s32 %v1622_v12, %v10868_v63 }
 0x112   : > { %9082 = vmatprep.subr.bf16.mxu0 %v9867_v38 }
 0x113   : > { %8923 = vmatpush3.bf16.msra.mxu1 %v9866_v47  ;;  %v9883_v47 = vld [vmem:[%s12274_s2 + $0x118] sm:$0xff]   ;;  %v1628_v53 = vcvt.s32.f32 %v10890_v45  ;;  %v1636_v2 = vfloor.f32 %v1632_v41  ;;  %v9904_v41 = vld [vmem:[%s12274_s2 + $0x1b0] sm:$0xff]  }
 0x114   : > { %8924 = vmatprep.subr.bf16.mxu1 %v9868_v39 }
 0x115   : > { %9083 = vmatpush3.bf16.msra.mxu0 %v9867_v38  ;;  %v10878_v38 = vadd.s32 %v1622_v12, %v10865_v33 }
 0x116   : > { %9084 = vmatprep.subr.bf16.mxu0 %v9869_v40 }
 0x117   : > { %8925 = vmatpush3.bf16.msra.mxu1 %v9868_v39  ;;  %v9884_v39 = vld [vmem:[%s12274_s2 + $0x160] sm:$0xff]   ;;  %v1630_v44 = vcvt.s32.f32 %v10878_v38 }
 0x118   : > { %8926 = vmatprep.subr.bf16.mxu1 %v9870_v51 }
 0x119   : > { %9085 = vmatpush3.bf16.msra.mxu0 %v9869_v40  ;;  %v9885_v40 = vld [vmem:[%s12274_s2 + $0x120] sm:$0xff]  }
 0x11a   : > { %9086 = vmatprep.subr.bf16.mxu0 %v9871_v43 }
 0x11b   : > { %8927 = vmatpush3.bf16.msra.mxu1 %v9870_v51  ;;  %v9887_v51 = vld [vmem:[%s12274_s2 + $0x128] sm:$0xff]  }
 0x11c   : > { %8928 = vmatprep.subr.bf16.mxu1 %v9872_v58 }
 0x11d   : > { %9087 = vmatpush3.bf16.msra.mxu0 %v9871_v43  ;;  %v1635_v43 = vmul.f32 0.027777778, %v1630_v44 }
 0x11e   : > { %9088 = vmatprep.subr.bf16.mxu0 %v9873_v59 }
 0x11f   : > { %8929 = vmatpush3.bf16.msra.mxu1 %v9872_v58  ;;  %v1638_v58 = vfloor.f32 %v1634_v35  ;;  %v1639_v5 = vfloor.f32 %v1635_v43  ;;  %v9899_v35 = vld [vmem:[%s12274_s2 + $0x158] sm:$0xff]  }
 0x120   : > { %8930 = vmatprep.subr.bf16.mxu1 %v9874_v61 }
 0x121   : > { %9089 = vmatpush3.bf16.msra.mxu0 %v9873_v59  ;;  %v1633_v59 = vmul.f32 0.027777778, %v1628_v53  ;;  %v10948_v34 = vmul.f32 36.0, %v1639_v5  ;;  %v9910_v5 = vld [vmem:[%s12274_s2 + $0x1c8] sm:$0xff]  }
 0x122   : > { %9090 = vmatprep.subr.bf16.mxu0 %v9875_v0 }
 0x123   : > { %8931 = vmatpush3.bf16.msra.mxu1 %v9874_v61  ;;  %v1642_v61 = vmul.f32 36.0, %v1638_v58  ;;  %v1637_v6 = vfloor.f32 %v1633_v59 }
 0x124   : > { %8936 = vmatprep.subr.bf16.mxu1 %v9876_v13 }
 0x125   : > { %9091 = vmatpush3.bf16.msra.mxu0 %v9875_v0  ;;  %v9892_v0 = vld [vmem:[%s12274_s2 + $0x180] sm:$0xff]   ;;  %v10927_v12 = vsub.f32 %v1629_v48, %v1642_v61  ;;  %v10950_v25 = vmul.f32 36.0, %v1637_v6  ;;  %v2653_v48 = vrot.slane %v10525_v46, 6 }
 0x126   : > { %9096 = vmatprep.subr.bf16.mxu0 %v9877_v9  ;;  %8933 = vmatmul.mubr.bf16.vlgmr.msra.gmra.mrb[4].mxu1 %v2269_v14  ;;  %v9894_v14 = vld [vmem:[%s12274_s2 + $0x188] sm:$0xff]   ;;  %v9900_v46 = vld [vmem:[%s12274_s2 + $0x1a0] sm:$0xff]  }
 0x127   : > { %8937 = vmatpush3.bf16.msra.mxu1 %v9876_v13  ;;  %8952 = vmatprep.mubr.bf16.mxu1 %v2394_v18  ;;  %v9893_v13 = vld [vmem:[%s12274_s2 + $0x140] sm:$0xff]   ;;  %v10938_v18 = vmul.f32 36.0, %v1636_v2 }
 0x128   : > { %9093 = vmatmul.mubr.bf16.vlgmr.msra.gmra.mrb[4].mxu0 %v3429_v23  ;;  %8938 = vmatprep.subr.bf16.mxu1 %v9878_v19  ;;  %v2522_v23 = vsel %vm12286_vm5, %v2520_v17, %v2521_v29  ;;  %v2646_v17 = vshrl.u32 %v10828_v16, 16  ;;  %v9908_v61 = vld [vmem:[%s12274_s2 + $0x1c0] sm:$0xff]  }
 0x129   : > { %9097 = vmatpush3.bf16.msra.mxu0 %v9877_v9  ;;  %9112 = vmatprep.mubr.bf16.mxu0 %v3561_v30  ;;  %v3694_v9 = vrot.slane %v10741_v28, 4  ;;  %v11042_v50 = vsub.f32 %v1627_v36, %v10938_v18  ;;  %v11057_v36 = vsub.f32 %v1628_v53, %v10950_v25  ;;  %v9928_v28 = vld [vmem:[%s12274_s2 + $0x210] sm:$0xff]  }
 0x12a   : > { %9098 = vmatprep.subr.bf16.mxu0 %v9879_v20  ;;  %v2648_v59 = vrot.slane %v2646_v17, 6  ;;  %v9918_v17 = vld [vmem:[%s12274_s2 + $0x1e8] sm:$0xff]  }
 0x12b   : > { %8939 = vmatpush3.bf16.msra.mxu1 %v9878_v19  ;;  %v2396_v19 = vsel %vm12281_vm3, %v2393_v3, %v2395_v24  ;;  %v3570_v3 = vsel %vm12282_vm1, %v10824_v11, %v3569_v7  ;;  %v10955_v24 = vmul.f32 0.16666667, %v10927_v12  ;;  %v3695_v30 = vsel %vm12281_vm3, %v3693_v60, %v3694_v9  ;;  %v9897_v11 = vld [vmem:[%s12274_s2 + $0x150] sm:$0xff]  }
 0x12c   : > { %8940 = vmatprep.subr.bf16.mxu1 %v9880_v27  ;;  %v1650_v18 = vmul.f32 0.16666667, %v11057_v36 }
 0x12d   : > { %9099 = vmatpush3.bf16.msra.mxu0 %v9879_v20  ;;  %v2523_v20 = vrot.slane %v10918_v1, 6  ;;  %v1655_v7 = vfloor.f32 %v10955_v24  ;;  %v3697_v1 = vsel %vm12281_vm3, %v3694_v9, %v3696_v10  ;;  %v9913_v10 = vld [vmem:[%s12274_s2 + $0x190] sm:$0xff]   ;;  %vm1670_vm3 = vcmp.lt.s32.totalorder %v10890_v45, 72 }
 0x12e   : > { %9100 = vmatprep.subr.bf16.mxu0 %v9881_v31 }
 0x12f   : > { %8941 = vmatpush3.bf16.msra.mxu1 %v9880_v27  ;;  %v9896_v27 = vld [vmem:[%s12274_s2 + $0x190] sm:$0xff]   ;;  %v2524_v6 = vsel %vm12286_vm5, %v2521_v29, %v2523_v20  ;;  %v11049_v29 = vsub.f32 %v1630_v44, %v10948_v34  ;;  %v1659_v9 = vmul.f32 6.0, %v1655_v7  ;;  %vm1679_vm11 = vcmp.ge.f32.partialorder %v1655_v7, 1.0  ;;  %v9915_v34 = vld [vmem:[%s12274_s2 + $0x198] sm:$0xff]  }
 0x130   : > { %8942 = vmatprep.subr.bf16.mxu1 %v9882_v62  ;;  %v1649_v44 = vmul.f32 0.16666667, %v11042_v50  ;;  %vm1683_vm12 = vmand %vm1675_vm10, %vm1679_vm11  ;;  %vm1687_vm13 = vcmp.le.f32.partialorder %v1655_v7, 4.0  ;;  %vm1668_vm10 = vcmp.ge.s32.totalorder %v10878_v38, 0  ;;  %vm1672_vm11 = vcmp.lt.s32.totalorder %v10878_v38, 72 }
 0x131   : > { %9101 = vmatpush3.bf16.msra.mxu0 %v9881_v31  ;;  %v2649_v31 = vshll.u32 %v10828_v16, 16  ;;  %v9902_v16 = vld [vmem:[%s12274_s2 + $0x1a8] sm:$0xff]   ;;  %v1652_v53 = vmul.f32 0.16666667, %v11049_v29  ;;  %v1663_v20 = vsub.f32 %v10927_v12, %v1659_v9  ;;  %vm1691_vm14 = vmand %vm1683_vm12, %vm1687_vm13  ;;  %v1654_v12 = vfloor.f32 %v1650_v18 }
 0x132   : > { %9102 = vmatprep.subr.bf16.mxu0 %v9883_v47  ;;  %vm1666_vm13 = vcmp.ge.s32.totalorder %v10890_v45, 0  ;;  %v3954_v18 = vrot.slane %v10602_v21, 6  ;;  %v9924_v21 = vld [vmem:[%s12274_s2 + $0x200] sm:$0xff]  }
 0x133   : > { %8943 = vmatpush3.bf16.msra.mxu1 %v9882_v62  ;;  %v2654_v62 = vrot.slane %v10461_v15, 7  ;;  %v9901_v15 = vld [vmem:[%s12274_s2 + $0x160] sm:$0xff]   ;;  %v2651_v60 = vrot.slane %v2649_v31, 7  ;;  %v1656_v25 = vfloor.f32 %v1652_v53  ;;  %vm1695_vm15 = vcmp.ge.f32.partialorder %v1663_v20, 1.0  ;;  %vm11099_vm0 = vmand %vm1666_vm13, %vm1670_vm3  ;;  %v9923_v53 = vld [vmem:[%s12274_s2 + $0x1b8] sm:$0xff]  }
 0x134   : > { %8944 = vmatprep.subr.bf16.mxu1 %v9884_v39  ;;  %vm11085_vm12 = vmand %vm1691_vm14, %vm1695_vm15  ;;  %vm1703_vm1 = vcmp.le.f32.partialorder %v1663_v20, 4.0  ;;  %v1658_v32 = vmul.f32 6.0, %v1654_v12  ;;  %v11096_v31 = vld [vmem:[#allocation2 + $0x20] sm:$0x7f]  ;;  %vm1678_vm8 = vcmp.ge.f32.partialorder %v1654_v12, 1.0 }
 0x135   : > { %9103 = vmatpush3.bf16.msra.mxu0 %v9883_v47  ;;  %v9898_v47 = vld [vmem:[%s12274_s2 + $0x198] sm:$0xff]   ;;  %v2652_v2 = vor.u32 %v2651_v60, %v2648_v59  ;;  %vm1676_vm14 = vmand %vm1668_vm10, %vm1672_vm11  ;;  %vm1680_vm15 = vcmp.ge.f32.partialorder %v1656_v25, 1.0  ;;  %v3802_v20 = vld [vmem:[#allocation2 + $0x30] sm:$0x3f] }
 0x136   : > { %9104 = vmatprep.subr.bf16.mxu0 %v9885_v40  ;;  %vm11105_vm9 = vmand %vm11085_vm12, %vm1703_vm1  ;;  %vm1688_vm1 = vcmp.le.f32.partialorder %v1656_v25, 4.0  ;;  %v3824_v45 = vrot.slane %v3802_v20, 6  ;;  %v9933_v20 = vld [vmem:[%s12274_s2 + $0x1e0] sm:$0xff]  }
 0x137   : > { %8945 = vmatpush3.bf16.msra.mxu1 %v9884_v39  ;;  %v9903_v39 = vld [vmem:[%s12274_s2 + $0x168] sm:$0xff]   ;;  %vm11117_vm3 = vmand %vm1676_vm14, %vm1680_vm15 }
 0x138   : > { %8946 = vmatprep.subr.bf16.mxu1 %v9886_v49 }
 0x139   : > { %9105 = vmatpush3.bf16.msra.mxu0 %v9885_v40  ;;  %v10988_v40 = vld [vmem:[#allocation2 + $0x20] sm:$0xc0] }
 0x13a   : > { %9106 = vmatprep.subr.bf16.mxu0 %v9887_v51  ;;  %v3821_v43 = vrot.slane %v10988_v40, 6  ;;  %v3950_v59 = vshll.u32 %v10988_v40, 16 }
 0x13b   : > { %8947 = vmatpush3.bf16.msra.mxu1 %v9886_v49  ;;  %v9905_v49 = vld [vmem:[%s12274_s2 + $0x170] sm:$0xff]  }
 0x13c   : > { %8948 = vmatprep.subr.bf16.mxu1 %v9888_v54  ;;  %v3823_v37 = vsel %vm12286_vm5, %v3821_v43, %v3822_v56 }
 0x13d   : > { %9107 = vmatpush3.bf16.msra.mxu0 %v9887_v51 }
 0x13e   : > { %9108 = vmatprep.subr.bf16.mxu0 %v9889_v55 }
 0x13f   : > { %8949 = vmatpush3.bf16.msra.mxu1 %v9888_v54 }
 0x140   : > { %8950 = vmatprep.subr.bf16.mxu1 %v9890_v57 }
 0x141   : > { %9109 = vmatpush3.bf16.msra.mxu0 %v9889_v55  ;;  %v9906_v55 = vld [vmem:[%s12274_s2 + $0x1b8] sm:$0xff]  }
 0x142   : > { %9110 = vmatprep.subr.bf16.mxu0 %v9891_v42 }
 0x143   : > { %8951 = vmatpush3.bf16.msra.mxu1 %v9890_v57 }
 0x144   : > { %8956 = vmatprep.subr.bf16.mxu1 %v9892_v0 }
 0x145   : > { %9111 = vmatpush3.bf16.msra.mxu0 %v9891_v42  ;;  %v9907_v42 = vld [vmem:[%s12274_s2 + $0x178] sm:$0xff]  }
 0x146   : > { %9116 = vmatprep.subr.bf16.mxu0 %v9893_v13  ;;  %8953 = vmatmul.mubr.bf16.vlgmr.msra.gmra.mrb[4].mxu1 %v2396_v19 }
 0x147   : > { %8957 = vmatpush3.bf16.msra.mxu1 %v9892_v0  ;;  %8972 = vmatprep.mubr.bf16.mxu1 %v2522_v23  ;;  %v9909_v0 = vld [vmem:[%s12274_s2 + $0x180] sm:$0xff]   ;;  %v1653_v23 = vfloor.f32 %v1649_v44 }
 0x148   : > { %9113 = vmatmul.mubr.bf16.vlgmr.msra.gmra.mrb[4].mxu0 %v3570_v3  ;;  %8958 = vmatprep.subr.bf16.mxu1 %v9894_v14  ;;  %v9916_v3 = vld [vmem:[%s12274_s2 + $0x1e0] sm:$0xff]  }
 0x149   : > { %9117 = vmatpush3.bf16.msra.mxu0 %v9893_v13  ;;  %9132 = vmatprep.mubr.bf16.mxu0 %v3695_v30  ;;  %v11018_v13 = vor.u32 %v2654_v62, %v2653_v48  ;;  %v1657_v24 = vmul.f32 6.0, %v1653_v23  ;;  %vm1677_vm4 = vcmp.ge.f32.partialorder %v1653_v23, 1.0  ;;  %vm1685_vm10 = vcmp.le.f32.partialorder %v1653_v23, 4.0  ;;  %v9925_v62 = vld [vmem:[%s12274_s2 + $0x1c0] sm:$0xff]   ;;  %v9936_v23 = vld [vmem:[%s12274_s2 + $0x230] sm:$0xff]  }
 0x14a   : > { %9118 = vmatprep.subr.bf16.mxu0 %v9895_v22  ;;  %vm11109_vm5 = vmand %vm1673_vm2, %vm1677_vm4  ;;  %vm1686_vm4 = vcmp.le.f32.partialorder %v1654_v12, 4.0  ;;  %v10107_v30 = vmov 0.0  }
 0x14b   : > { %8959 = vmatpush3.bf16.msra.mxu1 %v9894_v14  ;;  %v9911_v14 = vld [vmem:[%s12274_s2 + $0x188] sm:$0xff]   ;;  %v2656_v19 = vsel %vm12288_vm6, %v2652_v2, %v11018_v13  ;;  %v1661_v48 = vsub.f32 %v11042_v50, %v1657_v24  ;;  %vm11128_vm2 = vmand %vm11099_vm0, %vm1678_vm8 }
 0x14c   : > { %8960 = vmatprep.subr.bf16.mxu1 %v9896_v27  ;;  %vm11137_vm11 = vmand %vm11109_vm5, %vm1685_vm10 }
 0x14d   : > { %9119 = vmatpush3.bf16.msra.mxu0 %v9895_v22  ;;  %v9914_v22 = vld [vmem:[%s12274_s2 + $0x1d8] sm:$0xff]   ;;  %vm1693_vm12 = vcmp.ge.f32.partialorder %v1661_v48, 1.0  ;;  %vm11151_vm0 = vmand %vm11117_vm3, %vm1688_vm1  ;;  %vm1701_vm8 = vcmp.le.f32.partialorder %v1661_v48, 4.0  ;;  %v4070_v48 = vld [vmem:[#allocation2 + $0x20] sm:$0x80] }
 0x14e   : > { %9120 = vmatprep.subr.bf16.mxu0 %v9897_v11  ;;  %vm11166_vm13 = vmand %vm11128_vm2, %vm1686_vm4 }
 0x14f   : > { %8961 = vmatpush3.bf16.msra.mxu1 %v9896_v27  ;;  %v9917_v27 = vld [vmem:[%s12274_s2 + $0x1a0] sm:$0xff]   ;;  %vm11175_vm15 = vmand %vm11137_vm11, %vm1693_vm12 }
 0x150   : > { %8962 = vmatprep.subr.bf16.mxu1 %v9898_v47  ;;  %vm11210_vm4 = vmand %vm11175_vm15, %vm1701_vm8 }
 0x151   : > { %9121 = vmatpush3.bf16.msra.mxu0 %v9897_v11  ;;  %v1660_v11 = vmul.f32 6.0, %v1656_v25 }
 0x152   : > { %9122 = vmatprep.subr.bf16.mxu0 %v9899_v35 }
 0x153   : > { %8963 = vmatpush3.bf16.msra.mxu1 %v9898_v47  ;;  %v9919_v47 = vld [vmem:[%s12274_s2 + $0x1a8] sm:$0xff]  }
 0x154   : > { %8964 = vmatprep.subr.bf16.mxu1 %v9900_v46 }
 0x155   : > { %9123 = vmatpush3.bf16.msra.mxu0 %v9899_v35  ;;  %v1664_v35 = vsub.f32 %v11049_v29, %v1660_v11  ;;  %v7337_v11 = vsel %vm11105_vm9, 1.0, %v10107_v30  ;;  %vm12319_vm9 = vcmask 1041408  }
 0x156   : > { %9124 = vmatprep.subr.bf16.mxu0 %v9901_v15 }
 0x157   : > { %8965 = vmatpush3.bf16.msra.mxu1 %v9900_v46  ;;  %vm1696_vm5 = vcmp.ge.f32.partialorder %v1664_v35, 1.0  ;;  %vm1704_vm10 = vcmp.le.f32.partialorder %v1664_v35, 4.0 }
 0x158   : > { %8966 = vmatprep.subr.bf16.mxu1 %v9902_v16  ;;  %vm11186_vm3 = vmand %vm11151_vm0, %vm1696_vm5  ;;  %vm12320_vm0 = vsmask.f32 7424 }
 0x159   : > { %9125 = vmatpush3.bf16.msra.mxu0 %v9901_v15  ;;  %v10996_v51 = vpop.f32.mrb[0].mxu1  ;;  %v11122_v15 = vsub.f32 %v11057_v36, %v1658_v32  ;;  %v3952_v36 = vrot.slane %v3950_v59, 7  ;;  %vm11220_vm11 = vmand %vm11186_vm3, %vm1704_vm10  ;;  %v9926_v59 = vld [vmem:[%s12274_s2 + $0x208] sm:$0xff]  }
 0x15a   : > { %v10999_v54 = vpop.f32.mrb[1].mxu1  ;;  %9126 = vmatprep.subr.bf16.mxu0 %v9903_v39 }
 0x15b   : > { %v11005_v58 = vpop.f32.mrb[2].mxu1  ;;  %8967 = vmatpush3.bf16.msra.mxu1 %v9902_v16  ;;  %v2658_v16 = vshrl.u32 %v11096_v31, 16  ;;  %vm1694_vm14 = vcmp.ge.f32.partialorder %v11122_v15, 1.0  ;;  %vm1702_vm1 = vcmp.le.f32.partialorder %v11122_v15, 4.0 }
 0x15c   : > { %v11007_v57 = vpop.f32.mrb[3].mxu1  ;;  %8968 = vmatprep.subr.bf16.mxu1 %v9904_v41  ;;  %vm11197_vm2 = vmand %vm11166_vm13, %vm1694_vm14 }
 0x15d   : > { %9127 = vmatpush3.bf16.msra.mxu0 %v9903_v39  ;;  %v2661_v39 = vshll.u32 %v11096_v31, 16  ;;  %vm11239_vm12 = vmand %vm11197_vm2, %vm1702_vm1 }
 0x15e   : > { %9128 = vmatprep.subr.bf16.mxu0 %v9905_v49 }
 0x15f   : > { %8969 = vmatpush3.bf16.msra.mxu1 %v9904_v41 }
 0x160   : > { %8970 = vmatprep.subr.bf16.mxu1 %v9906_v55 }
 0x161   : > { %9129 = vmatpush3.bf16.msra.mxu0 %v9905_v49  ;;  %v9920_v49 = vld [vmem:[%s12274_s2 + $0x1f0] sm:$0xff]  }
 0x162   : > { %9130 = vmatprep.subr.bf16.mxu0 %v9907_v42 }
 0x163   : > { %8971 = vmatpush3.bf16.msra.mxu1 %v9906_v55  ;;  %v3947_v55 = vshrl.u32 %v10988_v40, 16  ;;  %v11161_v40 = vld [vmem:[%s12276_s4] ss:$0 sm:$0xff] }
 0x164   : > { %8976 = vmatprep.subr.bf16.mxu1 %v9908_v61 }
 0x165   : > { %9131 = vmatpush3.bf16.msra.mxu0 %v9907_v42  ;;  %v11146_v42 = vld [vmem:[%s12275_s3] ss:$0 sm:$0xff]  ;;  %v3949_v9 = vrot.slane %v3947_v55, 6  ;;  %v7336_v55 = vsel %vm11239_vm12, 1.0, %v10107_v30 }
 0x166   : > { %9136 = vmatprep.subr.bf16.mxu0 %v9909_v0  ;;  %8973 = vmatmul.mubr.bf16.vlgmr.msra.gmra.mrb[4].mxu1 %v2524_v6  ;;  %v2663_v6 = vrot.slane %v2661_v39, 7 }
 0x167   : > { %8977 = vmatpush3.bf16.msra.mxu1 %v9908_v61  ;;  %8992 = vmatprep.mubr.bf16.mxu1 %v2656_v19  ;;  %v9921_v61 = vld [vmem:[%s12274_s2 + $0x1b0] sm:$0xff]   ;;  %v3953_v35 = vor.u32 %v3952_v36, %v3949_v9 }
 0x168   : > { %9133 = vmatmul.mubr.bf16.vlgmr.msra.gmra.mrb[4].mxu0 %v3697_v1  ;;  %8978 = vmatprep.subr.bf16.mxu1 %v9910_v5  ;;  %v9922_v1 = vld [vmem:[%s12274_s2 + $0x1f8] sm:$0xff]  }
 0x169   : > { %9137 = vmatpush3.bf16.msra.mxu0 %v9909_v0  ;;  %9152 = vmatprep.mubr.bf16.mxu0 %v3823_v37  ;;  %v2769_v37 = vld [vmem:[#allocation2 + $0x10] sm:$0x80] }
 0x16a   : > { %9138 = vmatprep.subr.bf16.mxu0 %v9911_v14  ;;  %v2788_v24 = vrot.slane %v2769_v37, 7 }
 0x16b   : > { %8979 = vmatpush3.bf16.msra.mxu1 %v9910_v5  ;;  %v2660_v5 = vrot.slane %v2658_v16, 6  ;;  %v7338_v16 = vsel %vm11220_vm11, 1.0, %v10107_v30 }
 0x16c   : > { %8980 = vmatprep.subr.bf16.mxu1 %v9912_v26 }
 0x16d   : > { %9139 = vmatpush3.bf16.msra.mxu0 %v9911_v14  ;;  %v2664_v25 = vor.u32 %v2663_v6, %v2660_v5  ;;  %v9927_v5 = vld [vmem:[%s12274_s2 + $0x1c8] sm:$0xff]  }
 0x16e   : > { %9140 = vmatprep.subr.bf16.mxu0 %v9913_v10 }
 0x16f   : > { %8981 = vmatpush3.bf16.msra.mxu1 %v9912_v26  ;;  %v2665_v41 = vsel %vm12288_vm6, %v11018_v13, %v2664_v25  ;;  %v3825_v13 = vsel %vm12319_vm9, %v3822_v56, %v3824_v45 }
 0x170   : > { %8982 = vmatprep.subr.bf16.mxu1 %v9914_v22 }
 0x171   : > { %9141 = vmatpush3.bf16.msra.mxu0 %v9913_v10 }
 0x172   : > { %9142 = vmatprep.subr.bf16.mxu0 %v9915_v34 }
 0x173   : > { %8983 = vmatpush3.bf16.msra.mxu1 %v9914_v22  ;;  %v3955_v22 = vrot.slane %v10535_v52, 7  ;;  %v9938_v52 = vld [vmem:[%s12274_s2 + $0x238] sm:$0xff]  }
 0x174   : > { %8984 = vmatprep.subr.bf16.mxu1 %v9916_v3 }
 0x175   : > { %9143 = vmatpush3.bf16.msra.mxu0 %v9915_v34  ;;  %v11247_v46 = vor.u32 %v3955_v22, %v3954_v18  ;;  %v9934_v18 = vld [vmem:[%s12274_s2 + $0x228] sm:$0xff]  }
 0x176   : > { %9144 = vmatprep.subr.bf16.mxu0 %v9917_v27  ;;  %v9935_v22 = vld [vmem:[%s12274_s2 + $0x1e8] sm:$0xff]  }
 0x177   : > { %8985 = vmatpush3.bf16.msra.mxu1 %v9916_v3  ;;  %v3957_v6 = vsel %vm12288_vm6, %v3953_v35, %v11247_v46 }
 0x178   : > { %8986 = vmatprep.subr.bf16.mxu1 %v9918_v17 }
 0x179   : > { %9145 = vmatpush3.bf16.msra.mxu0 %v9917_v27 }
 0x17a   : > { %9146 = vmatprep.subr.bf16.mxu0 %v9919_v47 }
 0x17b   : > { %v8834_v0 = vpop.f32.mrb[0].mxu0  ;;  %8987 = vmatpush3.bf16.msra.mxu1 %v9918_v17 }
 0x17c   : > { %v9556_v7 = vadd.f32 %v8834_v0, %v10996_v51  ;;  %v1571_v14 = vpop.f32.mrb[1].mxu0  ;;  %8988 = vmatprep.subr.bf16.mxu1 %v9920_v49  ;;  %v9930_v51 = vld [vmem:[%s12274_s2 + $0x218] sm:$0xff]  }
 0x17d   : > { %v9557_v50 = vadd.f32 %v1571_v14, %v10999_v54  ;;  %v8835_v29 = vpop.f32.mrb[2].mxu0  ;;  %9147 = vmatpush3.bf16.msra.mxu0 %v9919_v47 }
 0x17e   : > { %v1599_v26 = vmul.f32 %v9556_v7, %v11146_v42  ;;  %v9558_v44 = vadd.f32 %v8835_v29, %v11005_v58  ;;  %v1574_v10 = vpop.f32.mrb[3].mxu0  ;;  %9148 = vmatprep.subr.bf16.mxu0 %v9921_v61 }
 0x17f   : > { %v1597_v58 = vmul.f32 %v9557_v50, %v11146_v42  ;;  %v9559_v34 = vadd.f32 %v1574_v10, %v11007_v57  ;;  %8989 = vmatpush3.bf16.msra.mxu1 %v9920_v49  ;;  %v11227_v57 = vld [vmem:[#allocation2 + $0x18] sm:$0xff]  ;;  %v7335_v49 = vsel %vm11210_vm4, 1.0, %v10107_v30 }
 0x180   : > { %v1610_v12 = vadd.f32 %v11161_v40, %v1599_v26  ;;  %v1600_v3 = vmul.f32 %v9558_v44, %v11146_v42  ;;  %8990 = vmatprep.subr.bf16.mxu1 %v9922_v1  ;;  %v2789_v27 = vrot.slane %v11227_v57, 7  ;;  %v9931_v44 = vld [vmem:[%s12274_s2 + $0x1d8] sm:$0xff]   ;;  %v9941_v57 = vld [vmem:[%s12274_s2 + $0x208] sm:$0xff]  }
 0x181   : > { %v1608_v32 = vadd.f32 %v11161_v40, %v1597_v58  ;;  %v1598_v17 = vmul.f32 %v9559_v34, %v11146_v42  ;;  %9149 = vmatpush3.bf16.msra.mxu0 %v9921_v61  ;;  %v11319_v58 = vld [vmem:[#allocation2 + $0x30] sm:$0x7f] }
 0x182   : > { %v1614_v38 = vmax.f32 %v1610_v12, 0.0  ;;  %v1611_v47 = vadd.f32 %v11161_v40, %v1600_v3  ;;  %9150 = vmatprep.subr.bf16.mxu0 %v9923_v53  ;;  %v2790_v60 = vsel %vm12287_vm7, %v2788_v24, %v2789_v27  ;;  %v3959_v34 = vshrl.u32 %v11319_v58, 16  ;;  %v9937_v12 = vld [vmem:[%s12274_s2 + $0x1f0] sm:$0xff]  }
 0x183   : > { %v1612_v15 = vmax.f32 %v1608_v32, 0.0  ;;  %v1609_v39 = vadd.f32 %v11161_v40, %v1598_v17  ;;  %8991 = vmatpush3.bf16.msra.mxu1 %v9922_v1  ;;  %v9929_v1 = vld [vmem:[%s12274_s2 + $0x1d0] sm:$0xff]   ;;  %v3962_v25 = vshll.u32 %v11319_v58, 16  ;;  %v2791_v17 = vrot.slane %v11096_v31, 7 }
 0x184   : > { %v1615_v43 = vmax.f32 %v1611_v47, 0.0  ;;  %8996 = vmatprep.subr.bf16.mxu1 %v9924_v21  ;;  %v1719_v0 = vmul.f32 %v7337_v11, %v1614_v38  ;;  %v9939_v11 = vld [vmem:[%s12274_s2 + $0x1f8] sm:$0xff]   ;;  %v9948_v38 = vld [vmem:[%s12277_s5 + $0x40] sm:$0xff]  }
 0x185   : > { %v1613_v61 = vmax.f32 %v1609_v39, 0.0  ;;  %9151 = vmatpush3.bf16.msra.mxu0 %v9923_v53  ;;  %v1717_v7 = vmul.f32 %v7335_v49, %v1612_v15  ;;  %v9932_v53 = vld [vmem:[%s12274_s2 + $0x220] sm:$0xff]   ;;  %v3964_v24 = vrot.slane %v3962_v25, 7  ;;  %v4089_v15 = vrot.slane %v4070_v48, 7  ;;  %v9949_v49 = vld [vmem:[%s12277_s5 + $0x48] sm:$0xff]  }
 0x186   : > { %v1720_v2 = vmul.f32 %v7338_v16, %v1615_v43  ;;  %9156 = vmatprep.subr.bf16.mxu0 %v9925_v62  ;;  %8993 = vmatmul.mubr.bf16.vlgmr.msra.gmra.mrb[4].mxu1 %v2665_v41  ;;  %v10096_v16 = vld [vmem:[#allocation2 + $0x28] sm:$0xff]  ;;  %v2792_v31 = vsel %vm12287_vm7, %v2789_v27, %v2791_v17 }
 0x187   : > { %v1718_v14 = vmul.f32 %v7336_v55, %v1613_v61  ;;  %8997 = vmatpush3.bf16.msra.mxu1 %v9924_v21  ;;  %9012 = vmatprep.mubr.bf16.mxu1 %v2790_v60  ;;  %v3961_v21 = vrot.slane %v3959_v34, 6  ;;  %v4090_v39 = vrot.slane %v10096_v16, 7  ;;  %v9944_v60 = vld [vmem:[%s12274_s2 + $0x220] sm:$0xff]   ;;  %v9945_v61 = vld [vmem:[%s12274_s2 + $0x228] sm:$0xff]  }
 0x188   : > { %v11275_v19 = vpack.c.bf16 %v1720_v2, %v1719_v0  ;;  %9153 = vmatmul.mubr.bf16.vlgmr.msra.gmra.mrb[4].mxu0 %v3825_v13  ;;  %8998 = vmatprep.subr.bf16.mxu1 %v9926_v59  ;;  %v9946_v13 = vld [vmem:[%s12274_s2 + $0x230] sm:$0xff]   ;;  %v9947_v0 = vld [vmem:[%s12274_s2 + $0x238] sm:$0xff]   ;;  %v4092_v2 = vrot.slane %v11319_v58, 7  ;;  %v11431_v58 = vld [vmem:[%s12277_s5] sm:$0xff]  }
 0x189   : > { %v11280_v56 = vpack.c.bf16 %v1718_v14, %v1717_v7  ;;  %9157 = vmatpush3.bf16.msra.mxu0 %v9925_v62  ;;  %9172 = vmatprep.mubr.bf16.mxu0 %v3957_v6  ;;  %v3965_v47 = vor.u32 %v3964_v24, %v3961_v21  ;;  %v9940_v62 = vld [vmem:[%s12274_s2 + $0x200] sm:$0xff]   ;;  %v4091_v27 = vsel %vm12287_vm7, %v4089_v15, %v4090_v39  ;;  %v9950_v6 = vld [vmem:[%s12277_s5 + $0x50] sm:$0xff]   ;;  %v9951_v7 = vld [vmem:[%s12277_s5 + $0x58] sm:$0xff]  }
 0x18a   : > { %1724 = vst [vmem:[#allocation3 + $0x8] sm:$0xff] %v11275_v19  ;;  %9158 = vmatprep.subr.bf16.mxu0 %v9927_v5  ;;  %v11287_v50 = vshll.u32 %v11275_v19, 16  ;;  %v11290_v29 = vshrl.u32 %v11275_v19, 16  ;;  %v9952_v14 = vld [vmem:[%s12277_s5 + $0x60] sm:$0xff]  }
 0x18b   : > { %1723 = vst [vmem:[#allocation3] sm:$0xff] %v11280_v56  ;;  %8999 = vmatpush3.bf16.msra.mxu1 %v9926_v59  ;;  %v4364_v3 = vshll.u32 %v11280_v56, 16  ;;  %v4362_v45 = vshrl.u32 %v11280_v56, 16  ;;  %v3966_v43 = vsel %vm12288_vm6, %v11247_v46, %v3965_v47  ;;  %v9942_v46 = vld [vmem:[%s12274_s2 + $0x210] sm:$0xff]   ;;  %v9943_v59 = vld [vmem:[%s12274_s2 + $0x218] sm:$0xff]  }
 0x18c   : > { %9000 = vmatprep.subr.bf16.mxu1 %v9928_v28  ;;  %v4861_v37 = vrot.slane %v11290_v29, 3  ;;  %v4862_v9 = vrot.slane %v11287_v50, 4  ;;  %v5260_v36 = vrot.slane %v11290_v29, 6  ;;  %v5261_v26 = vrot.slane %v11287_v50, 7 }
 0x18d   : > { %9159 = vmatpush3.bf16.msra.mxu0 %v9927_v5  ;;  %v4366_v32 = vrot.slane %v4364_v3, 1  ;;  %v4371_v41 = vrot.slane %v11287_v50, 1  ;;  %v4093_v5 = vsel %vm12287_vm7, %v4090_v39, %v4092_v2 }
 0x18e   : > { %9160 = vmatprep.subr.bf16.mxu0 %v9929_v1  ;;  %v11303_v10 = vor.u32 %v4862_v9, %v4861_v37  ;;  %v11305_v54 = vor.u32 %v5261_v26, %v5260_v36  ;;  %v9955_v37 = vld [vmem:[%s12277_s5 + $0x78] sm:$0xff]   ;;  %v11404_v9 = vld [vmem:[%s12277_s5] sm:$0xff]   ;;  %v9959_v36 = vld [vmem:[%s12277_s5 + $0x48] sm:$0xff]  }
 0x18f   : > { %9001 = vmatpush3.bf16.msra.mxu1 %v9928_v28  ;;  %v4367_v35 = vor.u32 %v4366_v32, %v4362_v45  ;;  %v9953_v28 = vld [vmem:[%s12277_s5 + $0x68] sm:$0xff]   ;;  %v9961_v26 = vld [vmem:[%s12277_s5 + $0x50] sm:$0xff]  }
 0x190   : > { %9002 = vmatprep.subr.bf16.mxu1 %v9930_v51 }
 0x191   : > { %9161 = vmatpush3.bf16.msra.mxu0 %v9929_v1  ;;  %v4372_v55 = vsel %vm12320_vm0, %v4367_v35, %v4371_v41  ;;  %v9954_v1 = vld [vmem:[%s12277_s5 + $0x70] sm:$0xff]  }
 0x192   : > { %9162 = vmatprep.subr.bf16.mxu0 %v9931_v44 }
 0x193   : > { %9003 = vmatpush3.bf16.msra.mxu1 %v9930_v51  ;;  %v9957_v51 = vld [vmem:[%s12277_s5 + $0x40] sm:$0xff]  }
 0x194   : > { %9004 = vmatprep.subr.bf16.mxu1 %v9932_v53 }
 0x195   : > { %9163 = vmatpush3.bf16.msra.mxu0 %v9931_v44  ;;  %v9963_v44 = vld [vmem:[%s12277_s5 + $0x58] sm:$0xff]  }
 0x196   : > { %9164 = vmatprep.subr.bf16.mxu0 %v9933_v20 }
 0x197   : > { %9005 = vmatpush3.bf16.msra.mxu1 %v9932_v53  ;;  %v9965_v53 = vld [vmem:[%s12277_s5 + $0x60] sm:$0xff]  }
 0x198   : > { %9006 = vmatprep.subr.bf16.mxu1 %v9934_v18 }
 0x199   : > { %9165 = vmatpush3.bf16.msra.mxu0 %v9933_v20  ;;  %v9967_v20 = vld [vmem:[%s12277_s5 + $0x68] sm:$0xff]  }
 0x19a   : > { %9166 = vmatprep.subr.bf16.mxu0 %v9935_v22 }
 0x19b   : > { %9007 = vmatpush3.bf16.msra.mxu1 %v9934_v18  ;;  %v9969_v18 = vld [vmem:[%s12277_s5 + $0x70] sm:$0xff]  }
 0x19c   : > { %9008 = vmatprep.subr.bf16.mxu1 %v9936_v23 }
 0x19d   : > { %9167 = vmatpush3.bf16.msra.mxu0 %v9935_v22  ;;  %v9971_v22 = vld [vmem:[%s12277_s5 + $0x78] sm:$0xff]  }
 0x19e   : > { %9168 = vmatprep.subr.bf16.mxu0 %v9937_v12 }
 0x19f   : > { %9009 = vmatpush3.bf16.msra.mxu1 %v9936_v23  ;;  %v2923_v23 = vstv %s2922_s21  ;;  %s12201_s21 = scalar_lea.vmem %s12280_s8, %s7124_s17 }
 0x1a0   : > { %9010 = vmatprep.subr.bf16.mxu1 %v9938_v52  ;;  %v2926_v34 = vadd.s32 %v2923_v23, %v10819_v8  ;;  %v2927_v3 = vadd.s32 %v2923_v23, %v10865_v33  ;;  %v2925_v24 = vadd.s32 %v2923_v23, %v10868_v63 }
 0x1a1   : > { %9169 = vmatpush3.bf16.msra.mxu0 %v9937_v12 }
 0x1a2   : > { %9170 = vmatprep.subr.bf16.mxu0 %v9939_v11  ;;  %v2930_v25 = vcvt.s32.f32 %v2926_v34  ;;  %v2929_v48 = vcvt.s32.f32 %v2925_v24  ;;  %vm2966_vm5 = vcmp.ge.s32.totalorder %v2926_v34, 0  ;;  %vm2970_vm13 = vcmp.lt.s32.totalorder %v2926_v34, 72 }
 0x1a3   : > { %9011 = vmatpush3.bf16.msra.mxu1 %v9938_v52  ;;  %v2924_v52 = vadd.s32 %v2923_v23, %v10812_v4  ;;  %vm2974_vm14 = vmand %vm2966_vm5, %vm2970_vm13  ;;  %vm2967_vm2 = vcmp.ge.s32.totalorder %v2927_v3, 0  ;;  %vm2971_vm4 = vcmp.lt.s32.totalorder %v2927_v3, 72  ;;  %vm2965_vm0 = vcmp.ge.s32.totalorder %v2925_v24, 0 }
 0x1a4   : > { %9196 = vmatprep.subr.bf16.mxu1 %v9948_v38  ;;  %v2934_v12 = vmul.f32 0.027777778, %v2930_v25  ;;  %vm2969_vm5 = vcmp.lt.s32.totalorder %v2925_v24, 72  ;;  %vm2975_vm13 = vmand %vm2967_vm2, %vm2971_vm4 }
 0x1a5   : > { %9171 = vmatpush3.bf16.msra.mxu0 %v9939_v11  ;;  %v2931_v11 = vcvt.s32.f32 %v2927_v3  ;;  %v2928_v32 = vcvt.s32.f32 %v2924_v52  ;;  %vm2964_vm11 = vcmp.ge.s32.totalorder %v2924_v52, 0  ;;  %vm2968_vm12 = vcmp.lt.s32.totalorder %v2924_v52, 72 }
 0x1a6   : > { %9013 = vmatmul.mubr.bf16.vlgmr.msra.gmra.mrb[4].mxu1 %v2792_v31  ;;  %9176 = vmatprep.subr.bf16.mxu0 %v9940_v62  ;;  %v2938_v21 = vfloor.f32 %v2934_v12 }
 0x1a7   : > { %9212 = vmatprep.mubr.bf16.mxu1 %v4372_v55  ;;  %9197 = vmatpush3.bf16.msra.mxu1 %v9948_v38  ;;  %v2935_v45 = vmul.f32 0.027777778, %v2931_v11  ;;  %v2932_v38 = vmul.f32 0.027777778, %v2928_v32 }
 0x1a8   : > { %9173 = vmatmul.mubr.bf16.vlgmr.msra.gmra.mrb[4].mxu0 %v3966_v43  ;;  %9198 = vmatprep.subr.bf16.mxu1 %v9949_v49  ;;  %v2942_v17 = vmul.f32 36.0, %v2938_v21 }
 0x1a9   : > { %9177 = vmatpush3.bf16.msra.mxu0 %v9940_v62  ;;  %9192 = vmatprep.mubr.bf16.mxu0 %v4091_v27  ;;  %v2933_v62 = vmul.f32 0.027777778, %v2929_v48  ;;  %v2939_v35 = vfloor.f32 %v2935_v45  ;;  %v2936_v15 = vfloor.f32 %v2932_v38 }
 0x1aa   : > { %9178 = vmatprep.subr.bf16.mxu0 %v9941_v57  ;;  %v2946_v47 = vsub.f32 %v2930_v25, %v2942_v17 }
 0x1ab   : > { %9199 = vmatpush3.bf16.msra.mxu1 %v9949_v49  ;;  %v2937_v39 = vfloor.f32 %v2933_v62  ;;  %v2943_v31 = vmul.f32 36.0, %v2939_v35  ;;  %v2940_v49 = vmul.f32 36.0, %v2936_v15 }
 0x1ac   : > { %9200 = vmatprep.subr.bf16.mxu1 %v9950_v6  ;;  %v2950_v16 = vmul.f32 0.16666667, %v2946_v47 }
 0x1ad   : > { %9179 = vmatpush3.bf16.msra.mxu0 %v9941_v57  ;;  %v2941_v55 = vmul.f32 36.0, %v2937_v39  ;;  %v2947_v57 = vsub.f32 %v2931_v11, %v2943_v31  ;;  %v2944_v27 = vsub.f32 %v2928_v32, %v2940_v49 }
 0x1ae   : > { %9180 = vmatprep.subr.bf16.mxu0 %v9942_v46  ;;  %v2954_v43 = vfloor.f32 %v2950_v16 }
 0x1af   : > { %9201 = vmatpush3.bf16.msra.mxu1 %v9950_v6 }
 0x1b0   : > { %9202 = vmatprep.subr.bf16.mxu1 %v9951_v7  ;;  %vm2978_vm15 = vcmp.ge.f32.partialorder %v2954_v43, 1.0  ;;  %vm2986_vm10 = vcmp.le.f32.partialorder %v2954_v43, 4.0 }
 0x1b1   : > { %9181 = vmatpush3.bf16.msra.mxu0 %v9942_v46  ;;  %v4224_v46 = vstv %s4223_s15  ;;  %vm2982_vm8 = vmand %vm2974_vm14, %vm2978_vm15 }
 0x1b2   : > { %9182 = vmatprep.subr.bf16.mxu0 %v9943_v59  ;;  %vm2990_vm3 = vmand %vm2982_vm8, %vm2986_vm10 }
 0x1b3   : > { %9203 = vmatpush3.bf16.msra.mxu1 %v9951_v7  ;;  %vm2972_vm8 = vmand %vm2964_vm11, %vm2968_vm12 }
 0x1b4   : > { %9204 = vmatprep.subr.bf16.mxu1 %v9952_v14 }
 0x1b5   : > { %9183 = vmatpush3.bf16.msra.mxu0 %v9943_v59  ;;  %v2958_v59 = vmul.f32 6.0, %v2954_v43 }
 0x1b6   : > { %9184 = vmatprep.subr.bf16.mxu0 %v9944_v60 }
 0x1b7   : > { %9205 = vmatpush3.bf16.msra.mxu1 %v9952_v14 }
 0x1b8   : > { %9206 = vmatprep.subr.bf16.mxu1 %v9953_v28 }
 0x1b9   : > { %9185 = vmatpush3.bf16.msra.mxu0 %v9944_v60  ;;  %v2945_v60 = vsub.f32 %v2929_v48, %v2941_v55 }
 0x1ba   : > { %9186 = vmatprep.subr.bf16.mxu0 %v9945_v61 }
 0x1bb   : > { %9207 = vmatpush3.bf16.msra.mxu1 %v9953_v28  ;;  %v2949_v2 = vmul.f32 0.16666667, %v2945_v60 }
 0x1bc   : > { %9208 = vmatprep.subr.bf16.mxu1 %v9954_v1 }
 0x1bd   : > { %9187 = vmatpush3.bf16.msra.mxu0 %v9945_v61  ;;  %v2951_v61 = vmul.f32 0.16666667, %v2947_v57  ;;  %v2953_v7 = vfloor.f32 %v2949_v2 }
 0x1be   : > { %9188 = vmatprep.subr.bf16.mxu0 %v9946_v13 }
 0x1bf   : > { %9209 = vmatpush3.bf16.msra.mxu1 %v9954_v1 }
 0x1c0   : > { %9210 = vmatprep.subr.bf16.mxu1 %v9955_v37 }
 0x1c1   : > { %9189 = vmatpush3.bf16.msra.mxu0 %v9946_v13  ;;  %v2948_v13 = vmul.f32 0.16666667, %v2944_v27 }
 0x1c2   : > { %9190 = vmatprep.subr.bf16.mxu0 %v9947_v0 }
 0x1c3   : > { %9211 = vmatpush3.bf16.msra.mxu1 %v9955_v37  ;;  %v2952_v6 = vfloor.f32 %v2948_v13  ;;  %v11445_v37 = vadd.s32 %v4224_v46, %v10812_v4 }
 0x1c4   : > { %9216 = vmatprep.subr.bf16.mxu1 %v11404_v9 }
 0x1c5   : > { %9191 = vmatpush3.bf16.msra.mxu0 %v9947_v0  ;;  %v2962_v0 = vsub.f32 %v2946_v47, %v2958_v59  ;;  %v2956_v1 = vmul.f32 6.0, %v2952_v6  ;;  %vm2976_vm10 = vcmp.ge.f32.partialorder %v2952_v6, 1.0  ;;  %vm2984_vm11 = vcmp.le.f32.partialorder %v2952_v6, 4.0 }
 0x1c6   : > { %9376 = vmatprep.subr.bf16.mxu0 %v9957_v51  ;;  %vm2980_vm4 = vmand %vm2972_vm8, %vm2976_vm10 }
 0x1c7   : > { %vm2994_vm1 = vcmp.ge.f32.partialorder %v2962_v0, 1.0  ;;  %vm3002_vm15 = vcmp.le.f32.partialorder %v2962_v0, 4.0 }
 0x1c8   : > { %9193 = vmatmul.mubr.bf16.vlgmr.msra.gmra.mrb[4].mxu0 %v4093_v5  ;;  %v2955_v5 = vfloor.f32 %v2951_v61  ;;  %vm11440_vm9 = vmand %vm2990_vm3, %vm2994_vm1  ;;  %vm2977_vm1 = vcmp.ge.f32.partialorder %v2953_v7, 1.0 }
 0x1c9   : > { %9377 = vmatpush3.bf16.msra.mxu0 %v9957_v51  ;;  %v2957_v51 = vmul.f32 6.0, %v2953_v7  ;;  %vm2973_vm3 = vmand %vm2965_vm0, %vm2969_vm5  ;;  %vm2985_vm0 = vcmp.le.f32.partialorder %v2953_v7, 4.0 }
 0x1ca   : > { %9378 = vmatprep.subr.bf16.mxu0 %v9959_v36  ;;  %v2959_v14 = vmul.f32 6.0, %v2955_v5  ;;  %vm2979_vm14 = vcmp.ge.f32.partialorder %v2955_v5, 1.0  ;;  %vm2987_vm6 = vcmp.le.f32.partialorder %v2955_v5, 4.0  ;;  %vm11452_vm2 = vmand %vm11440_vm9, %vm3002_vm15 }
 0x1cb   : > { %vm2983_vm7 = vmand %vm2975_vm13, %vm2979_vm14 }
 0x1cc   : > { %vm2981_vm12 = vmand %vm2973_vm3, %vm2977_vm1 }
 0x1cd   : > { %9379 = vmatpush3.bf16.msra.mxu0 %v9959_v36  ;;  %v11448_v36 = vadd.s32 %v4224_v46, %v10868_v63  ;;  %vm2991_vm5 = vmand %vm2983_vm7, %vm2987_vm6 }
 0x1ce   : > { %9380 = vmatprep.subr.bf16.mxu0 %v9961_v26  ;;  %vm2988_vm14 = vmand %vm2980_vm4, %vm2984_vm11 }
 0x1cf   : > { %vm2989_vm15 = vmand %vm2981_vm12, %vm2985_vm0  ;;  %vm12326_vm0 = vsmask.f32 7424 }
 0x1d1   : > { %9381 = vmatpush3.bf16.msra.mxu0 %v9961_v26  ;;  %v2963_v26 = vsub.f32 %v2947_v57, %v2959_v14 }
 0x1d2   : > { %9382 = vmatprep.subr.bf16.mxu0 %v9963_v44 }
 0x1d3   : > { %vm2995_vm13 = vcmp.ge.f32.partialorder %v2963_v26, 1.0  ;;  %vm3003_vm10 = vcmp.le.f32.partialorder %v2963_v26, 4.0 }
 0x1d4   : > { %vm2999_vm8 = vmand %vm2991_vm5, %vm2995_vm13  ;;  %vm4265_vm5 = vcmp.ge.s32.totalorder %v11445_v37, 0  ;;  %vm4269_vm13 = vcmp.lt.s32.totalorder %v11445_v37, 72 }
 0x1d5   : > { %9383 = vmatpush3.bf16.msra.mxu0 %v9963_v44  ;;  %v2960_v44 = vsub.f32 %v2944_v27, %v2956_v1  ;;  %vm3007_vm4 = vmand %vm2999_vm8, %vm3003_vm10 }
 0x1d6   : > { %9384 = vmatprep.subr.bf16.mxu0 %v9965_v53  ;;  %v7544_v15 = vsel %vm3007_vm4, 1.0, %v10107_v30  ;;  %vm12327_vm10 = vmmov %vm12326_vm0 }
 0x1d7   : > { %vm2992_vm9 = vcmp.ge.f32.partialorder %v2960_v44, 1.0  ;;  %vm3000_vm3 = vcmp.le.f32.partialorder %v2960_v44, 4.0 }
 0x1d8   : > { %vm2996_vm1 = vmand %vm2988_vm14, %vm2992_vm9  ;;  %vm4266_vm14 = vcmp.ge.s32.totalorder %v11448_v36, 0  ;;  %vm4270_vm9 = vcmp.lt.s32.totalorder %v11448_v36, 72 }
 0x1d9   : > { %9385 = vmatpush3.bf16.msra.mxu0 %v9965_v53  ;;  %v12323_v53 = vmov 0  ;;  %vm3004_vm11 = vmand %vm2996_vm1, %vm3000_vm3 }
 0x1da   : > { %9386 = vmatprep.subr.bf16.mxu0 %v9967_v20  ;;  %v12324_v53 = vsel %vm11452_vm2, 4294967295, %v12323_v53  ;;  %v7541_v49 = vsel %vm3004_vm11, 1.0, %v10107_v30  ;;  %vm4274_vm1 = vmand %vm4266_vm14, %vm4270_vm9 }
 0x1dd   : > { %9387 = vmatpush3.bf16.msra.mxu0 %v9967_v20  ;;  %v2961_v20 = vsub.f32 %v2945_v60, %v2957_v51 }
 0x1de   : > { %9388 = vmatprep.subr.bf16.mxu0 %v9969_v18 }
 0x1df   : > { %vm2993_vm2 = vcmp.ge.f32.partialorder %v2961_v20, 1.0  ;;  %vm3001_vm7 = vcmp.le.f32.partialorder %v2961_v20, 4.0 }
 0x1e0   : > { %vm2997_vm6 = vmand %vm2989_vm15, %vm2993_vm2  ;;  %vm12325_vm2 = vnez %v12324_v53 }
 0x1e1   : > { %9389 = vmatpush3.bf16.msra.mxu0 %v9969_v18  ;;  %v4229_v18 = vcvt.s32.f32 %v11445_v37  ;;  %vm3005_vm12 = vmand %vm2997_vm6, %vm3001_vm7  ;;  %v7543_v62 = vsel %vm12325_vm2, 1.0, %v10107_v30 }
 0x1e2   : > { %9390 = vmatprep.subr.bf16.mxu0 %v9971_v22  ;;  %v7542_v55 = vsel %vm3005_vm12, 1.0, %v10107_v30  ;;  %vm4273_vm15 = vmand %vm4265_vm5, %vm4269_vm13 }
 0x1e3   : > { %v4233_v23 = vmul.f32 0.027777778, %v4229_v18 }
 0x1e5   : > { %9391 = vmatpush3.bf16.msra.mxu0 %v9971_v22  ;;  %v4230_v22 = vcvt.s32.f32 %v11448_v36  ;;  %v4237_v24 = vfloor.f32 %v4233_v23  ;;  %v7746_v36 = vld [vmem:[%s12276_s4] ss:$0 sm:$0xff] }
 0x1e6   : > { %9396 = vmatprep.subr.bf16.mxu0 %v11431_v58 }
 0x1e7   : > { %v4234_v34 = vmul.f32 0.027777778, %v4230_v22  ;;  %v4241_v31 = vmul.f32 36.0, %v4237_v24  ;;  %v4375_v24 = vor.u32 %v11290_v29, %v4371_v41  ;;  %v9960_v29 = vld [vmem:[%s12277_s5 + $0x10] sm:$0xff]   ;;  %v7745_v41 = vld [vmem:[%s12275_s3] ss:$0 sm:$0xff] }
 0x1e9   : > { %v4238_v48 = vfloor.f32 %v4234_v34  ;;  %v4245_v61 = vsub.f32 %v4229_v18, %v4241_v31 }
 0x1eb   : > { %v4249_v7 = vmul.f32 0.16666667, %v4245_v61 }
 0x1ed   : > { %v4253_v23 = vfloor.f32 %v4249_v7 }
 0x1ef   : > { %vm4277_vm8 = vcmp.ge.f32.partialorder %v4253_v23, 1.0  ;;  %vm4285_vm7 = vcmp.le.f32.partialorder %v4253_v23, 4.0 }
 0x1f0   : > { %vm4281_vm6 = vmand %vm4273_vm15, %vm4277_vm8 }
 0x1f1   : > { %vm4289_vm12 = vmand %vm4281_vm6, %vm4285_vm7  ;;  %vm12331_vm7 = vcmask 1044480  }
 0x279   : > { %v9014_v25 = vpop.f32.mrb[4].mxu1 }
 0x27a   : > { %v2905_v12 = vmul.f32 %v9014_v25, %v11146_v42  ;;  %v2877_v3 = vpop.f32.mrb[5].mxu1 }
 0x27b   : > { %v2903_v52 = vmul.f32 %v11146_v42, %v2877_v3  ;;  %v9015_v21 = vpop.f32.mrb[6].mxu1 }
 0x27c   : > { %v2916_v11 = vadd.f32 %v11161_v40, %v2905_v12  ;;  %v2906_v32 = vmul.f32 %v9015_v21, %v11146_v42  ;;  %v2880_v17 = vpop.f32.mrb[7].mxu1  ;;  %v4257_v21 = vmul.f32 6.0, %v4253_v23  ;;  %v9979_v23 = vld [vmem:[%s12277_s5 + $0x18] sm:$0xff]  }
 0x27d   : > { %v2914_v45 = vadd.f32 %v11161_v40, %v2903_v52  ;;  %v2904_v38 = vmul.f32 %v11146_v42, %v2880_v17  ;;  %v4242_v42 = vmul.f32 36.0, %v4238_v48  ;;  %v9958_v17 = vld [vmem:[%s12277_s5 + $0x8] sm:$0xff]  }
 0x27e   : > { %v2920_v47 = vmax.f32 %v2916_v11, 0.0  ;;  %v2917_v35 = vadd.f32 %v11161_v40, %v2906_v32  ;;  %v4261_v48 = vsub.f32 %v4245_v61, %v4257_v21  ;;  %v4577_v61 = vld [vmem:[#allocation3] sm:$0xfe]  ;;  %v9985_v21 = vld [vmem:[%s12277_s5 + $0x30] sm:$0xff]  }
 0x27f   : > { %v2918_v16 = vmax.f32 %v2914_v45, 0.0  ;;  %v2915_v39 = vadd.f32 %v11161_v40, %v2904_v38  ;;  %v4246_v0 = vsub.f32 %v4230_v22, %v4242_v42 }
 0x280   : > { %v2921_v43 = vmax.f32 %v2917_v35, 0.0  ;;  %v3018_v27 = vmul.f32 %v7543_v62, %v2920_v47  ;;  %vm4293_vm2 = vcmp.ge.f32.partialorder %v4261_v48, 1.0  ;;  %vm4301_vm14 = vcmp.le.f32.partialorder %v4261_v48, 4.0  ;;  %v9964_v35 = vld [vmem:[%s12277_s5 + $0x20] sm:$0xff]  }
 0x281   : > { %v2919_v57 = vmax.f32 %v2915_v39, 0.0  ;;  %v3016_v59 = vmul.f32 %v7541_v49, %v2918_v16  ;;  %v4250_v14 = vmul.f32 0.16666667, %v4246_v0  ;;  %vm4297_vm13 = vmand %vm4289_vm12, %vm4293_vm2  ;;  %vm12334_vm12 = vsmask.f32 4352 }
 0x282   : > { %v3019_v46 = vmul.f32 %v7544_v15, %v2921_v43  ;;  %vm4305_vm8 = vmand %vm4297_vm13, %vm4301_vm14  ;;  %vm12338_vm13 = vcmask 1043456  }
 0x283   : > { %v3017_v60 = vmul.f32 %v7542_v55, %v2919_v57  ;;  %v4254_v12 = vfloor.f32 %v4250_v14  ;;  %v7747_v49 = vsel %vm4305_vm8, 1.0, %v10107_v30  ;;  %v9966_v55 = vld [vmem:[%s12277_s5 + $0x28] sm:$0xff]   ;;  %vm12342_vm8 = vcmask 1041408  }
 0x284   : > { %v11472_v13 = vpack.c.bf16 %v3019_v46, %v3018_v27  ;;  %v9968_v46 = vld [vmem:[%s12277_s5 + $0x30] sm:$0xff]  }
 0x285   : > { %v11474_v2 = vpack.c.bf16 %v3017_v60, %v3016_v59  ;;  %v4258_v32 = vmul.f32 6.0, %v4254_v12  ;;  %vm4278_vm3 = vcmp.ge.f32.partialorder %v4254_v12, 1.0  ;;  %vm4286_vm11 = vcmp.le.f32.partialorder %v4254_v12, 4.0  ;;  %v9970_v60 = vld [vmem:[%s12277_s5 + $0x38] sm:$0xff]   ;;  %v9983_v12 = vld [vmem:[%s12277_s5 + $0x28] sm:$0xff]  }
 0x286   : > { %3023 = vst [vmem:[#allocation3 + $0x18] sm:$0xff] %v11472_v13  ;;  %v11478_v40 = vshll.u32 %v11472_v13, 16  ;;  %v11481_v5 = vshrl.u32 %v11472_v13, 16  ;;  %vm4282_vm4 = vmand %vm4274_vm1, %vm4278_vm3  ;;  %vm12328_vm1 = vcmask 1046528   ;;  %vm12329_vm3 = vsmask.f32 7424 }
 0x287   : > { %3022 = vst [vmem:[#allocation3 + $0x10] sm:$0xff] %v11474_v2  ;;  %v5728_v6 = vshll.u32 %v11474_v2, 16  ;;  %v5726_v26 = vshrl.u32 %v11474_v2, 16  ;;  %v4262_v50 = vsub.f32 %v4246_v0, %v4258_v32  ;;  %v9972_v0 = vld [vmem:[%s12277_s5 + $0x80] sm:$0xff]   ;;  %v11599_v32 = vld [vmem:[#allocation3] sm:$0xf8]  ;;  %vm12330_vm6 = vmmov %vm12328_vm1 }
 0x288   : > { %v6222_v28 = vrot.slane %v11481_v5, 3  ;;  %v6223_v1 = vrot.slane %v11478_v40, 4  ;;  %v6618_v51 = vrot.slane %v11481_v5, 6  ;;  %v6619_v53 = vrot.slane %v11478_v40, 7  ;;  %vm12335_vm2 = vmmov %vm12328_vm1 }
 0x289   : > { %v5730_v44 = vrot.slane %v5728_v6, 1  ;;  %v5735_v22 = vrot.slane %v11478_v40, 1  ;;  %vm4294_vm5 = vcmp.ge.f32.partialorder %v4262_v50, 1.0  ;;  %vm4302_vm15 = vcmp.le.f32.partialorder %v4262_v50, 4.0  ;;  %v9976_v40 = vld [vmem:[%s12277_s5 + $0x90] sm:$0xff]   ;;  %v9989_v50 = vld [vmem:[%s12277_s5 + $0x80] sm:$0xff]  }
 0x28a   : > { %v11490_v20 = vor.u32 %v6223_v1, %v6222_v28  ;;  %v11493_v34 = vor.u32 %v6619_v53, %v6618_v51  ;;  %v4598_v6 = vrot.slane %v4577_v61, 1  ;;  %v4599_v28 = vrot.slane %v11275_v19, 1  ;;  %v9974_v1 = vld [vmem:[%s12277_s5 + $0x88] sm:$0xff]  }
 0x28b   : > { %v5731_v18 = vor.u32 %v5730_v44, %v5726_v26  ;;  %v5739_v51 = vor.u32 %v11481_v5, %v5735_v22  ;;  %v9975_v53 = vld [vmem:[%s12277_s5 + $0x8] sm:$0xff]   ;;  %v9977_v5 = vld [vmem:[%s12277_s5 + $0x10] sm:$0xff]  }
 0x28c   : > { %v4600_v44 = vsel %vm12328_vm1, %v4598_v6, %v4599_v28  ;;  %v10004_v6 = vld [vmem:[%s12277_s5 + $0x100] sm:$0xff]  }
 0x28d   : > { %v5736_v25 = vsel %vm12326_vm0, %v5731_v18, %v5735_v22  ;;  %vm4290_vm0 = vmand %vm4282_vm4, %vm4286_vm11  ;;  %v9978_v22 = vld [vmem:[%s12277_s5 + $0x98] sm:$0xff]  }
 0x28e   : > { %v11498_v3 = vld [vmem:[#allocation3 + $0x10] sm:$0x1]  ;;  %9392 = vmatprep.mubr.bf16.mxu0 %v5736_v25  ;;  %vm4298_vm9 = vmand %vm4290_vm0, %vm4294_vm5  ;;  %v5941_v48 = vld [vmem:[#allocation3 + $0x10] sm:$0xfe] }
 0x28f   : > { %v4377_v52 = vshll.u32 %v11498_v3, 16  ;;  %v9982_v25 = vld [vmem:[%s12277_s5 + $0xa8] sm:$0xff]   ;;  %vm12332_vm4 = vmmov %vm12328_vm1 }
 0x290   : > { %vm12333_vm11 = vmmov %vm12331_vm7 }
 0x291   : > { %v4379_v11 = vrot.slane %v4377_v52, 1  ;;  %v9984_v52 = vld [vmem:[%s12277_s5 + $0xb0] sm:$0xff]   ;;  %vm12336_vm0 = vmmov %vm12331_vm7 }
 0x292   : > { %vm12337_vm5 = vmmov %vm12334_vm12 }
 0x293   : > { %v4380_v37 = vsel %vm12327_vm10, %v4375_v24, %v4379_v11  ;;  %vm4306_vm10 = vmand %vm4298_vm9, %vm4302_vm15  ;;  %v9986_v24 = vld [vmem:[%s12277_s5 + $0xb8] sm:$0xff]  }
 0x294   : > { %9213 = vmatmul.mubr.bf16.vlgmr.msra.gmra.mrb[8].mxu1 %v4380_v37  ;;  %v7748_v43 = vsel %vm4306_vm10, 1.0, %v10107_v30  ;;  %v9987_v11 = vld [vmem:[%s12277_s5 + $0x38] sm:$0xff]   ;;  %v4601_v37 = vrot.slane %v11498_v3, 1  ;;  %vm12339_vm14 = vmmov %vm12336_vm0 }
 0x295   : > { %9217 = vmatpush3.bf16.msra.mxu1 %v11404_v9  ;;  %9232 = vmatprep.mubr.bf16.mxu1 %v11280_v56  ;;  %v9962_v56 = vld [vmem:[%s12277_s5 + $0x18] sm:$0xff]   ;;  %vm12340_vm9 = vmmov %vm12337_vm5 }
 0x296   : > { %9218 = vmatprep.subr.bf16.mxu1 %v9958_v17  ;;  %v4602_v3 = vsel %vm12330_vm6, %v4599_v28, %v4601_v37  ;;  %v11668_v28 = vld [vmem:[#allocation3 + $0x10] sm:$0xf8]  ;;  %vm12341_vm15 = vmmov %vm12338_vm13  ;;  %vm12346_vm6 = vsmask.f32 1280 }
 0x297   : > { %vm12343_vm10 = vmmov %vm12337_vm5 }
 0x298   : > { %vm12344_vm1 = vmmov %vm12338_vm13 }
 0x299   : > { %9219 = vmatpush3.bf16.msra.mxu1 %v9958_v17  ;;  %v9988_v17 = vld [vmem:[%s12277_s5 + $0xc0] sm:$0xff]  }
 0x29a   : > { %9220 = vmatprep.subr.bf16.mxu1 %v9960_v29 }
 0x29b   : > { %v9194_v9 = vpop.f32.mrb[4].mxu0 }
 0x29c   : > { %v4178_v45 = vpop.f32.mrb[5].mxu0  ;;  %v9990_v9 = vld [vmem:[%s12277_s5 + $0xc8] sm:$0xff]  }
 0x29d   : > { %v4204_v38 = vmul.f32 %v7745_v41, %v4178_v45  ;;  %v9195_v47 = vpop.f32.mrb[6].mxu0  ;;  %9221 = vmatpush3.bf16.msra.mxu1 %v9960_v29  ;;  %v4727_v29 = vrot.slane %v11599_v32, 3  ;;  %v5962_v45 = vrot.slane %v11472_v13, 1 }
 0x29e   : > { %v4181_v62 = vpop.f32.mrb[7].mxu0  ;;  %9222 = vmatprep.subr.bf16.mxu1 %v9962_v56 }
 0x29f   : > { %v4215_v15 = vadd.f32 %v7746_v36, %v4204_v38  ;;  %v4205_v16 = vmul.f32 %v7745_v41, %v4181_v62  ;;  %v4728_v41 = vrot.slane %v11275_v19, 3  ;;  %v9991_v38 = vld [vmem:[%s12277_s5 + $0x88] sm:$0xff]   ;;  %v9992_v62 = vld [vmem:[%s12277_s5 + $0xd0] sm:$0xff]  }
 0x2a1   : > { %v4219_v39 = vmax.f32 %v4215_v15, 0.0  ;;  %v4216_v31 = vadd.f32 %v7746_v36, %v4205_v16  ;;  %9223 = vmatpush3.bf16.msra.mxu1 %v9962_v56  ;;  %v5961_v56 = vrot.slane %v5941_v48, 1  ;;  %v4729_v36 = vsel %vm12331_vm7, %v4727_v29, %v4728_v41  ;;  %v9994_v15 = vld [vmem:[%s12277_s5 + $0xd8] sm:$0xff]   ;;  %v10017_v48 = vld [vmem:[%s12277_s5 + $0xf0] sm:$0xff]   ;;  %vm12347_vm7 = vmmov %vm12344_vm1 }
 0x2a2   : > { %9224 = vmatprep.subr.bf16.mxu1 %v9964_v35  ;;  %v9995_v16 = vld [vmem:[%s12277_s5 + $0x98] sm:$0xff]   ;;  %v6215_v29 = vshrl.u32 %v11668_v28, 16 }
 0x2a3   : > { %v4220_v42 = vmax.f32 %v4216_v31, 0.0  ;;  %v4317_v57 = vmul.f32 %v7747_v49, %v4219_v39  ;;  %v5963_v47 = vsel %vm12332_vm4, %v5961_v56, %v5962_v45  ;;  %v9996_v39 = vld [vmem:[%s12277_s5 + $0xe0] sm:$0xff]   ;;  %v9998_v49 = vld [vmem:[%s12277_s5 + $0xe8] sm:$0xff]  }
 0x2a4   : > { %v9997_v31 = vld [vmem:[%s12277_s5 + $0xa0] sm:$0xff]  }
 0x2a5   : > { %v4318_v27 = vmul.f32 %v7748_v43, %v4220_v42  ;;  %9225 = vmatpush3.bf16.msra.mxu1 %v9964_v35  ;;  %v9993_v35 = vld [vmem:[%s12277_s5 + $0x90] sm:$0xff]   ;;  %v9999_v43 = vld [vmem:[%s12277_s5 + $0xa8] sm:$0xff]  }
 0x2a6   : > { %9226 = vmatprep.subr.bf16.mxu1 %v9966_v55  ;;  %v10001_v42 = vld [vmem:[%s12277_s5 + $0xb0] sm:$0xff]  }
 0x2a7   : > { %v4321_v59 = vpack.c.bf16 %v4318_v27, %v4317_v57  ;;  %v4854_v57 = vshrl.u32 %v11599_v32, 16  ;;  %v4857_v27 = vshll.u32 %v11599_v32, 16  ;;  %v10016_v32 = vld [vmem:[%s12277_s5 + $0x130] sm:$0xff]  }
 0x2a9   : > { %4323 = vst [vmem:[#allocation3 + $0x20] sm:$0xff] %v4321_v59  ;;  %9227 = vmatpush3.bf16.msra.mxu1 %v9966_v55  ;;  %v10000_v55 = vld [vmem:[%s12277_s5 + $0xf0] sm:$0xff]   ;;  %v10003_v59 = vld [vmem:[%s12277_s5 + $0xb8] sm:$0xff]   ;;  %v4856_v61 = vrot.slane %v4854_v57, 3 }
 0x2aa   : > { %9228 = vmatprep.subr.bf16.mxu1 %v9968_v46 }
 0x2ad   : > { %9229 = vmatpush3.bf16.msra.mxu1 %v9968_v46  ;;  %v10002_v46 = vld [vmem:[%s12277_s5 + $0xf8] sm:$0xff]  }
 0x2ae   : > { %9230 = vmatprep.subr.bf16.mxu1 %v9970_v60 }
 0x2b0   : > { %v11543_v7 = vld [vmem:[#allocation3 + $0x20] sm:$0x1] }
 0x2b1   : > { %9231 = vmatpush3.bf16.msra.mxu1 %v9970_v60  ;;  %v5741_v14 = vshll.u32 %v11543_v7, 16  ;;  %v4707_v60 = vld [vmem:[#allocation3 + $0x10] sm:$0x7] }
 0x2b2   : > { %9236 = vmatprep.subr.bf16.mxu1 %v9972_v0 }
 0x2b3   : > { %v5743_v26 = vrot.slane %v5741_v14, 1  ;;  %v4730_v14 = vrot.slane %v4707_v60, 3  ;;  %v10025_v60 = vld [vmem:[%s12277_s5 + $0x110] sm:$0xff]  }
 0x2b4   : > { %9233 = vmatmul.mubr.bf16.vlgmr.msra.gmra.mrb[8].mxu1 %v11275_v19 }
 0x2b5   : > { %9237 = vmatpush3.bf16.msra.mxu1 %v9972_v0  ;;  %9252 = vmatprep.mubr.bf16.mxu1 %v4600_v44  ;;  %v5744_v18 = vsel %vm12329_vm3, %v5739_v51, %v5743_v26  ;;  %v4859_v0 = vrot.slane %v4857_v27, 4  ;;  %v5964_v26 = vrot.slane %v11543_v7, 1  ;;  %v6089_v44 = vrot.slane %v11668_v28, 3  ;;  %v10007_v7 = vld [vmem:[%s12277_s5 + $0xc8] sm:$0xff]   ;;  %vm12345_vm3 = vmmov %vm12342_vm8 }
 0x2b6   : > { %9393 = vmatmul.mubr.bf16.vlgmr.msra.gmra.mrb[8].mxu0 %v5744_v18  ;;  %9238 = vmatprep.subr.bf16.mxu1 %v9974_v1  ;;  %v4731_v18 = vsel %vm12333_vm11, %v4728_v41, %v4730_v14  ;;  %v6218_v41 = vshll.u32 %v11668_v28, 16  ;;  %v10023_v27 = vld [vmem:[%s12277_s5 + $0x108] sm:$0xff]   ;;  %v10029_v14 = vld [vmem:[%s12277_s5 + $0x120] sm:$0xff]   ;;  %vm12348_vm4 = vmmov %vm12345_vm3 }
 0x2b7   : > { %9397 = vmatpush3.bf16.msra.mxu0 %v11431_v58  ;;  %9412 = vmatprep.mubr.bf16.mxu0 %v11474_v2  ;;  %v9980_v58 = vld [vmem:[%s12277_s5 + $0xa0] sm:$0xff]   ;;  %v4860_v51 = vor.u32 %v4859_v0, %v4856_v61  ;;  %v10026_v61 = vld [vmem:[%s12277_s5 + $0x158] sm:$0xff]   ;;  %v10030_v28 = vld [vmem:[%s12277_s5 + $0x168] sm:$0xff]  }
 0x2b8   : > { %9398 = vmatprep.subr.bf16.mxu0 %v9975_v53  ;;  %v9981_v2 = vld [vmem:[%s12277_s5 + $0x20] sm:$0xff]   ;;  %v10027_v0 = vld [vmem:[%s12277_s5 + $0x118] sm:$0xff]   ;;  %vm12349_vm11 = vmmov %vm12346_vm6 }
 0x2b9   : > { %9239 = vmatpush3.bf16.msra.mxu1 %v9974_v1  ;;  %v10005_v1 = vld [vmem:[%s12277_s5 + $0xc0] sm:$0xff]  }
 0x2ba   : > { %9240 = vmatprep.subr.bf16.mxu1 %v9976_v40 }
 0x2bb   : > { %9399 = vmatpush3.bf16.msra.mxu0 %v9975_v53  ;;  %v10006_v53 = vld [vmem:[%s12277_s5 + $0x108] sm:$0xff]  }
 0x2bc   : > { %9400 = vmatprep.subr.bf16.mxu0 %v9977_v5 }
 0x2bd   : > { %9241 = vmatpush3.bf16.msra.mxu1 %v9976_v40  ;;  %v4864_v40 = vsel %vm12334_vm12, %v4860_v51, %v11303_v10  ;;  %v10032_v51 = vld [vmem:[%s12277_s5 + $0x170] sm:$0xff]   ;;  %vm12350_vm12 = vcmask 1040384  }
 0x2be   : > { %9242 = vmatprep.subr.bf16.mxu1 %v9978_v22 }
 0x2bf   : > { %9401 = vmatpush3.bf16.msra.mxu0 %v9977_v5  ;;  %v6090_v5 = vrot.slane %v11472_v13, 3 }
 0x2c0   : > { %9402 = vmatprep.subr.bf16.mxu0 %v9979_v23 }
 0x2c1   : > { %9243 = vmatpush3.bf16.msra.mxu1 %v9978_v22  ;;  %v5965_v22 = vsel %vm12335_vm2, %v5962_v45, %v5964_v26  ;;  %v6091_v19 = vsel %vm12336_vm0, %v6089_v44, %v6090_v5  ;;  %v10020_v45 = vld [vmem:[%s12277_s5 + $0x140] sm:$0xff]   ;;  %v11787_v26 = vld [vmem:[#allocation3 + $0x20] sm:$0xf]  ;;  %v10033_v44 = vld [vmem:[%s12277_s5 + $0x130] sm:$0xff]  }
 0x2c2   : > { %9244 = vmatprep.subr.bf16.mxu1 %v9980_v58  ;;  %vm12351_vm2 = vmmov %vm12345_vm3 }
 0x2c3   : > { %9403 = vmatpush3.bf16.msra.mxu0 %v9979_v23  ;;  %v10008_v23 = vld [vmem:[%s12277_s5 + $0x110] sm:$0xff]   ;;  %vm12352_vm0 = vmmov %vm12346_vm6 }
 0x2c4   : > { %9404 = vmatprep.subr.bf16.mxu0 %v9981_v2 }
 0x2c5   : > { %9245 = vmatpush3.bf16.msra.mxu1 %v9980_v58  ;;  %v10009_v58 = vld [vmem:[%s12277_s5 + $0xd0] sm:$0xff]  }
 0x2c6   : > { %9246 = vmatprep.subr.bf16.mxu1 %v9982_v25 }
 0x2c7   : > { %9405 = vmatpush3.bf16.msra.mxu0 %v9981_v2  ;;  %v10010_v2 = vld [vmem:[%s12277_s5 + $0x118] sm:$0xff]  }
 0x2c8   : > { %9406 = vmatprep.subr.bf16.mxu0 %v9983_v12 }
 0x2c9   : > { %9247 = vmatpush3.bf16.msra.mxu1 %v9982_v25  ;;  %v10011_v25 = vld [vmem:[%s12277_s5 + $0xd8] sm:$0xff]  }
 0x2ca   : > { %9248 = vmatprep.subr.bf16.mxu1 %v9984_v52 }
 0x2cb   : > { %9407 = vmatpush3.bf16.msra.mxu0 %v9983_v12  ;;  %v10012_v12 = vld [vmem:[%s12277_s5 + $0x120] sm:$0xff]  }
 0x2cc   : > { %9408 = vmatprep.subr.bf16.mxu0 %v9985_v21 }
 0x2cd   : > { %9249 = vmatpush3.bf16.msra.mxu1 %v9984_v52  ;;  %v10013_v52 = vld [vmem:[%s12277_s5 + $0xe0] sm:$0xff]  }
 0x2ce   : > { %9250 = vmatprep.subr.bf16.mxu1 %v9986_v24 }
 0x2cf   : > { %9409 = vmatpush3.bf16.msra.mxu0 %v9985_v21  ;;  %v10014_v21 = vld [vmem:[%s12277_s5 + $0x128] sm:$0xff]  }
 0x2d0   : > { %9410 = vmatprep.subr.bf16.mxu0 %v9987_v11 }
 0x2d1   : > { %9251 = vmatpush3.bf16.msra.mxu1 %v9986_v24  ;;  %v10015_v24 = vld [vmem:[%s12277_s5 + $0xe8] sm:$0xff]  }
 0x2d2   : > { %9256 = vmatprep.subr.bf16.mxu1 %v9988_v17 }
 0x2d3   : > { %9411 = vmatpush3.bf16.msra.mxu0 %v9987_v11  ;;  %v11717_v11 = vld [vmem:[#allocation3 + $0x10] sm:$0xf] }
 0x2d4   : > { %9253 = vmatmul.mubr.bf16.vlgmr.msra.gmra.mrb[8].mxu1 %v4602_v3  ;;  %9416 = vmatprep.subr.bf16.mxu0 %v9989_v50  ;;  %v4869_v37 = vshll.u32 %v11717_v11, 16  ;;  %v10019_v3 = vld [vmem:[%s12277_s5 + $0xf8] sm:$0xff]  }
 0x2d5   : > { %9257 = vmatpush3.bf16.msra.mxu1 %v9988_v17  ;;  %9272 = vmatprep.mubr.bf16.mxu1 %v4729_v36  ;;  %v4866_v17 = vshrl.u32 %v11717_v11, 16  ;;  %v4977_v36 = vld [vmem:[#allocation3] sm:$0xf0] }
 0x2d6   : > { %9413 = vmatmul.mubr.bf16.vlgmr.msra.gmra.mrb[8].mxu0 %v11472_v13  ;;  %9258 = vmatprep.subr.bf16.mxu1 %v9990_v9 }
 0x2d7   : > { %9417 = vmatpush3.bf16.msra.mxu0 %v9989_v50  ;;  %9432 = vmatprep.mubr.bf16.mxu0 %v5963_v47  ;;  %v10018_v50 = vld [vmem:[%s12277_s5 + $0x138] sm:$0xff]   ;;  %v4868_v56 = vrot.slane %v4866_v17, 3  ;;  %v6217_v47 = vrot.slane %v6215_v29, 3 }
 0x2d8   : > { %9418 = vmatprep.subr.bf16.mxu0 %v9991_v38 }
 0x2d9   : > { %9259 = vmatpush3.bf16.msra.mxu1 %v9990_v9  ;;  %v4871_v9 = vrot.slane %v4869_v37, 4  ;;  %v6358_v37 = vrot.slane %v11472_v13, 4 }
 0x2da   : > { %9260 = vmatprep.subr.bf16.mxu1 %v9992_v62 }
 0x2db   : > { %9419 = vmatpush3.bf16.msra.mxu0 %v9991_v38  ;;  %v6070_v38 = vld [vmem:[#allocation3 + $0x20] sm:$0x7] }
 0x2dc   : > { %9420 = vmatprep.subr.bf16.mxu0 %v9993_v35 }
 0x2dd   : > { %9261 = vmatpush3.bf16.msra.mxu1 %v9992_v62  ;;  %v6220_v62 = vrot.slane %v6218_v41, 4  ;;  %v10040_v41 = vld [vmem:[%s12277_s5 + $0x190] sm:$0xff]  }
 0x2de   : > { %9262 = vmatprep.subr.bf16.mxu1 %v9994_v15 }
 0x2df   : > { %9421 = vmatpush3.bf16.msra.mxu0 %v9993_v35  ;;  %v4872_v35 = vor.u32 %v4871_v9, %v4868_v56  ;;  %v10041_v56 = vld [vmem:[%s12277_s5 + $0x150] sm:$0xff]   ;;  %v10043_v9 = vld [vmem:[%s12277_s5 + $0x158] sm:$0xff]  }
 0x2e0   : > { %9422 = vmatprep.subr.bf16.mxu0 %v9995_v16 }
 0x2e1   : > { %9263 = vmatpush3.bf16.msra.mxu1 %v9994_v15  ;;  %v10021_v15 = vld [vmem:[%s12277_s5 + $0x100] sm:$0xff]  }
 0x2e2   : > { %9264 = vmatprep.subr.bf16.mxu1 %v9996_v39 }
 0x2e3   : > { %9423 = vmatpush3.bf16.msra.mxu0 %v9995_v16  ;;  %v4997_v16 = vrot.slane %v4977_v36, 4  ;;  %v10045_v36 = vld [vmem:[%s12277_s5 + $0x160] sm:$0xff]  }
 0x2e4   : > { %9424 = vmatprep.subr.bf16.mxu0 %v9997_v31 }
 0x2e5   : > { %9265 = vmatpush3.bf16.msra.mxu1 %v9996_v39  ;;  %v6092_v39 = vrot.slane %v6070_v38, 3  ;;  %v10047_v38 = vld [vmem:[%s12277_s5 + $0x168] sm:$0xff]  }
 0x2e6   : > { %9266 = vmatprep.subr.bf16.mxu1 %v9998_v49 }
 0x2e7   : > { %9425 = vmatpush3.bf16.msra.mxu0 %v9997_v31  ;;  %v11741_v31 = vld [vmem:[#allocation3 + $0x8] sm:$0xff] }
 0x2e8   : > { %9426 = vmatprep.subr.bf16.mxu0 %v9999_v43 }
 0x2e9   : > { %9267 = vmatpush3.bf16.msra.mxu1 %v9998_v49  ;;  %v4998_v49 = vrot.slane %v11741_v31, 4 }
 0x2ea   : > { %9268 = vmatprep.subr.bf16.mxu1 %v10000_v55 }
 0x2eb   : > { %9427 = vmatpush3.bf16.msra.mxu0 %v9999_v43  ;;  %v6221_v43 = vor.u32 %v6220_v62, %v6217_v47  ;;  %v4999_v57 = vsel %vm12338_vm13, %v4997_v16, %v4998_v49  ;;  %v10048_v47 = vld [vmem:[%s12277_s5 + $0x1b0] sm:$0xff]   ;;  %v10050_v16 = vld [vmem:[%s12277_s5 + $0x1b8] sm:$0xff]   ;;  %vm12354_vm13 = vmmov %vm12352_vm0 }
 0x2ec   : > { %9428 = vmatprep.subr.bf16.mxu0 %v10001_v42  ;;  %v10049_v62 = vld [vmem:[%s12277_s5 + $0x170] sm:$0xff]  }
 0x2ed   : > { %9269 = vmatpush3.bf16.msra.mxu1 %v10000_v55  ;;  %v10022_v55 = vld [vmem:[%s12277_s5 + $0x148] sm:$0xff]  }
 0x2ee   : > { %9270 = vmatprep.subr.bf16.mxu1 %v10002_v46 }
 0x2ef   : > { %9429 = vmatpush3.bf16.msra.mxu0 %v10001_v42  ;;  %v4873_v42 = vsel %vm12337_vm5, %v11303_v10, %v4872_v35  ;;  %v6225_v10 = vsel %vm12340_vm9, %v6221_v43, %v11490_v20  ;;  %vm12353_vm5 = vmmov %vm12350_vm12 }
 0x2f0   : > { %9430 = vmatprep.subr.bf16.mxu0 %v10003_v59  ;;  %vm12356_vm9 = vmmov %vm12353_vm5 }
 0x2f1   : > { %9271 = vmatpush3.bf16.msra.mxu1 %v10002_v46  ;;  %v6093_v46 = vsel %vm12339_vm14, %v6090_v5, %v6092_v39  ;;  %v10035_v5 = vld [vmem:[%s12277_s5 + $0x138] sm:$0xff]   ;;  %vm12355_vm14 = vmmov %vm12353_vm5 }
 0x2f2   : > { %9276 = vmatprep.subr.bf16.mxu1 %v10004_v6  ;;  %v10051_v39 = vld [vmem:[%s12277_s5 + $0x178] sm:$0xff]  }
 0x2f3   : > { %9431 = vmatpush3.bf16.msra.mxu0 %v10003_v59  ;;  %v10024_v59 = vld [vmem:[%s12277_s5 + $0x150] sm:$0xff]  }
 0x2f4   : > { %9273 = vmatmul.mubr.bf16.vlgmr.msra.gmra.mrb[8].mxu1 %v4731_v18  ;;  %9436 = vmatprep.subr.bf16.mxu0 %v10005_v1  ;;  %v6230_v18 = vshll.u32 %v11787_v26, 16 }
 0x2f5   : > { %9277 = vmatpush3.bf16.msra.mxu1 %v10004_v6  ;;  %9292 = vmatprep.mubr.bf16.mxu1 %v4864_v40  ;;  %v10028_v6 = vld [vmem:[%s12277_s5 + $0x160] sm:$0xff]   ;;  %v10034_v40 = vld [vmem:[%s12277_s5 + $0x178] sm:$0xff]  }
 0x2f6   : > { %9433 = vmatmul.mubr.bf16.vlgmr.msra.gmra.mrb[8].mxu0 %v5965_v22  ;;  %9278 = vmatprep.subr.bf16.mxu1 %v10006_v53  ;;  %v6232_v22 = vrot.slane %v6230_v18, 4  ;;  %v10059_v18 = vld [vmem:[%s12277_s5 + $0x198] sm:$0xff]  }
 0x2f7   : > { %9437 = vmatpush3.bf16.msra.mxu0 %v10005_v1  ;;  %9452 = vmatprep.mubr.bf16.mxu0 %v6091_v19  ;;  %v10031_v1 = vld [vmem:[%s12277_s5 + $0x128] sm:$0xff]   ;;  %v11800_v19 = vld [vmem:[#allocation3] sm:$0xc0] }
 0x2f8   : > { %9438 = vmatprep.subr.bf16.mxu0 %v10007_v7  ;;  %v5253_v35 = vshrl.u32 %v11800_v19, 16 }
 0x2f9   : > { %9279 = vmatpush3.bf16.msra.mxu1 %v10006_v53  ;;  %v6227_v53 = vshrl.u32 %v11787_v26, 16 }
 0x2fa   : > { %9280 = vmatprep.subr.bf16.mxu1 %v10008_v23  ;;  %v5255_v43 = vrot.slane %v5253_v35, 6 }
 0x2fb   : > { %9439 = vmatpush3.bf16.msra.mxu0 %v10007_v7  ;;  %v6229_v7 = vrot.slane %v6227_v53, 3  ;;  %v10058_v53 = vld [vmem:[%s12277_s5 + $0x1d8] sm:$0xff]  }
 0x2fc   : > { %9440 = vmatprep.subr.bf16.mxu0 %v10009_v58 }
 0x2fd   : > { %9281 = vmatpush3.bf16.msra.mxu1 %v10008_v23  ;;  %v10036_v23 = vld [vmem:[%s12277_s5 + $0x180] sm:$0xff]  }
 0x2fe   : > { %9282 = vmatprep.subr.bf16.mxu1 %v10010_v2 }
 0x2ff   : > { %9441 = vmatpush3.bf16.msra.mxu0 %v10009_v58  ;;  %v5000_v58 = vrot.slane %v11717_v11, 4 }
 0x300   : > { %9442 = vmatprep.subr.bf16.mxu0 %v10011_v25 }
 0x301   : > { %9283 = vmatpush3.bf16.msra.mxu1 %v10010_v2  ;;  %v6338_v2 = vld [vmem:[#allocation3 + $0x10] sm:$0xf0]  ;;  %v5001_v11 = vsel %vm12341_vm15, %v4998_v49, %v5000_v58 }
 0x302   : > { %9284 = vmatprep.subr.bf16.mxu1 %v10012_v12  ;;  %v5106_v49 = vld [vmem:[#allocation3 + $0x10] sm:$0x3f] }
 0x303   : > { %9443 = vmatpush3.bf16.msra.mxu0 %v10011_v25  ;;  %v10037_v25 = vld [vmem:[%s12277_s5 + $0x140] sm:$0xff]  }
 0x304   : > { %9444 = vmatprep.subr.bf16.mxu0 %v10013_v52 }
 0x305   : > { %9285 = vmatpush3.bf16.msra.mxu1 %v10012_v12  ;;  %v5126_v12 = vrot.slane %v11800_v19, 6 }
 0x306   : > { %9286 = vmatprep.subr.bf16.mxu1 %v10014_v21 }
 0x307   : > { %9445 = vmatpush3.bf16.msra.mxu0 %v10013_v52  ;;  %v6233_v52 = vor.u32 %v6232_v22, %v6229_v7  ;;  %v10062_v7 = vld [vmem:[%s12277_s5 + $0x1e8] sm:$0xff]  }
 0x308   : > { %9446 = vmatprep.subr.bf16.mxu0 %v10015_v24  ;;  %v10063_v22 = vld [vmem:[%s12277_s5 + $0x1a8] sm:$0xff]  }
 0x309   : > { %9287 = vmatpush3.bf16.msra.mxu1 %v10014_v21  ;;  %v5127_v21 = vrot.slane %v11741_v31, 6 }
 0x30a   : > { %9288 = vmatprep.subr.bf16.mxu1 %v10016_v32 }
 0x30b   : > { %9447 = vmatpush3.bf16.msra.mxu0 %v10015_v24  ;;  %v6357_v24 = vrot.slane %v6338_v2, 4  ;;  %v5128_v17 = vsel %vm12342_vm8, %v5126_v12, %v5127_v21  ;;  %v10066_v12 = vld [vmem:[%s12277_s5 + $0x1f8] sm:$0xff]  }
 0x30c   : > { %9448 = vmatprep.subr.bf16.mxu0 %v10017_v48 }
 0x30d   : > { %9289 = vmatpush3.bf16.msra.mxu1 %v10016_v32  ;;  %v10038_v32 = vld [vmem:[%s12277_s5 + $0x188] sm:$0xff]   ;;  %v6359_v29 = vsel %vm12344_vm1, %v6357_v24, %v6358_v37 }
 0x30e   : > { %9290 = vmatprep.subr.bf16.mxu1 %v10018_v50 }
 0x30f   : > { %9449 = vmatpush3.bf16.msra.mxu0 %v10017_v48  ;;  %v10039_v48 = vld [vmem:[%s12277_s5 + $0x148] sm:$0xff]  }
 0x310   : > { %9450 = vmatprep.subr.bf16.mxu0 %v10019_v3 }
 0x311   : > { %9291 = vmatpush3.bf16.msra.mxu1 %v10018_v50  ;;  %v6234_v50 = vsel %vm12343_vm10, %v11490_v20, %v6233_v52  ;;  %v10042_v20 = vld [vmem:[%s12277_s5 + $0x198] sm:$0xff]  }
 0x312   : > { %9296 = vmatprep.subr.bf16.mxu1 %v10020_v45 }
 0x313   : > { %9451 = vmatpush3.bf16.msra.mxu0 %v10019_v3  ;;  %v10044_v3 = vld [vmem:[%s12277_s5 + $0x1a0] sm:$0xff]  }
 0x314   : > { %9293 = vmatmul.mubr.bf16.vlgmr.msra.gmra.mrb[8].mxu1 %v4873_v42  ;;  %9456 = vmatprep.subr.bf16.mxu0 %v10021_v15  ;;  %v10052_v42 = vld [vmem:[%s12277_s5 + $0x1c0] sm:$0xff]  }
 0x315   : > { %9297 = vmatpush3.bf16.msra.mxu1 %v10020_v45  ;;  %9312 = vmatprep.mubr.bf16.mxu1 %v4999_v57  ;;  %v10046_v45 = vld [vmem:[%s12277_s5 + $0x1a8] sm:$0xff]   ;;  %v5129_v57 = vrot.slane %v5106_v49, 6  ;;  %v10076_v49 = vld [vmem:[%s12277_s5 + $0x220] sm:$0xff]  }
 0x316   : > { %9453 = vmatmul.mubr.bf16.vlgmr.msra.gmra.mrb[8].mxu0 %v6093_v46  ;;  %9298 = vmatprep.subr.bf16.mxu1 %v10022_v55  ;;  %v10053_v46 = vld [vmem:[%s12277_s5 + $0x180] sm:$0xff]  }
 0x317   : > { %9457 = vmatpush3.bf16.msra.mxu0 %v10021_v15  ;;  %9472 = vmatprep.mubr.bf16.mxu0 %v6225_v10  ;;  %v5256_v15 = vshll.u32 %v11800_v19, 16  ;;  %v11919_v19 = vld [vmem:[#allocation3 + $0x10] sm:$0x7f] }
 0x318   : > { %9458 = vmatprep.subr.bf16.mxu0 %v10023_v27  ;;  %v5265_v58 = vshrl.u32 %v11919_v19, 16  ;;  %v5268_v2 = vshll.u32 %v11919_v19, 16 }
 0x319   : > { %9299 = vmatpush3.bf16.msra.mxu1 %v10022_v55  ;;  %v5258_v55 = vrot.slane %v5256_v15, 7  ;;  %v10072_v15 = vld [vmem:[%s12277_s5 + $0x210] sm:$0xff]  }
 0x31a   : > { %9300 = vmatprep.subr.bf16.mxu1 %v10024_v59  ;;  %v5267_v24 = vrot.slane %v5265_v58, 6  ;;  %v10091_v58 = vld [vmem:[%s12277_s5 + $0x238] sm:$0xff]  }
 0x31b   : > { %9459 = vmatpush3.bf16.msra.mxu0 %v10023_v27  ;;  %v11870_v27 = vld [vmem:[#allocation3 + $0x10] sm:$0xc0]  ;;  %v5259_v10 = vor.u32 %v5258_v55, %v5255_v43  ;;  %v10077_v43 = vld [vmem:[%s12277_s5 + $0x1e0] sm:$0xff]  }
 0x31c   : > { %9460 = vmatprep.subr.bf16.mxu0 %v10025_v60  ;;  %v6611_v52 = vshrl.u32 %v11870_v27, 16  ;;  %v10078_v55 = vld [vmem:[%s12277_s5 + $0x228] sm:$0xff]  }
 0x31d   : > { %9301 = vmatpush3.bf16.msra.mxu1 %v10024_v59  ;;  %v6360_v59 = vrot.slane %v11787_v26, 4  ;;  %v10056_v26 = vld [vmem:[%s12277_s5 + $0x1d0] sm:$0xff]  }
 0x31e   : > { %9302 = vmatprep.subr.bf16.mxu1 %v10026_v61 }
 0x31f   : > { %9461 = vmatpush3.bf16.msra.mxu0 %v10025_v60  ;;  %v6485_v60 = vrot.slane %v11870_v27, 6 }
 0x320   : > { %9462 = vmatprep.subr.bf16.mxu0 %v10027_v0 }
 0x321   : > { %9303 = vmatpush3.bf16.msra.mxu1 %v10026_v61  ;;  %v10054_v61 = vld [vmem:[%s12277_s5 + $0x1c8] sm:$0xff]  }
 0x322   : > { %9304 = vmatprep.subr.bf16.mxu1 %v10028_v6 }
 0x323   : > { %9463 = vmatpush3.bf16.msra.mxu0 %v10027_v0  ;;  %v5130_v0 = vsel %vm12345_vm3, %v5127_v21, %v5129_v57  ;;  %v6614_v21 = vshll.u32 %v11870_v27, 16  ;;  %v10080_v57 = vld [vmem:[%s12277_s5 + $0x230] sm:$0xff]   ;;  %v6593_v27 = vld [vmem:[#allocation3 + $0x20] sm:$0x7f]  ;;  %vm12357_vm3 = vmmov %vm12347_vm7 }
 0x324   : > { %9464 = vmatprep.subr.bf16.mxu0 %v10029_v14 }
 0x325   : > { %9305 = vmatpush3.bf16.msra.mxu1 %v10028_v6  ;;  %v5263_v6 = vsel %vm12346_vm6, %v5259_v10, %v11305_v54  ;;  %v6623_v10 = vshrl.u32 %v6593_v27, 16 }
 0x326   : > { %9306 = vmatprep.subr.bf16.mxu1 %v10030_v28 }
 0x327   : > { %9465 = vmatpush3.bf16.msra.mxu0 %v10029_v14  ;;  %v6486_v14 = vrot.slane %v11472_v13, 6  ;;  %v10073_v13 = vld [vmem:[%s12277_s5 + $0x1d0] sm:$0xff]  }
 0x328   : > { %9466 = vmatprep.subr.bf16.mxu0 %v10031_v1 }
 0x329   : > { %9307 = vmatpush3.bf16.msra.mxu1 %v10030_v28  ;;  %v10055_v28 = vld [vmem:[%s12277_s5 + $0x188] sm:$0xff]  }
 0x32a   : > { %9308 = vmatprep.subr.bf16.mxu1 %v10032_v51 }
 0x32b   : > { %9467 = vmatpush3.bf16.msra.mxu0 %v10031_v1  ;;  %v6361_v1 = vsel %vm12347_vm7, %v6358_v37, %v6360_v59  ;;  %v10068_v37 = vld [vmem:[%s12277_s5 + $0x200] sm:$0xff]   ;;  %v6626_v59 = vshll.u32 %v6593_v27, 16 }
 0x32c   : > { %9468 = vmatprep.subr.bf16.mxu0 %v10033_v44 }
 0x32d   : > { %9309 = vmatpush3.bf16.msra.mxu1 %v10032_v51  ;;  %v6487_v51 = vsel %vm12348_vm4, %v6485_v60, %v6486_v14  ;;  %v10082_v60 = vld [vmem:[%s12277_s5 + $0x238] sm:$0xff]  }
 0x32e   : > { %9310 = vmatprep.subr.bf16.mxu1 %v10034_v40 }
 0x32f   : > { %9469 = vmatpush3.bf16.msra.mxu0 %v10033_v44  ;;  %v10057_v44 = vld [vmem:[%s12277_s5 + $0x190] sm:$0xff]  }
 0x330   : > { %9470 = vmatprep.subr.bf16.mxu0 %v10035_v5 }
 0x331   : > { %9311 = vmatpush3.bf16.msra.mxu1 %v10034_v40  ;;  %v10060_v40 = vld [vmem:[%s12277_s5 + $0x1e0] sm:$0xff]  }
 0x332   : > { %9316 = vmatprep.subr.bf16.mxu1 %v10036_v23 }
 0x333   : > { %9471 = vmatpush3.bf16.msra.mxu0 %v10035_v5  ;;  %v10061_v5 = vld [vmem:[%s12277_s5 + $0x1a0] sm:$0xff]  }
 0x334   : > { %9313 = vmatmul.mubr.bf16.vlgmr.msra.gmra.mrb[8].mxu1 %v5001_v11  ;;  %9476 = vmatprep.subr.bf16.mxu0 %v10037_v25  ;;  %v10067_v11 = vld [vmem:[%s12277_s5 + $0x1b8] sm:$0xff]  }
 0x335   : > { %9317 = vmatpush3.bf16.msra.mxu1 %v10036_v23  ;;  %9332 = vmatprep.mubr.bf16.mxu1 %v5128_v17  ;;  %v10064_v23 = vld [vmem:[%s12277_s5 + $0x1f0] sm:$0xff]   ;;  %v5376_v17 = vld [vmem:[#allocation3] sm:$0x80] }
 0x336   : > { %9473 = vmatmul.mubr.bf16.vlgmr.msra.gmra.mrb[8].mxu0 %v6234_v50  ;;  %9318 = vmatprep.subr.bf16.mxu1 %v10038_v32  ;;  %v6613_v50 = vrot.slane %v6611_v52, 6 }
 0x337   : > { %9477 = vmatpush3.bf16.msra.mxu0 %v10037_v25  ;;  %9492 = vmatprep.mubr.bf16.mxu0 %v6359_v29  ;;  %v10065_v25 = vld [vmem:[%s12277_s5 + $0x1b0] sm:$0xff]   ;;  %v6616_v29 = vrot.slane %v6614_v21, 7 }
 0x338   : > { %9478 = vmatprep.subr.bf16.mxu0 %v10039_v48 }
 0x339   : > { %9319 = vmatpush3.bf16.msra.mxu1 %v10038_v32  ;;  %v5270_v32 = vrot.slane %v5268_v2, 7  ;;  %v6756_v2 = vrot.slane %v6593_v27, 7 }
 0x33a   : > { %9320 = vmatprep.subr.bf16.mxu1 %v10040_v41 }
 0x33b   : > { %9479 = vmatpush3.bf16.msra.mxu0 %v10039_v48  ;;  %v6466_v48 = vld [vmem:[#allocation3 + $0x20] sm:$0x3f] }
 0x33c   : > { %9480 = vmatprep.subr.bf16.mxu0 %v10041_v56 }
 0x33d   : > { %9321 = vmatpush3.bf16.msra.mxu1 %v10040_v41  ;;  %v5271_v41 = vor.u32 %v5270_v32, %v5267_v24 }
 0x33e   : > { %9322 = vmatprep.subr.bf16.mxu1 %v10042_v20 }
 0x33f   : > { %9481 = vmatpush3.bf16.msra.mxu0 %v10041_v56  ;;  %v10069_v56 = vld [vmem:[%s12277_s5 + $0x1c0] sm:$0xff]  }
 0x340   : > { %9482 = vmatprep.subr.bf16.mxu0 %v10043_v9 }
 0x341   : > { %9323 = vmatpush3.bf16.msra.mxu1 %v10042_v20  ;;  %v5396_v20 = vrot.slane %v5376_v17, 7 }
 0x342   : > { %9324 = vmatprep.subr.bf16.mxu1 %v10044_v3 }
 0x343   : > { %9483 = vmatpush3.bf16.msra.mxu0 %v10043_v9  ;;  %v6488_v9 = vrot.slane %v6466_v48, 6 }
 0x344   : > { %9484 = vmatprep.subr.bf16.mxu0 %v10045_v36 }
 0x345   : > { %9325 = vmatpush3.bf16.msra.mxu1 %v10044_v3  ;;  %v5397_v3 = vrot.slane %v11741_v31, 7  ;;  %v6489_v35 = vsel %vm12351_vm2, %v6486_v14, %v6488_v9  ;;  %v5399_v14 = vrot.slane %v11919_v19, 7  ;;  %v10086_v31 = vld [vmem:[%s12277_s5 + $0x210] sm:$0xff]   ;;  %v10089_v19 = vld [vmem:[%s12277_s5 + $0x228] sm:$0xff]  }
 0x346   : > { %9326 = vmatprep.subr.bf16.mxu1 %v10046_v45 }
 0x347   : > { %9485 = vmatpush3.bf16.msra.mxu0 %v10045_v36  ;;  %v6617_v36 = vor.u32 %v6616_v29, %v6613_v50 }
 0x348   : > { %9486 = vmatprep.subr.bf16.mxu0 %v10047_v38 }
 0x349   : > { %9327 = vmatpush3.bf16.msra.mxu1 %v10046_v45  ;;  %v10070_v45 = vld [vmem:[%s12277_s5 + $0x208] sm:$0xff]  }
 0x34a   : > { %9328 = vmatprep.subr.bf16.mxu1 %v10048_v47 }
 0x34b   : > { %9487 = vmatpush3.bf16.msra.mxu0 %v10047_v38  ;;  %v5272_v38 = vsel %vm12349_vm11, %v11305_v54, %v5271_v41  ;;  %v6621_v54 = vsel %vm12352_vm0, %v6617_v36, %v11493_v34  ;;  %vm12358_vm0 = vmmov %vm12357_vm3 }
 0x34c   : > { %9488 = vmatprep.subr.bf16.mxu0 %v10049_v62 }
 0x34d   : > { %9329 = vmatpush3.bf16.msra.mxu1 %v10048_v47  ;;  %v5398_v47 = vsel %vm12350_vm12, %v5396_v20, %v5397_v3 }
 0x34e   : > { %9330 = vmatprep.subr.bf16.mxu1 %v10050_v16 }
 0x34f   : > { %9489 = vmatpush3.bf16.msra.mxu0 %v10049_v62  ;;  %v10071_v62 = vld [vmem:[%s12277_s5 + $0x1c8] sm:$0xff]  }
 0x350   : > { %9490 = vmatprep.subr.bf16.mxu0 %v10051_v39 }
 0x351   : > { %9331 = vmatpush3.bf16.msra.mxu1 %v10050_v16  ;;  %v10074_v16 = vld [vmem:[%s12277_s5 + $0x218] sm:$0xff]  }
 0x352   : > { %9336 = vmatprep.subr.bf16.mxu1 %v10052_v42 }
 0x353   : > { %9491 = vmatpush3.bf16.msra.mxu0 %v10051_v39  ;;  %v10075_v39 = vld [vmem:[%s12277_s5 + $0x1d8] sm:$0xff]  }
 0x354   : > { %9333 = vmatmul.mubr.bf16.vlgmr.msra.gmra.mrb[8].mxu1 %v5130_v0  ;;  %9496 = vmatprep.subr.bf16.mxu0 %v10053_v46  ;;  %v6625_v0 = vrot.slane %v6623_v10, 6  ;;  %v5504_v10 = vld [vmem:[#allocation2] sm:$0x80] }
 0x355   : > { %9337 = vmatpush3.bf16.msra.mxu1 %v10052_v42  ;;  %9352 = vmatprep.mubr.bf16.mxu1 %v5263_v6  ;;  %v10079_v42 = vld [vmem:[%s12277_s5 + $0x1e8] sm:$0xff]   ;;  %v6628_v6 = vrot.slane %v6626_v59, 7 }
 0x356   : > { %9493 = vmatmul.mubr.bf16.vlgmr.msra.gmra.mrb[8].mxu0 %v6361_v1  ;;  %9338 = vmatprep.subr.bf16.mxu1 %v10054_v61  ;;  %v10084_v1 = vld [vmem:[%s12277_s5 + $0x200] sm:$0xff]  }
 0x357   : > { %9497 = vmatpush3.bf16.msra.mxu0 %v10053_v46  ;;  %9512 = vmatprep.mubr.bf16.mxu0 %v6487_v51  ;;  %v10081_v46 = vld [vmem:[%s12277_s5 + $0x1f0] sm:$0xff]   ;;  %v6629_v51 = vor.u32 %v6628_v6, %v6625_v0 }
 0x358   : > { %9498 = vmatprep.subr.bf16.mxu0 %v10055_v28 }
 0x359   : > { %9339 = vmatpush3.bf16.msra.mxu1 %v10054_v61  ;;  %v10083_v61 = vld [vmem:[%s12277_s5 + $0x1f8] sm:$0xff]  }
 0x35a   : > { %9340 = vmatprep.subr.bf16.mxu1 %v10056_v26 }
 0x35b   : > { %9499 = vmatpush3.bf16.msra.mxu0 %v10055_v28  ;;  %v6734_v28 = vld [vmem:[#allocation3 + $0x10] sm:$0x80] }
 0x35c   : > { %9500 = vmatprep.subr.bf16.mxu0 %v10057_v44 }
 0x35d   : > { %9341 = vmatpush3.bf16.msra.mxu1 %v10056_v26  ;;  %v6753_v26 = vrot.slane %v6734_v28, 7 }
 0x35e   : > { %9342 = vmatprep.subr.bf16.mxu1 %v10058_v53 }
 0x35f   : > { %9501 = vmatpush3.bf16.msra.mxu0 %v10057_v44  ;;  %v5400_v44 = vsel %vm12353_vm5, %v5397_v3, %v5399_v14  ;;  %v5510_v14 = vrot.slane %v5504_v10, 4 }
 0x360   : > { %9502 = vmatprep.subr.bf16.mxu0 %v10059_v18 }
 0x361   : > { %9343 = vmatpush3.bf16.msra.mxu1 %v10058_v53  ;;  %v10098_v53 = vld [vmem:[#allocation3 + $0x18] sm:$0xff] }
 0x362   : > { %9344 = vmatprep.subr.bf16.mxu1 %v10060_v40 }
 0x363   : > { %9503 = vmatpush3.bf16.msra.mxu0 %v10059_v18  ;;  %v6754_v18 = vrot.slane %v10098_v53, 7 }
 0x364   : > { %9504 = vmatprep.subr.bf16.mxu0 %v10061_v5 }
 0x365   : > { %9345 = vmatpush3.bf16.msra.mxu1 %v10060_v40  ;;  %v10085_v40 = vld [vmem:[%s12277_s5 + $0x208] sm:$0xff]  }
 0x366   : > { %9346 = vmatprep.subr.bf16.mxu1 %v10062_v7 }
 0x367   : > { %9505 = vmatpush3.bf16.msra.mxu0 %v10061_v5  ;;  %v6630_v5 = vsel %vm12354_vm13, %v11493_v34, %v6629_v51  ;;  %v10088_v34 = vld [vmem:[%s12277_s5 + $0x220] sm:$0xff]  }
 0x368   : > { %9506 = vmatprep.subr.bf16.mxu0 %v10063_v22 }
 0x369   : > { %9347 = vmatpush3.bf16.msra.mxu1 %v10062_v7  ;;  %v6755_v7 = vsel %vm12355_vm14, %v6753_v26, %v6754_v18 }
 0x36a   : > { %9348 = vmatprep.subr.bf16.mxu1 %v10064_v23 }
 0x36b   : > { %9507 = vmatpush3.bf16.msra.mxu0 %v10063_v22  ;;  %v10087_v22 = vld [vmem:[%s12277_s5 + $0x218] sm:$0xff]  }
 0x36c   : > { %9508 = vmatprep.subr.bf16.mxu0 %v10065_v25 }
 0x36d   : > { %9349 = vmatpush3.bf16.msra.mxu1 %v10064_v23  ;;  %v10090_v23 = vld [vmem:[%s12277_s5 + $0x230] sm:$0xff]  }
 0x36e   : > { %9350 = vmatprep.subr.bf16.mxu1 %v10066_v12 }
 0x36f   : > { %9509 = vmatpush3.bf16.msra.mxu0 %v10065_v25  ;;  %v6757_v25 = vsel %vm12356_vm9, %v6754_v18, %v6756_v2 }
 0x370   : > { %9510 = vmatprep.subr.bf16.mxu0 %v10067_v11 }
 0x371   : > { %9351 = vmatpush3.bf16.msra.mxu1 %v10066_v12  ;;  %v5573_v12 = vstv %s5572_s11 }
 0x372   : > { %9356 = vmatprep.subr.bf16.mxu1 %v10068_v37  ;;  %v5576_v52 = vadd.s32 %v5573_v12, %v10819_v8  ;;  %v5574_v32 = vadd.s32 %v5573_v12, %v10812_v4  ;;  %v12035_v17 = vadd.s32 %v5573_v12, %v10868_v63 }
 0x373   : > { %9511 = vmatpush3.bf16.msra.mxu0 %v10067_v11  ;;  %v12032_v11 = vadd.s32 %v5573_v12, %v10865_v33 }
 0x374   : > { %9353 = vmatmul.mubr.bf16.vlgmr.msra.gmra.mrb[8].mxu1 %v5272_v38  ;;  %9516 = vmatprep.subr.bf16.mxu0 %v10069_v56  ;;  %v5580_v21 = vcvt.s32.f32 %v5576_v52  ;;  %v5578_v48 = vcvt.s32.f32 %v5574_v32  ;;  %v5579_v29 = vcvt.s32.f32 %v12035_v17  ;;  %vm5616_vm15 = vcmp.ge.s32.totalorder %v5576_v52, 0 }
 0x375   : > { %9357 = vmatpush3.bf16.msra.mxu1 %v10068_v37  ;;  %9372 = vmatprep.mubr.bf16.mxu1 %v5398_v47  ;;  %v5581_v50 = vcvt.s32.f32 %v12032_v11  ;;  %vm5620_vm8 = vcmp.lt.s32.totalorder %v5576_v52, 72  ;;  %vm5614_vm4 = vcmp.ge.s32.totalorder %v5574_v32, 0  ;;  %vm5618_vm11 = vcmp.lt.s32.totalorder %v5574_v32, 72 }
 0x376   : > { %9513 = vmatmul.mubr.bf16.vlgmr.msra.gmra.mrb[8].mxu0 %v6489_v35  ;;  %9358 = vmatprep.subr.bf16.mxu1 %v10070_v45  ;;  %v5584_v24 = vmul.f32 0.027777778, %v5580_v21  ;;  %v5583_v9 = vmul.f32 0.027777778, %v5579_v29  ;;  %vm5624_vm10 = vmand %vm5616_vm15, %vm5620_vm8  ;;  %vm5617_vm5 = vcmp.ge.s32.totalorder %v12032_v11, 0  ;;  %vm5621_vm13 = vcmp.lt.s32.totalorder %v12032_v11, 72 }
 0x377   : > { %9517 = vmatpush3.bf16.msra.mxu0 %v10069_v56  ;;  %9532 = vmatprep.mubr.bf16.mxu0 %v6621_v54  ;;  %v5582_v56 = vmul.f32 0.027777778, %v5578_v48  ;;  %v5585_v20 = vmul.f32 0.027777778, %v5581_v50  ;;  %vm12048_vm14 = vmand %vm5614_vm4, %vm5618_vm11  ;;  %vm5615_vm9 = vcmp.ge.s32.totalorder %v12035_v17, 0  ;;  %vm5619_vm15 = vcmp.lt.s32.totalorder %v12035_v17, 72 }
 0x378   : > { %9518 = vmatprep.subr.bf16.mxu0 %v10071_v62  ;;  %v5588_v37 = vfloor.f32 %v5584_v24  ;;  %v5587_v38 = vfloor.f32 %v5583_v9 }
 0x379   : > { %9359 = vmatpush3.bf16.msra.mxu1 %v10070_v45  ;;  %v5586_v36 = vfloor.f32 %v5582_v56  ;;  %v5589_v45 = vfloor.f32 %v5585_v20 }
 0x37a   : > { %9360 = vmatprep.subr.bf16.mxu1 %v10072_v15  ;;  %v5592_v41 = vmul.f32 36.0, %v5588_v37  ;;  %v5591_v54 = vmul.f32 36.0, %v5587_v38 }
 0x37b   : > { %9519 = vmatpush3.bf16.msra.mxu0 %v10071_v62  ;;  %v5590_v62 = vmul.f32 36.0, %v5586_v36  ;;  %v5593_v35 = vmul.f32 36.0, %v5589_v45 }
 0x37c   : > { %9520 = vmatprep.subr.bf16.mxu0 %v10073_v13  ;;  %v5596_v3 = vsub.f32 %v5580_v21, %v5592_v41 }
 0x37d   : > { %9361 = vmatpush3.bf16.msra.mxu1 %v10072_v15 }
 0x37e   : > { %9362 = vmatprep.subr.bf16.mxu1 %v10074_v16  ;;  %v5600_v47 = vmul.f32 0.16666667, %v5596_v3 }
 0x37f   : > { %9521 = vmatpush3.bf16.msra.mxu0 %v10073_v13  ;;  %v5594_v13 = vsub.f32 %v5578_v48, %v5590_v62 }
 0x380   : > { %9522 = vmatprep.subr.bf16.mxu0 %v10075_v39  ;;  %v5604_v15 = vfloor.f32 %v5600_v47 }
 0x381   : > { %9363 = vmatpush3.bf16.msra.mxu1 %v10074_v16  ;;  %v5505_v16 = vld [vmem:[#allocation2 + $0x8] sm:$0xff] }
 0x382   : > { %9364 = vmatprep.subr.bf16.mxu1 %v10076_v49  ;;  %vm5628_vm1 = vcmp.ge.f32.partialorder %v5604_v15, 1.0  ;;  %vm5636_vm7 = vcmp.le.f32.partialorder %v5604_v15, 4.0 }
 0x383   : > { %9523 = vmatpush3.bf16.msra.mxu0 %v10075_v39  ;;  %v5506_v39 = vld [vmem:[#allocation2 + $0x10] sm:$0x7f]  ;;  %vm5632_vm6 = vmand %vm5624_vm10, %vm5628_vm1 }
 0x384   : > { %9524 = vmatprep.subr.bf16.mxu0 %v10077_v43  ;;  %v5513_v27 = vrot.slane %v5506_v39, 4  ;;  %vm5640_vm12 = vmand %vm5632_vm6, %vm5636_vm7 }
 0x385   : > { %9365 = vmatpush3.bf16.msra.mxu1 %v10076_v49  ;;  %v5597_v49 = vsub.f32 %v5581_v50, %v5593_v35  ;;  %vm12068_vm7 = vmand %vm5615_vm9, %vm5619_vm15 }
 0x386   : > { %9366 = vmatprep.subr.bf16.mxu1 %v10078_v55  ;;  %v5522_v24 = vunpack.c.l.bf16 %v5513_v27 }
 0x387   : > { %9525 = vmatpush3.bf16.msra.mxu0 %v10077_v43  ;;  %v5595_v43 = vsub.f32 %v5579_v29, %v5591_v54  ;;  %v5601_v59 = vmul.f32 0.16666667, %v5597_v49  ;;  %v12102_v29 = vld [vmem:[%s12278_s6] ss:$0 sm:$0xff] }
 0x388   : > { %9526 = vmatprep.subr.bf16.mxu0 %v10079_v42  ;;  %v5558_v47 = vrot.slane %v5522_v24, 6 }
 0x389   : > { %9367 = vmatpush3.bf16.msra.mxu1 %v10078_v55  ;;  %v6929_v55 = vstv %s6928_s12 }
 0x38a   : > { %9368 = vmatprep.subr.bf16.mxu1 %v10080_v57  ;;  %v12073_v12 = vadd.s32 %v6929_v55, %v10868_v63 }
 0x38b   : > { %9527 = vmatpush3.bf16.msra.mxu0 %v10079_v42  ;;  %v5608_v42 = vmul.f32 6.0, %v5604_v15 }
 0x38c   : > { %9528 = vmatprep.subr.bf16.mxu0 %v10081_v46  ;;  %v6935_v9 = vcvt.s32.f32 %v12073_v12 }
 0x38d   : > { %9369 = vmatpush3.bf16.msra.mxu1 %v10080_v57  ;;  %v5511_v57 = vrot.slane %v5505_v16, 4  ;;  %v5612_v0 = vsub.f32 %v5596_v3, %v5608_v42  ;;  %v12115_v3 = vld [vmem:[%s12279_s7] ss:$0 sm:$0xff] }
 0x38e   : > { %9370 = vmatprep.subr.bf16.mxu1 %v10082_v60 }
 0x38f   : > { %9529 = vmatpush3.bf16.msra.mxu0 %v10081_v46  ;;  %v5598_v46 = vmul.f32 0.16666667, %v5594_v13  ;;  %v5514_v6 = vsel %vm12357_vm3, %v5511_v57, %v5513_v27  ;;  %vm5644_vm2 = vcmp.ge.f32.partialorder %v5612_v0, 1.0  ;;  %vm5652_vm1 = vcmp.le.f32.partialorder %v5612_v0, 4.0  ;;  %vm5625_vm3 = vmand %vm5617_vm5, %vm5621_vm13 }
 0x390   : > { %9530 = vmatprep.subr.bf16.mxu0 %v10083_v61  ;;  %vm12056_vm8 = vmand %vm5640_vm12, %vm5644_vm2 }
 0x391   : > { %9371 = vmatpush3.bf16.msra.mxu1 %v10082_v60  ;;  %v12041_v60 = vadd.s32 %v6929_v55, %v10819_v8  ;;  %v5602_v28 = vfloor.f32 %v5598_v46  ;;  %v5512_v8 = vsel %vm12358_vm0, %v5510_v14, %v5511_v57  ;;  %vm12083_vm2 = vmand %vm12056_vm8, %vm5652_vm1  ;;  %v6939_v57 = vmul.f32 0.027777778, %v6935_v9 }
 0x393   : > { %9531 = vmatpush3.bf16.msra.mxu0 %v10083_v61  ;;  %v5599_v61 = vmul.f32 0.16666667, %v5595_v43  ;;  %v6936_v51 = vcvt.s32.f32 %v12041_v60  ;;  %v5606_v53 = vmul.f32 6.0, %v5602_v28  ;;  %vm5626_vm10 = vcmp.ge.f32.partialorder %v5602_v28, 1.0 }
 0x394   : > { %9373 = vmatmul.mubr.bf16.vlgmr.msra.gmra.mrb[8].mxu1 %v5400_v44  ;;  %9536 = vmatprep.subr.bf16.mxu0 %v10084_v1  ;;  %v5520_v44 = vunpack.c.l.bf16 %v5514_v6  ;;  %vm12077_vm11 = vmand %vm12048_vm14, %vm5626_vm10  ;;  %vm5634_vm12 = vcmp.le.f32.partialorder %v5602_v28, 4.0 }
 0x395   : > { %v5603_v26 = vfloor.f32 %v5599_v61  ;;  %v5610_v2 = vsub.f32 %v5594_v13, %v5606_v53  ;;  %vm12107_vm9 = vmand %vm12077_vm11, %vm5634_vm12 }
 0x396   : > { %9533 = vmatmul.mubr.bf16.vlgmr.msra.gmra.mrb[8].mxu0 %v6630_v5  ;;  %v6940_v5 = vmul.f32 0.027777778, %v6936_v51  ;;  %v5554_v17 = vrot.slane %v5520_v44, 6 }
 0x397   : > { %9537 = vmatpush3.bf16.msra.mxu0 %v10084_v1  ;;  %9552 = vmatprep.mubr.bf16.mxu0 %v6755_v7  ;;  %v5605_v1 = vfloor.f32 %v5601_v59  ;;  %v5521_v7 = vunpack.c.h.bf16 %v5514_v6  ;;  %vm5627_vm4 = vcmp.ge.f32.partialorder %v5603_v26, 1.0  ;;  %vm5635_vm14 = vcmp.le.f32.partialorder %v5603_v26, 4.0 }
 0x398   : > { %9538 = vmatprep.subr.bf16.mxu0 %v10085_v40  ;;  %v6944_v52 = vfloor.f32 %v6940_v5  ;;  %vm12094_vm13 = vmand %vm12068_vm7, %vm5627_vm4  ;;  %vm5642_vm15 = vcmp.ge.f32.partialorder %v5610_v2, 1.0  ;;  %vm5650_vm4 = vcmp.le.f32.partialorder %v5610_v2, 4.0 }
 0x399   : > { %vm5629_vm6 = vcmp.ge.f32.partialorder %v5605_v1, 1.0  ;;  %vm5637_vm5 = vcmp.le.f32.partialorder %v5605_v1, 4.0  ;;  %v5556_v37 = vrot.slane %v5521_v7, 6  ;;  %vm12126_vm1 = vmand %vm12094_vm13, %vm5635_vm14  ;;  %v7955_v7 = vsel %vm12083_vm2, 1.0, %v10107_v30 }
 0x39a   : > { %vm12087_vm0 = vmand %vm5625_vm3, %vm5629_vm6  ;;  %v6948_v45 = vmul.f32 36.0, %v6944_v52  ;;  %vm12379_vm6 = vcmask 1041408   ;;  %vm6972_vm2 = vcmp.ge.s32.totalorder %v12041_v60, 0 }
 0x39b   : > { %9539 = vmatpush3.bf16.msra.mxu0 %v10085_v40  ;;  %v5609_v40 = vmul.f32 6.0, %v5605_v1  ;;  %vm12120_vm8 = vmand %vm12087_vm0, %vm5637_vm5  ;;  %v5557_v15 = vsel %vm12379_vm6, %v5554_v17, %v5556_v37 }
 0x39c   : > { %9540 = vmatprep.subr.bf16.mxu0 %v10086_v31  ;;  %vm12136_vm7 = vmand %vm12107_vm9, %vm5642_vm15  ;;  %v6952_v61 = vsub.f32 %v6936_v51, %v6948_v45 }
 0x39d   : > { %vm12382_vm11 = vmmov %vm12379_vm6 }
 0x39e   : > { %vm12169_vm14 = vmand %vm12136_vm7, %vm5650_vm4 }
 0x39f   : > { %9541 = vmatpush3.bf16.msra.mxu0 %v10086_v31  ;;  %vm12389_vm9 = vmmov %vm12379_vm6 }
 0x3a0   : > { %9542 = vmatprep.subr.bf16.mxu0 %v10087_v22  ;;  %v5559_v14 = vsel %vm12389_vm9, %v5556_v37, %v5558_v47 }
 0x3a3   : > { %9543 = vmatpush3.bf16.msra.mxu0 %v10087_v22  ;;  %v5607_v22 = vmul.f32 6.0, %v5603_v26 }
 0x3a4   : > { %9544 = vmatprep.subr.bf16.mxu0 %v10088_v34 }
 0x3a5   : > { %v5611_v63 = vsub.f32 %v5595_v43, %v5607_v22  ;;  %v6956_v22 = vmul.f32 0.16666667, %v6952_v61 }
 0x3a7   : > { %9545 = vmatpush3.bf16.msra.mxu0 %v10088_v34  ;;  %v12061_v34 = vadd.s32 %v6929_v55, %v10812_v4  ;;  %vm5643_vm3 = vcmp.ge.f32.partialorder %v5611_v63, 1.0  ;;  %vm5651_vm13 = vcmp.le.f32.partialorder %v5611_v63, 4.0  ;;  %v7953_v4 = vsel %vm12169_vm14, 1.0, %v10107_v30 }
 0x3a8   : > { %9546 = vmatprep.subr.bf16.mxu0 %v10089_v19  ;;  %vm12159_vm5 = vmand %vm12126_vm1, %vm5643_vm3  ;;  %v6960_v37 = vfloor.f32 %v6956_v22  ;;  %vm6976_vm1 = vcmp.lt.s32.totalorder %v12041_v60, 72 }
 0x3a9   : > { %v6934_v11 = vcvt.s32.f32 %v12061_v34  ;;  %vm6980_vm3 = vmand %vm6972_vm2, %vm6976_vm1 }
 0x3aa   : > { %v6964_v47 = vmul.f32 6.0, %v6960_v37  ;;  %vm6992_vm4 = vcmp.le.f32.partialorder %v6960_v37, 4.0 }
 0x3ab   : > { %9547 = vmatpush3.bf16.msra.mxu0 %v10089_v19  ;;  %v5518_v19 = vunpack.c.l.bf16 %v5512_v8  ;;  %v6938_v35 = vmul.f32 0.027777778, %v6934_v11 }
 0x3ac   : > { %9548 = vmatprep.subr.bf16.mxu0 %v10090_v23 }
 0x3ad   : > { %v5551_v41 = vrot.slane %v5518_v19, 6  ;;  %v6942_v1 = vfloor.f32 %v6938_v35  ;;  %v6862_v35 = vld [vmem:[#allocation2 + $0x18] sm:$0xff] }
 0x3ae   : > { %v6868_v16 = vrot.slane %v6862_v35, 4 }
 0x3af   : > { %9549 = vmatpush3.bf16.msra.mxu0 %v10090_v23  ;;  %v12064_v23 = vadd.s32 %v6929_v55, %v10865_v33  ;;  %v5613_v33 = vsub.f32 %v5597_v49, %v5609_v40  ;;  %v6943_v40 = vfloor.f32 %v6939_v57 }
 0x3b0   : > { %9550 = vmatprep.subr.bf16.mxu0 %v10091_v58 }
 0x3b1   : > { %v6937_v50 = vcvt.s32.f32 %v12064_v23  ;;  %vm5645_vm10 = vcmp.ge.f32.partialorder %v5613_v33, 1.0  ;;  %vm5653_vm0 = vcmp.le.f32.partialorder %v5613_v33, 4.0  ;;  %v6947_v63 = vmul.f32 36.0, %v6943_v40 }
 0x3b2   : > { %vm12148_vm12 = vmand %vm12120_vm8, %vm5645_vm10  ;;  %vm6973_vm14 = vcmp.ge.s32.totalorder %v12064_v23, 0  ;;  %vm6977_vm9 = vcmp.lt.s32.totalorder %v12064_v23, 72 }
 0x3b3   : > { %9551 = vmatpush3.bf16.msra.mxu0 %v10091_v58  ;;  %v5519_v58 = vunpack.c.h.bf16 %v5512_v8  ;;  %v6941_v39 = vmul.f32 0.027777778, %v6937_v50  ;;  %vm5657_vm15 = vmand %vm12148_vm12, %vm5653_vm0  ;;  %vm6974_vm12 = vcmp.lt.s32.totalorder %v12061_v34, 72 }
 0x3b4   : > { %vm12390_vm8 = vmmov %vm12379_vm6  ;;  %vm6984_vm6 = vcmp.ge.f32.partialorder %v6960_v37, 1.0 }
 0x3b5   : > { %v5552_v56 = vrot.slane %v5519_v58, 6  ;;  %v6945_v8 = vfloor.f32 %v6941_v39  ;;  %vm5655_vm10 = vmand %vm12159_vm5, %vm5651_vm13  ;;  %v7956_v58 = vsel %vm5657_vm15, 1.0, %v10107_v30  ;;  %vm12391_vm13 = vcmask 1043456  }
 0x3b6   : > { %9553 = vmatmul.mubr.bf16.vlgmr.msra.gmra.mrb[8].mxu0 %v6757_v25  ;;  %v6946_v25 = vmul.f32 36.0, %v6942_v1  ;;  %v7954_v52 = vsel %vm5655_vm10, 1.0, %v10107_v30  ;;  %vm6988_vm7 = vmand %vm6980_vm3, %vm6984_vm6  ;;  %vm6975_vm10 = vcmp.lt.s32.totalorder %v12073_v12, 72 }
 0x3b7   : > { %v5553_v43 = vsel %vm12382_vm11, %v5551_v41, %v5552_v56  ;;  %v5555_v44 = vsel %vm12390_vm8, %v5552_v56, %v5554_v17  ;;  %v6949_v24 = vmul.f32 36.0, %v6945_v8  ;;  %vm6970_vm11 = vcmp.ge.s32.totalorder %v12061_v34, 0  ;;  %vm6996_vm0 = vmand %vm6988_vm7, %vm6992_vm4 }
 0x3b8   : > { %v6950_v56 = vsub.f32 %v6934_v11, %v6946_v25  ;;  %vm12218_vm15 = vmand %vm6970_vm11, %vm6974_vm12  ;;  %vm6971_vm8 = vcmp.ge.s32.totalorder %v12073_v12, 0 }
 0x3b9   : > { %v6953_v36 = vsub.f32 %v6937_v50, %v6949_v24  ;;  %v6861_v50 = vld [vmem:[#allocation2 + $0x10] sm:$0x80]  ;;  %vm12396_vm1 = vmmov %vm12391_vm13 }
 0x3ba   : > { %v6954_v62 = vmul.f32 0.16666667, %v6950_v56  ;;  %vm6981_vm6 = vmand %vm6973_vm14, %vm6977_vm9 }
 0x3bb   : > { %v6957_v11 = vmul.f32 0.16666667, %v6953_v36  ;;  %vm6979_vm11 = vmand %vm6971_vm8, %vm6975_vm10 }
 0x3bc   : > { %v6958_v60 = vfloor.f32 %v6954_v62 }
 0x3be   : > { %v6962_v42 = vmul.f32 6.0, %v6958_v60  ;;  %vm6982_vm3 = vcmp.ge.f32.partialorder %v6958_v60, 1.0 }
 0x467   : > { %v9374_v38 = vpop.f32.mrb[8].mxu1 }
 0x468   : > { %v5532_v54 = vmul.f32 %v9374_v38, %v12102_v29  ;;  %v5485_v13 = vpop.f32.mrb[9].mxu1  ;;  %v6951_v38 = vsub.f32 %v6935_v9, %v6947_v63 }
 0x469   : > { %v5530_v49 = vmul.f32 %v12102_v29, %v5485_v13  ;;  %v9375_v55 = vpop.f32.mrb[10].mxu1  ;;  %v6968_v13 = vsub.f32 %v6952_v61, %v6964_v47  ;;  %v6966_v61 = vsub.f32 %v6950_v56, %v6962_v42 }
 0x46a   : > { %v5543_v27 = vadd.f32 %v12115_v3, %v5532_v54  ;;  %v5533_v46 = vmul.f32 %v9375_v55, %v12102_v29  ;;  %v5488_v10 = vpop.f32.mrb[11].mxu1  ;;  %v6863_v54 = vld [vmem:[#allocation2 + $0x20] sm:$0x7f] }
 0x46b   : > { %v5541_v0 = vadd.f32 %v12115_v3, %v5530_v49  ;;  %v5531_v28 = vmul.f32 %v12102_v29, %v5488_v10  ;;  %v6870_v39 = vrot.slane %v6863_v54, 4  ;;  %v6961_v49 = vfloor.f32 %v6957_v11 }
 0x46c   : > { %v5566_v26 = vadd.f32 %v5557_v15, %v5543_v27  ;;  %v5544_v51 = vadd.f32 %v12115_v3, %v5533_v46  ;;  %v6955_v15 = vmul.f32 0.16666667, %v6951_v38  ;;  %vm7000_vm5 = vcmp.ge.f32.partialorder %v6968_v13, 1.0 }
 0x46d   : > { %v5564_v53 = vadd.f32 %v5553_v43, %v5541_v0  ;;  %v5542_v18 = vadd.f32 %v12115_v3, %v5531_v28  ;;  %v6867_v43 = vrot.slane %v6861_v50, 4  ;;  %v6871_v55 = vsel %vm12391_vm13, %v6868_v16, %v6870_v39  ;;  %vm12224_vm2 = vmand %vm6996_vm0, %vm7000_vm5 }
 0x46e   : > { %v5570_v5 = vmax.f32 %v5566_v26, 0.0  ;;  %v5567_v31 = vadd.f32 %v5559_v14, %v5544_v51  ;;  %v6959_v9 = vfloor.f32 %v6955_v15  ;;  %v6965_v27 = vmul.f32 6.0, %v6961_v49  ;;  %vm6986_vm0 = vmand %vm12218_vm15, %vm6982_vm3 }
 0x46f   : > { %v5568_v19 = vmax.f32 %v5564_v53, 0.0  ;;  %v5565_v2 = vadd.f32 %v5555_v44, %v5542_v18  ;;  %v6869_v46 = vsel %vm12396_vm1, %v6867_v43, %v6868_v16  ;;  %v6877_v59 = vunpack.c.l.bf16 %v6871_v55 }
 0x470   : > { %v5571_v33 = vmax.f32 %v5567_v31, 0.0  ;;  %v5668_v21 = vmul.f32 %v7955_v7, %v5570_v5  ;;  %v6963_v10 = vmul.f32 6.0, %v6959_v9  ;;  %vm6985_vm7 = vcmp.ge.f32.partialorder %v6961_v49, 1.0 }
 0x471   : > { %v5569_v32 = vmax.f32 %v5565_v2, 0.0  ;;  %v5666_v48 = vmul.f32 %v7953_v4, %v5568_v19  ;;  %v6878_v23 = vunpack.c.h.bf16 %v6871_v55  ;;  %vm7008_vm4 = vcmp.le.f32.partialorder %v6968_v13, 4.0  ;;  %vm6989_vm13 = vmand %vm6981_vm6, %vm6985_vm7 }
 0x472   : > { %v5669_v17 = vmul.f32 %v7956_v58, %v5571_v33  ;;  %vm6983_vm12 = vcmp.ge.f32.partialorder %v6959_v9, 1.0  ;;  %v6875_v0 = vunpack.c.l.bf16 %v6869_v46  ;;  %v6876_v6 = vunpack.c.h.bf16 %v6869_v46  ;;  %vm12233_vm14 = vmand %vm12224_vm2, %vm7008_vm4 }
 0x473   : > { %v5667_v41 = vmul.f32 %v7954_v52, %v5569_v32  ;;  %vm6990_vm5 = vcmp.le.f32.partialorder %v6958_v60, 4.0  ;;  %v6969_v12 = vsub.f32 %v6953_v36, %v6965_v27  ;;  %v6879_v14 = vunpack.c.l.bf16 %v6870_v39  ;;  %vm6987_vm9 = vmand %vm6979_vm11, %vm6983_vm12 }
 0x474   : > { %v8191_v20 = vpack.c.bf16 %v5669_v17, %v5668_v21  ;;  %vm6993_vm1 = vcmp.le.f32.partialorder %v6961_v49, 4.0  ;;  %v6967_v28 = vsub.f32 %v6951_v38, %v6963_v10  ;;  %vm6991_vm8 = vcmp.le.f32.partialorder %v6959_v9, 4.0  ;;  %vm6994_vm10 = vmand %vm6986_vm0, %vm6990_vm5 }
 0x475   : > { %v8186_v45 = vpack.c.bf16 %v5667_v41, %v5666_v48  ;;  %v6910_v26 = vrot.slane %v6877_v59, 6  ;;  %v6912_v51 = vrot.slane %v6878_v23, 6  ;;  %vm6998_vm3 = vcmp.ge.f32.partialorder %v6966_v61, 1.0  ;;  %vm6997_vm15 = vmand %vm6989_vm13, %vm6993_vm1 }
 0x476   : > { %8203 = vst [vmem:[%s12201_s21 + $0x8] sm:$0xff] %v8191_v20   ;;  %v6907_v44 = vrot.slane %v6875_v0, 6  ;;  %v6908_v8 = vrot.slane %v6876_v6, 6  ;;  %vm7001_vm6 = vcmp.ge.f32.partialorder %v6969_v12, 1.0  ;;  %v6914_v18 = vrot.slane %v6879_v14, 6  ;;  %vm12237_vm7 = vmand %vm6987_vm9, %vm6991_vm8 }
 0x477   : > { %8187 = vst [vmem:[%s12201_s21] sm:$0xff] %v8186_v45   ;;  %vm6999_vm2 = vcmp.ge.f32.partialorder %v6967_v28, 1.0  ;;  %vm7002_vm4 = vmand %vm6994_vm10, %vm6998_vm3  ;;  %vm7006_vm11 = vcmp.le.f32.partialorder %v6966_v61, 4.0  ;;  %vm12401_vm12 = vcmask 1041408   ;;  %vm7009_vm5 = vcmp.le.f32.partialorder %v6969_v12, 4.0 }
 0x478   : > { %v6913_v31 = vsel %vm12401_vm12, %v6910_v26, %v6912_v51  ;;  %vm7005_vm0 = vmand %vm6997_vm15, %vm7001_vm6  ;;  %vm7007_vm9 = vcmp.le.f32.partialorder %v6967_v28, 4.0  ;;  %v8165_v20 = vsel %vm12233_vm14, 1.0, %v10107_v30 }
 0x479   : > { %vm12402_vm13 = vmmov %vm12401_vm12 }
 0x47a   : > { %v6909_v2 = vsel %vm12402_vm13, %v6907_v44, %v6908_v8  ;;  %vm7003_vm1 = vmand %vm12237_vm7, %vm6999_vm2 }
 0x47b   : > { %vm12250_vm8 = vmand %vm7002_vm4, %vm7006_vm11 }
 0x47c   : > { %vm12405_vm10 = vmmov %vm12401_vm12  ;;  %v8163_v38 = vsel %vm12250_vm8, 1.0, %v10107_v30 }
 0x47d   : > { %v6915_v24 = vsel %vm12405_vm10, %v6912_v51, %v6914_v18  ;;  %vm7013_vm3 = vmand %vm7005_vm0, %vm7009_vm5 }
 0x47e   : > { %vm12406_vm15 = vmmov %vm12405_vm10 }
 0x47f   : > { %v6911_v17 = vsel %vm12406_vm15, %v6908_v8, %v6910_v26  ;;  %vm7011_vm6 = vmand %vm7003_vm1, %vm7007_vm9 }
 0x489   : > { %v9554_v53 = vpop.f32.mrb[8].mxu0 }
 0x48a   : > { %v6889_v5 = vmul.f32 %v9554_v53, %v12102_v29  ;;  %v6842_v7 = vpop.f32.mrb[9].mxu0 }
 0x48b   : > { %v6887_v22 = vmul.f32 %v12102_v29, %v6842_v7  ;;  %v9555_v19 = vpop.f32.mrb[10].mxu0 }
 0x48c   : > { %v6900_v58 = vadd.f32 %v12115_v3, %v6889_v5  ;;  %v6890_v25 = vmul.f32 %v9555_v19, %v12102_v29  ;;  %v6845_v4 = vpop.f32.mrb[11].mxu0 }
 0x48d   : > { %v6898_v33 = vadd.f32 %v12115_v3, %v6887_v22  ;;  %v6888_v32 = vmul.f32 %v12102_v29, %v6845_v4  ;;  %v8166_v29 = vsel %vm7013_vm3, 1.0, %v10107_v30 }
 0x48e   : > { %v6922_v63 = vadd.f32 %v6913_v31, %v6900_v58  ;;  %v6901_v21 = vadd.f32 %v12115_v3, %v6890_v25 }
 0x48f   : > { %v6920_v37 = vadd.f32 %v6909_v2, %v6898_v33  ;;  %v6899_v48 = vadd.f32 %v12115_v3, %v6888_v32  ;;  %v8164_v3 = vsel %vm7011_vm6, 1.0, %v10107_v30 }
 0x490   : > { %v6926_v41 = vmax.f32 %v6922_v63, 0.0  ;;  %v6923_v56 = vadd.f32 %v6915_v24, %v6901_v21 }
 0x491   : > { %v6924_v36 = vmax.f32 %v6920_v37, 0.0  ;;  %v6921_v45 = vadd.f32 %v6911_v17, %v6899_v48 }
 0x492   : > { %v6927_v47 = vmax.f32 %v6923_v56, 0.0  ;;  %v7024_v35 = vmul.f32 %v8165_v20, %v6926_v41 }
 0x493   : > { %v6925_v62 = vmax.f32 %v6921_v45, 0.0  ;;  %v7022_v11 = vmul.f32 %v8163_v38, %v6924_v36 }
 0x494   : > { %v7025_v54 = vmul.f32 %v8166_v29, %v6927_v47 }
 0x495   : > { %v7023_v15 = vmul.f32 %v8164_v3, %v6925_v62 }
 0x496   : > { %v8201_v13 = vpack.c.bf16 %v7025_v54, %v7024_v35 }
 0x497   : > { %v8196_v50 = vpack.c.bf16 %v7023_v15, %v7022_v11 }
 0x498   : > { %8205 = vst [vmem:[%s12201_s21 + $0x18] sm:$0xff] %v8201_v13  }
 0x499   : > { %8204 = vst [vmem:[%s12201_s21 + $0x10] sm:$0xff] %v8196_v50  }
 0x49a PF: > { %s18_s27 = sadd.s32 1, %s10105_s27  }
 0x49b   : > { %p15_p6 = scmp.ge.s32.totalorder %s18_s27, 5  }
 0x49d   :  { %17 = sbr.rel (!%p15_p6) target bundleno = 1 (0x1), region = 101 }

// kernel: resnet_stage0_forward.7
= control target key start
LH: loop header
LB: loop body
LE: loop exit
PB: predicated region body
PF: predicated region fallthrough
CT: control target
= control target key end

     0   :  { %s10152_s27 = smov 0   ;;  %s12271_s0 = inlined_call_operand.vmem [shape: bf16[192,128], index: 0, kind: input, shape index: {}, may-alias: {0,1}]   ;;  %s12272_s1 = inlined_call_operand.vmem [shape: bf16[192,128], index: 1, kind: input, shape index: {}, may-alias: {0,1}]   ;;  %s12273_s2 = inlined_call_operand.vmem [shape: bf16[9,128,128], index: 2, kind: input, shape index: {}]   ;;  %s12274_s3 = inlined_call_operand.vmem [shape: f32[1,128], index: 3, kind: input, shape index: {}]   ;;  %s12275_s4 = inlined_call_operand.vmem [shape: f32[1,128], index: 4, kind: input, shape index: {}]   ;;  %s12276_s5 = inlined_call_operand.vmem [shape: bf16[9,128,128], index: 5, kind: input, shape index: {}]   ;;  %s12277_s6 = inlined_call_operand.vmem [shape: f32[1,128], index: 6, kind: input, shape index: {}]   ;;  %s12278_s7 = inlined_call_operand.vmem [shape: f32[1,128], index: 7, kind: input, shape index: {}]   ;;  %s12279_s8 = inlined_call_operand.vmem [shape: bf16[128,128], index: 8, kind: output, shape index: {}]  }
   0x1 LB: > { %s7113_s28 = sadd.s32 4294967295, %s10104_s27   ;;  %p7117_p0 = scmp.ge.s32.totalorder %s10104_s27, 1  ;;  %s10104_s27 = sphi %s10152_s27, %s18_s27  }
   0x2   : > { %p278_p1 = scmp.lt.s32.totalorder %s10104_s27, 3 }
   0x4   : > { %p279_p2 = pnand %p7117_p0, %p278_p1 }
   0x5   : > { %v9724_v0 = vld [vmem:[%s12273_s2 + $0x40] sm:$0xff] (!%p279_p2)   ;;  %s10165_s9 = sshll.u32 (!%p279_p2), %s7113_s28, 3  ;;  %v9726_v2 = vld [vmem:[%s12273_s2 + $0x48] sm:$0xff] (!%p279_p2)   ;;  %v9728_v4 = vld [vmem:[%s12273_s2 + $0x50] sm:$0xff] (!%p279_p2)   ;;  %vm12284_vm0 = vsmask.f32 (!%p279_p2), 7424 }
   0x6   : > { %282 = sbr.rel (%p279_p2) target bundleno = 1178 (0x49a), region = 52  ;;  %v9725_v1 = vld [vmem:[%s12273_s2 + $0x100] sm:$0xff] (!%p279_p2)   ;;  %8655 = vmatprep.subr.bf16.mxu1 (!%p279_p2), %v9724_v0  ;;  %v9727_v3 = vld [vmem:[%s12273_s2 + $0x108] sm:$0xff] (!%p279_p2)   ;;  %p319_p3 = scmp.lt.s32.totalorder (!%p279_p2), %s10165_s9, 23  ;;  %v9729_v5 = vld [vmem:[%s12273_s2 + $0x110] sm:$0xff] (!%p279_p2)   ;;  %vm12282_vm2 = vcmask (!%p279_p2), 1044480  }
   0x7   : > { %8735 = vmatprep.subr.bf16.mxu0 (!%p279_p2), %v9725_v1  ;;  %8656 = vmatpush3.bf16.msra.mxu1 (!%p279_p2), %v9724_v0  ;;  %v9730_v6 = vld [vmem:[%s12273_s2 + $0x58] sm:$0xff] (!%p279_p2)   ;;  %v9732_v8 = vld [vmem:[%s12273_s2 + $0x60] sm:$0xff] (!%p279_p2)   ;;  %v9734_v10 = vld [vmem:[%s12273_s2 + $0x68] sm:$0xff] (!%p279_p2)   ;;  %vm12281_vm1 = vsmask.f32 (!%p279_p2), 4352  ;;  %vm12280_vm3 = vcmask (!%p279_p2), 1043456  }
   0x8   : > { %8736 = vmatpush3.bf16.msra.mxu0 (!%p279_p2), %v9725_v1  ;;  %8657 = vmatprep.subr.bf16.mxu1 (!%p279_p2), %v9726_v2  ;;  %v9731_v7 = vld [vmem:[%s12273_s2 + $0x118] sm:$0xff] (!%p279_p2)   ;;  %v9733_v9 = vld [vmem:[%s12273_s2 + $0x120] sm:$0xff] (!%p279_p2)   ;;  %v9735_v11 = vld [vmem:[%s12273_s2 + $0x128] sm:$0xff] (!%p279_p2)   ;;  %vm12283_vm4 = vcmask (!%p279_p2), 1046528   ;;  %vm12285_vm5 = vcmask (!%p279_p2), 1041408   ;;  %s8173_s18 = sadd.s32 (!%p279_p2), 8, %s10165_s9 }
   0x9   : > { %8737 = vmatprep.subr.bf16.mxu0 (!%p279_p2), %v9727_v3  ;;  %v9736_v17 = vld [vmem:[%s12273_s2 + $0x70] sm:$0xff] (!%p279_p2)   ;;  %v9738_v23 = vld [vmem:[%s12273_s2 + $0x78] sm:$0xff] (!%p279_p2)   ;;  %v9742_v30 = vld [vmem:[%s12273_s2] sm:$0xff] (!%p279_p2)   ;;  %p326_p4 = scmp.lt.s32.totalorder (!%p279_p2), %s8173_s18, 23  ;;  %vm12287_vm6 = vsmask.f32 (!%p279_p2), 1280 }
   0xa   : > { %v9737_v19 = vld [vmem:[%s12273_s2 + $0x130] sm:$0xff] (!%p279_p2)   ;;  %v9739_v25 = vld [vmem:[%s12273_s2 + $0x138] sm:$0xff] (!%p279_p2)   ;;  %v9743_v33 = vld [vmem:[%s12273_s2 + $0x140] sm:$0xff] (!%p279_p2)   ;;  %vm12286_vm7 = vcmask (!%p279_p2), 1040384   ;;  %s10801_s22 = sshll.u32 (!%p279_p2), %s7113_s28, 6  ;;  %p333_p5 = scmp.lt.s32.totalorder (!%p279_p2), %s10165_s9, 15 }
   0xb   : > { %8658 = vmatpush3.bf16.msra.mxu1 (!%p279_p2), %v9726_v2  ;;  %v9745_v44 = vld [vmem:[%s12273_s2 + $0x8] sm:$0xff] (!%p279_p2)   ;;  %v9747_v56 = vld [vmem:[%s12273_s2 + $0x10] sm:$0xff] (!%p279_p2)   ;;  %v9749_v0 = vld [vmem:[%s12273_s2 + $0x18] sm:$0xff] (!%p279_p2)   ;;  %s1616_s28 = sadd.s32 (!%p279_p2), 4294967289, %s10801_s22  ;;  %s2922_s21 = sadd.s32 (!%p279_p2), 25, %s10801_s22 }
   0xc   : > { %8738 = vmatpush3.bf16.msra.mxu0 (!%p279_p2), %v9727_v3  ;;  %8659 = vmatprep.subr.bf16.mxu1 (!%p279_p2), %v9728_v4  ;;  %v9746_v52 = vld [vmem:[%s12273_s2 + $0x148] sm:$0xff] (!%p279_p2)   ;;  %v9748_v60 = vld [vmem:[%s12273_s2 + $0x150] sm:$0xff] (!%p279_p2)   ;;  %v9750_v2 = vld [vmem:[%s12273_s2 + $0x158] sm:$0xff] (!%p279_p2)   ;;  %s6927_s11 = sadd.s32 (!%p279_p2), 32, %s10801_s22 }
   0xd   : > { %s320_s20 = scalar_select %p319_p3, %s10165_s9, 23  ;;  %8739 = vmatprep.subr.bf16.mxu0 %v9729_v5  ;;  %v9751_v3 = vld [vmem:[%s12273_s2 + $0x20] sm:$0xff]  }
   0xe   : > { %s12407_s18 = smov (!%p326_p4, %s8173_s18), 23  ;;  %s12409_s9 = smov (!%p333_p5, %s10165_s9), 15 }
   0xf   : > { %8660 = vmatpush3.bf16.msra.mxu1 %v9728_v4  ;;  %s7119_s25 = sshll.u32 %s320_s20, 2  ;;  %v9752_v4 = vld [vmem:[%s12273_s2 + $0x160] sm:$0xff]   ;;  %s7121_s14 = sshll.u32 %s12407_s18, 2 }
  0x10   : > { %8740 = vmatpush3.bf16.msra.mxu0 %v9729_v5  ;;  %8661 = vmatprep.subr.bf16.mxu1 %v9730_v6  ;;  %s10202_s15 = scalar_lea.vmem %s12271_s0, %s7119_s25  ;;  %v9753_v5 = vld [vmem:[%s12273_s2 + $0x28] sm:$0xff]   ;;  %s10386_s18 = scalar_lea.vmem %s12272_s1, %s7121_s14 }
  0x11   : > { %8741 = vmatprep.subr.bf16.mxu0 %v9731_v7  ;;  %v10208_v12 = vld [vmem:[%s10202_s15] sm:$0xff]   ;;  %v10211_v13 = vld [vmem:[%s10202_s15 + $0x8] sm:$0xff]   ;;  %v10224_v18 = vld [vmem:[%s10202_s15 + $0x10] sm:$0xff]   ;;  %s7123_s16 = sshll.u32 %s12409_s9, 2 }
  0x12   : > { %372 = vst [vmem:[#allocation2] sm:$0xff] %v10208_v12  ;;  %373 = vst [vmem:[#allocation2 + $0x8] sm:$0xff] %v10211_v13  ;;  %v441_v14 = vshrl.u32 %v10208_v12, 16  ;;  %v443_v15 = vshll.u32 %v10208_v12, 16  ;;  %v10218_v16 = vshll.u32 %v10211_v13, 16  ;;  %v10231_v22 = vshrl.u32 %v10211_v13, 16  ;;  %s12200_s20 = scalar_lea.vmem %s12279_s8, %s7123_s16 }
  0x13   : > { %8662 = vmatpush3.bf16.msra.mxu1 %v9730_v6  ;;  %374 = vst [vmem:[#allocation2 + $0x10] sm:$0xff] %v10224_v18  ;;  %v809_v48 = vrot.slane %v10211_v13, 3  ;;  %v1081_v59 = vrot.slane %v10211_v13, 4  ;;  %v9754_v6 = vld [vmem:[%s12273_s2 + $0x168] sm:$0xff]  }
  0x14   : > { %8742 = vmatpush3.bf16.msra.mxu0 %v9731_v7  ;;  %8663 = vmatprep.subr.bf16.mxu1 %v9732_v8  ;;  %v445_v20 = vrot.slane %v443_v15, 1  ;;  %v450_v21 = vrot.slane %v10218_v16, 1  ;;  %v943_v27 = vrot.slane %v10231_v22, 3  ;;  %v944_v28 = vrot.slane %v10218_v16, 4  ;;  %v9755_v7 = vld [vmem:[%s12273_s2 + $0x30] sm:$0xff]   ;;  %v9759_v15 = vld [vmem:[%s12273_s2 + $0x80] sm:$0xff]  }
  0x15   : > { %8743 = vmatprep.subr.bf16.mxu0 %v9733_v9  ;;  %v1345_v55 = vrot.slane %v10231_v22, 6  ;;  %v1346_v58 = vrot.slane %v10218_v16, 7 }
  0x16   : > { %v446_v24 = vor.u32 %v445_v20, %v441_v14  ;;  %v945_v36 = vor.u32 %v944_v28, %v943_v27  ;;  %v454_v39 = vor.u32 %v10231_v22, %v450_v21  ;;  %v9760_v20 = vld [vmem:[%s12273_s2 + $0x180] sm:$0xff]   ;;  %v9761_v22 = vld [vmem:[%s12273_s2 + $0x88] sm:$0xff]   ;;  %v9763_v27 = vld [vmem:[%s12273_s2 + $0x90] sm:$0xff]  }
  0x17   : > { %8664 = vmatpush3.bf16.msra.mxu1 %v9732_v8  ;;  %v10282_v62 = vor.u32 %v1346_v58, %v1345_v55  ;;  %v9756_v8 = vld [vmem:[%s12273_s2 + $0x170] sm:$0xff]   ;;  %v9778_v55 = vld [vmem:[%s12273_s2 + $0x1c8] sm:$0xff]  }
  0x18   : > { %8744 = vmatpush3.bf16.msra.mxu0 %v9733_v9  ;;  %8665 = vmatprep.subr.bf16.mxu1 %v9734_v10  ;;  %v451_v26 = vsel %vm12284_vm0, %v446_v24, %v450_v21  ;;  %v9757_v9 = vld [vmem:[%s12273_s2 + $0x38] sm:$0xff]   ;;  %v9764_v28 = vld [vmem:[%s12273_s2 + $0x190] sm:$0xff]  }
  0x19   : > { %8745 = vmatprep.subr.bf16.mxu0 %v9735_v11  ;;  %8671 = vmatprep.mubr.bf16.mxu1 %v451_v26  ;;  %v786_v29 = vld [vmem:[#allocation2] sm:$0xf8]  ;;  %v9779_v58 = vld [vmem:[%s12273_s2 + $0xd0] sm:$0xff]  }
  0x1a   : > { %v936_v31 = vshrl.u32 %v786_v29, 16  ;;  %v939_v32 = vshll.u32 %v786_v29, 16  ;;  %v10249_v37 = vld [vmem:[#allocation2 + $0x10] sm:$0x1]  ;;  %v808_v53 = vrot.slane %v786_v29, 3  ;;  %v9765_v29 = vld [vmem:[%s12273_s2 + $0x98] sm:$0xff]  }
  0x1b   : > { %8666 = vmatpush3.bf16.msra.mxu1 %v9734_v10  ;;  %v10251_v38 = vld [vmem:[#allocation2 + $0x10] sm:$0xf]  ;;  %v456_v40 = vshll.u32 %v10249_v37, 16  ;;  %v1059_v61 = vld [vmem:[#allocation2] sm:$0xf0] }
  0x1c   : > { %8746 = vmatpush3.bf16.msra.mxu0 %v9735_v11  ;;  %8667 = vmatprep.subr.bf16.mxu1 %v9736_v17  ;;  %v938_v34 = vrot.slane %v936_v31, 3  ;;  %v941_v35 = vrot.slane %v939_v32, 4  ;;  %v948_v41 = vshrl.u32 %v10251_v38, 16  ;;  %v951_v42 = vshll.u32 %v10251_v38, 16  ;;  %v656_v10 = vld [vmem:[#allocation2] sm:$0xfe] }
  0x1d   : > { %8747 = vmatprep.subr.bf16.mxu0 %v9737_v19  ;;  %v458_v45 = vrot.slane %v456_v40, 1  ;;  %v10275_v57 = vsel %vm12282_vm2, %v808_v53, %v809_v48  ;;  %v1080_v63 = vrot.slane %v1059_v61, 4  ;;  %v9758_v11 = vld [vmem:[%s12273_s2 + $0x178] sm:$0xff]   ;;  %v10316_v14 = vld [vmem:[#allocation2] sm:$0xc0]  ;;  %v678_v16 = vrot.slane %v656_v10, 1 }
  0x1e   : > { %v942_v43 = vor.u32 %v941_v35, %v938_v34  ;;  %v950_v46 = vrot.slane %v948_v41, 3  ;;  %v953_v47 = vrot.slane %v951_v42, 4  ;;  %v1210_v21 = vrot.slane %v10316_v14, 6  ;;  %v9767_v31 = vld [vmem:[%s12273_s2 + $0xa0] sm:$0xff]   ;;  %v9770_v34 = vld [vmem:[%s12273_s2 + $0x1a8] sm:$0xff]   ;;  %v9771_v35 = vld [vmem:[%s12273_s2 + $0xb0] sm:$0xff]  }
  0x1f   : > { %8668 = vmatpush3.bf16.msra.mxu1 %v9736_v17  ;;  %v459_v50 = vsel %vm12284_vm0, %v454_v39, %v458_v45  ;;  %v1082_v1 = vsel %vm12280_vm3, %v1080_v63, %v1081_v59  ;;  %v1083_v17 = vrot.slane %v10251_v38, 4  ;;  %v9768_v32 = vld [vmem:[%s12273_s2 + $0x1a0] sm:$0xff]   ;;  %v1338_v38 = vshrl.u32 %v10316_v14, 16  ;;  %v9773_v40 = vld [vmem:[%s12273_s2 + $0xb8] sm:$0xff]   ;;  %v9777_v53 = vld [vmem:[%s12273_s2 + $0xc8] sm:$0xff]  }
  0x20   : > { %8748 = vmatpush3.bf16.msra.mxu0 %v9737_v19  ;;  %8669 = vmatprep.subr.bf16.mxu1 %v9738_v23  ;;  %v946_v49 = vsel %vm12281_vm1, %v942_v43, %v945_v36  ;;  %v954_v51 = vor.u32 %v953_v47, %v950_v46  ;;  %v1211_v19 = vrot.slane %v10211_v13, 6  ;;  %v1341_v39 = vshll.u32 %v10316_v14, 16  ;;  %v9774_v41 = vld [vmem:[%s12273_s2 + $0x1b8] sm:$0xff]   ;;  %v1189_v43 = vld [vmem:[#allocation2 + $0x10] sm:$0x3f]  ;;  %v10391_v47 = vld [vmem:[%s10386_s18] sm:$0xff]  }
  0x21   : > { %8749 = vmatprep.subr.bf16.mxu0 %v9739_v25  ;;  %8751 = vmatprep.mubr.bf16.mxu0 %v946_v49  ;;  %v1084_v24 = vsel %vm12280_vm3, %v1081_v59, %v1083_v17  ;;  %v10381_v42 = vld [vmem:[%s10202_s15 + $0x18] sm:$0xff]   ;;  %v681_v46 = vrot.slane %v10249_v37, 1  ;;  %v9775_v49 = vld [vmem:[%s12273_s2 + $0xc0] sm:$0xff]   ;;  %400 = vst [vmem:[#allocation2 + $0x20] sm:$0xff] %v10391_v47  ;;  %v9780_v59 = vld [vmem:[%s12273_s2 + $0x1d0] sm:$0xff]   ;;  %s4223_s15 = sadd.s32 57, %s10801_s22 }
  0x22   : > { %v955_v54 = vsel %vm12281_vm1, %v945_v36, %v954_v51  ;;  %v1212_v26 = vsel %vm12285_vm5, %v1210_v21, %v1211_v19  ;;  %v9772_v36 = vld [vmem:[%s12273_s2 + $0x1b0] sm:$0xff]   ;;  %v1343_v45 = vrot.slane %v1341_v39, 7  ;;  %375 = vst [vmem:[#allocation2 + $0x18] sm:$0xff] %v10381_v42  ;;  %v9776_v51 = vld [vmem:[%s12273_s2 + $0x1c0] sm:$0xff]   ;;  %v10431_v63 = vld [vmem:[%s10386_s18 + $0x8] sm:$0xff]  }
  0x23   : > { %8670 = vmatpush3.bf16.msra.mxu1 %v9738_v23  ;;  %v9783_v61 = vld [vmem:[%s12273_s2 + $0xe0] sm:$0xff]   ;;  %401 = vst [vmem:[#allocation2 + $0x28] sm:$0xff] %v10431_v63  ;;  %v787_v10 = vld [vmem:[#allocation2 + $0x10] sm:$0x7]  ;;  %v9789_v14 = vld [vmem:[%s12273_s2 + $0xf8] sm:$0xff]  }
  0x24   : > { %8750 = vmatpush3.bf16.msra.mxu0 %v9739_v25  ;;  %8675 = vmatprep.subr.bf16.mxu1 %v9742_v30  ;;  %v9762_v25 = vld [vmem:[%s12273_s2 + $0x188] sm:$0xff]   ;;  %v9792_v21 = vld [vmem:[%s12273_s2 + $0x40] sm:$0xff]  }
  0x25   : > { %8755 = vmatprep.subr.bf16.mxu0 %v9743_v33  ;;  %v9802_v39 = vld [vmem:[%s12273_s2 + $0x68] sm:$0xff]  }
  0x26   : > { %8672 = vmatmul.mubr.bf16.vlgmr.msra.gmra.mrb[0].mxu1 %v459_v50  ;;  %v1213_v50 = vrot.slane %v1189_v43, 6 }
  0x27   : > { %8676 = vmatpush3.bf16.msra.mxu1 %v9742_v30  ;;  %8691 = vmatprep.mubr.bf16.mxu1 %v10208_v12  ;;  %v679_v12 = vrot.slane %v10211_v13, 1  ;;  %v9766_v30 = vld [vmem:[%s12273_s2 + $0x198] sm:$0xff]  }
  0x28   : > { %8752 = vmatmul.mubr.bf16.vlgmr.msra.gmra.mrb[0].mxu0 %v955_v54  ;;  %8677 = vmatprep.subr.bf16.mxu1 %v9745_v44  ;;  %v1214_v54 = vsel %vm12285_vm5, %v1211_v19, %v1213_v50  ;;  %v9790_v19 = vld [vmem:[%s12273_s2 + $0x1f8] sm:$0xff]   ;;  %v10517_v43 = vld [vmem:[#allocation2 + $0x20] sm:$0x1] }
  0x29   : > { %8756 = vmatpush3.bf16.msra.mxu0 %v9743_v33  ;;  %8771 = vmatprep.mubr.bf16.mxu0 %v1082_v1  ;;  %v680_v23 = vsel %vm12283_vm4, %v678_v16, %v679_v12  ;;  %v9769_v33 = vld [vmem:[%s12273_s2 + $0xa8] sm:$0xff]   ;;  %v682_v37 = vsel %vm12283_vm4, %v679_v12, %v681_v46  ;;  %v9828_v1 = vld [vmem:[%s10386_s18 + $0x10] sm:$0xff]   ;;  %v10524_v46 = vshrl.u32 %v10381_v42, 16  ;;  %v9806_v50 = vld [vmem:[%s12273_s2 + $0x78] sm:$0xff]  }
  0x2a   : > { %8757 = vmatprep.subr.bf16.mxu0 %v9746_v52  ;;  %402 = vst [vmem:[#allocation2 + $0x30] sm:$0xff] %v9828_v1 }
  0x2b   : > { %8678 = vmatpush3.bf16.msra.mxu1 %v9745_v44  ;;  %v1340_v44 = vrot.slane %v1338_v38, 6  ;;  %v9799_v38 = vld [vmem:[%s12273_s2 + $0x220] sm:$0xff]  }
  0x2c   : > { %8679 = vmatprep.subr.bf16.mxu1 %v9747_v56 }
  0x2d   : > { %8758 = vmatpush3.bf16.msra.mxu0 %v9746_v52  ;;  %v1344_v52 = vor.u32 %v1343_v45, %v1340_v44  ;;  %v9803_v44 = vld [vmem:[%s12273_s2 + $0x230] sm:$0xff]   ;;  %v3064_v45 = vshll.u32 %v10391_v47, 16 }
  0x2e   : > { %8759 = vmatprep.subr.bf16.mxu0 %v9748_v60 }
  0x2f   : > { %8680 = vmatpush3.bf16.msra.mxu1 %v9747_v56  ;;  %v1348_v56 = vsel %vm12287_vm6, %v1344_v52, %v10282_v62  ;;  %v10534_v52 = vshll.u32 %v10431_v63, 16 }
  0x30   : > { %8681 = vmatprep.subr.bf16.mxu1 %v9749_v0 }
  0x31   : > { %8760 = vmatpush3.bf16.msra.mxu0 %v9748_v60  ;;  %v9782_v60 = vld [vmem:[%s12273_s2 + $0x1d8] sm:$0xff]  }
  0x32   : > { %8761 = vmatprep.subr.bf16.mxu0 %v9750_v2 }
  0x33   : > { %8682 = vmatpush3.bf16.msra.mxu1 %v9749_v0  ;;  %v9784_v0 = vld [vmem:[%s12273_s2 + $0x1e0] sm:$0xff]  }
  0x34   : > { %8683 = vmatprep.subr.bf16.mxu1 %v9751_v3 }
  0x35   : > { %8762 = vmatpush3.bf16.msra.mxu0 %v9750_v2  ;;  %v9785_v2 = vld [vmem:[%s12273_s2 + $0xe8] sm:$0xff]  }
  0x36   : > { %8763 = vmatprep.subr.bf16.mxu0 %v9752_v4 }
  0x37   : > { %8684 = vmatpush3.bf16.msra.mxu1 %v9751_v3  ;;  %v9786_v3 = vld [vmem:[%s12273_s2 + $0x1e8] sm:$0xff]  }
  0x38   : > { %8685 = vmatprep.subr.bf16.mxu1 %v9753_v5 }
  0x39   : > { %8764 = vmatpush3.bf16.msra.mxu0 %v9752_v4  ;;  %v10444_v4 = vld [vmem:[#allocation2 + $0x10] sm:$0x7f] }
  0x3a   : > { %8765 = vmatprep.subr.bf16.mxu0 %v9754_v6 }
  0x3b   : > { %8686 = vmatpush3.bf16.msra.mxu1 %v9753_v5  ;;  %v1763_v5 = vshll.u32 %v10224_v18, 16 }
  0x3c   : > { %8687 = vmatprep.subr.bf16.mxu1 %v9755_v7 }
  0x3d   : > { %8766 = vmatpush3.bf16.msra.mxu0 %v9754_v6  ;;  %v9787_v6 = vld [vmem:[%s12273_s2 + $0xf0] sm:$0xff]   ;;  %v1765_v12 = vrot.slane %v1763_v5, 1 }
  0x3e   : > { %8767 = vmatprep.subr.bf16.mxu0 %v9756_v8  ;;  %v9814_v5 = vld [vmem:[%s12273_s2 + $0x50] sm:$0xff]  }
  0x3f   : > { %8688 = vmatpush3.bf16.msra.mxu1 %v9755_v7  ;;  %v1350_v7 = vshrl.u32 %v10444_v4, 16 }
  0x40   : > { %8689 = vmatprep.subr.bf16.mxu1 %v9757_v9 }
  0x41   : > { %8768 = vmatpush3.bf16.msra.mxu0 %v9756_v8  ;;  %v1353_v8 = vshll.u32 %v10444_v4, 16  ;;  %v1352_v16 = vrot.slane %v1350_v7, 6  ;;  %v9816_v7 = vld [vmem:[%s12273_s2 + $0x58] sm:$0xff]  }
  0x42   : > { %8769 = vmatprep.subr.bf16.mxu0 %v9758_v11 }
  0x43   : > { %8690 = vmatpush3.bf16.msra.mxu1 %v9757_v9  ;;  %v9788_v9 = vld [vmem:[%s12273_s2 + $0x1f0] sm:$0xff]   ;;  %v1355_v17 = vrot.slane %v1353_v8, 7  ;;  %v9817_v8 = vld [vmem:[%s12273_s2 + $0x20] sm:$0xff]  }
  0x44   : > { %8695 = vmatprep.subr.bf16.mxu1 %v9759_v15 }
  0x45   : > { %8770 = vmatpush3.bf16.msra.mxu0 %v9758_v11  ;;  %v1761_v11 = vshrl.u32 %v10224_v18, 16  ;;  %v1461_v18 = vld [vmem:[#allocation2] sm:$0x80] }
  0x46   : > { %8775 = vmatprep.subr.bf16.mxu0 %v9760_v20  ;;  %8692 = vmatmul.mubr.bf16.vlgmr.msra.gmra.mrb[0].mxu1 %v10211_v13 }
  0x47   : > { %8696 = vmatpush3.bf16.msra.mxu1 %v9759_v15  ;;  %8711 = vmatprep.mubr.bf16.mxu1 %v680_v23  ;;  %v10460_v15 = vshll.u32 %v10381_v42, 16 }
  0x48   : > { %8772 = vmatmul.mubr.bf16.vlgmr.msra.gmra.mrb[0].mxu0 %v1084_v24  ;;  %8697 = vmatprep.subr.bf16.mxu1 %v9761_v22  ;;  %v1356_v24 = vor.u32 %v1355_v17, %v1352_v16  ;;  %v9822_v16 = vld [vmem:[%s12273_s2 + $0x70] sm:$0xff]  }
  0x49   : > { %8776 = vmatpush3.bf16.msra.mxu0 %v9760_v20  ;;  %8791 = vmatprep.mubr.bf16.mxu0 %v1212_v26  ;;  %v811_v20 = vrot.slane %v787_v10, 3  ;;  %v1770_v23 = vrot.slane %v10460_v15, 1  ;;  %v9791_v26 = vld [vmem:[%s12273_s2 + $0x200] sm:$0xff]   ;;  %v9819_v10 = vld [vmem:[%s12273_s2 + $0x28] sm:$0xff]   ;;  %v10592_v17 = vld [vmem:[#allocation2 + $0x30] sm:$0x1] }
  0x4a   : > { %8777 = vmatprep.subr.bf16.mxu0 %v9762_v25 }
  0x4b   : > { %8698 = vmatpush3.bf16.msra.mxu1 %v9761_v22  ;;  %v1766_v22 = vor.u32 %v1765_v12, %v1761_v11  ;;  %v9820_v11 = vld [vmem:[%s12273_s2 + $0x68] sm:$0xff]   ;;  %v1997_v12 = vrot.slane %v10381_v42, 1 }
  0x4c   : > { %8699 = vmatprep.subr.bf16.mxu1 %v9763_v27 }
  0x4d   : > { %8778 = vmatpush3.bf16.msra.mxu0 %v9762_v25  ;;  %v1483_v25 = vrot.slane %v10211_v13, 7  ;;  %v9813_v13 = vld [vmem:[%s12273_s2 + $0x10] sm:$0xff]  }
  0x4e   : > { %8779 = vmatprep.subr.bf16.mxu0 %v9764_v28 }
  0x4f   : > { %8700 = vmatpush3.bf16.msra.mxu1 %v9763_v27  ;;  %v1482_v27 = vrot.slane %v1461_v18, 7  ;;  %v9824_v18 = vld [vmem:[%s12273_s2 + $0x78] sm:$0xff]  }
  0x50   : > { %8701 = vmatprep.subr.bf16.mxu1 %v9765_v29 }
  0x51   : > { %8780 = vmatpush3.bf16.msra.mxu0 %v9764_v28  ;;  %v812_v28 = vsel %vm12282_vm2, %v809_v48, %v811_v20  ;;  %v9793_v48 = vld [vmem:[%s12273_s2 + $0x208] sm:$0xff]   ;;  %v9823_v20 = vld [vmem:[%s12273_s2 + $0x38] sm:$0xff]  }
  0x52   : > { %8781 = vmatprep.subr.bf16.mxu0 %v9766_v30 }
  0x53   : > { %8702 = vmatpush3.bf16.msra.mxu1 %v9765_v29  ;;  %v9794_v29 = vld [vmem:[%s12273_s2 + $0x48] sm:$0xff]  }
  0x54   : > { %8703 = vmatprep.subr.bf16.mxu1 %v9767_v31 }
  0x55   : > { %8782 = vmatpush3.bf16.msra.mxu0 %v9766_v30  ;;  %v1771_v30 = vsel %vm12284_vm0, %v1766_v22, %v1770_v23  ;;  %v3077_v22 = vshll.u32 %v10592_v17, 16 }
  0x56   : > { %8783 = vmatprep.subr.bf16.mxu0 %v9768_v32 }
  0x57   : > { %8704 = vmatpush3.bf16.msra.mxu1 %v9767_v31  ;;  %v1357_v31 = vsel %vm12287_vm6, %v10282_v62, %v1356_v24  ;;  %v9795_v62 = vld [vmem:[%s12273_s2 + $0x210] sm:$0xff]   ;;  %v9825_v24 = vld [vmem:[%s12273_s2 + $0x80] sm:$0xff]  }
  0x58   : > { %8705 = vmatprep.subr.bf16.mxu1 %v9769_v33 }
  0x59   : > { %8784 = vmatpush3.bf16.msra.mxu0 %v9768_v32  ;;  %v1484_v32 = vsel %vm12286_vm7, %v1482_v27, %v1483_v25  ;;  %v9827_v27 = vld [vmem:[%s12273_s2] sm:$0xff]  }
  0x5a   : > { %8785 = vmatprep.subr.bf16.mxu0 %v9770_v34 }
  0x5b   : > { %8706 = vmatpush3.bf16.msra.mxu1 %v9769_v33  ;;  %v9796_v33 = vld [vmem:[%s12273_s2 + $0x50] sm:$0xff]  }
  0x5c   : > { %8707 = vmatprep.subr.bf16.mxu1 %v9771_v35 }
  0x5d   : > { %8786 = vmatpush3.bf16.msra.mxu0 %v9770_v34  ;;  %v9798_v34 = vld [vmem:[%s12273_s2 + $0x58] sm:$0xff]  }
  0x5e   : > { %8787 = vmatprep.subr.bf16.mxu0 %v9772_v36 }
  0x5f   : > { %8708 = vmatpush3.bf16.msra.mxu1 %v9771_v35  ;;  %v9797_v35 = vld [vmem:[%s12273_s2 + $0x218] sm:$0xff]  }
  0x60   : > { %8709 = vmatprep.subr.bf16.mxu1 %v9773_v40 }
  0x61   : > { %8788 = vmatpush3.bf16.msra.mxu0 %v9772_v36  ;;  %v9800_v36 = vld [vmem:[%s12273_s2 + $0x60] sm:$0xff]  }
  0x62   : > { %8789 = vmatprep.subr.bf16.mxu0 %v9774_v41 }
  0x63   : > { %8710 = vmatpush3.bf16.msra.mxu1 %v9773_v40  ;;  %v9801_v40 = vld [vmem:[%s12273_s2 + $0x228] sm:$0xff]  }
  0x64   : > { %8715 = vmatprep.subr.bf16.mxu1 %v9775_v49 }
  0x65   : > { %8790 = vmatpush3.bf16.msra.mxu0 %v9774_v41  ;;  %v9804_v41 = vld [vmem:[%s12273_s2 + $0x70] sm:$0xff]  }
  0x66   : > { %8795 = vmatprep.subr.bf16.mxu0 %v9776_v51  ;;  %8712 = vmatmul.mubr.bf16.vlgmr.msra.gmra.mrb[0].mxu1 %v682_v37  ;;  %v3062_v37 = vshrl.u32 %v10391_v47, 16 }
  0x67   : > { %8716 = vmatpush3.bf16.msra.mxu1 %v9775_v49  ;;  %8731 = vmatprep.mubr.bf16.mxu1 %v10275_v57  ;;  %v9781_v57 = vld [vmem:[%s12273_s2 + $0xd8] sm:$0xff]   ;;  %v1776_v49 = vshll.u32 %v10517_v43, 16 }
  0x68   : > { %8792 = vmatmul.mubr.bf16.vlgmr.msra.gmra.mrb[0].mxu0 %v1214_v54  ;;  %8717 = vmatprep.subr.bf16.mxu1 %v9777_v53  ;;  %v9808_v54 = vld [vmem:[%s12273_s2] sm:$0xff]  }
  0x69   : > { %8796 = vmatpush3.bf16.msra.mxu0 %v9776_v51  ;;  %8811 = vmatprep.mubr.bf16.mxu0 %v1348_v56  ;;  %v9805_v51 = vld [vmem:[%s12273_s2 + $0x238] sm:$0xff]   ;;  %v1778_v56 = vrot.slane %v1776_v49, 1 }
  0x6a   : > { %8797 = vmatprep.subr.bf16.mxu0 %v9778_v55 }
  0x6b   : > { %8718 = vmatpush3.bf16.msra.mxu1 %v9777_v53  ;;  %v3066_v53 = vrot.slane %v3064_v45, 1  ;;  %v9842_v45 = vld [vmem:[%s12273_s2 + $0x38] sm:$0xff]  }
  0x6c   : > { %8719 = vmatprep.subr.bf16.mxu1 %v9779_v58 }
  0x6d   : > { %8798 = vmatpush3.bf16.msra.mxu0 %v9778_v55  ;;  %v1774_v55 = vor.u32 %v10524_v46, %v1770_v23 }
  0x6e   : > { %8799 = vmatprep.subr.bf16.mxu0 %v9780_v59 }
  0x6f   : > { %8720 = vmatpush3.bf16.msra.mxu1 %v9779_v58  ;;  %v1485_v58 = vrot.slane %v10444_v4, 7  ;;  %v10091_v4 = vld [vmem:[#allocation2 + $0x10] sm:$0xff] }
  0x70   : > { %8721 = vmatprep.subr.bf16.mxu1 %v9781_v57 }
  0x71   : > { %8800 = vmatpush3.bf16.msra.mxu0 %v9780_v59  ;;  %v9809_v59 = vld [vmem:[%s12273_s2 + $0x40] sm:$0xff]   ;;  %v1486_v1 = vsel %vm12286_vm7, %v1483_v25, %v1485_v58  ;;  %v9845_v58 = vld [vmem:[%s12273_s2 + $0xc8] sm:$0xff]  }
  0x72   : > { %8801 = vmatprep.subr.bf16.mxu0 %v9782_v60 }
  0x73   : > { %8722 = vmatpush3.bf16.msra.mxu1 %v9781_v57  ;;  %v3071_v57 = vrot.slane %v10534_v52, 1 }
  0x74   : > { %8723 = vmatprep.subr.bf16.mxu1 %v9783_v61 }
  0x75   : > { %8802 = vmatpush3.bf16.msra.mxu0 %v9782_v60  ;;  %v3067_v60 = vor.u32 %v3066_v53, %v3062_v37  ;;  %v3277_v37 = vld [vmem:[#allocation2 + $0x20] sm:$0xfe] }
  0x76   : > { %8803 = vmatprep.subr.bf16.mxu0 %v9784_v0  ;;  %v9844_v53 = vld [vmem:[%s12273_s2 + $0x80] sm:$0xff]  }
  0x77   : > { %8724 = vmatpush3.bf16.msra.mxu1 %v9783_v61  ;;  %v1779_v61 = vsel %vm12284_vm0, %v1774_v55, %v1778_v56  ;;  %v3298_v55 = vrot.slane %v10431_v63, 1 }
  0x78   : > { %8725 = vmatprep.subr.bf16.mxu1 %v9785_v2 }
  0x79   : > { %8804 = vmatpush3.bf16.msra.mxu0 %v9784_v0  ;;  %v9811_v0 = vld [vmem:[%s12273_s2 + $0x8] sm:$0xff]  }
  0x7a   : > { %8805 = vmatprep.subr.bf16.mxu0 %v9786_v3 }
  0x7b   : > { %8726 = vmatpush3.bf16.msra.mxu1 %v9785_v2  ;;  %v9812_v2 = vld [vmem:[%s12273_s2 + $0x48] sm:$0xff]  }
  0x7c   : > { %8727 = vmatprep.subr.bf16.mxu1 %v9787_v6 }
  0x7d   : > { %8806 = vmatpush3.bf16.msra.mxu0 %v9786_v3  ;;  %v3072_v3 = vsel %vm12284_vm0, %v3067_v60, %v3071_v57  ;;  %v9847_v60 = vld [vmem:[%s12273_s2 + $0xd0] sm:$0xff]  }
  0x7e   : > { %8807 = vmatprep.subr.bf16.mxu0 %v9788_v9 }
  0x7f   : > { %8728 = vmatpush3.bf16.msra.mxu1 %v9787_v6  ;;  %v9815_v6 = vld [vmem:[%s12273_s2 + $0x18] sm:$0xff]  }
  0x80   : > { %8729 = vmatprep.subr.bf16.mxu1 %v9789_v14 }
  0x81   : > { %8808 = vmatpush3.bf16.msra.mxu0 %v9788_v9  ;;  %v9818_v9 = vld [vmem:[%s12273_s2 + $0x60] sm:$0xff]  }
  0x82   : > { %8809 = vmatprep.subr.bf16.mxu0 %v9790_v19 }
  0x83   : > { %8730 = vmatpush3.bf16.msra.mxu1 %v9789_v14  ;;  %v9821_v14 = vld [vmem:[%s12273_s2 + $0x30] sm:$0xff]  }
  0x84   : > { %8835 = vmatprep.subr.bf16.mxu1 %v9792_v21 }
  0x85   : > { %8810 = vmatpush3.bf16.msra.mxu0 %v9790_v19  ;;  %v1976_v19 = vld [vmem:[#allocation2 + $0x10] sm:$0xfe] }
  0x86   : > { %8732 = vmatmul.mubr.bf16.vlgmr.msra.gmra.mrb[0].mxu1 %v812_v28  ;;  %8815 = vmatprep.subr.bf16.mxu0 %v9791_v26  ;;  %v1996_v23 = vrot.slane %v1976_v19, 1  ;;  %v9829_v28 = vld [vmem:[%s12273_s2 + $0x88] sm:$0xff]   ;;  %v9858_v19 = vld [vmem:[%s12273_s2 + $0xb8] sm:$0xff]  }
  0x87   : > { %8836 = vmatpush3.bf16.msra.mxu1 %v9792_v21  ;;  %8851 = vmatprep.mubr.bf16.mxu1 %v1771_v30  ;;  %v10601_v21 = vshrl.u32 %v10431_v63, 16 }
  0x88   : > { %8812 = vmatmul.mubr.bf16.vlgmr.msra.gmra.mrb[0].mxu0 %v1357_v31  ;;  %8837 = vmatprep.subr.bf16.mxu1 %v9794_v29  ;;  %v9830_v31 = vld [vmem:[%s12273_s2 + $0x8] sm:$0xff]  }
  0x89   : > { %8816 = vmatpush3.bf16.msra.mxu0 %v9791_v26  ;;  %8831 = vmatprep.mubr.bf16.mxu0 %v1484_v32  ;;  %v3075_v25 = vor.u32 %v10601_v21, %v3071_v57  ;;  %v3079_v26 = vrot.slane %v3077_v22, 1  ;;  %v9832_v32 = vld [vmem:[%s12273_s2 + $0x10] sm:$0xff]   ;;  %v9846_v57 = vld [vmem:[%s12273_s2 + $0x88] sm:$0xff]   ;;  %v9859_v22 = vld [vmem:[%s12273_s2 + $0x100] sm:$0xff]  }
  0x8a   : > { %8817 = vmatprep.subr.bf16.mxu0 %v9793_v48 }
  0x8b   : > { %8838 = vmatpush3.bf16.msra.mxu1 %v9794_v29  ;;  %v1998_v29 = vsel %vm12283_vm4, %v1996_v23, %v1997_v12  ;;  %v3080_v30 = vsel %vm12284_vm0, %v3075_v25, %v3079_v26  ;;  %v3300_v25 = vrot.slane %v10592_v17, 1  ;;  %v9860_v26 = vld [vmem:[%s12273_s2 + $0xc0] sm:$0xff]   ;;  %v9861_v17 = vld [vmem:[%s12273_s2 + $0x108] sm:$0xff]  }
  0x8c   : > { %8839 = vmatprep.subr.bf16.mxu1 %v9796_v33 }
  0x8d   : > { %8818 = vmatpush3.bf16.msra.mxu0 %v9793_v48  ;;  %v9831_v48 = vld [vmem:[%s12273_s2 + $0x90] sm:$0xff]  }
  0x8e   : > { %8819 = vmatprep.subr.bf16.mxu0 %v9795_v62 }
  0x8f   : > { %8840 = vmatpush3.bf16.msra.mxu1 %v9796_v33  ;;  %v9833_v33 = vld [vmem:[%s12273_s2 + $0x98] sm:$0xff]  }
  0x90   : > { %8841 = vmatprep.subr.bf16.mxu1 %v9798_v34 }
  0x91   : > { %8820 = vmatpush3.bf16.msra.mxu0 %v9795_v62  ;;  %v9834_v62 = vld [vmem:[%s12273_s2 + $0x18] sm:$0xff]  }
  0x92   : > { %8821 = vmatprep.subr.bf16.mxu0 %v9797_v35 }
  0x93   : > { %8842 = vmatpush3.bf16.msra.mxu1 %v9798_v34  ;;  %v9835_v34 = vld [vmem:[%s12273_s2 + $0xa0] sm:$0xff]  }
  0x94   : > { %8843 = vmatprep.subr.bf16.mxu1 %v9800_v36 }
  0x95   : > { %8822 = vmatpush3.bf16.msra.mxu0 %v9797_v35  ;;  %v9837_v35 = vld [vmem:[%s12273_s2 + $0xa8] sm:$0xff]  }
  0x96   : > { %8823 = vmatprep.subr.bf16.mxu0 %v9799_v38 }
  0x97   : > { %8844 = vmatpush3.bf16.msra.mxu1 %v9800_v36  ;;  %v9838_v36 = vld [vmem:[%s12273_s2 + $0x28] sm:$0xff]  }
  0x98   : > { %8845 = vmatprep.subr.bf16.mxu1 %v9802_v39 }
  0x99   : > { %8824 = vmatpush3.bf16.msra.mxu0 %v9799_v38  ;;  %v9839_v38 = vld [vmem:[%s12273_s2 + $0xb0] sm:$0xff]  }
  0x9a   : > { %8825 = vmatprep.subr.bf16.mxu0 %v9801_v40 }
  0x9b   : > { %8846 = vmatpush3.bf16.msra.mxu1 %v9802_v39  ;;  %v9840_v39 = vld [vmem:[%s12273_s2 + $0x30] sm:$0xff]  }
  0x9c   : > { %8847 = vmatprep.subr.bf16.mxu1 %v9804_v41 }
  0x9d   : > { %8826 = vmatpush3.bf16.msra.mxu0 %v9801_v40  ;;  %v9841_v40 = vld [vmem:[%s12273_s2 + $0xb8] sm:$0xff]  }
  0x9e   : > { %8827 = vmatprep.subr.bf16.mxu0 %v9803_v44 }
  0x9f   : > { %8848 = vmatpush3.bf16.msra.mxu1 %v9804_v41  ;;  %v1999_v41 = vrot.slane %v10517_v43, 1  ;;  %v9843_v43 = vld [vmem:[%s12273_s2 + $0xc0] sm:$0xff]  }
  0xa0   : > { %8849 = vmatprep.subr.bf16.mxu1 %v9806_v50 }
  0xa1   : > { %8828 = vmatpush3.bf16.msra.mxu0 %v9803_v44  ;;  %v10659_v44 = vld [vmem:[#allocation2 + $0x10] sm:$0xf8]  ;;  %v2000_v56 = vsel %vm12283_vm4, %v1997_v12, %v1999_v41 }
  0xa2   : > { %8829 = vmatprep.subr.bf16.mxu0 %v9805_v51  ;;  %v2124_v49 = vrot.slane %v10659_v44, 3 }
  0xa3   : > { %8850 = vmatpush3.bf16.msra.mxu1 %v9806_v50  ;;  %v10665_v50 = vld [vmem:[#allocation2 + $0x18] sm:$0xff] }
  0xa4   : > { %8855 = vmatprep.subr.bf16.mxu1 %v9808_v54 }
  0xa5   : > { %8830 = vmatpush3.bf16.msra.mxu0 %v9805_v51  ;;  %v2125_v51 = vrot.slane %v10665_v50, 3 }
  0xa6   : > { %9015 = vmatprep.subr.bf16.mxu0 %v9809_v59  ;;  %8852 = vmatmul.mubr.bf16.vlgmr.msra.gmra.mrb[4].mxu1 %v1779_v61  ;;  %v9848_v61 = vld [vmem:[%s12273_s2 + $0x90] sm:$0xff]  }
  0xa7   : > { %8856 = vmatpush3.bf16.msra.mxu1 %v9808_v54  ;;  %8871 = vmatprep.mubr.bf16.mxu1 %v10091_v4  ;;  %v3297_v54 = vrot.slane %v3277_v37, 1  ;;  %v9853_v4 = vld [vmem:[%s12273_s2 + $0xe8] sm:$0xff]   ;;  %v10785_v37 = vld [vmem:[#allocation2 + $0x30] sm:$0xf] }
  0xa8   : > { %8832 = vmatmul.mubr.bf16.vlgmr.msra.gmra.mrb[0].mxu0 %v1486_v1  ;;  %8857 = vmatprep.subr.bf16.mxu1 %v9811_v0  ;;  %v9850_v1 = vld [vmem:[%s12273_s2 + $0x98] sm:$0xff]  }
  0xa9   : > { %9016 = vmatpush3.bf16.msra.mxu0 %v9809_v59  ;;  %9031 = vmatprep.mubr.bf16.mxu0 %v3072_v3  ;;  %v2126_v59 = vsel %vm12282_vm2, %v2124_v49, %v2125_v51  ;;  %v9852_v3 = vld [vmem:[%s12273_s2 + $0xa0] sm:$0xff]  }
  0xaa   : > { %9017 = vmatprep.subr.bf16.mxu0 %v9812_v2 }
  0xab   : > { %8858 = vmatpush3.bf16.msra.mxu1 %v9811_v0  ;;  %v9849_v0 = vld [vmem:[%s12273_s2 + $0xd8] sm:$0xff]  }
  0xac   : > { %8859 = vmatprep.subr.bf16.mxu1 %v9813_v13 }
  0xad   : > { %9018 = vmatpush3.bf16.msra.mxu0 %v9812_v2  ;;  %v9851_v2 = vld [vmem:[%s12273_s2 + $0xe0] sm:$0xff]  }
  0xae   : > { %9019 = vmatprep.subr.bf16.mxu0 %v9814_v5 }
  0xaf   : > { %8860 = vmatpush3.bf16.msra.mxu1 %v9813_v13  ;;  %v9854_v13 = vld [vmem:[%s12273_s2 + $0xa8] sm:$0xff]  }
  0xb0   : > { %8861 = vmatprep.subr.bf16.mxu1 %v9815_v6 }
  0xb1   : > { %9020 = vmatpush3.bf16.msra.mxu0 %v9814_v5  ;;  %v9855_v5 = vld [vmem:[%s12273_s2 + $0xf0] sm:$0xff]  }
  0xb2   : > { %9021 = vmatprep.subr.bf16.mxu0 %v9816_v7 }
  0xb3   : > { %8862 = vmatpush3.bf16.msra.mxu1 %v9815_v6  ;;  %v2250_v6 = vshrl.u32 %v10659_v44, 16 }
  0xb4   : > { %8863 = vmatprep.subr.bf16.mxu1 %v9817_v8 }
  0xb5   : > { %9022 = vmatpush3.bf16.msra.mxu0 %v9816_v7  ;;  %v2253_v7 = vshll.u32 %v10659_v44, 16 }
  0xb6   : > { %9023 = vmatprep.subr.bf16.mxu0 %v9818_v9 }
  0xb7   : > { %8864 = vmatpush3.bf16.msra.mxu1 %v9817_v8  ;;  %v9856_v8 = vld [vmem:[%s12273_s2 + $0xb0] sm:$0xff]   ;;  %v2255_v12 = vrot.slane %v2253_v7, 4  ;;  %v3566_v7 = vshll.u32 %v10785_v37, 16 }
  0xb8   : > { %8865 = vmatprep.subr.bf16.mxu1 %v9819_v10 }
  0xb9   : > { %9024 = vmatpush3.bf16.msra.mxu0 %v9818_v9  ;;  %v9857_v9 = vld [vmem:[%s12273_s2 + $0xf8] sm:$0xff]  }
  0xba   : > { %9025 = vmatprep.subr.bf16.mxu0 %v9820_v11 }
  0xbb   : > { %8866 = vmatpush3.bf16.msra.mxu1 %v9819_v10  ;;  %v2105_v10 = vld [vmem:[#allocation2 + $0x20] sm:$0x7] }
  0xbc   : > { %8867 = vmatprep.subr.bf16.mxu1 %v9821_v14 }
  0xbd   : > { %9026 = vmatpush3.bf16.msra.mxu0 %v9820_v11  ;;  %v2252_v11 = vrot.slane %v2250_v6, 3 }
  0xbe   : > { %9027 = vmatprep.subr.bf16.mxu0 %v9822_v16 }
  0xbf   : > { %8868 = vmatpush3.bf16.msra.mxu1 %v9821_v14  ;;  %v2257_v14 = vrot.slane %v10524_v46, 3  ;;  %v2256_v23 = vor.u32 %v2255_v12, %v2252_v11  ;;  %v1622_v12 = vstv %s1616_s28 }
  0xc0   : > { %8869 = vmatprep.subr.bf16.mxu1 %v9823_v20 }
  0xc1   : > { %9028 = vmatpush3.bf16.msra.mxu0 %v9822_v16  ;;  %v2258_v16 = vrot.slane %v10460_v15, 4 }
  0xc2   : > { %9029 = vmatprep.subr.bf16.mxu0 %v9824_v18 }
  0xc3   : > { %8870 = vmatpush3.bf16.msra.mxu1 %v9823_v20  ;;  %v2127_v20 = vrot.slane %v2105_v10, 3 }
  0xc4   : > { %8875 = vmatprep.subr.bf16.mxu1 %v9825_v24 }
  0xc5   : > { %9030 = vmatpush3.bf16.msra.mxu0 %v9824_v18  ;;  %v3405_v18 = vld [vmem:[#allocation2 + $0x20] sm:$0xf8] }
  0xc6   : > { %9035 = vmatprep.subr.bf16.mxu0 %v9827_v27  ;;  %8872 = vmatmul.mubr.bf16.vlgmr.msra.gmra.mrb[4].mxu1 %v10381_v42  ;;  %v3299_v42 = vsel %vm12283_vm4, %v3297_v54, %v3298_v55  ;;  %v3554_v49 = vshll.u32 %v3405_v18, 16 }
  0xc7   : > { %8876 = vmatpush3.bf16.msra.mxu1 %v9825_v24  ;;  %8891 = vmatprep.mubr.bf16.mxu1 %v1998_v29  ;;  %v10734_v24 = vor.u32 %v2258_v16, %v2257_v14  ;;  %v10827_v16 = vld [vmem:[#allocation2 + $0x10] sm:$0xc0] }
  0xc8   : > { %9032 = vmatmul.mubr.bf16.vlgmr.msra.gmra.mrb[4].mxu0 %v3080_v30  ;;  %8877 = vmatprep.subr.bf16.mxu1 %v9829_v28  ;;  %v2128_v30 = vsel %vm12282_vm2, %v2125_v51, %v2127_v20  ;;  %v9869_v51 = vld [vmem:[%s12273_s2 + $0x128] sm:$0xff]   ;;  %v3556_v54 = vrot.slane %v3554_v49, 4 }
  0xc9   : > { %9036 = vmatpush3.bf16.msra.mxu0 %v9827_v27  ;;  %9051 = vmatprep.mubr.bf16.mxu0 %v10391_v47  ;;  %v9836_v47 = vld [vmem:[%s12273_s2 + $0x20] sm:$0xff]   ;;  %v3425_v27 = vrot.slane %v3405_v18, 3  ;;  %v9878_v20 = vld [vmem:[%s12273_s2 + $0x108] sm:$0xff]  }
  0xca   : > { %9037 = vmatprep.subr.bf16.mxu0 %v9830_v31  ;;  %v9885_v49 = vld [vmem:[%s12273_s2 + $0x168] sm:$0xff]  }
  0xcb   : > { %8878 = vmatpush3.bf16.msra.mxu1 %v9829_v28  ;;  %v10740_v28 = vld [vmem:[#allocation2 + $0x28] sm:$0xff] }
  0xcc   : > { %8879 = vmatprep.subr.bf16.mxu1 %v9831_v48  ;;  %v3426_v29 = vrot.slane %v10740_v28, 3 }
  0xcd   : > { %9038 = vmatpush3.bf16.msra.mxu0 %v9830_v31  ;;  %v2260_v31 = vsel %vm12281_vm1, %v2256_v23, %v10734_v24 }
  0xce   : > { %9039 = vmatprep.subr.bf16.mxu0 %v9832_v32 }
  0xcf   : > { %8880 = vmatpush3.bf16.msra.mxu1 %v9831_v48  ;;  %v3301_v48 = vsel %vm12283_vm4, %v3298_v55, %v3300_v25  ;;  %v3558_v55 = vrot.slane %v10601_v21, 3  ;;  %v10844_v25 = vrot.slane %v3566_v7, 4 }
  0xd0   : > { %8881 = vmatprep.subr.bf16.mxu1 %v9833_v33 }
  0xd1   : > { %9040 = vmatpush3.bf16.msra.mxu0 %v9832_v32  ;;  %v9862_v32 = vld [vmem:[%s12273_s2 + $0xc8] sm:$0xff]  }
  0xd2   : > { %9041 = vmatprep.subr.bf16.mxu0 %v9834_v62 }
  0xd3   : > { %8882 = vmatpush3.bf16.msra.mxu1 %v9833_v33  ;;  %v3427_v33 = vsel %vm12282_vm2, %v3425_v27, %v3426_v29  ;;  %v9879_v27 = vld [vmem:[%s12273_s2 + $0x150] sm:$0xff]  }
  0xd4   : > { %8883 = vmatprep.subr.bf16.mxu1 %v9835_v34 }
  0xd5   : > { %9042 = vmatpush3.bf16.msra.mxu0 %v9834_v62  ;;  %v9864_v62 = vld [vmem:[%s12273_s2 + $0xd0] sm:$0xff]  }
  0xd6   : > { %9043 = vmatprep.subr.bf16.mxu0 %v9836_v47 }
  0xd7   : > { %8884 = vmatpush3.bf16.msra.mxu1 %v9835_v34  ;;  %v10766_v34 = vld [vmem:[#allocation2 + $0x20] sm:$0xf] }
  0xd8   : > { %8885 = vmatprep.subr.bf16.mxu1 %v9837_v35 }
  0xd9   : > { %9044 = vmatpush3.bf16.msra.mxu0 %v9836_v47  ;;  %v9865_v47 = vld [vmem:[%s12273_s2 + $0x118] sm:$0xff]  }
  0xda   : > { %9045 = vmatprep.subr.bf16.mxu0 %v9838_v36 }
  0xdb   : > { %8886 = vmatpush3.bf16.msra.mxu1 %v9837_v35  ;;  %v2262_v35 = vshrl.u32 %v10766_v34, 16 }
  0xdc   : > { %8887 = vmatprep.subr.bf16.mxu1 %v9839_v38 }
  0xdd   : > { %9046 = vmatpush3.bf16.msra.mxu0 %v9838_v36  ;;  %v2265_v36 = vshll.u32 %v10766_v34, 16  ;;  %v2264_v41 = vrot.slane %v2262_v35, 3 }
  0xde   : > { %9047 = vmatprep.subr.bf16.mxu0 %v9840_v39 }
  0xdf   : > { %8888 = vmatpush3.bf16.msra.mxu1 %v9839_v38  ;;  %v9866_v38 = vld [vmem:[%s12273_s2 + $0xd8] sm:$0xff]   ;;  %v2267_v44 = vrot.slane %v2265_v36, 4 }
  0xe0   : > { %8889 = vmatprep.subr.bf16.mxu1 %v9841_v40 }
  0xe1   : > { %9048 = vmatpush3.bf16.msra.mxu0 %v9840_v39  ;;  %v9867_v39 = vld [vmem:[%s12273_s2 + $0x120] sm:$0xff]  }
  0xe2   : > { %9049 = vmatprep.subr.bf16.mxu0 %v9842_v45 }
  0xe3   : > { %8890 = vmatpush3.bf16.msra.mxu1 %v9841_v40  ;;  %v9868_v40 = vld [vmem:[%s12273_s2 + $0xe0] sm:$0xff]  }
  0xe4   : > { %8895 = vmatprep.subr.bf16.mxu1 %v9843_v43 }
  0xe5   : > { %9050 = vmatpush3.bf16.msra.mxu0 %v9842_v45  ;;  %v3551_v45 = vshrl.u32 %v3405_v18, 16 }
  0xe6   : > { %9055 = vmatprep.subr.bf16.mxu0 %v9844_v53  ;;  %8892 = vmatmul.mubr.bf16.vlgmr.msra.gmra.mrb[4].mxu1 %v2000_v56  ;;  %v3563_v56 = vshrl.u32 %v10785_v37, 16 }
  0xe7   : > { %8896 = vmatpush3.bf16.msra.mxu1 %v9843_v43  ;;  %8911 = vmatprep.mubr.bf16.mxu1 %v2126_v59  ;;  %v9870_v43 = vld [vmem:[%s12273_s2 + $0xe8] sm:$0xff]   ;;  %v9872_v59 = vld [vmem:[%s12273_s2 + $0xf0] sm:$0xff]  }
  0xe8   : > { %9052 = vmatmul.mubr.bf16.vlgmr.msra.gmra.mrb[4].mxu0 %v10431_v63  ;;  %8897 = vmatprep.subr.bf16.mxu1 %v9845_v58  ;;  %v9863_v63 = vld [vmem:[%s12273_s2 + $0x110] sm:$0xff]  }
  0xe9   : > { %9056 = vmatpush3.bf16.msra.mxu0 %v9844_v53  ;;  %9071 = vmatprep.mubr.bf16.mxu0 %v3299_v42  ;;  %v3553_v53 = vrot.slane %v3551_v45, 3  ;;  %v3559_v42 = vrot.slane %v10534_v52, 4 }
  0xea   : > { %9057 = vmatprep.subr.bf16.mxu0 %v9846_v57 }
  0xeb   : > { %8898 = vmatpush3.bf16.msra.mxu1 %v9845_v58  ;;  %v9871_v58 = vld [vmem:[%s12273_s2 + $0x130] sm:$0xff]   ;;  %v3557_v10 = vor.u32 %v3556_v54, %v3553_v53  ;;  %v10823_v11 = vor.u32 %v3559_v42, %v3558_v55  ;;  %v9890_v42 = vld [vmem:[%s12273_s2 + $0x138] sm:$0xff]  }
  0xec   : > { %8899 = vmatprep.subr.bf16.mxu1 %v9847_v60  ;;  %v9887_v54 = vld [vmem:[%s12273_s2 + $0x170] sm:$0xff]  }
  0xed   : > { %9058 = vmatpush3.bf16.msra.mxu0 %v9846_v57  ;;  %v2373_v57 = vld [vmem:[#allocation2 + $0x10] sm:$0xf0] }
  0xee   : > { %9059 = vmatprep.subr.bf16.mxu0 %v9848_v61  ;;  %v9888_v55 = vld [vmem:[%s12273_s2 + $0x130] sm:$0xff]  }
  0xef   : > { %8900 = vmatpush3.bf16.msra.mxu1 %v9847_v60  ;;  %v1617_v60 = vlaneseq }
  0xf0   : > { %8901 = vmatprep.subr.bf16.mxu1 %v9849_v0 }
  0xf1   : > { %9060 = vmatpush3.bf16.msra.mxu0 %v9848_v61  ;;  %v9873_v61 = vld [vmem:[%s12273_s2 + $0x138] sm:$0xff]  }
  0xf2   : > { %9061 = vmatprep.subr.bf16.mxu0 %v9850_v1 }
  0xf3   : > { %8902 = vmatpush3.bf16.msra.mxu1 %v9849_v0  ;;  %v9874_v0 = vld [vmem:[%s12273_s2 + $0xf8] sm:$0xff]  }
  0xf4   : > { %8903 = vmatprep.subr.bf16.mxu1 %v9851_v2 }
  0xf5   : > { %9062 = vmatpush3.bf16.msra.mxu0 %v9850_v1  ;;  %v3406_v1 = vld [vmem:[#allocation2 + $0x30] sm:$0x7] }
  0xf6   : > { %9063 = vmatprep.subr.bf16.mxu0 %v9852_v3  ;;  %v3428_v6 = vrot.slane %v3406_v1, 3  ;;  %v10917_v1 = vld [vmem:[#allocation2 + $0x20] sm:$0x3f] }
  0xf7   : > { %8904 = vmatpush3.bf16.msra.mxu1 %v9851_v2  ;;  %v2392_v2 = vrot.slane %v2373_v57, 4  ;;  %v9889_v57 = vld [vmem:[%s12273_s2 + $0x178] sm:$0xff]  }
  0xf8   : > { %8905 = vmatprep.subr.bf16.mxu1 %v9853_v4  ;;  %v3429_v23 = vsel %vm12282_vm2, %v3426_v29, %v3428_v6  ;;  %v2521_v29 = vrot.slane %v10665_v50, 6 }
  0xf9   : > { %9064 = vmatpush3.bf16.msra.mxu0 %v9852_v3  ;;  %v2393_v3 = vrot.slane %v10665_v50, 4 }
  0xfa   : > { %9065 = vmatprep.subr.bf16.mxu0 %v9854_v13 }
  0xfb   : > { %8906 = vmatpush3.bf16.msra.mxu1 %v9853_v4  ;;  %v10811_v4 = vshrl.u32 %v1617_v60, 7  ;;  %v2394_v18 = vsel %vm12280_vm3, %v2392_v2, %v2393_v3 }
  0xfc   : > { %8907 = vmatprep.subr.bf16.mxu1 %v9855_v5 }
  0xfd   : > { %9066 = vmatpush3.bf16.msra.mxu0 %v9854_v13  ;;  %v9875_v13 = vld [vmem:[%s12273_s2 + $0x140] sm:$0xff]  }
  0xfe   : > { %9067 = vmatprep.subr.bf16.mxu0 %v9856_v8 }
  0xff   : > { %8908 = vmatpush3.bf16.msra.mxu1 %v9855_v5  ;;  %v2268_v5 = vor.u32 %v2267_v44, %v2264_v41 }
 0x100   : > { %8909 = vmatprep.subr.bf16.mxu1 %v9857_v9 }
 0x101   : > { %9068 = vmatpush3.bf16.msra.mxu0 %v9856_v8  ;;  %v10818_v8 = vadd.s32 16, %v10811_v4  ;;  %v2269_v14 = vsel %vm12281_vm1, %v10734_v24, %v2268_v5  ;;  %v2395_v24 = vrot.slane %v10766_v34, 4 }
 0x102   : > { %9069 = vmatprep.subr.bf16.mxu0 %v9858_v19 }
 0x103   : > { %8910 = vmatpush3.bf16.msra.mxu1 %v9857_v9  ;;  %v9876_v9 = vld [vmem:[%s12273_s2 + $0x100] sm:$0xff]  }
 0x104   : > { %8915 = vmatprep.subr.bf16.mxu1 %v9859_v22 }
 0x105   : > { %9070 = vmatpush3.bf16.msra.mxu0 %v9858_v19  ;;  %v9877_v19 = vld [vmem:[%s12273_s2 + $0x148] sm:$0xff]  }
 0x106   : > { %9075 = vmatprep.subr.bf16.mxu0 %v9860_v26  ;;  %8912 = vmatmul.mubr.bf16.vlgmr.msra.gmra.mrb[4].mxu1 %v2128_v30  ;;  %v3561_v30 = vsel %vm12281_vm1, %v3557_v10, %v10823_v11  ;;  %v3696_v10 = vrot.slane %v10785_v37, 4 }
 0x107   : > { %8916 = vmatpush3.bf16.msra.mxu1 %v9859_v22  ;;  %8931 = vmatprep.mubr.bf16.mxu1 %v2260_v31  ;;  %v10838_v22 = vrot.slane %v3563_v56, 3  ;;  %v9880_v31 = vld [vmem:[%s12273_s2 + $0x110] sm:$0xff]   ;;  %v3674_v56 = vld [vmem:[#allocation2 + $0x20] sm:$0xf0] }
 0x108   : > { %9072 = vmatmul.mubr.bf16.vlgmr.msra.gmra.mrb[4].mxu0 %v3301_v48  ;;  %8917 = vmatprep.subr.bf16.mxu1 %v9861_v17  ;;  %v3693_v60 = vrot.slane %v3674_v56, 4  ;;  %v3822_v56 = vrot.slane %v10740_v28, 6 }
 0x109   : > { %9076 = vmatpush3.bf16.msra.mxu0 %v9860_v26  ;;  %9091 = vmatprep.mubr.bf16.mxu0 %v3427_v33  ;;  %v10847_v26 = vadd.s32 %v1622_v12, %v10818_v8  ;;  %v10864_v33 = vadd.s32 24, %v10811_v4  ;;  %v3569_v7 = vor.u32 %v10844_v25, %v10838_v22  ;;  %v9894_v22 = vld [vmem:[%s12273_s2 + $0x148] sm:$0xff]  }
 0x10a   : > { %9077 = vmatprep.subr.bf16.mxu0 %v9862_v32 }
 0x10b   : > { %8918 = vmatpush3.bf16.msra.mxu1 %v9861_v17  ;;  %v2520_v17 = vrot.slane %v10827_v16, 6  ;;  %v1629_v48 = vcvt.s32.f32 %v10847_v26  ;;  %vm1667_vm8 = vcmp.ge.s32.totalorder %v10847_v26, 0  ;;  %vm1671_vm9 = vcmp.lt.s32.totalorder %v10847_v26, 72  ;;  %v9911_v26 = vld [vmem:[%s12273_s2 + $0x1d0] sm:$0xff]  }
 0x10c   : > { %8919 = vmatprep.subr.bf16.mxu1 %v9863_v63  ;;  %vm1675_vm10 = vmand %vm1667_vm8, %vm1671_vm9 }
 0x10d   : > { %9078 = vmatpush3.bf16.msra.mxu0 %v9862_v32  ;;  %v10861_v32 = vadd.s32 %v1622_v12, %v10811_v4  ;;  %v1634_v35 = vmul.f32 0.027777778, %v1629_v48 }
 0x10e   : > { %9079 = vmatprep.subr.bf16.mxu0 %v9864_v62 }
 0x10f   : > { %8920 = vmatpush3.bf16.msra.mxu1 %v9863_v63  ;;  %v10867_v63 = vadd.s32 8, %v10811_v4  ;;  %v1627_v36 = vcvt.s32.f32 %v10861_v32  ;;  %vm1665_vm8 = vcmp.ge.s32.totalorder %v10861_v32, 0  ;;  %vm1669_vm9 = vcmp.lt.s32.totalorder %v10861_v32, 72 }
 0x110   : > { %8921 = vmatprep.subr.bf16.mxu1 %v9865_v47  ;;  %vm1673_vm2 = vmand %vm1665_vm8, %vm1669_vm9 }
 0x111   : > { %9080 = vmatpush3.bf16.msra.mxu0 %v9864_v62  ;;  %v9881_v62 = vld [vmem:[%s12273_s2 + $0x158] sm:$0xff]   ;;  %v1632_v41 = vmul.f32 0.027777778, %v1627_v36  ;;  %v10889_v45 = vadd.s32 %v1622_v12, %v10867_v63 }
 0x112   : > { %9081 = vmatprep.subr.bf16.mxu0 %v9866_v38 }
 0x113   : > { %8922 = vmatpush3.bf16.msra.mxu1 %v9865_v47  ;;  %v9882_v47 = vld [vmem:[%s12273_s2 + $0x118] sm:$0xff]   ;;  %v1628_v53 = vcvt.s32.f32 %v10889_v45  ;;  %v1636_v2 = vfloor.f32 %v1632_v41  ;;  %v9903_v41 = vld [vmem:[%s12273_s2 + $0x1b0] sm:$0xff]  }
 0x114   : > { %8923 = vmatprep.subr.bf16.mxu1 %v9867_v39 }
 0x115   : > { %9082 = vmatpush3.bf16.msra.mxu0 %v9866_v38  ;;  %v10877_v38 = vadd.s32 %v1622_v12, %v10864_v33 }
 0x116   : > { %9083 = vmatprep.subr.bf16.mxu0 %v9868_v40 }
 0x117   : > { %8924 = vmatpush3.bf16.msra.mxu1 %v9867_v39  ;;  %v9883_v39 = vld [vmem:[%s12273_s2 + $0x160] sm:$0xff]   ;;  %v1630_v44 = vcvt.s32.f32 %v10877_v38 }
 0x118   : > { %8925 = vmatprep.subr.bf16.mxu1 %v9869_v51 }
 0x119   : > { %9084 = vmatpush3.bf16.msra.mxu0 %v9868_v40  ;;  %v9884_v40 = vld [vmem:[%s12273_s2 + $0x120] sm:$0xff]  }
 0x11a   : > { %9085 = vmatprep.subr.bf16.mxu0 %v9870_v43 }
 0x11b   : > { %8926 = vmatpush3.bf16.msra.mxu1 %v9869_v51  ;;  %v9886_v51 = vld [vmem:[%s12273_s2 + $0x128] sm:$0xff]  }
 0x11c   : > { %8927 = vmatprep.subr.bf16.mxu1 %v9871_v58 }
 0x11d   : > { %9086 = vmatpush3.bf16.msra.mxu0 %v9870_v43  ;;  %v1635_v43 = vmul.f32 0.027777778, %v1630_v44 }
 0x11e   : > { %9087 = vmatprep.subr.bf16.mxu0 %v9872_v59 }
 0x11f   : > { %8928 = vmatpush3.bf16.msra.mxu1 %v9871_v58  ;;  %v1638_v58 = vfloor.f32 %v1634_v35  ;;  %v1639_v5 = vfloor.f32 %v1635_v43  ;;  %v9898_v35 = vld [vmem:[%s12273_s2 + $0x158] sm:$0xff]  }
 0x120   : > { %8929 = vmatprep.subr.bf16.mxu1 %v9873_v61 }
 0x121   : > { %9088 = vmatpush3.bf16.msra.mxu0 %v9872_v59  ;;  %v1633_v59 = vmul.f32 0.027777778, %v1628_v53  ;;  %v10947_v34 = vmul.f32 36.0, %v1639_v5  ;;  %v9909_v5 = vld [vmem:[%s12273_s2 + $0x1c8] sm:$0xff]  }
 0x122   : > { %9089 = vmatprep.subr.bf16.mxu0 %v9874_v0 }
 0x123   : > { %8930 = vmatpush3.bf16.msra.mxu1 %v9873_v61  ;;  %v1642_v61 = vmul.f32 36.0, %v1638_v58  ;;  %v1637_v6 = vfloor.f32 %v1633_v59 }
 0x124   : > { %8935 = vmatprep.subr.bf16.mxu1 %v9875_v13 }
 0x125   : > { %9090 = vmatpush3.bf16.msra.mxu0 %v9874_v0  ;;  %v9891_v0 = vld [vmem:[%s12273_s2 + $0x180] sm:$0xff]   ;;  %v10926_v12 = vsub.f32 %v1629_v48, %v1642_v61  ;;  %v10949_v25 = vmul.f32 36.0, %v1637_v6  ;;  %v2653_v48 = vrot.slane %v10524_v46, 6 }
 0x126   : > { %9095 = vmatprep.subr.bf16.mxu0 %v9876_v9  ;;  %8932 = vmatmul.mubr.bf16.vlgmr.msra.gmra.mrb[4].mxu1 %v2269_v14  ;;  %v9893_v14 = vld [vmem:[%s12273_s2 + $0x188] sm:$0xff]   ;;  %v9899_v46 = vld [vmem:[%s12273_s2 + $0x1a0] sm:$0xff]  }
 0x127   : > { %8936 = vmatpush3.bf16.msra.mxu1 %v9875_v13  ;;  %8951 = vmatprep.mubr.bf16.mxu1 %v2394_v18  ;;  %v9892_v13 = vld [vmem:[%s12273_s2 + $0x140] sm:$0xff]   ;;  %v10937_v18 = vmul.f32 36.0, %v1636_v2 }
 0x128   : > { %9092 = vmatmul.mubr.bf16.vlgmr.msra.gmra.mrb[4].mxu0 %v3429_v23  ;;  %8937 = vmatprep.subr.bf16.mxu1 %v9877_v19  ;;  %v2522_v23 = vsel %vm12285_vm5, %v2520_v17, %v2521_v29  ;;  %v2646_v17 = vshrl.u32 %v10827_v16, 16  ;;  %v9907_v61 = vld [vmem:[%s12273_s2 + $0x1c0] sm:$0xff]  }
 0x129   : > { %9096 = vmatpush3.bf16.msra.mxu0 %v9876_v9  ;;  %9111 = vmatprep.mubr.bf16.mxu0 %v3561_v30  ;;  %v3694_v9 = vrot.slane %v10740_v28, 4  ;;  %v11041_v50 = vsub.f32 %v1627_v36, %v10937_v18  ;;  %v11056_v36 = vsub.f32 %v1628_v53, %v10949_v25  ;;  %v9927_v28 = vld [vmem:[%s12273_s2 + $0x210] sm:$0xff]  }
 0x12a   : > { %9097 = vmatprep.subr.bf16.mxu0 %v9878_v20  ;;  %v2648_v59 = vrot.slane %v2646_v17, 6  ;;  %v9917_v17 = vld [vmem:[%s12273_s2 + $0x1e8] sm:$0xff]  }
 0x12b   : > { %8938 = vmatpush3.bf16.msra.mxu1 %v9877_v19  ;;  %v2396_v19 = vsel %vm12280_vm3, %v2393_v3, %v2395_v24  ;;  %v3570_v3 = vsel %vm12281_vm1, %v10823_v11, %v3569_v7  ;;  %v10954_v24 = vmul.f32 0.16666667, %v10926_v12  ;;  %v3695_v30 = vsel %vm12280_vm3, %v3693_v60, %v3694_v9  ;;  %v9896_v11 = vld [vmem:[%s12273_s2 + $0x150] sm:$0xff]  }
 0x12c   : > { %8939 = vmatprep.subr.bf16.mxu1 %v9879_v27  ;;  %v1650_v18 = vmul.f32 0.16666667, %v11056_v36 }
 0x12d   : > { %9098 = vmatpush3.bf16.msra.mxu0 %v9878_v20  ;;  %v2523_v20 = vrot.slane %v10917_v1, 6  ;;  %v1655_v7 = vfloor.f32 %v10954_v24  ;;  %v3697_v1 = vsel %vm12280_vm3, %v3694_v9, %v3696_v10  ;;  %v9912_v10 = vld [vmem:[%s12273_s2 + $0x190] sm:$0xff]   ;;  %vm1670_vm3 = vcmp.lt.s32.totalorder %v10889_v45, 72 }
 0x12e   : > { %9099 = vmatprep.subr.bf16.mxu0 %v9880_v31 }
 0x12f   : > { %8940 = vmatpush3.bf16.msra.mxu1 %v9879_v27  ;;  %v9895_v27 = vld [vmem:[%s12273_s2 + $0x190] sm:$0xff]   ;;  %v2524_v6 = vsel %vm12285_vm5, %v2521_v29, %v2523_v20  ;;  %v11048_v29 = vsub.f32 %v1630_v44, %v10947_v34  ;;  %v1659_v9 = vmul.f32 6.0, %v1655_v7  ;;  %vm1679_vm11 = vcmp.ge.f32.partialorder %v1655_v7, 1.0  ;;  %v9914_v34 = vld [vmem:[%s12273_s2 + $0x198] sm:$0xff]  }
 0x130   : > { %8941 = vmatprep.subr.bf16.mxu1 %v9881_v62  ;;  %v1649_v44 = vmul.f32 0.16666667, %v11041_v50  ;;  %vm1683_vm12 = vmand %vm1675_vm10, %vm1679_vm11  ;;  %vm1687_vm13 = vcmp.le.f32.partialorder %v1655_v7, 4.0  ;;  %vm1668_vm10 = vcmp.ge.s32.totalorder %v10877_v38, 0  ;;  %vm1672_vm11 = vcmp.lt.s32.totalorder %v10877_v38, 72 }
 0x131   : > { %9100 = vmatpush3.bf16.msra.mxu0 %v9880_v31  ;;  %v2649_v31 = vshll.u32 %v10827_v16, 16  ;;  %v9901_v16 = vld [vmem:[%s12273_s2 + $0x1a8] sm:$0xff]   ;;  %v1652_v53 = vmul.f32 0.16666667, %v11048_v29  ;;  %v1663_v20 = vsub.f32 %v10926_v12, %v1659_v9  ;;  %vm1691_vm14 = vmand %vm1683_vm12, %vm1687_vm13  ;;  %v1654_v12 = vfloor.f32 %v1650_v18 }
 0x132   : > { %9101 = vmatprep.subr.bf16.mxu0 %v9882_v47  ;;  %vm1666_vm13 = vcmp.ge.s32.totalorder %v10889_v45, 0  ;;  %v3954_v18 = vrot.slane %v10601_v21, 6  ;;  %v9923_v21 = vld [vmem:[%s12273_s2 + $0x200] sm:$0xff]  }
 0x133   : > { %8942 = vmatpush3.bf16.msra.mxu1 %v9881_v62  ;;  %v2654_v62 = vrot.slane %v10460_v15, 7  ;;  %v9900_v15 = vld [vmem:[%s12273_s2 + $0x160] sm:$0xff]   ;;  %v2651_v60 = vrot.slane %v2649_v31, 7  ;;  %v1656_v25 = vfloor.f32 %v1652_v53  ;;  %vm1695_vm15 = vcmp.ge.f32.partialorder %v1663_v20, 1.0  ;;  %vm11098_vm0 = vmand %vm1666_vm13, %vm1670_vm3  ;;  %v9922_v53 = vld [vmem:[%s12273_s2 + $0x1b8] sm:$0xff]  }
 0x134   : > { %8943 = vmatprep.subr.bf16.mxu1 %v9883_v39  ;;  %vm11084_vm12 = vmand %vm1691_vm14, %vm1695_vm15  ;;  %vm1703_vm1 = vcmp.le.f32.partialorder %v1663_v20, 4.0  ;;  %v1658_v32 = vmul.f32 6.0, %v1654_v12  ;;  %v11095_v31 = vld [vmem:[#allocation2 + $0x20] sm:$0x7f]  ;;  %vm1678_vm8 = vcmp.ge.f32.partialorder %v1654_v12, 1.0 }
 0x135   : > { %9102 = vmatpush3.bf16.msra.mxu0 %v9882_v47  ;;  %v9897_v47 = vld [vmem:[%s12273_s2 + $0x198] sm:$0xff]   ;;  %v2652_v2 = vor.u32 %v2651_v60, %v2648_v59  ;;  %vm1676_vm14 = vmand %vm1668_vm10, %vm1672_vm11  ;;  %vm1680_vm15 = vcmp.ge.f32.partialorder %v1656_v25, 1.0  ;;  %v3802_v20 = vld [vmem:[#allocation2 + $0x30] sm:$0x3f] }
 0x136   : > { %9103 = vmatprep.subr.bf16.mxu0 %v9884_v40  ;;  %vm11104_vm9 = vmand %vm11084_vm12, %vm1703_vm1  ;;  %vm1688_vm1 = vcmp.le.f32.partialorder %v1656_v25, 4.0  ;;  %v3824_v45 = vrot.slane %v3802_v20, 6  ;;  %v9932_v20 = vld [vmem:[%s12273_s2 + $0x1e0] sm:$0xff]  }
 0x137   : > { %8944 = vmatpush3.bf16.msra.mxu1 %v9883_v39  ;;  %v9902_v39 = vld [vmem:[%s12273_s2 + $0x168] sm:$0xff]   ;;  %vm11116_vm3 = vmand %vm1676_vm14, %vm1680_vm15 }
 0x138   : > { %8945 = vmatprep.subr.bf16.mxu1 %v9885_v49 }
 0x139   : > { %9104 = vmatpush3.bf16.msra.mxu0 %v9884_v40  ;;  %v10987_v40 = vld [vmem:[#allocation2 + $0x20] sm:$0xc0] }
 0x13a   : > { %9105 = vmatprep.subr.bf16.mxu0 %v9886_v51  ;;  %v3821_v43 = vrot.slane %v10987_v40, 6  ;;  %v3950_v59 = vshll.u32 %v10987_v40, 16 }
 0x13b   : > { %8946 = vmatpush3.bf16.msra.mxu1 %v9885_v49  ;;  %v9904_v49 = vld [vmem:[%s12273_s2 + $0x170] sm:$0xff]  }
 0x13c   : > { %8947 = vmatprep.subr.bf16.mxu1 %v9887_v54  ;;  %v3823_v37 = vsel %vm12285_vm5, %v3821_v43, %v3822_v56 }
 0x13d   : > { %9106 = vmatpush3.bf16.msra.mxu0 %v9886_v51 }
 0x13e   : > { %9107 = vmatprep.subr.bf16.mxu0 %v9888_v55 }
 0x13f   : > { %8948 = vmatpush3.bf16.msra.mxu1 %v9887_v54 }
 0x140   : > { %8949 = vmatprep.subr.bf16.mxu1 %v9889_v57 }
 0x141   : > { %9108 = vmatpush3.bf16.msra.mxu0 %v9888_v55  ;;  %v9905_v55 = vld [vmem:[%s12273_s2 + $0x1b8] sm:$0xff]  }
 0x142   : > { %9109 = vmatprep.subr.bf16.mxu0 %v9890_v42 }
 0x143   : > { %8950 = vmatpush3.bf16.msra.mxu1 %v9889_v57 }
 0x144   : > { %8955 = vmatprep.subr.bf16.mxu1 %v9891_v0 }
 0x145   : > { %9110 = vmatpush3.bf16.msra.mxu0 %v9890_v42  ;;  %v9906_v42 = vld [vmem:[%s12273_s2 + $0x178] sm:$0xff]  }
 0x146   : > { %9115 = vmatprep.subr.bf16.mxu0 %v9892_v13  ;;  %8952 = vmatmul.mubr.bf16.vlgmr.msra.gmra.mrb[4].mxu1 %v2396_v19 }
 0x147   : > { %8956 = vmatpush3.bf16.msra.mxu1 %v9891_v0  ;;  %8971 = vmatprep.mubr.bf16.mxu1 %v2522_v23  ;;  %v9908_v0 = vld [vmem:[%s12273_s2 + $0x180] sm:$0xff]   ;;  %v1653_v23 = vfloor.f32 %v1649_v44 }
 0x148   : > { %9112 = vmatmul.mubr.bf16.vlgmr.msra.gmra.mrb[4].mxu0 %v3570_v3  ;;  %8957 = vmatprep.subr.bf16.mxu1 %v9893_v14  ;;  %v9915_v3 = vld [vmem:[%s12273_s2 + $0x1e0] sm:$0xff]  }
 0x149   : > { %9116 = vmatpush3.bf16.msra.mxu0 %v9892_v13  ;;  %9131 = vmatprep.mubr.bf16.mxu0 %v3695_v30  ;;  %v11017_v13 = vor.u32 %v2654_v62, %v2653_v48  ;;  %v1657_v24 = vmul.f32 6.0, %v1653_v23  ;;  %vm1677_vm4 = vcmp.ge.f32.partialorder %v1653_v23, 1.0  ;;  %vm1685_vm10 = vcmp.le.f32.partialorder %v1653_v23, 4.0  ;;  %v9924_v62 = vld [vmem:[%s12273_s2 + $0x1c0] sm:$0xff]   ;;  %v9935_v23 = vld [vmem:[%s12273_s2 + $0x230] sm:$0xff]  }
 0x14a   : > { %9117 = vmatprep.subr.bf16.mxu0 %v9894_v22  ;;  %vm11108_vm5 = vmand %vm1673_vm2, %vm1677_vm4  ;;  %vm1686_vm4 = vcmp.le.f32.partialorder %v1654_v12, 4.0  ;;  %v10106_v30 = vmov 0.0  }
 0x14b   : > { %8958 = vmatpush3.bf16.msra.mxu1 %v9893_v14  ;;  %v9910_v14 = vld [vmem:[%s12273_s2 + $0x188] sm:$0xff]   ;;  %v2656_v19 = vsel %vm12287_vm6, %v2652_v2, %v11017_v13  ;;  %v1661_v48 = vsub.f32 %v11041_v50, %v1657_v24  ;;  %vm11127_vm2 = vmand %vm11098_vm0, %vm1678_vm8 }
 0x14c   : > { %8959 = vmatprep.subr.bf16.mxu1 %v9895_v27  ;;  %vm11136_vm11 = vmand %vm11108_vm5, %vm1685_vm10 }
 0x14d   : > { %9118 = vmatpush3.bf16.msra.mxu0 %v9894_v22  ;;  %v9913_v22 = vld [vmem:[%s12273_s2 + $0x1d8] sm:$0xff]   ;;  %vm1693_vm12 = vcmp.ge.f32.partialorder %v1661_v48, 1.0  ;;  %vm11150_vm0 = vmand %vm11116_vm3, %vm1688_vm1  ;;  %vm1701_vm8 = vcmp.le.f32.partialorder %v1661_v48, 4.0  ;;  %v4070_v48 = vld [vmem:[#allocation2 + $0x20] sm:$0x80] }
 0x14e   : > { %9119 = vmatprep.subr.bf16.mxu0 %v9896_v11  ;;  %vm11165_vm13 = vmand %vm11127_vm2, %vm1686_vm4 }
 0x14f   : > { %8960 = vmatpush3.bf16.msra.mxu1 %v9895_v27  ;;  %v9916_v27 = vld [vmem:[%s12273_s2 + $0x1a0] sm:$0xff]   ;;  %vm11174_vm15 = vmand %vm11136_vm11, %vm1693_vm12 }
 0x150   : > { %8961 = vmatprep.subr.bf16.mxu1 %v9897_v47  ;;  %vm11209_vm4 = vmand %vm11174_vm15, %vm1701_vm8 }
 0x151   : > { %9120 = vmatpush3.bf16.msra.mxu0 %v9896_v11  ;;  %v1660_v11 = vmul.f32 6.0, %v1656_v25 }
 0x152   : > { %9121 = vmatprep.subr.bf16.mxu0 %v9898_v35 }
 0x153   : > { %8962 = vmatpush3.bf16.msra.mxu1 %v9897_v47  ;;  %v9918_v47 = vld [vmem:[%s12273_s2 + $0x1a8] sm:$0xff]  }
 0x154   : > { %8963 = vmatprep.subr.bf16.mxu1 %v9899_v46 }
 0x155   : > { %9122 = vmatpush3.bf16.msra.mxu0 %v9898_v35  ;;  %v1664_v35 = vsub.f32 %v11048_v29, %v1660_v11  ;;  %v7336_v11 = vsel %vm11104_vm9, 1.0, %v10106_v30  ;;  %vm12318_vm9 = vcmask 1041408  }
 0x156   : > { %9123 = vmatprep.subr.bf16.mxu0 %v9900_v15 }
 0x157   : > { %8964 = vmatpush3.bf16.msra.mxu1 %v9899_v46  ;;  %vm1696_vm5 = vcmp.ge.f32.partialorder %v1664_v35, 1.0  ;;  %vm1704_vm10 = vcmp.le.f32.partialorder %v1664_v35, 4.0 }
 0x158   : > { %8965 = vmatprep.subr.bf16.mxu1 %v9901_v16  ;;  %vm11185_vm3 = vmand %vm11150_vm0, %vm1696_vm5  ;;  %vm12319_vm0 = vsmask.f32 7424 }
 0x159   : > { %9124 = vmatpush3.bf16.msra.mxu0 %v9900_v15  ;;  %v10995_v51 = vpop.f32.mrb[0].mxu1  ;;  %v11121_v15 = vsub.f32 %v11056_v36, %v1658_v32  ;;  %v3952_v36 = vrot.slane %v3950_v59, 7  ;;  %vm11219_vm11 = vmand %vm11185_vm3, %vm1704_vm10  ;;  %v9925_v59 = vld [vmem:[%s12273_s2 + $0x208] sm:$0xff]  }
 0x15a   : > { %v10998_v54 = vpop.f32.mrb[1].mxu1  ;;  %9125 = vmatprep.subr.bf16.mxu0 %v9902_v39 }
 0x15b   : > { %v11004_v58 = vpop.f32.mrb[2].mxu1  ;;  %8966 = vmatpush3.bf16.msra.mxu1 %v9901_v16  ;;  %v2658_v16 = vshrl.u32 %v11095_v31, 16  ;;  %vm1694_vm14 = vcmp.ge.f32.partialorder %v11121_v15, 1.0  ;;  %vm1702_vm1 = vcmp.le.f32.partialorder %v11121_v15, 4.0 }
 0x15c   : > { %v11006_v57 = vpop.f32.mrb[3].mxu1  ;;  %8967 = vmatprep.subr.bf16.mxu1 %v9903_v41  ;;  %vm11196_vm2 = vmand %vm11165_vm13, %vm1694_vm14 }
 0x15d   : > { %9126 = vmatpush3.bf16.msra.mxu0 %v9902_v39  ;;  %v2661_v39 = vshll.u32 %v11095_v31, 16  ;;  %vm11238_vm12 = vmand %vm11196_vm2, %vm1702_vm1 }
 0x15e   : > { %9127 = vmatprep.subr.bf16.mxu0 %v9904_v49 }
 0x15f   : > { %8968 = vmatpush3.bf16.msra.mxu1 %v9903_v41 }
 0x160   : > { %8969 = vmatprep.subr.bf16.mxu1 %v9905_v55 }
 0x161   : > { %9128 = vmatpush3.bf16.msra.mxu0 %v9904_v49  ;;  %v9919_v49 = vld [vmem:[%s12273_s2 + $0x1f0] sm:$0xff]  }
 0x162   : > { %9129 = vmatprep.subr.bf16.mxu0 %v9906_v42 }
 0x163   : > { %8970 = vmatpush3.bf16.msra.mxu1 %v9905_v55  ;;  %v3947_v55 = vshrl.u32 %v10987_v40, 16  ;;  %v11160_v40 = vld [vmem:[%s12275_s4] ss:$0 sm:$0xff] }
 0x164   : > { %8975 = vmatprep.subr.bf16.mxu1 %v9907_v61 }
 0x165   : > { %9130 = vmatpush3.bf16.msra.mxu0 %v9906_v42  ;;  %v11145_v42 = vld [vmem:[%s12274_s3] ss:$0 sm:$0xff]  ;;  %v3949_v9 = vrot.slane %v3947_v55, 6  ;;  %v7335_v55 = vsel %vm11238_vm12, 1.0, %v10106_v30 }
 0x166   : > { %9135 = vmatprep.subr.bf16.mxu0 %v9908_v0  ;;  %8972 = vmatmul.mubr.bf16.vlgmr.msra.gmra.mrb[4].mxu1 %v2524_v6  ;;  %v2663_v6 = vrot.slane %v2661_v39, 7 }
 0x167   : > { %8976 = vmatpush3.bf16.msra.mxu1 %v9907_v61  ;;  %8991 = vmatprep.mubr.bf16.mxu1 %v2656_v19  ;;  %v9920_v61 = vld [vmem:[%s12273_s2 + $0x1b0] sm:$0xff]   ;;  %v3953_v35 = vor.u32 %v3952_v36, %v3949_v9 }
 0x168   : > { %9132 = vmatmul.mubr.bf16.vlgmr.msra.gmra.mrb[4].mxu0 %v3697_v1  ;;  %8977 = vmatprep.subr.bf16.mxu1 %v9909_v5  ;;  %v9921_v1 = vld [vmem:[%s12273_s2 + $0x1f8] sm:$0xff]  }
 0x169   : > { %9136 = vmatpush3.bf16.msra.mxu0 %v9908_v0  ;;  %9151 = vmatprep.mubr.bf16.mxu0 %v3823_v37  ;;  %v2769_v37 = vld [vmem:[#allocation2 + $0x10] sm:$0x80] }
 0x16a   : > { %9137 = vmatprep.subr.bf16.mxu0 %v9910_v14  ;;  %v2788_v24 = vrot.slane %v2769_v37, 7 }
 0x16b   : > { %8978 = vmatpush3.bf16.msra.mxu1 %v9909_v5  ;;  %v2660_v5 = vrot.slane %v2658_v16, 6  ;;  %v7337_v16 = vsel %vm11219_vm11, 1.0, %v10106_v30 }
 0x16c   : > { %8979 = vmatprep.subr.bf16.mxu1 %v9911_v26 }
 0x16d   : > { %9138 = vmatpush3.bf16.msra.mxu0 %v9910_v14  ;;  %v2664_v25 = vor.u32 %v2663_v6, %v2660_v5  ;;  %v9926_v5 = vld [vmem:[%s12273_s2 + $0x1c8] sm:$0xff]  }
 0x16e   : > { %9139 = vmatprep.subr.bf16.mxu0 %v9912_v10 }
 0x16f   : > { %8980 = vmatpush3.bf16.msra.mxu1 %v9911_v26  ;;  %v2665_v41 = vsel %vm12287_vm6, %v11017_v13, %v2664_v25  ;;  %v3825_v13 = vsel %vm12318_vm9, %v3822_v56, %v3824_v45 }
 0x170   : > { %8981 = vmatprep.subr.bf16.mxu1 %v9913_v22 }
 0x171   : > { %9140 = vmatpush3.bf16.msra.mxu0 %v9912_v10 }
 0x172   : > { %9141 = vmatprep.subr.bf16.mxu0 %v9914_v34 }
 0x173   : > { %8982 = vmatpush3.bf16.msra.mxu1 %v9913_v22  ;;  %v3955_v22 = vrot.slane %v10534_v52, 7  ;;  %v9937_v52 = vld [vmem:[%s12273_s2 + $0x238] sm:$0xff]  }
 0x174   : > { %8983 = vmatprep.subr.bf16.mxu1 %v9915_v3 }
 0x175   : > { %9142 = vmatpush3.bf16.msra.mxu0 %v9914_v34  ;;  %v11246_v46 = vor.u32 %v3955_v22, %v3954_v18  ;;  %v9933_v18 = vld [vmem:[%s12273_s2 + $0x228] sm:$0xff]  }
 0x176   : > { %9143 = vmatprep.subr.bf16.mxu0 %v9916_v27  ;;  %v9934_v22 = vld [vmem:[%s12273_s2 + $0x1e8] sm:$0xff]  }
 0x177   : > { %8984 = vmatpush3.bf16.msra.mxu1 %v9915_v3  ;;  %v3957_v6 = vsel %vm12287_vm6, %v3953_v35, %v11246_v46 }
 0x178   : > { %8985 = vmatprep.subr.bf16.mxu1 %v9917_v17 }
 0x179   : > { %9144 = vmatpush3.bf16.msra.mxu0 %v9916_v27 }
 0x17a   : > { %9145 = vmatprep.subr.bf16.mxu0 %v9918_v47 }
 0x17b   : > { %v8833_v0 = vpop.f32.mrb[0].mxu0  ;;  %8986 = vmatpush3.bf16.msra.mxu1 %v9917_v17 }
 0x17c   : > { %v9555_v7 = vadd.f32 %v8833_v0, %v10995_v51  ;;  %v1571_v14 = vpop.f32.mrb[1].mxu0  ;;  %8987 = vmatprep.subr.bf16.mxu1 %v9919_v49  ;;  %v9929_v51 = vld [vmem:[%s12273_s2 + $0x218] sm:$0xff]  }
 0x17d   : > { %v9556_v50 = vadd.f32 %v1571_v14, %v10998_v54  ;;  %v8834_v29 = vpop.f32.mrb[2].mxu0  ;;  %9146 = vmatpush3.bf16.msra.mxu0 %v9918_v47 }
 0x17e   : > { %v1599_v26 = vmul.f32 %v9555_v7, %v11145_v42  ;;  %v9557_v44 = vadd.f32 %v8834_v29, %v11004_v58  ;;  %v1574_v10 = vpop.f32.mrb[3].mxu0  ;;  %9147 = vmatprep.subr.bf16.mxu0 %v9920_v61 }
 0x17f   : > { %v1597_v58 = vmul.f32 %v9556_v50, %v11145_v42  ;;  %v9558_v34 = vadd.f32 %v1574_v10, %v11006_v57  ;;  %8988 = vmatpush3.bf16.msra.mxu1 %v9919_v49  ;;  %v11226_v57 = vld [vmem:[#allocation2 + $0x18] sm:$0xff]  ;;  %v7334_v49 = vsel %vm11209_vm4, 1.0, %v10106_v30 }
 0x180   : > { %v1610_v12 = vadd.f32 %v11160_v40, %v1599_v26  ;;  %v1600_v3 = vmul.f32 %v9557_v44, %v11145_v42  ;;  %8989 = vmatprep.subr.bf16.mxu1 %v9921_v1  ;;  %v2789_v27 = vrot.slane %v11226_v57, 7  ;;  %v9930_v44 = vld [vmem:[%s12273_s2 + $0x1d8] sm:$0xff]   ;;  %v9940_v57 = vld [vmem:[%s12273_s2 + $0x208] sm:$0xff]  }
 0x181   : > { %v1608_v32 = vadd.f32 %v11160_v40, %v1597_v58  ;;  %v1598_v17 = vmul.f32 %v9558_v34, %v11145_v42  ;;  %9148 = vmatpush3.bf16.msra.mxu0 %v9920_v61  ;;  %v11318_v58 = vld [vmem:[#allocation2 + $0x30] sm:$0x7f] }
 0x182   : > { %v1614_v38 = vmax.f32 %v1610_v12, 0.0  ;;  %v1611_v47 = vadd.f32 %v11160_v40, %v1600_v3  ;;  %9149 = vmatprep.subr.bf16.mxu0 %v9922_v53  ;;  %v2790_v60 = vsel %vm12286_vm7, %v2788_v24, %v2789_v27  ;;  %v3959_v34 = vshrl.u32 %v11318_v58, 16  ;;  %v9936_v12 = vld [vmem:[%s12273_s2 + $0x1f0] sm:$0xff]  }
 0x183   : > { %v1612_v15 = vmax.f32 %v1608_v32, 0.0  ;;  %v1609_v39 = vadd.f32 %v11160_v40, %v1598_v17  ;;  %8990 = vmatpush3.bf16.msra.mxu1 %v9921_v1  ;;  %v9928_v1 = vld [vmem:[%s12273_s2 + $0x1d0] sm:$0xff]   ;;  %v3962_v25 = vshll.u32 %v11318_v58, 16  ;;  %v2791_v17 = vrot.slane %v11095_v31, 7 }
 0x184   : > { %v1615_v43 = vmax.f32 %v1611_v47, 0.0  ;;  %8995 = vmatprep.subr.bf16.mxu1 %v9923_v21  ;;  %v1719_v0 = vmul.f32 %v7336_v11, %v1614_v38  ;;  %v9938_v11 = vld [vmem:[%s12273_s2 + $0x1f8] sm:$0xff]   ;;  %v9947_v38 = vld [vmem:[%s12276_s5 + $0x40] sm:$0xff]  }
 0x185   : > { %v1613_v61 = vmax.f32 %v1609_v39, 0.0  ;;  %9150 = vmatpush3.bf16.msra.mxu0 %v9922_v53  ;;  %v1717_v7 = vmul.f32 %v7334_v49, %v1612_v15  ;;  %v9931_v53 = vld [vmem:[%s12273_s2 + $0x220] sm:$0xff]   ;;  %v3964_v24 = vrot.slane %v3962_v25, 7  ;;  %v4089_v15 = vrot.slane %v4070_v48, 7  ;;  %v9948_v49 = vld [vmem:[%s12276_s5 + $0x48] sm:$0xff]  }
 0x186   : > { %v1720_v2 = vmul.f32 %v7337_v16, %v1615_v43  ;;  %9155 = vmatprep.subr.bf16.mxu0 %v9924_v62  ;;  %8992 = vmatmul.mubr.bf16.vlgmr.msra.gmra.mrb[4].mxu1 %v2665_v41  ;;  %v10095_v16 = vld [vmem:[#allocation2 + $0x28] sm:$0xff]  ;;  %v2792_v31 = vsel %vm12286_vm7, %v2789_v27, %v2791_v17 }
 0x187   : > { %v1718_v14 = vmul.f32 %v7335_v55, %v1613_v61  ;;  %8996 = vmatpush3.bf16.msra.mxu1 %v9923_v21  ;;  %9011 = vmatprep.mubr.bf16.mxu1 %v2790_v60  ;;  %v3961_v21 = vrot.slane %v3959_v34, 6  ;;  %v4090_v39 = vrot.slane %v10095_v16, 7  ;;  %v9943_v60 = vld [vmem:[%s12273_s2 + $0x220] sm:$0xff]   ;;  %v9944_v61 = vld [vmem:[%s12273_s2 + $0x228] sm:$0xff]  }
 0x188   : > { %v11274_v19 = vpack.c.bf16 %v1720_v2, %v1719_v0  ;;  %9152 = vmatmul.mubr.bf16.vlgmr.msra.gmra.mrb[4].mxu0 %v3825_v13  ;;  %8997 = vmatprep.subr.bf16.mxu1 %v9925_v59  ;;  %v9945_v13 = vld [vmem:[%s12273_s2 + $0x230] sm:$0xff]   ;;  %v9946_v0 = vld [vmem:[%s12273_s2 + $0x238] sm:$0xff]   ;;  %v4092_v2 = vrot.slane %v11318_v58, 7  ;;  %v11430_v58 = vld [vmem:[%s12276_s5] sm:$0xff]  }
 0x189   : > { %v11279_v56 = vpack.c.bf16 %v1718_v14, %v1717_v7  ;;  %9156 = vmatpush3.bf16.msra.mxu0 %v9924_v62  ;;  %9171 = vmatprep.mubr.bf16.mxu0 %v3957_v6  ;;  %v3965_v47 = vor.u32 %v3964_v24, %v3961_v21  ;;  %v9939_v62 = vld [vmem:[%s12273_s2 + $0x200] sm:$0xff]   ;;  %v4091_v27 = vsel %vm12286_vm7, %v4089_v15, %v4090_v39  ;;  %v9949_v6 = vld [vmem:[%s12276_s5 + $0x50] sm:$0xff]   ;;  %v9950_v7 = vld [vmem:[%s12276_s5 + $0x58] sm:$0xff]  }
 0x18a   : > { %1724 = vst [vmem:[#allocation3 + $0x8] sm:$0xff] %v11274_v19  ;;  %9157 = vmatprep.subr.bf16.mxu0 %v9926_v5  ;;  %v11286_v50 = vshll.u32 %v11274_v19, 16  ;;  %v11289_v29 = vshrl.u32 %v11274_v19, 16  ;;  %v9951_v14 = vld [vmem:[%s12276_s5 + $0x60] sm:$0xff]  }
 0x18b   : > { %1723 = vst [vmem:[#allocation3] sm:$0xff] %v11279_v56  ;;  %8998 = vmatpush3.bf16.msra.mxu1 %v9925_v59  ;;  %v4364_v3 = vshll.u32 %v11279_v56, 16  ;;  %v4362_v45 = vshrl.u32 %v11279_v56, 16  ;;  %v3966_v43 = vsel %vm12287_vm6, %v11246_v46, %v3965_v47  ;;  %v9941_v46 = vld [vmem:[%s12273_s2 + $0x210] sm:$0xff]   ;;  %v9942_v59 = vld [vmem:[%s12273_s2 + $0x218] sm:$0xff]  }
 0x18c   : > { %8999 = vmatprep.subr.bf16.mxu1 %v9927_v28  ;;  %v4861_v37 = vrot.slane %v11289_v29, 3  ;;  %v4862_v9 = vrot.slane %v11286_v50, 4  ;;  %v5260_v36 = vrot.slane %v11289_v29, 6  ;;  %v5261_v26 = vrot.slane %v11286_v50, 7 }
 0x18d   : > { %9158 = vmatpush3.bf16.msra.mxu0 %v9926_v5  ;;  %v4366_v32 = vrot.slane %v4364_v3, 1  ;;  %v4371_v41 = vrot.slane %v11286_v50, 1  ;;  %v4093_v5 = vsel %vm12286_vm7, %v4090_v39, %v4092_v2 }
 0x18e   : > { %9159 = vmatprep.subr.bf16.mxu0 %v9928_v1  ;;  %v11302_v10 = vor.u32 %v4862_v9, %v4861_v37  ;;  %v11304_v54 = vor.u32 %v5261_v26, %v5260_v36  ;;  %v9954_v37 = vld [vmem:[%s12276_s5 + $0x78] sm:$0xff]   ;;  %v11403_v9 = vld [vmem:[%s12276_s5] sm:$0xff]   ;;  %v9958_v36 = vld [vmem:[%s12276_s5 + $0x48] sm:$0xff]  }
 0x18f   : > { %9000 = vmatpush3.bf16.msra.mxu1 %v9927_v28  ;;  %v4367_v35 = vor.u32 %v4366_v32, %v4362_v45  ;;  %v9952_v28 = vld [vmem:[%s12276_s5 + $0x68] sm:$0xff]   ;;  %v9960_v26 = vld [vmem:[%s12276_s5 + $0x50] sm:$0xff]  }
 0x190   : > { %9001 = vmatprep.subr.bf16.mxu1 %v9929_v51 }
 0x191   : > { %9160 = vmatpush3.bf16.msra.mxu0 %v9928_v1  ;;  %v4372_v55 = vsel %vm12319_vm0, %v4367_v35, %v4371_v41  ;;  %v9953_v1 = vld [vmem:[%s12276_s5 + $0x70] sm:$0xff]  }
 0x192   : > { %9161 = vmatprep.subr.bf16.mxu0 %v9930_v44 }
 0x193   : > { %9002 = vmatpush3.bf16.msra.mxu1 %v9929_v51  ;;  %v9956_v51 = vld [vmem:[%s12276_s5 + $0x40] sm:$0xff]  }
 0x194   : > { %9003 = vmatprep.subr.bf16.mxu1 %v9931_v53 }
 0x195   : > { %9162 = vmatpush3.bf16.msra.mxu0 %v9930_v44  ;;  %v9962_v44 = vld [vmem:[%s12276_s5 + $0x58] sm:$0xff]  }
 0x196   : > { %9163 = vmatprep.subr.bf16.mxu0 %v9932_v20 }
 0x197   : > { %9004 = vmatpush3.bf16.msra.mxu1 %v9931_v53  ;;  %v9964_v53 = vld [vmem:[%s12276_s5 + $0x60] sm:$0xff]  }
 0x198   : > { %9005 = vmatprep.subr.bf16.mxu1 %v9933_v18 }
 0x199   : > { %9164 = vmatpush3.bf16.msra.mxu0 %v9932_v20  ;;  %v9966_v20 = vld [vmem:[%s12276_s5 + $0x68] sm:$0xff]  }
 0x19a   : > { %9165 = vmatprep.subr.bf16.mxu0 %v9934_v22 }
 0x19b   : > { %9006 = vmatpush3.bf16.msra.mxu1 %v9933_v18  ;;  %v9968_v18 = vld [vmem:[%s12276_s5 + $0x70] sm:$0xff]  }
 0x19c   : > { %9007 = vmatprep.subr.bf16.mxu1 %v9935_v23 }
 0x19d   : > { %9166 = vmatpush3.bf16.msra.mxu0 %v9934_v22  ;;  %v9970_v22 = vld [vmem:[%s12276_s5 + $0x78] sm:$0xff]  }
 0x19e   : > { %9167 = vmatprep.subr.bf16.mxu0 %v9936_v12 }
 0x19f   : > { %9008 = vmatpush3.bf16.msra.mxu1 %v9935_v23  ;;  %v2923_v23 = vstv %s2922_s21 }
 0x1a0   : > { %9009 = vmatprep.subr.bf16.mxu1 %v9937_v52  ;;  %v2926_v34 = vadd.s32 %v2923_v23, %v10818_v8  ;;  %v2927_v3 = vadd.s32 %v2923_v23, %v10864_v33  ;;  %v2925_v24 = vadd.s32 %v2923_v23, %v10867_v63 }
 0x1a1   : > { %9168 = vmatpush3.bf16.msra.mxu0 %v9936_v12 }
 0x1a2   : > { %9169 = vmatprep.subr.bf16.mxu0 %v9938_v11  ;;  %v2930_v25 = vcvt.s32.f32 %v2926_v34  ;;  %v2929_v48 = vcvt.s32.f32 %v2925_v24  ;;  %vm2966_vm5 = vcmp.ge.s32.totalorder %v2926_v34, 0  ;;  %vm2970_vm13 = vcmp.lt.s32.totalorder %v2926_v34, 72 }
 0x1a3   : > { %9010 = vmatpush3.bf16.msra.mxu1 %v9937_v52  ;;  %v2924_v52 = vadd.s32 %v2923_v23, %v10811_v4  ;;  %vm2974_vm14 = vmand %vm2966_vm5, %vm2970_vm13  ;;  %vm2967_vm2 = vcmp.ge.s32.totalorder %v2927_v3, 0  ;;  %vm2971_vm4 = vcmp.lt.s32.totalorder %v2927_v3, 72  ;;  %vm2965_vm0 = vcmp.ge.s32.totalorder %v2925_v24, 0 }
 0x1a4   : > { %9195 = vmatprep.subr.bf16.mxu1 %v9947_v38  ;;  %v2934_v12 = vmul.f32 0.027777778, %v2930_v25  ;;  %vm2969_vm5 = vcmp.lt.s32.totalorder %v2925_v24, 72  ;;  %vm2975_vm13 = vmand %vm2967_vm2, %vm2971_vm4 }
 0x1a5   : > { %9170 = vmatpush3.bf16.msra.mxu0 %v9938_v11  ;;  %v2931_v11 = vcvt.s32.f32 %v2927_v3  ;;  %v2928_v32 = vcvt.s32.f32 %v2924_v52  ;;  %vm2964_vm11 = vcmp.ge.s32.totalorder %v2924_v52, 0  ;;  %vm2968_vm12 = vcmp.lt.s32.totalorder %v2924_v52, 72 }
 0x1a6   : > { %9012 = vmatmul.mubr.bf16.vlgmr.msra.gmra.mrb[4].mxu1 %v2792_v31  ;;  %9175 = vmatprep.subr.bf16.mxu0 %v9939_v62  ;;  %v2938_v21 = vfloor.f32 %v2934_v12 }
 0x1a7   : > { %9211 = vmatprep.mubr.bf16.mxu1 %v4372_v55  ;;  %9196 = vmatpush3.bf16.msra.mxu1 %v9947_v38  ;;  %v2935_v45 = vmul.f32 0.027777778, %v2931_v11  ;;  %v2932_v38 = vmul.f32 0.027777778, %v2928_v32 }
 0x1a8   : > { %9172 = vmatmul.mubr.bf16.vlgmr.msra.gmra.mrb[4].mxu0 %v3966_v43  ;;  %9197 = vmatprep.subr.bf16.mxu1 %v9948_v49  ;;  %v2942_v17 = vmul.f32 36.0, %v2938_v21 }
 0x1a9   : > { %9176 = vmatpush3.bf16.msra.mxu0 %v9939_v62  ;;  %9191 = vmatprep.mubr.bf16.mxu0 %v4091_v27  ;;  %v2933_v62 = vmul.f32 0.027777778, %v2929_v48  ;;  %v2939_v35 = vfloor.f32 %v2935_v45  ;;  %v2936_v15 = vfloor.f32 %v2932_v38 }
 0x1aa   : > { %9177 = vmatprep.subr.bf16.mxu0 %v9940_v57  ;;  %v2946_v47 = vsub.f32 %v2930_v25, %v2942_v17 }
 0x1ab   : > { %9198 = vmatpush3.bf16.msra.mxu1 %v9948_v49  ;;  %v2937_v39 = vfloor.f32 %v2933_v62  ;;  %v2943_v31 = vmul.f32 36.0, %v2939_v35  ;;  %v2940_v49 = vmul.f32 36.0, %v2936_v15 }
 0x1ac   : > { %9199 = vmatprep.subr.bf16.mxu1 %v9949_v6  ;;  %v2950_v16 = vmul.f32 0.16666667, %v2946_v47 }
 0x1ad   : > { %9178 = vmatpush3.bf16.msra.mxu0 %v9940_v57  ;;  %v2941_v55 = vmul.f32 36.0, %v2937_v39  ;;  %v2947_v57 = vsub.f32 %v2931_v11, %v2943_v31  ;;  %v2944_v27 = vsub.f32 %v2928_v32, %v2940_v49 }
 0x1ae   : > { %9179 = vmatprep.subr.bf16.mxu0 %v9941_v46  ;;  %v2954_v43 = vfloor.f32 %v2950_v16 }
 0x1af   : > { %9200 = vmatpush3.bf16.msra.mxu1 %v9949_v6 }
 0x1b0   : > { %9201 = vmatprep.subr.bf16.mxu1 %v9950_v7  ;;  %vm2978_vm15 = vcmp.ge.f32.partialorder %v2954_v43, 1.0  ;;  %vm2986_vm10 = vcmp.le.f32.partialorder %v2954_v43, 4.0 }
 0x1b1   : > { %9180 = vmatpush3.bf16.msra.mxu0 %v9941_v46  ;;  %v4224_v46 = vstv %s4223_s15  ;;  %vm2982_vm8 = vmand %vm2974_vm14, %vm2978_vm15 }
 0x1b2   : > { %9181 = vmatprep.subr.bf16.mxu0 %v9942_v59  ;;  %vm2990_vm3 = vmand %vm2982_vm8, %vm2986_vm10 }
 0x1b3   : > { %9202 = vmatpush3.bf16.msra.mxu1 %v9950_v7  ;;  %vm2972_vm8 = vmand %vm2964_vm11, %vm2968_vm12 }
 0x1b4   : > { %9203 = vmatprep.subr.bf16.mxu1 %v9951_v14 }
 0x1b5   : > { %9182 = vmatpush3.bf16.msra.mxu0 %v9942_v59  ;;  %v2958_v59 = vmul.f32 6.0, %v2954_v43 }
 0x1b6   : > { %9183 = vmatprep.subr.bf16.mxu0 %v9943_v60 }
 0x1b7   : > { %9204 = vmatpush3.bf16.msra.mxu1 %v9951_v14 }
 0x1b8   : > { %9205 = vmatprep.subr.bf16.mxu1 %v9952_v28 }
 0x1b9   : > { %9184 = vmatpush3.bf16.msra.mxu0 %v9943_v60  ;;  %v2945_v60 = vsub.f32 %v2929_v48, %v2941_v55 }
 0x1ba   : > { %9185 = vmatprep.subr.bf16.mxu0 %v9944_v61 }
 0x1bb   : > { %9206 = vmatpush3.bf16.msra.mxu1 %v9952_v28  ;;  %v2949_v2 = vmul.f32 0.16666667, %v2945_v60 }
 0x1bc   : > { %9207 = vmatprep.subr.bf16.mxu1 %v9953_v1 }
 0x1bd   : > { %9186 = vmatpush3.bf16.msra.mxu0 %v9944_v61  ;;  %v2951_v61 = vmul.f32 0.16666667, %v2947_v57  ;;  %v2953_v7 = vfloor.f32 %v2949_v2 }
 0x1be   : > { %9187 = vmatprep.subr.bf16.mxu0 %v9945_v13 }
 0x1bf   : > { %9208 = vmatpush3.bf16.msra.mxu1 %v9953_v1 }
 0x1c0   : > { %9209 = vmatprep.subr.bf16.mxu1 %v9954_v37 }
 0x1c1   : > { %9188 = vmatpush3.bf16.msra.mxu0 %v9945_v13  ;;  %v2948_v13 = vmul.f32 0.16666667, %v2944_v27 }
 0x1c2   : > { %9189 = vmatprep.subr.bf16.mxu0 %v9946_v0 }
 0x1c3   : > { %9210 = vmatpush3.bf16.msra.mxu1 %v9954_v37  ;;  %v2952_v6 = vfloor.f32 %v2948_v13  ;;  %v11444_v37 = vadd.s32 %v4224_v46, %v10811_v4 }
 0x1c4   : > { %9215 = vmatprep.subr.bf16.mxu1 %v11403_v9 }
 0x1c5   : > { %9190 = vmatpush3.bf16.msra.mxu0 %v9946_v0  ;;  %v2962_v0 = vsub.f32 %v2946_v47, %v2958_v59  ;;  %v2956_v1 = vmul.f32 6.0, %v2952_v6  ;;  %vm2976_vm10 = vcmp.ge.f32.partialorder %v2952_v6, 1.0  ;;  %vm2984_vm11 = vcmp.le.f32.partialorder %v2952_v6, 4.0 }
 0x1c6   : > { %9375 = vmatprep.subr.bf16.mxu0 %v9956_v51  ;;  %vm2980_vm4 = vmand %vm2972_vm8, %vm2976_vm10 }
 0x1c7   : > { %vm2994_vm1 = vcmp.ge.f32.partialorder %v2962_v0, 1.0  ;;  %vm3002_vm15 = vcmp.le.f32.partialorder %v2962_v0, 4.0 }
 0x1c8   : > { %9192 = vmatmul.mubr.bf16.vlgmr.msra.gmra.mrb[4].mxu0 %v4093_v5  ;;  %v2955_v5 = vfloor.f32 %v2951_v61  ;;  %vm11439_vm9 = vmand %vm2990_vm3, %vm2994_vm1  ;;  %vm2977_vm1 = vcmp.ge.f32.partialorder %v2953_v7, 1.0 }
 0x1c9   : > { %9376 = vmatpush3.bf16.msra.mxu0 %v9956_v51  ;;  %v2957_v51 = vmul.f32 6.0, %v2953_v7  ;;  %vm2973_vm3 = vmand %vm2965_vm0, %vm2969_vm5  ;;  %vm2985_vm0 = vcmp.le.f32.partialorder %v2953_v7, 4.0 }
 0x1ca   : > { %9377 = vmatprep.subr.bf16.mxu0 %v9958_v36  ;;  %v2959_v14 = vmul.f32 6.0, %v2955_v5  ;;  %vm2979_vm14 = vcmp.ge.f32.partialorder %v2955_v5, 1.0  ;;  %vm2987_vm6 = vcmp.le.f32.partialorder %v2955_v5, 4.0  ;;  %vm11451_vm2 = vmand %vm11439_vm9, %vm3002_vm15 }
 0x1cb   : > { %vm2983_vm7 = vmand %vm2975_vm13, %vm2979_vm14 }
 0x1cc   : > { %vm2981_vm12 = vmand %vm2973_vm3, %vm2977_vm1 }
 0x1cd   : > { %9378 = vmatpush3.bf16.msra.mxu0 %v9958_v36  ;;  %v11447_v36 = vadd.s32 %v4224_v46, %v10867_v63  ;;  %vm2991_vm5 = vmand %vm2983_vm7, %vm2987_vm6 }
 0x1ce   : > { %9379 = vmatprep.subr.bf16.mxu0 %v9960_v26  ;;  %vm2988_vm14 = vmand %vm2980_vm4, %vm2984_vm11 }
 0x1cf   : > { %vm2989_vm15 = vmand %vm2981_vm12, %vm2985_vm0  ;;  %vm12325_vm0 = vsmask.f32 7424 }
 0x1d1   : > { %9380 = vmatpush3.bf16.msra.mxu0 %v9960_v26  ;;  %v2963_v26 = vsub.f32 %v2947_v57, %v2959_v14 }
 0x1d2   : > { %9381 = vmatprep.subr.bf16.mxu0 %v9962_v44 }
 0x1d3   : > { %vm2995_vm13 = vcmp.ge.f32.partialorder %v2963_v26, 1.0  ;;  %vm3003_vm10 = vcmp.le.f32.partialorder %v2963_v26, 4.0 }
 0x1d4   : > { %vm2999_vm8 = vmand %vm2991_vm5, %vm2995_vm13  ;;  %vm4265_vm5 = vcmp.ge.s32.totalorder %v11444_v37, 0  ;;  %vm4269_vm13 = vcmp.lt.s32.totalorder %v11444_v37, 72 }
 0x1d5   : > { %9382 = vmatpush3.bf16.msra.mxu0 %v9962_v44  ;;  %v2960_v44 = vsub.f32 %v2944_v27, %v2956_v1  ;;  %vm3007_vm4 = vmand %vm2999_vm8, %vm3003_vm10 }
 0x1d6   : > { %9383 = vmatprep.subr.bf16.mxu0 %v9964_v53  ;;  %v7543_v15 = vsel %vm3007_vm4, 1.0, %v10106_v30  ;;  %vm12326_vm10 = vmmov %vm12325_vm0 }
 0x1d7   : > { %vm2992_vm9 = vcmp.ge.f32.partialorder %v2960_v44, 1.0  ;;  %vm3000_vm3 = vcmp.le.f32.partialorder %v2960_v44, 4.0 }
 0x1d8   : > { %vm2996_vm1 = vmand %vm2988_vm14, %vm2992_vm9  ;;  %vm4266_vm14 = vcmp.ge.s32.totalorder %v11447_v36, 0  ;;  %vm4270_vm9 = vcmp.lt.s32.totalorder %v11447_v36, 72 }
 0x1d9   : > { %9384 = vmatpush3.bf16.msra.mxu0 %v9964_v53  ;;  %v12322_v53 = vmov 0  ;;  %vm3004_vm11 = vmand %vm2996_vm1, %vm3000_vm3 }
 0x1da   : > { %9385 = vmatprep.subr.bf16.mxu0 %v9966_v20  ;;  %v12323_v53 = vsel %vm11451_vm2, 4294967295, %v12322_v53  ;;  %v7540_v49 = vsel %vm3004_vm11, 1.0, %v10106_v30  ;;  %vm4274_vm1 = vmand %vm4266_vm14, %vm4270_vm9 }
 0x1dd   : > { %9386 = vmatpush3.bf16.msra.mxu0 %v9966_v20  ;;  %v2961_v20 = vsub.f32 %v2945_v60, %v2957_v51 }
 0x1de   : > { %9387 = vmatprep.subr.bf16.mxu0 %v9968_v18 }
 0x1df   : > { %vm2993_vm2 = vcmp.ge.f32.partialorder %v2961_v20, 1.0  ;;  %vm3001_vm7 = vcmp.le.f32.partialorder %v2961_v20, 4.0 }
 0x1e0   : > { %vm2997_vm6 = vmand %vm2989_vm15, %vm2993_vm2  ;;  %vm12324_vm2 = vnez %v12323_v53 }
 0x1e1   : > { %9388 = vmatpush3.bf16.msra.mxu0 %v9968_v18  ;;  %v4229_v18 = vcvt.s32.f32 %v11444_v37  ;;  %vm3005_vm12 = vmand %vm2997_vm6, %vm3001_vm7  ;;  %v7542_v62 = vsel %vm12324_vm2, 1.0, %v10106_v30 }
 0x1e2   : > { %9389 = vmatprep.subr.bf16.mxu0 %v9970_v22  ;;  %v7541_v55 = vsel %vm3005_vm12, 1.0, %v10106_v30  ;;  %vm4273_vm15 = vmand %vm4265_vm5, %vm4269_vm13 }
 0x1e3   : > { %v4233_v23 = vmul.f32 0.027777778, %v4229_v18 }
 0x1e5   : > { %9390 = vmatpush3.bf16.msra.mxu0 %v9970_v22  ;;  %v4230_v22 = vcvt.s32.f32 %v11447_v36  ;;  %v4237_v24 = vfloor.f32 %v4233_v23  ;;  %v7745_v36 = vld [vmem:[%s12275_s4] ss:$0 sm:$0xff] }
 0x1e6   : > { %9395 = vmatprep.subr.bf16.mxu0 %v11430_v58 }
 0x1e7   : > { %v4234_v34 = vmul.f32 0.027777778, %v4230_v22  ;;  %v4241_v31 = vmul.f32 36.0, %v4237_v24  ;;  %v4375_v24 = vor.u32 %v11289_v29, %v4371_v41  ;;  %v9959_v29 = vld [vmem:[%s12276_s5 + $0x10] sm:$0xff]   ;;  %v7744_v41 = vld [vmem:[%s12274_s3] ss:$0 sm:$0xff] }
 0x1e9   : > { %v4238_v48 = vfloor.f32 %v4234_v34  ;;  %v4245_v61 = vsub.f32 %v4229_v18, %v4241_v31 }
 0x1eb   : > { %v4249_v7 = vmul.f32 0.16666667, %v4245_v61 }
 0x1ed   : > { %v4253_v23 = vfloor.f32 %v4249_v7 }
 0x1ef   : > { %vm4277_vm8 = vcmp.ge.f32.partialorder %v4253_v23, 1.0  ;;  %vm4285_vm7 = vcmp.le.f32.partialorder %v4253_v23, 4.0 }
 0x1f0   : > { %vm4281_vm6 = vmand %vm4273_vm15, %vm4277_vm8 }
 0x1f1   : > { %vm4289_vm12 = vmand %vm4281_vm6, %vm4285_vm7  ;;  %vm12330_vm7 = vcmask 1044480  }
 0x279   : > { %v9013_v25 = vpop.f32.mrb[4].mxu1 }
 0x27a   : > { %v2905_v12 = vmul.f32 %v9013_v25, %v11145_v42  ;;  %v2877_v3 = vpop.f32.mrb[5].mxu1 }
 0x27b   : > { %v2903_v52 = vmul.f32 %v11145_v42, %v2877_v3  ;;  %v9014_v21 = vpop.f32.mrb[6].mxu1 }
 0x27c   : > { %v2916_v11 = vadd.f32 %v11160_v40, %v2905_v12  ;;  %v2906_v32 = vmul.f32 %v9014_v21, %v11145_v42  ;;  %v2880_v17 = vpop.f32.mrb[7].mxu1  ;;  %v4257_v21 = vmul.f32 6.0, %v4253_v23  ;;  %v9978_v23 = vld [vmem:[%s12276_s5 + $0x18] sm:$0xff]  }
 0x27d   : > { %v2914_v45 = vadd.f32 %v11160_v40, %v2903_v52  ;;  %v2904_v38 = vmul.f32 %v11145_v42, %v2880_v17  ;;  %v4242_v42 = vmul.f32 36.0, %v4238_v48  ;;  %v9957_v17 = vld [vmem:[%s12276_s5 + $0x8] sm:$0xff]  }
 0x27e   : > { %v2920_v47 = vmax.f32 %v2916_v11, 0.0  ;;  %v2917_v35 = vadd.f32 %v11160_v40, %v2906_v32  ;;  %v4261_v48 = vsub.f32 %v4245_v61, %v4257_v21  ;;  %v4577_v61 = vld [vmem:[#allocation3] sm:$0xfe]  ;;  %v9984_v21 = vld [vmem:[%s12276_s5 + $0x30] sm:$0xff]  }
 0x27f   : > { %v2918_v16 = vmax.f32 %v2914_v45, 0.0  ;;  %v2915_v39 = vadd.f32 %v11160_v40, %v2904_v38  ;;  %v4246_v0 = vsub.f32 %v4230_v22, %v4242_v42 }
 0x280   : > { %v2921_v43 = vmax.f32 %v2917_v35, 0.0  ;;  %v3018_v27 = vmul.f32 %v7542_v62, %v2920_v47  ;;  %vm4293_vm2 = vcmp.ge.f32.partialorder %v4261_v48, 1.0  ;;  %vm4301_vm14 = vcmp.le.f32.partialorder %v4261_v48, 4.0  ;;  %v9963_v35 = vld [vmem:[%s12276_s5 + $0x20] sm:$0xff]  }
 0x281   : > { %v2919_v57 = vmax.f32 %v2915_v39, 0.0  ;;  %v3016_v59 = vmul.f32 %v7540_v49, %v2918_v16  ;;  %v4250_v14 = vmul.f32 0.16666667, %v4246_v0  ;;  %vm4297_vm13 = vmand %vm4289_vm12, %vm4293_vm2  ;;  %vm12333_vm12 = vsmask.f32 4352 }
 0x282   : > { %v3019_v46 = vmul.f32 %v7543_v15, %v2921_v43  ;;  %vm4305_vm8 = vmand %vm4297_vm13, %vm4301_vm14  ;;  %vm12337_vm13 = vcmask 1043456  }
 0x283   : > { %v3017_v60 = vmul.f32 %v7541_v55, %v2919_v57  ;;  %v4254_v12 = vfloor.f32 %v4250_v14  ;;  %v7746_v49 = vsel %vm4305_vm8, 1.0, %v10106_v30  ;;  %v9965_v55 = vld [vmem:[%s12276_s5 + $0x28] sm:$0xff]   ;;  %vm12341_vm8 = vcmask 1041408  }
 0x284   : > { %v11471_v13 = vpack.c.bf16 %v3019_v46, %v3018_v27  ;;  %v9967_v46 = vld [vmem:[%s12276_s5 + $0x30] sm:$0xff]  }
 0x285   : > { %v11473_v2 = vpack.c.bf16 %v3017_v60, %v3016_v59  ;;  %v4258_v32 = vmul.f32 6.0, %v4254_v12  ;;  %vm4278_vm3 = vcmp.ge.f32.partialorder %v4254_v12, 1.0  ;;  %vm4286_vm11 = vcmp.le.f32.partialorder %v4254_v12, 4.0  ;;  %v9969_v60 = vld [vmem:[%s12276_s5 + $0x38] sm:$0xff]   ;;  %v9982_v12 = vld [vmem:[%s12276_s5 + $0x28] sm:$0xff]  }
 0x286   : > { %3023 = vst [vmem:[#allocation3 + $0x18] sm:$0xff] %v11471_v13  ;;  %v11477_v40 = vshll.u32 %v11471_v13, 16  ;;  %v11480_v5 = vshrl.u32 %v11471_v13, 16  ;;  %vm4282_vm4 = vmand %vm4274_vm1, %vm4278_vm3  ;;  %vm12327_vm1 = vcmask 1046528   ;;  %vm12328_vm3 = vsmask.f32 7424 }
 0x287   : > { %3022 = vst [vmem:[#allocation3 + $0x10] sm:$0xff] %v11473_v2  ;;  %v5727_v6 = vshll.u32 %v11473_v2, 16  ;;  %v5725_v26 = vshrl.u32 %v11473_v2, 16  ;;  %v4262_v50 = vsub.f32 %v4246_v0, %v4258_v32  ;;  %v9971_v0 = vld [vmem:[%s12276_s5 + $0x80] sm:$0xff]   ;;  %v11598_v32 = vld [vmem:[#allocation3] sm:$0xf8]  ;;  %vm12329_vm6 = vmmov %vm12327_vm1 }
 0x288   : > { %v6221_v28 = vrot.slane %v11480_v5, 3  ;;  %v6222_v1 = vrot.slane %v11477_v40, 4  ;;  %v6617_v51 = vrot.slane %v11480_v5, 6  ;;  %v6618_v53 = vrot.slane %v11477_v40, 7  ;;  %vm12334_vm2 = vmmov %vm12327_vm1 }
 0x289   : > { %v5729_v44 = vrot.slane %v5727_v6, 1  ;;  %v5734_v22 = vrot.slane %v11477_v40, 1  ;;  %vm4294_vm5 = vcmp.ge.f32.partialorder %v4262_v50, 1.0  ;;  %vm4302_vm15 = vcmp.le.f32.partialorder %v4262_v50, 4.0  ;;  %v9975_v40 = vld [vmem:[%s12276_s5 + $0x90] sm:$0xff]   ;;  %v9988_v50 = vld [vmem:[%s12276_s5 + $0x80] sm:$0xff]  }
 0x28a   : > { %v11489_v20 = vor.u32 %v6222_v1, %v6221_v28  ;;  %v11492_v34 = vor.u32 %v6618_v53, %v6617_v51  ;;  %v4598_v6 = vrot.slane %v4577_v61, 1  ;;  %v4599_v28 = vrot.slane %v11274_v19, 1  ;;  %v9973_v1 = vld [vmem:[%s12276_s5 + $0x88] sm:$0xff]  }
 0x28b   : > { %v5730_v18 = vor.u32 %v5729_v44, %v5725_v26  ;;  %v5738_v51 = vor.u32 %v11480_v5, %v5734_v22  ;;  %v9974_v53 = vld [vmem:[%s12276_s5 + $0x8] sm:$0xff]   ;;  %v9976_v5 = vld [vmem:[%s12276_s5 + $0x10] sm:$0xff]  }
 0x28c   : > { %v4600_v44 = vsel %vm12327_vm1, %v4598_v6, %v4599_v28  ;;  %v10003_v6 = vld [vmem:[%s12276_s5 + $0x100] sm:$0xff]  }
 0x28d   : > { %v5735_v25 = vsel %vm12325_vm0, %v5730_v18, %v5734_v22  ;;  %vm4290_vm0 = vmand %vm4282_vm4, %vm4286_vm11  ;;  %v9977_v22 = vld [vmem:[%s12276_s5 + $0x98] sm:$0xff]  }
 0x28e   : > { %v11497_v3 = vld [vmem:[#allocation3 + $0x10] sm:$0x1]  ;;  %9391 = vmatprep.mubr.bf16.mxu0 %v5735_v25  ;;  %vm4298_vm9 = vmand %vm4290_vm0, %vm4294_vm5  ;;  %v5940_v48 = vld [vmem:[#allocation3 + $0x10] sm:$0xfe] }
 0x28f   : > { %v4377_v52 = vshll.u32 %v11497_v3, 16  ;;  %v9981_v25 = vld [vmem:[%s12276_s5 + $0xa8] sm:$0xff]   ;;  %vm12331_vm4 = vmmov %vm12327_vm1 }
 0x290   : > { %vm12332_vm11 = vmmov %vm12330_vm7 }
 0x291   : > { %v4379_v11 = vrot.slane %v4377_v52, 1  ;;  %v9983_v52 = vld [vmem:[%s12276_s5 + $0xb0] sm:$0xff]   ;;  %vm12335_vm0 = vmmov %vm12330_vm7 }
 0x292   : > { %vm12336_vm5 = vmmov %vm12333_vm12 }
 0x293   : > { %v4380_v37 = vsel %vm12326_vm10, %v4375_v24, %v4379_v11  ;;  %vm4306_vm10 = vmand %vm4298_vm9, %vm4302_vm15  ;;  %v9985_v24 = vld [vmem:[%s12276_s5 + $0xb8] sm:$0xff]  }
 0x294   : > { %9212 = vmatmul.mubr.bf16.vlgmr.msra.gmra.mrb[8].mxu1 %v4380_v37  ;;  %v7747_v43 = vsel %vm4306_vm10, 1.0, %v10106_v30  ;;  %v9986_v11 = vld [vmem:[%s12276_s5 + $0x38] sm:$0xff]   ;;  %v4601_v37 = vrot.slane %v11497_v3, 1  ;;  %vm12338_vm14 = vmmov %vm12335_vm0 }
 0x295   : > { %9216 = vmatpush3.bf16.msra.mxu1 %v11403_v9  ;;  %9231 = vmatprep.mubr.bf16.mxu1 %v11279_v56  ;;  %v9961_v56 = vld [vmem:[%s12276_s5 + $0x18] sm:$0xff]   ;;  %vm12339_vm9 = vmmov %vm12336_vm5 }
 0x296   : > { %9217 = vmatprep.subr.bf16.mxu1 %v9957_v17  ;;  %v4602_v3 = vsel %vm12329_vm6, %v4599_v28, %v4601_v37  ;;  %v11667_v28 = vld [vmem:[#allocation3 + $0x10] sm:$0xf8]  ;;  %vm12340_vm15 = vmmov %vm12337_vm13  ;;  %vm12345_vm6 = vsmask.f32 1280 }
 0x297   : > { %vm12342_vm10 = vmmov %vm12336_vm5 }
 0x298   : > { %vm12343_vm1 = vmmov %vm12337_vm13 }
 0x299   : > { %9218 = vmatpush3.bf16.msra.mxu1 %v9957_v17  ;;  %v9987_v17 = vld [vmem:[%s12276_s5 + $0xc0] sm:$0xff]  }
 0x29a   : > { %9219 = vmatprep.subr.bf16.mxu1 %v9959_v29 }
 0x29b   : > { %v9193_v9 = vpop.f32.mrb[4].mxu0 }
 0x29c   : > { %v4178_v45 = vpop.f32.mrb[5].mxu0  ;;  %v9989_v9 = vld [vmem:[%s12276_s5 + $0xc8] sm:$0xff]  }
 0x29d   : > { %v4204_v38 = vmul.f32 %v7744_v41, %v4178_v45  ;;  %v9194_v47 = vpop.f32.mrb[6].mxu0  ;;  %9220 = vmatpush3.bf16.msra.mxu1 %v9959_v29  ;;  %v4727_v29 = vrot.slane %v11598_v32, 3  ;;  %v5961_v45 = vrot.slane %v11471_v13, 1 }
 0x29e   : > { %v4181_v62 = vpop.f32.mrb[7].mxu0  ;;  %9221 = vmatprep.subr.bf16.mxu1 %v9961_v56 }
 0x29f   : > { %v4215_v15 = vadd.f32 %v7745_v36, %v4204_v38  ;;  %v4205_v16 = vmul.f32 %v7744_v41, %v4181_v62  ;;  %v4728_v41 = vrot.slane %v11274_v19, 3  ;;  %v9990_v38 = vld [vmem:[%s12276_s5 + $0x88] sm:$0xff]   ;;  %v9991_v62 = vld [vmem:[%s12276_s5 + $0xd0] sm:$0xff]  }
 0x2a1   : > { %v4219_v39 = vmax.f32 %v4215_v15, 0.0  ;;  %v4216_v31 = vadd.f32 %v7745_v36, %v4205_v16  ;;  %9222 = vmatpush3.bf16.msra.mxu1 %v9961_v56  ;;  %v5960_v56 = vrot.slane %v5940_v48, 1  ;;  %v4729_v36 = vsel %vm12330_vm7, %v4727_v29, %v4728_v41  ;;  %v9993_v15 = vld [vmem:[%s12276_s5 + $0xd8] sm:$0xff]   ;;  %v10016_v48 = vld [vmem:[%s12276_s5 + $0xf0] sm:$0xff]   ;;  %vm12346_vm7 = vmmov %vm12343_vm1 }
 0x2a2   : > { %9223 = vmatprep.subr.bf16.mxu1 %v9963_v35  ;;  %v9994_v16 = vld [vmem:[%s12276_s5 + $0x98] sm:$0xff]   ;;  %v6214_v29 = vshrl.u32 %v11667_v28, 16 }
 0x2a3   : > { %v4220_v42 = vmax.f32 %v4216_v31, 0.0  ;;  %v4317_v57 = vmul.f32 %v7746_v49, %v4219_v39  ;;  %v5962_v47 = vsel %vm12331_vm4, %v5960_v56, %v5961_v45  ;;  %v9995_v39 = vld [vmem:[%s12276_s5 + $0xe0] sm:$0xff]   ;;  %v9997_v49 = vld [vmem:[%s12276_s5 + $0xe8] sm:$0xff]  }
 0x2a4   : > { %v9996_v31 = vld [vmem:[%s12276_s5 + $0xa0] sm:$0xff]  }
 0x2a5   : > { %v4318_v27 = vmul.f32 %v7747_v43, %v4220_v42  ;;  %9224 = vmatpush3.bf16.msra.mxu1 %v9963_v35  ;;  %v9992_v35 = vld [vmem:[%s12276_s5 + $0x90] sm:$0xff]   ;;  %v9998_v43 = vld [vmem:[%s12276_s5 + $0xa8] sm:$0xff]  }
 0x2a6   : > { %9225 = vmatprep.subr.bf16.mxu1 %v9965_v55  ;;  %v10000_v42 = vld [vmem:[%s12276_s5 + $0xb0] sm:$0xff]  }
 0x2a7   : > { %v4321_v59 = vpack.c.bf16 %v4318_v27, %v4317_v57  ;;  %v4854_v57 = vshrl.u32 %v11598_v32, 16  ;;  %v4857_v27 = vshll.u32 %v11598_v32, 16  ;;  %v10015_v32 = vld [vmem:[%s12276_s5 + $0x130] sm:$0xff]  }
 0x2a9   : > { %4323 = vst [vmem:[#allocation3 + $0x20] sm:$0xff] %v4321_v59  ;;  %9226 = vmatpush3.bf16.msra.mxu1 %v9965_v55  ;;  %v9999_v55 = vld [vmem:[%s12276_s5 + $0xf0] sm:$0xff]   ;;  %v10002_v59 = vld [vmem:[%s12276_s5 + $0xb8] sm:$0xff]   ;;  %v4856_v61 = vrot.slane %v4854_v57, 3 }
 0x2aa   : > { %9227 = vmatprep.subr.bf16.mxu1 %v9967_v46 }
 0x2ad   : > { %9228 = vmatpush3.bf16.msra.mxu1 %v9967_v46  ;;  %v10001_v46 = vld [vmem:[%s12276_s5 + $0xf8] sm:$0xff]  }
 0x2ae   : > { %9229 = vmatprep.subr.bf16.mxu1 %v9969_v60 }
 0x2b0   : > { %v11542_v7 = vld [vmem:[#allocation3 + $0x20] sm:$0x1] }
 0x2b1   : > { %9230 = vmatpush3.bf16.msra.mxu1 %v9969_v60  ;;  %v5740_v14 = vshll.u32 %v11542_v7, 16  ;;  %v4707_v60 = vld [vmem:[#allocation3 + $0x10] sm:$0x7] }
 0x2b2   : > { %9235 = vmatprep.subr.bf16.mxu1 %v9971_v0 }
 0x2b3   : > { %v5742_v26 = vrot.slane %v5740_v14, 1  ;;  %v4730_v14 = vrot.slane %v4707_v60, 3  ;;  %v10024_v60 = vld [vmem:[%s12276_s5 + $0x110] sm:$0xff]  }
 0x2b4   : > { %9232 = vmatmul.mubr.bf16.vlgmr.msra.gmra.mrb[8].mxu1 %v11274_v19 }
 0x2b5   : > { %9236 = vmatpush3.bf16.msra.mxu1 %v9971_v0  ;;  %9251 = vmatprep.mubr.bf16.mxu1 %v4600_v44  ;;  %v5743_v18 = vsel %vm12328_vm3, %v5738_v51, %v5742_v26  ;;  %v4859_v0 = vrot.slane %v4857_v27, 4  ;;  %v5963_v26 = vrot.slane %v11542_v7, 1  ;;  %v6088_v44 = vrot.slane %v11667_v28, 3  ;;  %v10006_v7 = vld [vmem:[%s12276_s5 + $0xc8] sm:$0xff]   ;;  %vm12344_vm3 = vmmov %vm12341_vm8 }
 0x2b6   : > { %9392 = vmatmul.mubr.bf16.vlgmr.msra.gmra.mrb[8].mxu0 %v5743_v18  ;;  %9237 = vmatprep.subr.bf16.mxu1 %v9973_v1  ;;  %v4731_v18 = vsel %vm12332_vm11, %v4728_v41, %v4730_v14  ;;  %v6217_v41 = vshll.u32 %v11667_v28, 16  ;;  %v10022_v27 = vld [vmem:[%s12276_s5 + $0x108] sm:$0xff]   ;;  %v10028_v14 = vld [vmem:[%s12276_s5 + $0x120] sm:$0xff]   ;;  %vm12347_vm4 = vmmov %vm12344_vm3 }
 0x2b7   : > { %9396 = vmatpush3.bf16.msra.mxu0 %v11430_v58  ;;  %9411 = vmatprep.mubr.bf16.mxu0 %v11473_v2  ;;  %v9979_v58 = vld [vmem:[%s12276_s5 + $0xa0] sm:$0xff]   ;;  %v4860_v51 = vor.u32 %v4859_v0, %v4856_v61  ;;  %v10025_v61 = vld [vmem:[%s12276_s5 + $0x158] sm:$0xff]   ;;  %v10029_v28 = vld [vmem:[%s12276_s5 + $0x168] sm:$0xff]  }
 0x2b8   : > { %9397 = vmatprep.subr.bf16.mxu0 %v9974_v53  ;;  %v9980_v2 = vld [vmem:[%s12276_s5 + $0x20] sm:$0xff]   ;;  %v10026_v0 = vld [vmem:[%s12276_s5 + $0x118] sm:$0xff]   ;;  %vm12348_vm11 = vmmov %vm12345_vm6 }
 0x2b9   : > { %9238 = vmatpush3.bf16.msra.mxu1 %v9973_v1  ;;  %v10004_v1 = vld [vmem:[%s12276_s5 + $0xc0] sm:$0xff]  }
 0x2ba   : > { %9239 = vmatprep.subr.bf16.mxu1 %v9975_v40 }
 0x2bb   : > { %9398 = vmatpush3.bf16.msra.mxu0 %v9974_v53  ;;  %v10005_v53 = vld [vmem:[%s12276_s5 + $0x108] sm:$0xff]  }
 0x2bc   : > { %9399 = vmatprep.subr.bf16.mxu0 %v9976_v5 }
 0x2bd   : > { %9240 = vmatpush3.bf16.msra.mxu1 %v9975_v40  ;;  %v4864_v40 = vsel %vm12333_vm12, %v4860_v51, %v11302_v10  ;;  %v10031_v51 = vld [vmem:[%s12276_s5 + $0x170] sm:$0xff]   ;;  %vm12349_vm12 = vcmask 1040384  }
 0x2be   : > { %9241 = vmatprep.subr.bf16.mxu1 %v9977_v22 }
 0x2bf   : > { %9400 = vmatpush3.bf16.msra.mxu0 %v9976_v5  ;;  %v6089_v5 = vrot.slane %v11471_v13, 3 }
 0x2c0   : > { %9401 = vmatprep.subr.bf16.mxu0 %v9978_v23 }
 0x2c1   : > { %9242 = vmatpush3.bf16.msra.mxu1 %v9977_v22  ;;  %v5964_v22 = vsel %vm12334_vm2, %v5961_v45, %v5963_v26  ;;  %v6090_v19 = vsel %vm12335_vm0, %v6088_v44, %v6089_v5  ;;  %v10019_v45 = vld [vmem:[%s12276_s5 + $0x140] sm:$0xff]   ;;  %v11786_v26 = vld [vmem:[#allocation3 + $0x20] sm:$0xf]  ;;  %v10032_v44 = vld [vmem:[%s12276_s5 + $0x130] sm:$0xff]  }
 0x2c2   : > { %9243 = vmatprep.subr.bf16.mxu1 %v9979_v58  ;;  %vm12350_vm2 = vmmov %vm12344_vm3 }
 0x2c3   : > { %9402 = vmatpush3.bf16.msra.mxu0 %v9978_v23  ;;  %v10007_v23 = vld [vmem:[%s12276_s5 + $0x110] sm:$0xff]   ;;  %vm12351_vm0 = vmmov %vm12345_vm6 }
 0x2c4   : > { %9403 = vmatprep.subr.bf16.mxu0 %v9980_v2 }
 0x2c5   : > { %9244 = vmatpush3.bf16.msra.mxu1 %v9979_v58  ;;  %v10008_v58 = vld [vmem:[%s12276_s5 + $0xd0] sm:$0xff]  }
 0x2c6   : > { %9245 = vmatprep.subr.bf16.mxu1 %v9981_v25 }
 0x2c7   : > { %9404 = vmatpush3.bf16.msra.mxu0 %v9980_v2  ;;  %v10009_v2 = vld [vmem:[%s12276_s5 + $0x118] sm:$0xff]  }
 0x2c8   : > { %9405 = vmatprep.subr.bf16.mxu0 %v9982_v12 }
 0x2c9   : > { %9246 = vmatpush3.bf16.msra.mxu1 %v9981_v25  ;;  %v10010_v25 = vld [vmem:[%s12276_s5 + $0xd8] sm:$0xff]  }
 0x2ca   : > { %9247 = vmatprep.subr.bf16.mxu1 %v9983_v52 }
 0x2cb   : > { %9406 = vmatpush3.bf16.msra.mxu0 %v9982_v12  ;;  %v10011_v12 = vld [vmem:[%s12276_s5 + $0x120] sm:$0xff]  }
 0x2cc   : > { %9407 = vmatprep.subr.bf16.mxu0 %v9984_v21 }
 0x2cd   : > { %9248 = vmatpush3.bf16.msra.mxu1 %v9983_v52  ;;  %v10012_v52 = vld [vmem:[%s12276_s5 + $0xe0] sm:$0xff]  }
 0x2ce   : > { %9249 = vmatprep.subr.bf16.mxu1 %v9985_v24 }
 0x2cf   : > { %9408 = vmatpush3.bf16.msra.mxu0 %v9984_v21  ;;  %v10013_v21 = vld [vmem:[%s12276_s5 + $0x128] sm:$0xff]  }
 0x2d0   : > { %9409 = vmatprep.subr.bf16.mxu0 %v9986_v11 }
 0x2d1   : > { %9250 = vmatpush3.bf16.msra.mxu1 %v9985_v24  ;;  %v10014_v24 = vld [vmem:[%s12276_s5 + $0xe8] sm:$0xff]  }
 0x2d2   : > { %9255 = vmatprep.subr.bf16.mxu1 %v9987_v17 }
 0x2d3   : > { %9410 = vmatpush3.bf16.msra.mxu0 %v9986_v11  ;;  %v11716_v11 = vld [vmem:[#allocation3 + $0x10] sm:$0xf] }
 0x2d4   : > { %9252 = vmatmul.mubr.bf16.vlgmr.msra.gmra.mrb[8].mxu1 %v4602_v3  ;;  %9415 = vmatprep.subr.bf16.mxu0 %v9988_v50  ;;  %v4869_v37 = vshll.u32 %v11716_v11, 16  ;;  %v10018_v3 = vld [vmem:[%s12276_s5 + $0xf8] sm:$0xff]  }
 0x2d5   : > { %9256 = vmatpush3.bf16.msra.mxu1 %v9987_v17  ;;  %9271 = vmatprep.mubr.bf16.mxu1 %v4729_v36  ;;  %v4866_v17 = vshrl.u32 %v11716_v11, 16  ;;  %v4977_v36 = vld [vmem:[#allocation3] sm:$0xf0] }
 0x2d6   : > { %9412 = vmatmul.mubr.bf16.vlgmr.msra.gmra.mrb[8].mxu0 %v11471_v13  ;;  %9257 = vmatprep.subr.bf16.mxu1 %v9989_v9 }
 0x2d7   : > { %9416 = vmatpush3.bf16.msra.mxu0 %v9988_v50  ;;  %9431 = vmatprep.mubr.bf16.mxu0 %v5962_v47  ;;  %v10017_v50 = vld [vmem:[%s12276_s5 + $0x138] sm:$0xff]   ;;  %v4868_v56 = vrot.slane %v4866_v17, 3  ;;  %v6216_v47 = vrot.slane %v6214_v29, 3 }
 0x2d8   : > { %9417 = vmatprep.subr.bf16.mxu0 %v9990_v38 }
 0x2d9   : > { %9258 = vmatpush3.bf16.msra.mxu1 %v9989_v9  ;;  %v4871_v9 = vrot.slane %v4869_v37, 4  ;;  %v6357_v37 = vrot.slane %v11471_v13, 4 }
 0x2da   : > { %9259 = vmatprep.subr.bf16.mxu1 %v9991_v62 }
 0x2db   : > { %9418 = vmatpush3.bf16.msra.mxu0 %v9990_v38  ;;  %v6069_v38 = vld [vmem:[#allocation3 + $0x20] sm:$0x7] }
 0x2dc   : > { %9419 = vmatprep.subr.bf16.mxu0 %v9992_v35 }
 0x2dd   : > { %9260 = vmatpush3.bf16.msra.mxu1 %v9991_v62  ;;  %v6219_v62 = vrot.slane %v6217_v41, 4  ;;  %v10039_v41 = vld [vmem:[%s12276_s5 + $0x190] sm:$0xff]  }
 0x2de   : > { %9261 = vmatprep.subr.bf16.mxu1 %v9993_v15 }
 0x2df   : > { %9420 = vmatpush3.bf16.msra.mxu0 %v9992_v35  ;;  %v4872_v35 = vor.u32 %v4871_v9, %v4868_v56  ;;  %v10040_v56 = vld [vmem:[%s12276_s5 + $0x150] sm:$0xff]   ;;  %v10042_v9 = vld [vmem:[%s12276_s5 + $0x158] sm:$0xff]  }
 0x2e0   : > { %9421 = vmatprep.subr.bf16.mxu0 %v9994_v16 }
 0x2e1   : > { %9262 = vmatpush3.bf16.msra.mxu1 %v9993_v15  ;;  %v10020_v15 = vld [vmem:[%s12276_s5 + $0x100] sm:$0xff]  }
 0x2e2   : > { %9263 = vmatprep.subr.bf16.mxu1 %v9995_v39 }
 0x2e3   : > { %9422 = vmatpush3.bf16.msra.mxu0 %v9994_v16  ;;  %v4997_v16 = vrot.slane %v4977_v36, 4  ;;  %v10044_v36 = vld [vmem:[%s12276_s5 + $0x160] sm:$0xff]  }
 0x2e4   : > { %9423 = vmatprep.subr.bf16.mxu0 %v9996_v31 }
 0x2e5   : > { %9264 = vmatpush3.bf16.msra.mxu1 %v9995_v39  ;;  %v6091_v39 = vrot.slane %v6069_v38, 3  ;;  %v10046_v38 = vld [vmem:[%s12276_s5 + $0x168] sm:$0xff]  }
 0x2e6   : > { %9265 = vmatprep.subr.bf16.mxu1 %v9997_v49 }
 0x2e7   : > { %9424 = vmatpush3.bf16.msra.mxu0 %v9996_v31  ;;  %v11740_v31 = vld [vmem:[#allocation3 + $0x8] sm:$0xff] }
 0x2e8   : > { %9425 = vmatprep.subr.bf16.mxu0 %v9998_v43 }
 0x2e9   : > { %9266 = vmatpush3.bf16.msra.mxu1 %v9997_v49  ;;  %v4998_v49 = vrot.slane %v11740_v31, 4 }
 0x2ea   : > { %9267 = vmatprep.subr.bf16.mxu1 %v9999_v55 }
 0x2eb   : > { %9426 = vmatpush3.bf16.msra.mxu0 %v9998_v43  ;;  %v6220_v43 = vor.u32 %v6219_v62, %v6216_v47  ;;  %v4999_v57 = vsel %vm12337_vm13, %v4997_v16, %v4998_v49  ;;  %v10047_v47 = vld [vmem:[%s12276_s5 + $0x1b0] sm:$0xff]   ;;  %v10049_v16 = vld [vmem:[%s12276_s5 + $0x1b8] sm:$0xff]   ;;  %vm12353_vm13 = vmmov %vm12351_vm0 }
 0x2ec   : > { %9427 = vmatprep.subr.bf16.mxu0 %v10000_v42  ;;  %v10048_v62 = vld [vmem:[%s12276_s5 + $0x170] sm:$0xff]  }
 0x2ed   : > { %9268 = vmatpush3.bf16.msra.mxu1 %v9999_v55  ;;  %v10021_v55 = vld [vmem:[%s12276_s5 + $0x148] sm:$0xff]  }
 0x2ee   : > { %9269 = vmatprep.subr.bf16.mxu1 %v10001_v46 }
 0x2ef   : > { %9428 = vmatpush3.bf16.msra.mxu0 %v10000_v42  ;;  %v4873_v42 = vsel %vm12336_vm5, %v11302_v10, %v4872_v35  ;;  %v6224_v10 = vsel %vm12339_vm9, %v6220_v43, %v11489_v20  ;;  %vm12352_vm5 = vmmov %vm12349_vm12 }
 0x2f0   : > { %9429 = vmatprep.subr.bf16.mxu0 %v10002_v59  ;;  %vm12355_vm9 = vmmov %vm12352_vm5 }
 0x2f1   : > { %9270 = vmatpush3.bf16.msra.mxu1 %v10001_v46  ;;  %v6092_v46 = vsel %vm12338_vm14, %v6089_v5, %v6091_v39  ;;  %v10034_v5 = vld [vmem:[%s12276_s5 + $0x138] sm:$0xff]   ;;  %vm12354_vm14 = vmmov %vm12352_vm5 }
 0x2f2   : > { %9275 = vmatprep.subr.bf16.mxu1 %v10003_v6  ;;  %v10050_v39 = vld [vmem:[%s12276_s5 + $0x178] sm:$0xff]  }
 0x2f3   : > { %9430 = vmatpush3.bf16.msra.mxu0 %v10002_v59  ;;  %v10023_v59 = vld [vmem:[%s12276_s5 + $0x150] sm:$0xff]  }
 0x2f4   : > { %9272 = vmatmul.mubr.bf16.vlgmr.msra.gmra.mrb[8].mxu1 %v4731_v18  ;;  %9435 = vmatprep.subr.bf16.mxu0 %v10004_v1  ;;  %v6229_v18 = vshll.u32 %v11786_v26, 16 }
 0x2f5   : > { %9276 = vmatpush3.bf16.msra.mxu1 %v10003_v6  ;;  %9291 = vmatprep.mubr.bf16.mxu1 %v4864_v40  ;;  %v10027_v6 = vld [vmem:[%s12276_s5 + $0x160] sm:$0xff]   ;;  %v10033_v40 = vld [vmem:[%s12276_s5 + $0x178] sm:$0xff]  }
 0x2f6   : > { %9432 = vmatmul.mubr.bf16.vlgmr.msra.gmra.mrb[8].mxu0 %v5964_v22  ;;  %9277 = vmatprep.subr.bf16.mxu1 %v10005_v53  ;;  %v6231_v22 = vrot.slane %v6229_v18, 4  ;;  %v10058_v18 = vld [vmem:[%s12276_s5 + $0x198] sm:$0xff]  }
 0x2f7   : > { %9436 = vmatpush3.bf16.msra.mxu0 %v10004_v1  ;;  %9451 = vmatprep.mubr.bf16.mxu0 %v6090_v19  ;;  %v10030_v1 = vld [vmem:[%s12276_s5 + $0x128] sm:$0xff]   ;;  %v11799_v19 = vld [vmem:[#allocation3] sm:$0xc0] }
 0x2f8   : > { %9437 = vmatprep.subr.bf16.mxu0 %v10006_v7  ;;  %v5253_v35 = vshrl.u32 %v11799_v19, 16 }
 0x2f9   : > { %9278 = vmatpush3.bf16.msra.mxu1 %v10005_v53  ;;  %v6226_v53 = vshrl.u32 %v11786_v26, 16 }
 0x2fa   : > { %9279 = vmatprep.subr.bf16.mxu1 %v10007_v23  ;;  %v5255_v43 = vrot.slane %v5253_v35, 6 }
 0x2fb   : > { %9438 = vmatpush3.bf16.msra.mxu0 %v10006_v7  ;;  %v6228_v7 = vrot.slane %v6226_v53, 3  ;;  %v10057_v53 = vld [vmem:[%s12276_s5 + $0x1d8] sm:$0xff]  }
 0x2fc   : > { %9439 = vmatprep.subr.bf16.mxu0 %v10008_v58 }
 0x2fd   : > { %9280 = vmatpush3.bf16.msra.mxu1 %v10007_v23  ;;  %v10035_v23 = vld [vmem:[%s12276_s5 + $0x180] sm:$0xff]  }
 0x2fe   : > { %9281 = vmatprep.subr.bf16.mxu1 %v10009_v2 }
 0x2ff   : > { %9440 = vmatpush3.bf16.msra.mxu0 %v10008_v58  ;;  %v5000_v58 = vrot.slane %v11716_v11, 4 }
 0x300   : > { %9441 = vmatprep.subr.bf16.mxu0 %v10010_v25 }
 0x301   : > { %9282 = vmatpush3.bf16.msra.mxu1 %v10009_v2  ;;  %v6337_v2 = vld [vmem:[#allocation3 + $0x10] sm:$0xf0]  ;;  %v5001_v11 = vsel %vm12340_vm15, %v4998_v49, %v5000_v58 }
 0x302   : > { %9283 = vmatprep.subr.bf16.mxu1 %v10011_v12  ;;  %v5106_v49 = vld [vmem:[#allocation3 + $0x10] sm:$0x3f] }
 0x303   : > { %9442 = vmatpush3.bf16.msra.mxu0 %v10010_v25  ;;  %v10036_v25 = vld [vmem:[%s12276_s5 + $0x140] sm:$0xff]  }
 0x304   : > { %9443 = vmatprep.subr.bf16.mxu0 %v10012_v52 }
 0x305   : > { %9284 = vmatpush3.bf16.msra.mxu1 %v10011_v12  ;;  %v5126_v12 = vrot.slane %v11799_v19, 6 }
 0x306   : > { %9285 = vmatprep.subr.bf16.mxu1 %v10013_v21 }
 0x307   : > { %9444 = vmatpush3.bf16.msra.mxu0 %v10012_v52  ;;  %v6232_v52 = vor.u32 %v6231_v22, %v6228_v7  ;;  %v10061_v7 = vld [vmem:[%s12276_s5 + $0x1e8] sm:$0xff]  }
 0x308   : > { %9445 = vmatprep.subr.bf16.mxu0 %v10014_v24  ;;  %v10062_v22 = vld [vmem:[%s12276_s5 + $0x1a8] sm:$0xff]  }
 0x309   : > { %9286 = vmatpush3.bf16.msra.mxu1 %v10013_v21  ;;  %v5127_v21 = vrot.slane %v11740_v31, 6 }
 0x30a   : > { %9287 = vmatprep.subr.bf16.mxu1 %v10015_v32 }
 0x30b   : > { %9446 = vmatpush3.bf16.msra.mxu0 %v10014_v24  ;;  %v6356_v24 = vrot.slane %v6337_v2, 4  ;;  %v5128_v17 = vsel %vm12341_vm8, %v5126_v12, %v5127_v21  ;;  %v10065_v12 = vld [vmem:[%s12276_s5 + $0x1f8] sm:$0xff]  }
 0x30c   : > { %9447 = vmatprep.subr.bf16.mxu0 %v10016_v48 }
 0x30d   : > { %9288 = vmatpush3.bf16.msra.mxu1 %v10015_v32  ;;  %v10037_v32 = vld [vmem:[%s12276_s5 + $0x188] sm:$0xff]   ;;  %v6358_v29 = vsel %vm12343_vm1, %v6356_v24, %v6357_v37 }
 0x30e   : > { %9289 = vmatprep.subr.bf16.mxu1 %v10017_v50 }
 0x30f   : > { %9448 = vmatpush3.bf16.msra.mxu0 %v10016_v48  ;;  %v10038_v48 = vld [vmem:[%s12276_s5 + $0x148] sm:$0xff]  }
 0x310   : > { %9449 = vmatprep.subr.bf16.mxu0 %v10018_v3 }
 0x311   : > { %9290 = vmatpush3.bf16.msra.mxu1 %v10017_v50  ;;  %v6233_v50 = vsel %vm12342_vm10, %v11489_v20, %v6232_v52  ;;  %v10041_v20 = vld [vmem:[%s12276_s5 + $0x198] sm:$0xff]  }
 0x312   : > { %9295 = vmatprep.subr.bf16.mxu1 %v10019_v45 }
 0x313   : > { %9450 = vmatpush3.bf16.msra.mxu0 %v10018_v3  ;;  %v10043_v3 = vld [vmem:[%s12276_s5 + $0x1a0] sm:$0xff]  }
 0x314   : > { %9292 = vmatmul.mubr.bf16.vlgmr.msra.gmra.mrb[8].mxu1 %v4873_v42  ;;  %9455 = vmatprep.subr.bf16.mxu0 %v10020_v15  ;;  %v10051_v42 = vld [vmem:[%s12276_s5 + $0x1c0] sm:$0xff]  }
 0x315   : > { %9296 = vmatpush3.bf16.msra.mxu1 %v10019_v45  ;;  %9311 = vmatprep.mubr.bf16.mxu1 %v4999_v57  ;;  %v10045_v45 = vld [vmem:[%s12276_s5 + $0x1a8] sm:$0xff]   ;;  %v5129_v57 = vrot.slane %v5106_v49, 6  ;;  %v10075_v49 = vld [vmem:[%s12276_s5 + $0x220] sm:$0xff]  }
 0x316   : > { %9452 = vmatmul.mubr.bf16.vlgmr.msra.gmra.mrb[8].mxu0 %v6092_v46  ;;  %9297 = vmatprep.subr.bf16.mxu1 %v10021_v55  ;;  %v10052_v46 = vld [vmem:[%s12276_s5 + $0x180] sm:$0xff]  }
 0x317   : > { %9456 = vmatpush3.bf16.msra.mxu0 %v10020_v15  ;;  %9471 = vmatprep.mubr.bf16.mxu0 %v6224_v10  ;;  %v5256_v15 = vshll.u32 %v11799_v19, 16  ;;  %v11918_v19 = vld [vmem:[#allocation3 + $0x10] sm:$0x7f] }
 0x318   : > { %9457 = vmatprep.subr.bf16.mxu0 %v10022_v27  ;;  %v5265_v58 = vshrl.u32 %v11918_v19, 16  ;;  %v5268_v2 = vshll.u32 %v11918_v19, 16 }
 0x319   : > { %9298 = vmatpush3.bf16.msra.mxu1 %v10021_v55  ;;  %v5258_v55 = vrot.slane %v5256_v15, 7  ;;  %v10071_v15 = vld [vmem:[%s12276_s5 + $0x210] sm:$0xff]  }
 0x31a   : > { %9299 = vmatprep.subr.bf16.mxu1 %v10023_v59  ;;  %v5267_v24 = vrot.slane %v5265_v58, 6  ;;  %v10090_v58 = vld [vmem:[%s12276_s5 + $0x238] sm:$0xff]  }
 0x31b   : > { %9458 = vmatpush3.bf16.msra.mxu0 %v10022_v27  ;;  %v11869_v27 = vld [vmem:[#allocation3 + $0x10] sm:$0xc0]  ;;  %v5259_v10 = vor.u32 %v5258_v55, %v5255_v43  ;;  %v10076_v43 = vld [vmem:[%s12276_s5 + $0x1e0] sm:$0xff]  }
 0x31c   : > { %9459 = vmatprep.subr.bf16.mxu0 %v10024_v60  ;;  %v6610_v52 = vshrl.u32 %v11869_v27, 16  ;;  %v10077_v55 = vld [vmem:[%s12276_s5 + $0x228] sm:$0xff]  }
 0x31d   : > { %9300 = vmatpush3.bf16.msra.mxu1 %v10023_v59  ;;  %v6359_v59 = vrot.slane %v11786_v26, 4  ;;  %v10055_v26 = vld [vmem:[%s12276_s5 + $0x1d0] sm:$0xff]  }
 0x31e   : > { %9301 = vmatprep.subr.bf16.mxu1 %v10025_v61 }
 0x31f   : > { %9460 = vmatpush3.bf16.msra.mxu0 %v10024_v60  ;;  %v6484_v60 = vrot.slane %v11869_v27, 6 }
 0x320   : > { %9461 = vmatprep.subr.bf16.mxu0 %v10026_v0 }
 0x321   : > { %9302 = vmatpush3.bf16.msra.mxu1 %v10025_v61  ;;  %v10053_v61 = vld [vmem:[%s12276_s5 + $0x1c8] sm:$0xff]  }
 0x322   : > { %9303 = vmatprep.subr.bf16.mxu1 %v10027_v6 }
 0x323   : > { %9462 = vmatpush3.bf16.msra.mxu0 %v10026_v0  ;;  %v5130_v0 = vsel %vm12344_vm3, %v5127_v21, %v5129_v57  ;;  %v6613_v21 = vshll.u32 %v11869_v27, 16  ;;  %v10079_v57 = vld [vmem:[%s12276_s5 + $0x230] sm:$0xff]   ;;  %v6592_v27 = vld [vmem:[#allocation3 + $0x20] sm:$0x7f]  ;;  %vm12356_vm3 = vmmov %vm12346_vm7 }
 0x324   : > { %9463 = vmatprep.subr.bf16.mxu0 %v10028_v14 }
 0x325   : > { %9304 = vmatpush3.bf16.msra.mxu1 %v10027_v6  ;;  %v5263_v6 = vsel %vm12345_vm6, %v5259_v10, %v11304_v54  ;;  %v6622_v10 = vshrl.u32 %v6592_v27, 16 }
 0x326   : > { %9305 = vmatprep.subr.bf16.mxu1 %v10029_v28 }
 0x327   : > { %9464 = vmatpush3.bf16.msra.mxu0 %v10028_v14  ;;  %v6485_v14 = vrot.slane %v11471_v13, 6  ;;  %v10072_v13 = vld [vmem:[%s12276_s5 + $0x1d0] sm:$0xff]  }
 0x328   : > { %9465 = vmatprep.subr.bf16.mxu0 %v10030_v1 }
 0x329   : > { %9306 = vmatpush3.bf16.msra.mxu1 %v10029_v28  ;;  %v10054_v28 = vld [vmem:[%s12276_s5 + $0x188] sm:$0xff]  }
 0x32a   : > { %9307 = vmatprep.subr.bf16.mxu1 %v10031_v51 }
 0x32b   : > { %9466 = vmatpush3.bf16.msra.mxu0 %v10030_v1  ;;  %v6360_v1 = vsel %vm12346_vm7, %v6357_v37, %v6359_v59  ;;  %v10067_v37 = vld [vmem:[%s12276_s5 + $0x200] sm:$0xff]   ;;  %v6625_v59 = vshll.u32 %v6592_v27, 16 }
 0x32c   : > { %9467 = vmatprep.subr.bf16.mxu0 %v10032_v44 }
 0x32d   : > { %9308 = vmatpush3.bf16.msra.mxu1 %v10031_v51  ;;  %v6486_v51 = vsel %vm12347_vm4, %v6484_v60, %v6485_v14  ;;  %v10081_v60 = vld [vmem:[%s12276_s5 + $0x238] sm:$0xff]  }
 0x32e   : > { %9309 = vmatprep.subr.bf16.mxu1 %v10033_v40 }
 0x32f   : > { %9468 = vmatpush3.bf16.msra.mxu0 %v10032_v44  ;;  %v10056_v44 = vld [vmem:[%s12276_s5 + $0x190] sm:$0xff]  }
 0x330   : > { %9469 = vmatprep.subr.bf16.mxu0 %v10034_v5 }
 0x331   : > { %9310 = vmatpush3.bf16.msra.mxu1 %v10033_v40  ;;  %v10059_v40 = vld [vmem:[%s12276_s5 + $0x1e0] sm:$0xff]  }
 0x332   : > { %9315 = vmatprep.subr.bf16.mxu1 %v10035_v23 }
 0x333   : > { %9470 = vmatpush3.bf16.msra.mxu0 %v10034_v5  ;;  %v10060_v5 = vld [vmem:[%s12276_s5 + $0x1a0] sm:$0xff]  }
 0x334   : > { %9312 = vmatmul.mubr.bf16.vlgmr.msra.gmra.mrb[8].mxu1 %v5001_v11  ;;  %9475 = vmatprep.subr.bf16.mxu0 %v10036_v25  ;;  %v10066_v11 = vld [vmem:[%s12276_s5 + $0x1b8] sm:$0xff]  }
 0x335   : > { %9316 = vmatpush3.bf16.msra.mxu1 %v10035_v23  ;;  %9331 = vmatprep.mubr.bf16.mxu1 %v5128_v17  ;;  %v10063_v23 = vld [vmem:[%s12276_s5 + $0x1f0] sm:$0xff]   ;;  %v5376_v17 = vld [vmem:[#allocation3] sm:$0x80] }
 0x336   : > { %9472 = vmatmul.mubr.bf16.vlgmr.msra.gmra.mrb[8].mxu0 %v6233_v50  ;;  %9317 = vmatprep.subr.bf16.mxu1 %v10037_v32  ;;  %v6612_v50 = vrot.slane %v6610_v52, 6 }
 0x337   : > { %9476 = vmatpush3.bf16.msra.mxu0 %v10036_v25  ;;  %9491 = vmatprep.mubr.bf16.mxu0 %v6358_v29  ;;  %v10064_v25 = vld [vmem:[%s12276_s5 + $0x1b0] sm:$0xff]   ;;  %v6615_v29 = vrot.slane %v6613_v21, 7 }
 0x338   : > { %9477 = vmatprep.subr.bf16.mxu0 %v10038_v48 }
 0x339   : > { %9318 = vmatpush3.bf16.msra.mxu1 %v10037_v32  ;;  %v5270_v32 = vrot.slane %v5268_v2, 7  ;;  %v6755_v2 = vrot.slane %v6592_v27, 7 }
 0x33a   : > { %9319 = vmatprep.subr.bf16.mxu1 %v10039_v41 }
 0x33b   : > { %9478 = vmatpush3.bf16.msra.mxu0 %v10038_v48  ;;  %v6465_v48 = vld [vmem:[#allocation3 + $0x20] sm:$0x3f] }
 0x33c   : > { %9479 = vmatprep.subr.bf16.mxu0 %v10040_v56 }
 0x33d   : > { %9320 = vmatpush3.bf16.msra.mxu1 %v10039_v41  ;;  %v5271_v41 = vor.u32 %v5270_v32, %v5267_v24 }
 0x33e   : > { %9321 = vmatprep.subr.bf16.mxu1 %v10041_v20 }
 0x33f   : > { %9480 = vmatpush3.bf16.msra.mxu0 %v10040_v56  ;;  %v10068_v56 = vld [vmem:[%s12276_s5 + $0x1c0] sm:$0xff]  }
 0x340   : > { %9481 = vmatprep.subr.bf16.mxu0 %v10042_v9 }
 0x341   : > { %9322 = vmatpush3.bf16.msra.mxu1 %v10041_v20  ;;  %v5396_v20 = vrot.slane %v5376_v17, 7 }
 0x342   : > { %9323 = vmatprep.subr.bf16.mxu1 %v10043_v3 }
 0x343   : > { %9482 = vmatpush3.bf16.msra.mxu0 %v10042_v9  ;;  %v6487_v9 = vrot.slane %v6465_v48, 6 }
 0x344   : > { %9483 = vmatprep.subr.bf16.mxu0 %v10044_v36 }
 0x345   : > { %9324 = vmatpush3.bf16.msra.mxu1 %v10043_v3  ;;  %v5397_v3 = vrot.slane %v11740_v31, 7  ;;  %v6488_v35 = vsel %vm12350_vm2, %v6485_v14, %v6487_v9  ;;  %v5399_v14 = vrot.slane %v11918_v19, 7  ;;  %v10085_v31 = vld [vmem:[%s12276_s5 + $0x210] sm:$0xff]   ;;  %v10088_v19 = vld [vmem:[%s12276_s5 + $0x228] sm:$0xff]  }
 0x346   : > { %9325 = vmatprep.subr.bf16.mxu1 %v10045_v45 }
 0x347   : > { %9484 = vmatpush3.bf16.msra.mxu0 %v10044_v36  ;;  %v6616_v36 = vor.u32 %v6615_v29, %v6612_v50 }
 0x348   : > { %9485 = vmatprep.subr.bf16.mxu0 %v10046_v38 }
 0x349   : > { %9326 = vmatpush3.bf16.msra.mxu1 %v10045_v45  ;;  %v10069_v45 = vld [vmem:[%s12276_s5 + $0x208] sm:$0xff]  }
 0x34a   : > { %9327 = vmatprep.subr.bf16.mxu1 %v10047_v47 }
 0x34b   : > { %9486 = vmatpush3.bf16.msra.mxu0 %v10046_v38  ;;  %v5272_v38 = vsel %vm12348_vm11, %v11304_v54, %v5271_v41  ;;  %v6620_v54 = vsel %vm12351_vm0, %v6616_v36, %v11492_v34  ;;  %vm12357_vm0 = vmmov %vm12356_vm3 }
 0x34c   : > { %9487 = vmatprep.subr.bf16.mxu0 %v10048_v62 }
 0x34d   : > { %9328 = vmatpush3.bf16.msra.mxu1 %v10047_v47  ;;  %v5398_v47 = vsel %vm12349_vm12, %v5396_v20, %v5397_v3 }
 0x34e   : > { %9329 = vmatprep.subr.bf16.mxu1 %v10049_v16 }
 0x34f   : > { %9488 = vmatpush3.bf16.msra.mxu0 %v10048_v62  ;;  %v10070_v62 = vld [vmem:[%s12276_s5 + $0x1c8] sm:$0xff]  }
 0x350   : > { %9489 = vmatprep.subr.bf16.mxu0 %v10050_v39 }
 0x351   : > { %9330 = vmatpush3.bf16.msra.mxu1 %v10049_v16  ;;  %v10073_v16 = vld [vmem:[%s12276_s5 + $0x218] sm:$0xff]  }
 0x352   : > { %9335 = vmatprep.subr.bf16.mxu1 %v10051_v42 }
 0x353   : > { %9490 = vmatpush3.bf16.msra.mxu0 %v10050_v39  ;;  %v10074_v39 = vld [vmem:[%s12276_s5 + $0x1d8] sm:$0xff]  }
 0x354   : > { %9332 = vmatmul.mubr.bf16.vlgmr.msra.gmra.mrb[8].mxu1 %v5130_v0  ;;  %9495 = vmatprep.subr.bf16.mxu0 %v10052_v46  ;;  %v6624_v0 = vrot.slane %v6622_v10, 6  ;;  %v5504_v10 = vld [vmem:[#allocation2] sm:$0x80] }
 0x355   : > { %9336 = vmatpush3.bf16.msra.mxu1 %v10051_v42  ;;  %9351 = vmatprep.mubr.bf16.mxu1 %v5263_v6  ;;  %v10078_v42 = vld [vmem:[%s12276_s5 + $0x1e8] sm:$0xff]   ;;  %v6627_v6 = vrot.slane %v6625_v59, 7 }
 0x356   : > { %9492 = vmatmul.mubr.bf16.vlgmr.msra.gmra.mrb[8].mxu0 %v6360_v1  ;;  %9337 = vmatprep.subr.bf16.mxu1 %v10053_v61  ;;  %v10083_v1 = vld [vmem:[%s12276_s5 + $0x200] sm:$0xff]  }
 0x357   : > { %9496 = vmatpush3.bf16.msra.mxu0 %v10052_v46  ;;  %9511 = vmatprep.mubr.bf16.mxu0 %v6486_v51  ;;  %v10080_v46 = vld [vmem:[%s12276_s5 + $0x1f0] sm:$0xff]   ;;  %v6628_v51 = vor.u32 %v6627_v6, %v6624_v0 }
 0x358   : > { %9497 = vmatprep.subr.bf16.mxu0 %v10054_v28 }
 0x359   : > { %9338 = vmatpush3.bf16.msra.mxu1 %v10053_v61  ;;  %v10082_v61 = vld [vmem:[%s12276_s5 + $0x1f8] sm:$0xff]  }
 0x35a   : > { %9339 = vmatprep.subr.bf16.mxu1 %v10055_v26 }
 0x35b   : > { %9498 = vmatpush3.bf16.msra.mxu0 %v10054_v28  ;;  %v6733_v28 = vld [vmem:[#allocation3 + $0x10] sm:$0x80] }
 0x35c   : > { %9499 = vmatprep.subr.bf16.mxu0 %v10056_v44 }
 0x35d   : > { %9340 = vmatpush3.bf16.msra.mxu1 %v10055_v26  ;;  %v6752_v26 = vrot.slane %v6733_v28, 7 }
 0x35e   : > { %9341 = vmatprep.subr.bf16.mxu1 %v10057_v53 }
 0x35f   : > { %9500 = vmatpush3.bf16.msra.mxu0 %v10056_v44  ;;  %v5400_v44 = vsel %vm12352_vm5, %v5397_v3, %v5399_v14  ;;  %v5510_v14 = vrot.slane %v5504_v10, 4 }
 0x360   : > { %9501 = vmatprep.subr.bf16.mxu0 %v10058_v18 }
 0x361   : > { %9342 = vmatpush3.bf16.msra.mxu1 %v10057_v53  ;;  %v10097_v53 = vld [vmem:[#allocation3 + $0x18] sm:$0xff] }
 0x362   : > { %9343 = vmatprep.subr.bf16.mxu1 %v10059_v40 }
 0x363   : > { %9502 = vmatpush3.bf16.msra.mxu0 %v10058_v18  ;;  %v6753_v18 = vrot.slane %v10097_v53, 7 }
 0x364   : > { %9503 = vmatprep.subr.bf16.mxu0 %v10060_v5 }
 0x365   : > { %9344 = vmatpush3.bf16.msra.mxu1 %v10059_v40  ;;  %v10084_v40 = vld [vmem:[%s12276_s5 + $0x208] sm:$0xff]  }
 0x366   : > { %9345 = vmatprep.subr.bf16.mxu1 %v10061_v7 }
 0x367   : > { %9504 = vmatpush3.bf16.msra.mxu0 %v10060_v5  ;;  %v6629_v5 = vsel %vm12353_vm13, %v11492_v34, %v6628_v51  ;;  %v10087_v34 = vld [vmem:[%s12276_s5 + $0x220] sm:$0xff]  }
 0x368   : > { %9505 = vmatprep.subr.bf16.mxu0 %v10062_v22 }
 0x369   : > { %9346 = vmatpush3.bf16.msra.mxu1 %v10061_v7  ;;  %v6754_v7 = vsel %vm12354_vm14, %v6752_v26, %v6753_v18 }
 0x36a   : > { %9347 = vmatprep.subr.bf16.mxu1 %v10063_v23 }
 0x36b   : > { %9506 = vmatpush3.bf16.msra.mxu0 %v10062_v22  ;;  %v10086_v22 = vld [vmem:[%s12276_s5 + $0x218] sm:$0xff]  }
 0x36c   : > { %9507 = vmatprep.subr.bf16.mxu0 %v10064_v25 }
 0x36d   : > { %9348 = vmatpush3.bf16.msra.mxu1 %v10063_v23  ;;  %v10089_v23 = vld [vmem:[%s12276_s5 + $0x230] sm:$0xff]  }
 0x36e   : > { %9349 = vmatprep.subr.bf16.mxu1 %v10065_v12 }
 0x36f   : > { %9508 = vmatpush3.bf16.msra.mxu0 %v10064_v25  ;;  %v6756_v25 = vsel %vm12355_vm9, %v6753_v18, %v6755_v2 }
 0x370   : > { %9509 = vmatprep.subr.bf16.mxu0 %v10066_v11 }
 0x371   : > { %9350 = vmatpush3.bf16.msra.mxu1 %v10065_v12  ;;  %v5572_v12 = vstv %s10801_s22 }
 0x372   : > { %9355 = vmatprep.subr.bf16.mxu1 %v10067_v37  ;;  %v5575_v52 = vadd.s32 %v5572_v12, %v10818_v8  ;;  %v5573_v32 = vadd.s32 %v5572_v12, %v10811_v4  ;;  %v12034_v17 = vadd.s32 %v5572_v12, %v10867_v63 }
 0x373   : > { %9510 = vmatpush3.bf16.msra.mxu0 %v10066_v11  ;;  %v12031_v11 = vadd.s32 %v5572_v12, %v10864_v33 }
 0x374   : > { %9352 = vmatmul.mubr.bf16.vlgmr.msra.gmra.mrb[8].mxu1 %v5272_v38  ;;  %9515 = vmatprep.subr.bf16.mxu0 %v10068_v56  ;;  %v5579_v21 = vcvt.s32.f32 %v5575_v52  ;;  %v5577_v48 = vcvt.s32.f32 %v5573_v32  ;;  %v5578_v29 = vcvt.s32.f32 %v12034_v17  ;;  %vm5615_vm15 = vcmp.ge.s32.totalorder %v5575_v52, 0 }
 0x375   : > { %9356 = vmatpush3.bf16.msra.mxu1 %v10067_v37  ;;  %9371 = vmatprep.mubr.bf16.mxu1 %v5398_v47  ;;  %v5580_v50 = vcvt.s32.f32 %v12031_v11  ;;  %vm5619_vm8 = vcmp.lt.s32.totalorder %v5575_v52, 72  ;;  %vm5613_vm4 = vcmp.ge.s32.totalorder %v5573_v32, 0  ;;  %vm5617_vm11 = vcmp.lt.s32.totalorder %v5573_v32, 72 }
 0x376   : > { %9512 = vmatmul.mubr.bf16.vlgmr.msra.gmra.mrb[8].mxu0 %v6488_v35  ;;  %9357 = vmatprep.subr.bf16.mxu1 %v10069_v45  ;;  %v5583_v24 = vmul.f32 0.027777778, %v5579_v21  ;;  %v5582_v9 = vmul.f32 0.027777778, %v5578_v29  ;;  %vm5623_vm10 = vmand %vm5615_vm15, %vm5619_vm8  ;;  %vm5616_vm5 = vcmp.ge.s32.totalorder %v12031_v11, 0  ;;  %vm5620_vm13 = vcmp.lt.s32.totalorder %v12031_v11, 72 }
 0x377   : > { %9516 = vmatpush3.bf16.msra.mxu0 %v10068_v56  ;;  %9531 = vmatprep.mubr.bf16.mxu0 %v6620_v54  ;;  %v5581_v56 = vmul.f32 0.027777778, %v5577_v48  ;;  %v5584_v20 = vmul.f32 0.027777778, %v5580_v50  ;;  %vm12047_vm14 = vmand %vm5613_vm4, %vm5617_vm11  ;;  %vm5614_vm9 = vcmp.ge.s32.totalorder %v12034_v17, 0  ;;  %vm5618_vm15 = vcmp.lt.s32.totalorder %v12034_v17, 72 }
 0x378   : > { %9517 = vmatprep.subr.bf16.mxu0 %v10070_v62  ;;  %v5587_v37 = vfloor.f32 %v5583_v24  ;;  %v5586_v38 = vfloor.f32 %v5582_v9 }
 0x379   : > { %9358 = vmatpush3.bf16.msra.mxu1 %v10069_v45  ;;  %v5585_v36 = vfloor.f32 %v5581_v56  ;;  %v5588_v45 = vfloor.f32 %v5584_v20 }
 0x37a   : > { %9359 = vmatprep.subr.bf16.mxu1 %v10071_v15  ;;  %v5591_v41 = vmul.f32 36.0, %v5587_v37  ;;  %v5590_v54 = vmul.f32 36.0, %v5586_v38 }
 0x37b   : > { %9518 = vmatpush3.bf16.msra.mxu0 %v10070_v62  ;;  %v5589_v62 = vmul.f32 36.0, %v5585_v36  ;;  %v5592_v35 = vmul.f32 36.0, %v5588_v45 }
 0x37c   : > { %9519 = vmatprep.subr.bf16.mxu0 %v10072_v13  ;;  %v5595_v3 = vsub.f32 %v5579_v21, %v5591_v41 }
 0x37d   : > { %9360 = vmatpush3.bf16.msra.mxu1 %v10071_v15 }
 0x37e   : > { %9361 = vmatprep.subr.bf16.mxu1 %v10073_v16  ;;  %v5599_v47 = vmul.f32 0.16666667, %v5595_v3 }
 0x37f   : > { %9520 = vmatpush3.bf16.msra.mxu0 %v10072_v13  ;;  %v5593_v13 = vsub.f32 %v5577_v48, %v5589_v62 }
 0x380   : > { %9521 = vmatprep.subr.bf16.mxu0 %v10074_v39  ;;  %v5603_v15 = vfloor.f32 %v5599_v47 }
 0x381   : > { %9362 = vmatpush3.bf16.msra.mxu1 %v10073_v16  ;;  %v5505_v16 = vld [vmem:[#allocation2 + $0x8] sm:$0xff] }
 0x382   : > { %9363 = vmatprep.subr.bf16.mxu1 %v10075_v49  ;;  %vm5627_vm1 = vcmp.ge.f32.partialorder %v5603_v15, 1.0  ;;  %vm5635_vm7 = vcmp.le.f32.partialorder %v5603_v15, 4.0 }
 0x383   : > { %9522 = vmatpush3.bf16.msra.mxu0 %v10074_v39  ;;  %v5506_v39 = vld [vmem:[#allocation2 + $0x10] sm:$0x7f]  ;;  %vm5631_vm6 = vmand %vm5623_vm10, %vm5627_vm1 }
 0x384   : > { %9523 = vmatprep.subr.bf16.mxu0 %v10076_v43  ;;  %v5513_v27 = vrot.slane %v5506_v39, 4  ;;  %vm5639_vm12 = vmand %vm5631_vm6, %vm5635_vm7 }
 0x385   : > { %9364 = vmatpush3.bf16.msra.mxu1 %v10075_v49  ;;  %v5596_v49 = vsub.f32 %v5580_v50, %v5592_v35  ;;  %vm12067_vm7 = vmand %vm5614_vm9, %vm5618_vm15 }
 0x386   : > { %9365 = vmatprep.subr.bf16.mxu1 %v10077_v55  ;;  %v5522_v24 = vunpack.c.l.bf16 %v5513_v27 }
 0x387   : > { %9524 = vmatpush3.bf16.msra.mxu0 %v10076_v43  ;;  %v5594_v43 = vsub.f32 %v5578_v29, %v5590_v54  ;;  %v5600_v59 = vmul.f32 0.16666667, %v5596_v49  ;;  %v12101_v29 = vld [vmem:[%s12277_s6] ss:$0 sm:$0xff] }
 0x388   : > { %9525 = vmatprep.subr.bf16.mxu0 %v10078_v42  ;;  %v5558_v47 = vrot.slane %v5522_v24, 6 }
 0x389   : > { %9366 = vmatpush3.bf16.msra.mxu1 %v10077_v55  ;;  %v6928_v55 = vstv %s6927_s11 }
 0x38a   : > { %9367 = vmatprep.subr.bf16.mxu1 %v10079_v57  ;;  %v12072_v12 = vadd.s32 %v6928_v55, %v10867_v63 }
 0x38b   : > { %9526 = vmatpush3.bf16.msra.mxu0 %v10078_v42  ;;  %v5607_v42 = vmul.f32 6.0, %v5603_v15 }
 0x38c   : > { %9527 = vmatprep.subr.bf16.mxu0 %v10080_v46  ;;  %v6934_v9 = vcvt.s32.f32 %v12072_v12 }
 0x38d   : > { %9368 = vmatpush3.bf16.msra.mxu1 %v10079_v57  ;;  %v5511_v57 = vrot.slane %v5505_v16, 4  ;;  %v5611_v0 = vsub.f32 %v5595_v3, %v5607_v42  ;;  %v12114_v3 = vld [vmem:[%s12278_s7] ss:$0 sm:$0xff] }
 0x38e   : > { %9369 = vmatprep.subr.bf16.mxu1 %v10081_v60 }
 0x38f   : > { %9528 = vmatpush3.bf16.msra.mxu0 %v10080_v46  ;;  %v5597_v46 = vmul.f32 0.16666667, %v5593_v13  ;;  %v5514_v6 = vsel %vm12356_vm3, %v5511_v57, %v5513_v27  ;;  %vm5643_vm2 = vcmp.ge.f32.partialorder %v5611_v0, 1.0  ;;  %vm5651_vm1 = vcmp.le.f32.partialorder %v5611_v0, 4.0  ;;  %vm5624_vm3 = vmand %vm5616_vm5, %vm5620_vm13 }
 0x390   : > { %9529 = vmatprep.subr.bf16.mxu0 %v10082_v61  ;;  %vm12055_vm8 = vmand %vm5639_vm12, %vm5643_vm2 }
 0x391   : > { %9370 = vmatpush3.bf16.msra.mxu1 %v10081_v60  ;;  %v12040_v60 = vadd.s32 %v6928_v55, %v10818_v8  ;;  %v5601_v28 = vfloor.f32 %v5597_v46  ;;  %v5512_v8 = vsel %vm12357_vm0, %v5510_v14, %v5511_v57  ;;  %vm12082_vm2 = vmand %vm12055_vm8, %vm5651_vm1  ;;  %v6938_v57 = vmul.f32 0.027777778, %v6934_v9 }
 0x393   : > { %9530 = vmatpush3.bf16.msra.mxu0 %v10082_v61  ;;  %v5598_v61 = vmul.f32 0.16666667, %v5594_v43  ;;  %v6935_v51 = vcvt.s32.f32 %v12040_v60  ;;  %v5605_v53 = vmul.f32 6.0, %v5601_v28  ;;  %vm5625_vm10 = vcmp.ge.f32.partialorder %v5601_v28, 1.0 }
 0x394   : > { %9372 = vmatmul.mubr.bf16.vlgmr.msra.gmra.mrb[8].mxu1 %v5400_v44  ;;  %9535 = vmatprep.subr.bf16.mxu0 %v10083_v1  ;;  %v5520_v44 = vunpack.c.l.bf16 %v5514_v6  ;;  %vm12076_vm11 = vmand %vm12047_vm14, %vm5625_vm10  ;;  %vm5633_vm12 = vcmp.le.f32.partialorder %v5601_v28, 4.0 }
 0x395   : > { %v5602_v26 = vfloor.f32 %v5598_v61  ;;  %v5609_v2 = vsub.f32 %v5593_v13, %v5605_v53  ;;  %vm12106_vm9 = vmand %vm12076_vm11, %vm5633_vm12 }
 0x396   : > { %9532 = vmatmul.mubr.bf16.vlgmr.msra.gmra.mrb[8].mxu0 %v6629_v5  ;;  %v6939_v5 = vmul.f32 0.027777778, %v6935_v51  ;;  %v5554_v17 = vrot.slane %v5520_v44, 6 }
 0x397   : > { %9536 = vmatpush3.bf16.msra.mxu0 %v10083_v1  ;;  %9551 = vmatprep.mubr.bf16.mxu0 %v6754_v7  ;;  %v5604_v1 = vfloor.f32 %v5600_v59  ;;  %v5521_v7 = vunpack.c.h.bf16 %v5514_v6  ;;  %vm5626_vm4 = vcmp.ge.f32.partialorder %v5602_v26, 1.0  ;;  %vm5634_vm14 = vcmp.le.f32.partialorder %v5602_v26, 4.0 }
 0x398   : > { %9537 = vmatprep.subr.bf16.mxu0 %v10084_v40  ;;  %v6943_v52 = vfloor.f32 %v6939_v5  ;;  %vm12093_vm13 = vmand %vm12067_vm7, %vm5626_vm4  ;;  %vm5641_vm15 = vcmp.ge.f32.partialorder %v5609_v2, 1.0  ;;  %vm5649_vm4 = vcmp.le.f32.partialorder %v5609_v2, 4.0 }
 0x399   : > { %vm5628_vm6 = vcmp.ge.f32.partialorder %v5604_v1, 1.0  ;;  %vm5636_vm5 = vcmp.le.f32.partialorder %v5604_v1, 4.0  ;;  %v5556_v37 = vrot.slane %v5521_v7, 6  ;;  %vm12125_vm1 = vmand %vm12093_vm13, %vm5634_vm14  ;;  %v7954_v7 = vsel %vm12082_vm2, 1.0, %v10106_v30 }
 0x39a   : > { %vm12086_vm0 = vmand %vm5624_vm3, %vm5628_vm6  ;;  %v6947_v45 = vmul.f32 36.0, %v6943_v52  ;;  %vm12378_vm6 = vcmask 1041408   ;;  %vm6971_vm2 = vcmp.ge.s32.totalorder %v12040_v60, 0 }
 0x39b   : > { %9538 = vmatpush3.bf16.msra.mxu0 %v10084_v40  ;;  %v5608_v40 = vmul.f32 6.0, %v5604_v1  ;;  %vm12119_vm8 = vmand %vm12086_vm0, %vm5636_vm5  ;;  %v5557_v15 = vsel %vm12378_vm6, %v5554_v17, %v5556_v37 }
 0x39c   : > { %9539 = vmatprep.subr.bf16.mxu0 %v10085_v31  ;;  %vm12135_vm7 = vmand %vm12106_vm9, %vm5641_vm15  ;;  %v6951_v61 = vsub.f32 %v6935_v51, %v6947_v45 }
 0x39d   : > { %vm12381_vm11 = vmmov %vm12378_vm6 }
 0x39e   : > { %vm12168_vm14 = vmand %vm12135_vm7, %vm5649_vm4 }
 0x39f   : > { %9540 = vmatpush3.bf16.msra.mxu0 %v10085_v31  ;;  %vm12388_vm9 = vmmov %vm12378_vm6 }
 0x3a0   : > { %9541 = vmatprep.subr.bf16.mxu0 %v10086_v22  ;;  %v5559_v14 = vsel %vm12388_vm9, %v5556_v37, %v5558_v47 }
 0x3a3   : > { %9542 = vmatpush3.bf16.msra.mxu0 %v10086_v22  ;;  %v5606_v22 = vmul.f32 6.0, %v5602_v26 }
 0x3a4   : > { %9543 = vmatprep.subr.bf16.mxu0 %v10087_v34 }
 0x3a5   : > { %v5610_v63 = vsub.f32 %v5594_v43, %v5606_v22  ;;  %v6955_v22 = vmul.f32 0.16666667, %v6951_v61 }
 0x3a7   : > { %9544 = vmatpush3.bf16.msra.mxu0 %v10087_v34  ;;  %v12060_v34 = vadd.s32 %v6928_v55, %v10811_v4  ;;  %vm5642_vm3 = vcmp.ge.f32.partialorder %v5610_v63, 1.0  ;;  %vm5650_vm13 = vcmp.le.f32.partialorder %v5610_v63, 4.0  ;;  %v7952_v4 = vsel %vm12168_vm14, 1.0, %v10106_v30 }
 0x3a8   : > { %9545 = vmatprep.subr.bf16.mxu0 %v10088_v19  ;;  %vm12158_vm5 = vmand %vm12125_vm1, %vm5642_vm3  ;;  %v6959_v37 = vfloor.f32 %v6955_v22  ;;  %vm6975_vm1 = vcmp.lt.s32.totalorder %v12040_v60, 72 }
 0x3a9   : > { %v6933_v11 = vcvt.s32.f32 %v12060_v34  ;;  %vm6979_vm3 = vmand %vm6971_vm2, %vm6975_vm1 }
 0x3aa   : > { %v6963_v47 = vmul.f32 6.0, %v6959_v37  ;;  %vm6991_vm4 = vcmp.le.f32.partialorder %v6959_v37, 4.0 }
 0x3ab   : > { %9546 = vmatpush3.bf16.msra.mxu0 %v10088_v19  ;;  %v5518_v19 = vunpack.c.l.bf16 %v5512_v8  ;;  %v6937_v35 = vmul.f32 0.027777778, %v6933_v11 }
 0x3ac   : > { %9547 = vmatprep.subr.bf16.mxu0 %v10089_v23 }
 0x3ad   : > { %v5551_v41 = vrot.slane %v5518_v19, 6  ;;  %v6941_v1 = vfloor.f32 %v6937_v35  ;;  %v6861_v35 = vld [vmem:[#allocation2 + $0x18] sm:$0xff] }
 0x3ae   : > { %v6867_v16 = vrot.slane %v6861_v35, 4 }
 0x3af   : > { %9548 = vmatpush3.bf16.msra.mxu0 %v10089_v23  ;;  %v12063_v23 = vadd.s32 %v6928_v55, %v10864_v33  ;;  %v5612_v33 = vsub.f32 %v5596_v49, %v5608_v40  ;;  %v6942_v40 = vfloor.f32 %v6938_v57 }
 0x3b0   : > { %9549 = vmatprep.subr.bf16.mxu0 %v10090_v58 }
 0x3b1   : > { %v6936_v50 = vcvt.s32.f32 %v12063_v23  ;;  %vm5644_vm10 = vcmp.ge.f32.partialorder %v5612_v33, 1.0  ;;  %vm5652_vm0 = vcmp.le.f32.partialorder %v5612_v33, 4.0  ;;  %v6946_v63 = vmul.f32 36.0, %v6942_v40 }
 0x3b2   : > { %vm12147_vm12 = vmand %vm12119_vm8, %vm5644_vm10  ;;  %vm6972_vm14 = vcmp.ge.s32.totalorder %v12063_v23, 0  ;;  %vm6976_vm9 = vcmp.lt.s32.totalorder %v12063_v23, 72 }
 0x3b3   : > { %9550 = vmatpush3.bf16.msra.mxu0 %v10090_v58  ;;  %v5519_v58 = vunpack.c.h.bf16 %v5512_v8  ;;  %v6940_v39 = vmul.f32 0.027777778, %v6936_v50  ;;  %vm5656_vm15 = vmand %vm12147_vm12, %vm5652_vm0  ;;  %vm6973_vm12 = vcmp.lt.s32.totalorder %v12060_v34, 72 }
 0x3b4   : > { %vm12389_vm8 = vmmov %vm12378_vm6  ;;  %vm6983_vm6 = vcmp.ge.f32.partialorder %v6959_v37, 1.0 }
 0x3b5   : > { %v5552_v56 = vrot.slane %v5519_v58, 6  ;;  %v6944_v8 = vfloor.f32 %v6940_v39  ;;  %vm5654_vm10 = vmand %vm12158_vm5, %vm5650_vm13  ;;  %v7955_v58 = vsel %vm5656_vm15, 1.0, %v10106_v30  ;;  %vm12390_vm13 = vcmask 1043456  }
 0x3b6   : > { %9552 = vmatmul.mubr.bf16.vlgmr.msra.gmra.mrb[8].mxu0 %v6756_v25  ;;  %v6945_v25 = vmul.f32 36.0, %v6941_v1  ;;  %v7953_v52 = vsel %vm5654_vm10, 1.0, %v10106_v30  ;;  %vm6987_vm7 = vmand %vm6979_vm3, %vm6983_vm6  ;;  %vm6974_vm10 = vcmp.lt.s32.totalorder %v12072_v12, 72 }
 0x3b7   : > { %v5553_v43 = vsel %vm12381_vm11, %v5551_v41, %v5552_v56  ;;  %v5555_v44 = vsel %vm12389_vm8, %v5552_v56, %v5554_v17  ;;  %v6948_v24 = vmul.f32 36.0, %v6944_v8  ;;  %vm6969_vm11 = vcmp.ge.s32.totalorder %v12060_v34, 0  ;;  %vm6995_vm0 = vmand %vm6987_vm7, %vm6991_vm4 }
 0x3b8   : > { %v6949_v56 = vsub.f32 %v6933_v11, %v6945_v25  ;;  %vm12217_vm15 = vmand %vm6969_vm11, %vm6973_vm12  ;;  %vm6970_vm8 = vcmp.ge.s32.totalorder %v12072_v12, 0 }
 0x3b9   : > { %v6952_v36 = vsub.f32 %v6936_v50, %v6948_v24  ;;  %v6860_v50 = vld [vmem:[#allocation2 + $0x10] sm:$0x80]  ;;  %vm12395_vm1 = vmmov %vm12390_vm13 }
 0x3ba   : > { %v6953_v62 = vmul.f32 0.16666667, %v6949_v56  ;;  %vm6980_vm6 = vmand %vm6972_vm14, %vm6976_vm9 }
 0x3bb   : > { %v6956_v11 = vmul.f32 0.16666667, %v6952_v36  ;;  %vm6978_vm11 = vmand %vm6970_vm8, %vm6974_vm10 }
 0x3bc   : > { %v6957_v60 = vfloor.f32 %v6953_v62 }
 0x3be   : > { %v6961_v42 = vmul.f32 6.0, %v6957_v60  ;;  %vm6981_vm3 = vcmp.ge.f32.partialorder %v6957_v60, 1.0 }
 0x467   : > { %v9373_v38 = vpop.f32.mrb[8].mxu1 }
 0x468   : > { %v5532_v54 = vmul.f32 %v9373_v38, %v12101_v29  ;;  %v5485_v13 = vpop.f32.mrb[9].mxu1  ;;  %v6950_v38 = vsub.f32 %v6934_v9, %v6946_v63 }
 0x469   : > { %v5530_v49 = vmul.f32 %v12101_v29, %v5485_v13  ;;  %v9374_v55 = vpop.f32.mrb[10].mxu1  ;;  %v6967_v13 = vsub.f32 %v6951_v61, %v6963_v47  ;;  %v6965_v61 = vsub.f32 %v6949_v56, %v6961_v42 }
 0x46a   : > { %v5543_v27 = vadd.f32 %v12114_v3, %v5532_v54  ;;  %v5533_v46 = vmul.f32 %v9374_v55, %v12101_v29  ;;  %v5488_v10 = vpop.f32.mrb[11].mxu1  ;;  %v6862_v54 = vld [vmem:[#allocation2 + $0x20] sm:$0x7f] }
 0x46b   : > { %v5541_v0 = vadd.f32 %v12114_v3, %v5530_v49  ;;  %v5531_v28 = vmul.f32 %v12101_v29, %v5488_v10  ;;  %v6869_v39 = vrot.slane %v6862_v54, 4  ;;  %v6960_v49 = vfloor.f32 %v6956_v11 }
 0x46c   : > { %v5566_v26 = vadd.f32 %v5557_v15, %v5543_v27  ;;  %v5544_v51 = vadd.f32 %v12114_v3, %v5533_v46  ;;  %v6954_v15 = vmul.f32 0.16666667, %v6950_v38  ;;  %vm6999_vm5 = vcmp.ge.f32.partialorder %v6967_v13, 1.0 }
 0x46d   : > { %v5564_v53 = vadd.f32 %v5553_v43, %v5541_v0  ;;  %v5542_v18 = vadd.f32 %v12114_v3, %v5531_v28  ;;  %v6866_v43 = vrot.slane %v6860_v50, 4  ;;  %v6870_v55 = vsel %vm12390_vm13, %v6867_v16, %v6869_v39  ;;  %vm12223_vm2 = vmand %vm6995_vm0, %vm6999_vm5 }
 0x46e   : > { %v5570_v5 = vmax.f32 %v5566_v26, 0.0  ;;  %v5567_v31 = vadd.f32 %v5559_v14, %v5544_v51  ;;  %v6958_v9 = vfloor.f32 %v6954_v15  ;;  %v6964_v27 = vmul.f32 6.0, %v6960_v49  ;;  %vm6985_vm0 = vmand %vm12217_vm15, %vm6981_vm3 }
 0x46f   : > { %v5568_v19 = vmax.f32 %v5564_v53, 0.0  ;;  %v5565_v2 = vadd.f32 %v5555_v44, %v5542_v18  ;;  %v6868_v46 = vsel %vm12395_vm1, %v6866_v43, %v6867_v16  ;;  %v6876_v59 = vunpack.c.l.bf16 %v6870_v55 }
 0x470   : > { %v5571_v33 = vmax.f32 %v5567_v31, 0.0  ;;  %v5667_v21 = vmul.f32 %v7954_v7, %v5570_v5  ;;  %v6962_v10 = vmul.f32 6.0, %v6958_v9  ;;  %vm6984_vm7 = vcmp.ge.f32.partialorder %v6960_v49, 1.0 }
 0x471   : > { %v5569_v32 = vmax.f32 %v5565_v2, 0.0  ;;  %v5665_v48 = vmul.f32 %v7952_v4, %v5568_v19  ;;  %v6877_v23 = vunpack.c.h.bf16 %v6870_v55  ;;  %vm7007_vm4 = vcmp.le.f32.partialorder %v6967_v13, 4.0  ;;  %vm6988_vm13 = vmand %vm6980_vm6, %vm6984_vm7 }
 0x472   : > { %v5668_v17 = vmul.f32 %v7955_v58, %v5571_v33  ;;  %vm6982_vm12 = vcmp.ge.f32.partialorder %v6958_v9, 1.0  ;;  %v6874_v0 = vunpack.c.l.bf16 %v6868_v46  ;;  %v6875_v6 = vunpack.c.h.bf16 %v6868_v46  ;;  %vm12232_vm14 = vmand %vm12223_vm2, %vm7007_vm4 }
 0x473   : > { %v5666_v41 = vmul.f32 %v7953_v52, %v5569_v32  ;;  %vm6989_vm5 = vcmp.le.f32.partialorder %v6957_v60, 4.0  ;;  %v6968_v12 = vsub.f32 %v6952_v36, %v6964_v27  ;;  %v6878_v14 = vunpack.c.l.bf16 %v6869_v39  ;;  %vm6986_vm9 = vmand %vm6978_vm11, %vm6982_vm12 }
 0x474   : > { %v8190_v20 = vpack.c.bf16 %v5668_v17, %v5667_v21  ;;  %vm6992_vm1 = vcmp.le.f32.partialorder %v6960_v49, 4.0  ;;  %v6966_v28 = vsub.f32 %v6950_v38, %v6962_v10  ;;  %vm6990_vm8 = vcmp.le.f32.partialorder %v6958_v9, 4.0  ;;  %vm6993_vm10 = vmand %vm6985_vm0, %vm6989_vm5 }
 0x475   : > { %v8185_v45 = vpack.c.bf16 %v5666_v41, %v5665_v48  ;;  %v6909_v26 = vrot.slane %v6876_v59, 6  ;;  %v6911_v51 = vrot.slane %v6877_v23, 6  ;;  %vm6997_vm3 = vcmp.ge.f32.partialorder %v6965_v61, 1.0  ;;  %vm6996_vm15 = vmand %vm6988_vm13, %vm6992_vm1 }
 0x476   : > { %8202 = vst [vmem:[%s12200_s20 + $0x8] sm:$0xff] %v8190_v20   ;;  %v6906_v44 = vrot.slane %v6874_v0, 6  ;;  %v6907_v8 = vrot.slane %v6875_v6, 6  ;;  %vm7000_vm6 = vcmp.ge.f32.partialorder %v6968_v12, 1.0  ;;  %v6913_v18 = vrot.slane %v6878_v14, 6  ;;  %vm12236_vm7 = vmand %vm6986_vm9, %vm6990_vm8 }
 0x477   : > { %8186 = vst [vmem:[%s12200_s20] sm:$0xff] %v8185_v45   ;;  %vm6998_vm2 = vcmp.ge.f32.partialorder %v6966_v28, 1.0  ;;  %vm7001_vm4 = vmand %vm6993_vm10, %vm6997_vm3  ;;  %vm7005_vm11 = vcmp.le.f32.partialorder %v6965_v61, 4.0  ;;  %vm12400_vm12 = vcmask 1041408   ;;  %vm7008_vm5 = vcmp.le.f32.partialorder %v6968_v12, 4.0 }
 0x478   : > { %v6912_v31 = vsel %vm12400_vm12, %v6909_v26, %v6911_v51  ;;  %vm7004_vm0 = vmand %vm6996_vm15, %vm7000_vm6  ;;  %vm7006_vm9 = vcmp.le.f32.partialorder %v6966_v28, 4.0  ;;  %v8164_v20 = vsel %vm12232_vm14, 1.0, %v10106_v30 }
 0x479   : > { %vm12401_vm13 = vmmov %vm12400_vm12 }
 0x47a   : > { %v6908_v2 = vsel %vm12401_vm13, %v6906_v44, %v6907_v8  ;;  %vm7002_vm1 = vmand %vm12236_vm7, %vm6998_vm2 }
 0x47b   : > { %vm12249_vm8 = vmand %vm7001_vm4, %vm7005_vm11 }
 0x47c   : > { %vm12404_vm10 = vmmov %vm12400_vm12  ;;  %v8162_v38 = vsel %vm12249_vm8, 1.0, %v10106_v30 }
 0x47d   : > { %v6914_v24 = vsel %vm12404_vm10, %v6911_v51, %v6913_v18  ;;  %vm7012_vm3 = vmand %vm7004_vm0, %vm7008_vm5 }
 0x47e   : > { %vm12405_vm15 = vmmov %vm12404_vm10 }
 0x47f   : > { %v6910_v17 = vsel %vm12405_vm15, %v6907_v8, %v6909_v26  ;;  %vm7010_vm6 = vmand %vm7002_vm1, %vm7006_vm9 }
 0x489   : > { %v9553_v53 = vpop.f32.mrb[8].mxu0 }
 0x48a   : > { %v6888_v5 = vmul.f32 %v9553_v53, %v12101_v29  ;;  %v6841_v7 = vpop.f32.mrb[9].mxu0 }
 0x48b   : > { %v6886_v22 = vmul.f32 %v12101_v29, %v6841_v7  ;;  %v9554_v19 = vpop.f32.mrb[10].mxu0 }
 0x48c   : > { %v6899_v58 = vadd.f32 %v12114_v3, %v6888_v5  ;;  %v6889_v25 = vmul.f32 %v9554_v19, %v12101_v29  ;;  %v6844_v4 = vpop.f32.mrb[11].mxu0 }
 0x48d   : > { %v6897_v33 = vadd.f32 %v12114_v3, %v6886_v22  ;;  %v6887_v32 = vmul.f32 %v12101_v29, %v6844_v4  ;;  %v8165_v29 = vsel %vm7012_vm3, 1.0, %v10106_v30 }
 0x48e   : > { %v6921_v63 = vadd.f32 %v6912_v31, %v6899_v58  ;;  %v6900_v21 = vadd.f32 %v12114_v3, %v6889_v25 }
 0x48f   : > { %v6919_v37 = vadd.f32 %v6908_v2, %v6897_v33  ;;  %v6898_v48 = vadd.f32 %v12114_v3, %v6887_v32  ;;  %v8163_v3 = vsel %vm7010_vm6, 1.0, %v10106_v30 }
 0x490   : > { %v6925_v41 = vmax.f32 %v6921_v63, 0.0  ;;  %v6922_v56 = vadd.f32 %v6914_v24, %v6900_v21 }
 0x491   : > { %v6923_v36 = vmax.f32 %v6919_v37, 0.0  ;;  %v6920_v45 = vadd.f32 %v6910_v17, %v6898_v48 }
 0x492   : > { %v6926_v47 = vmax.f32 %v6922_v56, 0.0  ;;  %v7023_v35 = vmul.f32 %v8164_v20, %v6925_v41 }
 0x493   : > { %v6924_v62 = vmax.f32 %v6920_v45, 0.0  ;;  %v7021_v11 = vmul.f32 %v8162_v38, %v6923_v36 }
 0x494   : > { %v7024_v54 = vmul.f32 %v8165_v29, %v6926_v47 }
 0x495   : > { %v7022_v15 = vmul.f32 %v8163_v3, %v6924_v62 }
 0x496   : > { %v8200_v13 = vpack.c.bf16 %v7024_v54, %v7023_v35 }
 0x497   : > { %v8195_v50 = vpack.c.bf16 %v7022_v15, %v7021_v11 }
 0x498   : > { %8204 = vst [vmem:[%s12200_s20 + $0x18] sm:$0xff] %v8200_v13  }
 0x499   : > { %8203 = vst [vmem:[%s12200_s20 + $0x10] sm:$0xff] %v8195_v50  }
 0x49a PF: > { %s18_s27 = sadd.s32 1, %s10104_s27  }
 0x49b   : > { %p15_p6 = scmp.ge.s32.totalorder %s18_s27, 4  }
 0x49d   :  { %17 = sbr.rel (!%p15_p6) target bundleno = 1 (0x1), region = 101 }

</bundles_post_ra>
